<compile_context>
chip_gen: v7x
topology: tpu7x:2x2x1
jax: 0.10.0
libtpu: 0.0.40
codegen_flags: <defaults>
</compile_context>

<pallas_src>
import math

import jax
import jax.numpy as jnp
from jax import lax
from jax.experimental import pallas as pl
from jax.experimental.pallas import tpu as pltpu

HIDDEN = 300   # logical hidden size (hard-coded in the module)
HP = 384       # lane-padded hidden size (3 x 128)


def bigru_kernel(
    x_ref,                                   # (T*Bp, D) bf16, time-major, batch-padded
    wih_f_ref, bih_f_ref, bhhn_f_ref,        # (D,3Hp) bf16, (1,3Hp) f32, (1,Hp) f32
    wih_b_ref, bih_b_ref, bhhn_b_ref,        # (D,3Hp) bf16, (1,3Hp) f32, (1,Hp) f32
    wd_bot_ref, bd_ref,                      # (Hp,Hp) bf16, (1,Hp) f32
    whh_f_hbm, wd_top_hbm,                   # (Hp,3Hp) bf16, (Hp,Hp) bf16  [pl.ANY]
    out_ref,                                 # (Bp, Hp) f32
    gi_ref,                                  # VMEM scratch (T*Bp, 3Hp) f32
    whh_vmem,                                # VMEM scratch (Hp, 3Hp) bf16
    wd_top_vmem,                             # VMEM scratch (Hp, Hp) bf16
    copy_sem,                                # DMA semaphores (2,)
):
    TB, _ = x_ref.shape
    Bp, Hp = out_ref.shape
    T = TB // Bp
    H3 = 3 * Hp

    # ---- Kick off the large weight DMAs immediately so they overlap the
    # input-side compute below (grid-less call => no auto-pipelining).
    whh_cp = pltpu.make_async_copy(whh_f_hbm, whh_vmem, copy_sem.at[0])
    wd_cp = pltpu.make_async_copy(wd_top_hbm, wd_top_vmem, copy_sem.at[1])
    whh_cp.start()
    wd_cp.start()

    # ---- Hoisted input-to-hidden matmul for ALL time steps (off the serial
    # h-dependency chain), input bias (+ folded r/z recurrent bias) included.
    gi_ref[...] = (
        jnp.dot(x_ref[...], wih_f_ref[...], preferred_element_type=jnp.float32)
        + bih_f_ref[...]
    )

    # ---- Backward direction (hoisted ABOVE the serial loop): the reverse-GRU
    # output at the last time index is its first step from a zero hidden
    # state, so h @ Whh_b == 0 and z*h == 0 algebraically.
    x_last = x_ref[(T - 1) * Bp:T * Bp, :]
    gi_b = (
        jnp.dot(x_last, wih_b_ref[...], preferred_element_type=jnp.float32)
        + bih_b_ref[...]
    )
    r_b = jax.nn.sigmoid(gi_b[:, 0:Hp])
    z_b = jax.nn.sigmoid(gi_b[:, Hp:2 * Hp])
    n_b = jnp.tanh(gi_b[:, 2 * Hp:H3] + r_b * bhhn_b_ref[...])
    h_bwd = (1.0 - z_b) * n_b

    # Backward half of the dense, issued before the loop so this MXU work
    # overlaps the whh_f DMA wait / first recurrence steps.
    feat_b = jnp.maximum(h_bwd, 0.0).astype(jnp.bfloat16)
    y_bwd = jnp.dot(feat_b, wd_bot_ref[...], preferred_element_type=jnp.float32)

    # Hoisted broadcast of the (1, Hp) n-gate recurrent bias
    # (JAX does not CSE broadcast_in_dim inside loops).
    bhhn_bc = jnp.broadcast_to(bhhn_f_ref[...], (Bp, Hp))

    # Need Whh in VMEM from here on.
    whh_cp.wait()

    h0 = jnp.zeros((Bp, Hp), jnp.float32)

    # ---- Forward recurrence: one fused (Bp,Hp)@(Hp,3Hp) MXU launch per step.
    def step(t, h):
        start = pl.multiple_of(t * Bp, Bp)
        gi = gi_ref[pl.ds(start, Bp), :]                          # (Bp, 3Hp) f32
        gh = jnp.dot(h.astype(jnp.bfloat16), whh_vmem[...],
                     preferred_element_type=jnp.float32)          # (Bp, 3Hp) f32
        r = jax.nn.sigmoid(gi[:, 0:Hp] + gh[:, 0:Hp])
        z = jax.nn.sigmoid(gi[:, Hp:2 * Hp] + gh[:, Hp:2 * Hp])
        n = jnp.tanh(gi[:, 2 * Hp:H3] + r * (gh[:, 2 * Hp:H3] + bhhn_bc))
        return n + z * (h - n)

    h_fwd = lax.fori_loop(0, T, step, h0, unroll=True)

    # ---- relu -> (dropout = identity) -> dense(2H -> H) as two summed halves
    # -> relu.  wd_top DMA has had the whole recurrence to complete.
    wd_cp.wait()
    feat_f = jnp.maximum(h_fwd, 0.0).astype(jnp.bfloat16)
    y = (jnp.dot(feat_f, wd_top_vmem[...], preferred_element_type=jnp.float32)
         + y_bwd + bd_ref[...])
    out_ref[...] = jnp.maximum(y, 0.0)


# ----------------------------------------------------------------------------
# Parameter handling
# ----------------------------------------------------------------------------
def make_params(key, input_size):
    """Deterministic synthetic parameters in PyTorch-like logical layout."""
    H, D = HIDDEN, input_size
    k_gru = 1.0 / math.sqrt(H)
    k_fc = 1.0 / math.sqrt(2 * H)
    ks = jax.random.split(key, 10)
    u = lambda kk, shape, lim: jax.random.uniform(kk, shape, jnp.float32, -lim, lim)

    wih_f = u(ks[0], (3, D, H), k_gru)   # gate order (r, z, n)
    whh_f = u(ks[1], (3, H, H), k_gru)
    bih_f = u(ks[2], (3, H), k_gru)
    bhh_f = u(ks[3], (3, H), k_gru)
    wih_b = u(ks[4], (3, D, H), k_gru)
    whh_b = u(ks[5], (3, H, H), k_gru)
    bih_b = u(ks[6], (3, H), k_gru)
    bhh_b = u(ks[7], (3, H), k_gru)
    wd = u(ks[8], (2 * H, H), k_fc)      # Linear(600, 300) weight, pre-transposed
    bd = u(ks[9], (H,), k_fc)
    return (wih_f, whh_f, bih_f, bhh_f, wih_b, whh_b, bih_b, bhh_b, wd, bd)


def _fuse_w(w3, rows_pad):
    """(3, rows, H) -> (rows_pad, 3*HP) bf16: gates fused along lanes, zero-padded."""
    rows = w3.shape[1]
    out = jnp.zeros((rows_pad, 3 * HP), jnp.float32)
    for g in range(3):
        out = out.at[:rows, g * HP:g * HP + HIDDEN].set(w3[g])
    return out.astype(jnp.bfloat16)


def _fuse_b(b3):
    """(3, H) -> (1, 3*HP) f32."""
    out = jnp.zeros((1, 3 * HP), jnp.float32)
    for g in range(3):
        out = out.at[:, g * HP:g * HP + HIDDEN].set(b3[g][None, :])
    return out


def _pad_vec(v):
    """(H,) -> (1, HP) f32."""
    return jnp.zeros((1, HP), jnp.float32).at[:, :HIDDEN].set(v[None, :])


def _pack_params(params, input_size):
    """Logical params -> lane-padded, gate-fused, bf16-cast kernel arguments."""
    (wih_f, whh_f, bih_f, bhh_f,
     wih_b, whh_b, bih_b, bhh_b, wd, bd) = params
    del whh_b  # multiplied by the zero initial reverse state -> dead weight
    D = input_size

    # r/z components of the recurrent bias always add linearly to the gate
    # pre-activation -> fold into the input bias; only the n-gate recurrent
    # bias must stay inside the r*( . ) term.
    bih_f_eff = bih_f.at[0].add(bhh_f[0]).at[1].add(bhh_f[1])
    bih_b_eff = bih_b.at[0].add(bhh_b[0]).at[1].add(bhh_b[1])

    wih_f_p = _fuse_w(wih_f, D)
    whh_f_p = _fuse_w(whh_f, HP)
    bih_f_p = _fuse_b(bih_f_eff)
    bhhn_f_p = _pad_vec(bhh_f[2])

    wih_b_p = _fuse_w(wih_b, D)
    bih_b_p = _fuse_b(bih_b_eff)
    bhhn_b_p = _pad_vec(bhh_b[2])

    # Dense split into forward / backward halves (feat = [relu(h_f), relu(h_b)]).
    wd_top = (jnp.zeros((HP, HP), jnp.float32)
              .at[:HIDDEN, :HIDDEN].set(wd[:HIDDEN]).astype(jnp.bfloat16))
    wd_bot = (jnp.zeros((HP, HP), jnp.float32)
              .at[:HIDDEN, :HIDDEN].set(wd[HIDDEN:]).astype(jnp.bfloat16))
    bd_p = _pad_vec(bd)

    return (wih_f_p, bih_f_p, bhhn_f_p,
            wih_b_p, bih_b_p, bhhn_b_p,
            wd_bot, bd_p,
            whh_f_p, wd_top)      # last two go through memory_space=pl.ANY


# ----------------------------------------------------------------------------
# Wrapper
# ----------------------------------------------------------------------------
def bigru_forward(x, params):
    """x: (B, T, D) float32, batch-first (as in PyTorch). Returns (B, 300)."""
    B, T, D = x.shape
    Bp = max(8, ((B + 7) // 8) * 8)     # sublane-aligned batch
    packed = _pack_params(params, D)

    # Pad batch rows and flatten to time-major (T*Bp, D) so the hoisted input
    # matmul covers all steps and each step reads a sublane-aligned row slab.
    x_pad = jnp.pad(x.astype(jnp.float32), ((0, Bp - B), (0, 0), (0, 0)))
    x_tm = jnp.transpose(x_pad, (1, 0, 2)).reshape(T * Bp, D).astype(jnp.bfloat16)

    vmem = pl.BlockSpec(memory_space=pltpu.MemorySpace.VMEM)
    hbm = pl.BlockSpec(memory_space=pl.ANY)
    inputs = (x_tm,) + packed
    in_specs = [vmem] * (len(inputs) - 2) + [hbm, hbm]

    out = pl.pallas_call(
        bigru_kernel,
        out_shape=jax.ShapeDtypeStruct((Bp, HP), jnp.float32),
        in_specs=in_specs,
        out_specs=vmem,
        scratch_shapes=[
            pltpu.VMEM((T * Bp, 3 * HP), jnp.float32),    # hoisted gi
            pltpu.VMEM((HP, 3 * HP), jnp.bfloat16),       # whh_f landing buffer
            pltpu.VMEM((HP, HP), jnp.bfloat16),           # wd_top landing buffer
            pltpu.SemaphoreType.DMA((2,)),
        ],
    )(*inputs)
    return out[:B, :HIDDEN]


# ----------------------------------------------------------------------------
# Pure-JAX reference (logical, unpadded, f32) for the correctness check
# ----------------------------------------------------------------------------
def reference_forward(x, params):
    (wih_f, whh_f, bih_f, bhh_f,
     wih_b, whh_b, bih_b, bhh_b, wd, bd) = params

    def cell(x_t, h, wih, whh, bih, bhh):
        r = jax.nn.sigmoid(x_t @ wih[0] + bih[0] + h @ whh[0] + bhh[0])
        z = jax.nn.sigmoid(x_t @ wih[1] + bih[1] + h @ whh[1] + bhh[1])
        n = jnp.tanh(x_t @ wih[2] + bih[2] + r * (h @ whh[2] + bhh[2]))
        return (1.0 - z) * n + z * h

    B, T, _ = x.shape
    h = jnp.zeros((B, HIDDEN), jnp.float32)
    for t in range(T):
        h = cell(x[:, t, :], h, wih_f, whh_f, bih_f, bhh_f)
    hb = cell(x[:, -1, :], jnp.zeros((B, HIDDEN), jnp.float32),
              wih_b, whh_b, bih_b, bhh_b)
    feat = jnp.concatenate([jnp.maximum(h, 0.0), jnp.maximum(hb, 0.0)], axis=-1)
    return jnp.maximum(feat @ wd + bd, 0.0)


if __name__ == "__main__":
    # Small shapes consistent with the module: x is (batch, seq_len, TIME_STEPS)
    # where TIME_STEPS is the GRU input feature size.
    B, SEQ_LEN, TIME_STEPS = 2, 8, 16

    key = jax.random.PRNGKey(0)
    kx, kp = jax.random.split(key)
    x = jax.random.normal(kx, (B, SEQ_LEN, TIME_STEPS), jnp.float32)
    params = make_params(kp, TIME_STEPS)

    out = jax.block_until_ready(bigru_forward(x, params))
    ref = jax.block_until_ready(reference_forward(x, params))

    assert out.shape == (B, HIDDEN) and out.dtype == jnp.float32
    assert bool(jnp.all(jnp.isfinite(out)))
    # bf16 weights/activations with f32 accumulation + f32 gate math: error
    # stays well inside the 1e-2 band at these shapes.
    assert jnp.allclose(out, ref, atol=1e-2, rtol=1e-2)

    print("KERNEL_OK")
</pallas_src>

<mosaic_0001>
module attributes {stable_mosaic.version = 11 : i64} {
  func.func @bigru_kernel(%arg0: memref<64x16xbf16, #tpu.memory_space<vmem>>, %arg1: memref<16x1152xbf16, #tpu.memory_space<vmem>>, %arg2: memref<1x1152xf32, #tpu.memory_space<vmem>>, %arg3: memref<1x384xf32, #tpu.memory_space<vmem>>, %arg4: memref<16x1152xbf16, #tpu.memory_space<vmem>>, %arg5: memref<1x1152xf32, #tpu.memory_space<vmem>>, %arg6: memref<1x384xf32, #tpu.memory_space<vmem>>, %arg7: memref<384x384xbf16, #tpu.memory_space<vmem>>, %arg8: memref<1x384xf32, #tpu.memory_space<vmem>>, %arg9: memref<384x1152xbf16, #tpu.memory_space<any>>, %arg10: memref<384x384xbf16, #tpu.memory_space<any>>, %arg11: memref<8x384xf32, #tpu.memory_space<vmem>>, %arg12: memref<64x1152xf32, #tpu.memory_space<vmem>>, %arg13: memref<384x1152xbf16, #tpu.memory_space<vmem>>, %arg14: memref<384x384xbf16, #tpu.memory_space<vmem>>, %arg15: memref<2x!tpu.dma_semaphore, #tpu.memory_space<semaphore_mem>>) attributes {dimension_semantics = [], scalar_prefetch = 0 : i64, scratch_operands = 4 : i64, tpu.core_type = #tpu.core_type<tc>} {
    %c0_i32 = arith.constant 0 : i32
    %0 = tpu.memref_slice %arg15[%c0_i32] : memref<2x!tpu.dma_semaphore, #tpu.memory_space<semaphore_mem>> -> memref<1x!tpu.dma_semaphore, #tpu.memory_space<semaphore_mem>>
    %1 = tpu.memref_squeeze %0 : memref<1x!tpu.dma_semaphore, #tpu.memory_space<semaphore_mem>> -> memref<!tpu.dma_semaphore, #tpu.memory_space<semaphore_mem>>
    tpu.enqueue_dma source(%arg9 : memref<384x1152xbf16, #tpu.memory_space<any>>) target(%arg13 : memref<384x1152xbf16, #tpu.memory_space<vmem>>) target_semaphore(%1 : memref<!tpu.dma_semaphore, #tpu.memory_space<semaphore_mem>>)
    %c1_i32 = arith.constant 1 : i32
    %2 = tpu.memref_slice %arg15[%c1_i32] : memref<2x!tpu.dma_semaphore, #tpu.memory_space<semaphore_mem>> -> memref<1x!tpu.dma_semaphore, #tpu.memory_space<semaphore_mem>>
    %3 = tpu.memref_squeeze %2 : memref<1x!tpu.dma_semaphore, #tpu.memory_space<semaphore_mem>> -> memref<!tpu.dma_semaphore, #tpu.memory_space<semaphore_mem>>
    tpu.enqueue_dma source(%arg10 : memref<384x384xbf16, #tpu.memory_space<any>>) target(%arg14 : memref<384x384xbf16, #tpu.memory_space<vmem>>) target_semaphore(%3 : memref<!tpu.dma_semaphore, #tpu.memory_space<semaphore_mem>>)
    %c0 = arith.constant 0 : index
    %c0_0 = arith.constant 0 : index
    %4 = vector.load %arg0[%c0, %c0_0] : memref<64x16xbf16, #tpu.memory_space<vmem>>, vector<64x16xbf16>
    %c0_1 = arith.constant 0 : index
    %c0_2 = arith.constant 0 : index
    %5 = vector.load %arg1[%c0_1, %c0_2] : memref<16x1152xbf16, #tpu.memory_space<vmem>>, vector<16x1152xbf16>
    %cst = arith.constant dense<0.000000e+00> : vector<64x1152xf32>
    %6 = tpu.matmul %4, %5, %cst {dimension_numbers = #tpu.dot_dimension_numbers<[1], [0], [0], [1], [0, 0, 1, 1], [], []>} : vector<64x16xbf16>, vector<16x1152xbf16>, vector<64x1152xf32> -> vector<64x1152xf32>
    %c0_3 = arith.constant 0 : index
    %c0_4 = arith.constant 0 : index
    %7 = vector.load %arg2[%c0_3, %c0_4] : memref<1x1152xf32, #tpu.memory_space<vmem>>, vector<1x1152xf32>
    %8 = vector.broadcast %7 : vector<1x1152xf32> to vector<64x1152xf32>
    %9 = arith.addf %6, %8 : vector<64x1152xf32>
    %c0_5 = arith.constant 0 : index
    %c0_6 = arith.constant 0 : index
    %10 = vector.load %arg12[%c0_5, %c0_6] : memref<64x1152xf32, #tpu.memory_space<vmem>>, vector<64x1152xf32>
    tpu.vector_store %arg12[%c0_5, %c0_6], %9 {strides = array<i32>} : memref<64x1152xf32, #tpu.memory_space<vmem>>, vector<64x1152xf32>,
    %c56 = arith.constant 56 : index
    %c0_7 = arith.constant 0 : index
    %11 = vector.load %arg0[%c56, %c0_7] : memref<64x16xbf16, #tpu.memory_space<vmem>>, vector<8x16xbf16>
    %c0_8 = arith.constant 0 : index
    %c0_9 = arith.constant 0 : index
    %12 = vector.load %arg4[%c0_8, %c0_9] : memref<16x1152xbf16, #tpu.memory_space<vmem>>, vector<16x1152xbf16>
    %cst_10 = arith.constant dense<0.000000e+00> : vector<8x1152xf32>
    %13 = tpu.matmul %11, %12, %cst_10 {dimension_numbers = #tpu.dot_dimension_numbers<[1], [0], [0], [1], [0, 0, 1, 1], [], []>} : vector<8x16xbf16>, vector<16x1152xbf16>, vector<8x1152xf32> -> vector<8x1152xf32>
    %c0_11 = arith.constant 0 : index
    %c0_12 = arith.constant 0 : index
    %14 = vector.load %arg5[%c0_11, %c0_12] : memref<1x1152xf32, #tpu.memory_space<vmem>>, vector<1x1152xf32>
    %15 = vector.broadcast %14 : vector<1x1152xf32> to vector<8x1152xf32>
    %16 = arith.addf %13, %15 : vector<8x1152xf32>
    %17 = vector.extract_strided_slice %16 {offsets = [0, 0], sizes = [8, 384], strides = [1, 1]} : vector<8x1152xf32> to vector<8x384xf32>
    %18 = arith.negf %17 : vector<8x384xf32>
    %19 = math.exp %18 : vector<8x384xf32>
    %cst_13 = arith.constant 1.000000e+00 : f32
    %20 = vector.broadcast %cst_13 : f32 to vector<8x384xf32>
    %21 = arith.addf %20, %19 : vector<8x384xf32>
    %22 = arith.divf %20, %21 : vector<8x384xf32>
    %23 = vector.extract_strided_slice %16 {offsets = [0, 384], sizes = [8, 384], strides = [1, 1]} : vector<8x1152xf32> to vector<8x384xf32>
    %24 = arith.negf %23 : vector<8x384xf32>
    %25 = math.exp %24 : vector<8x384xf32>
    %cst_14 = arith.constant 1.000000e+00 : f32
    %26 = vector.broadcast %cst_14 : f32 to vector<8x384xf32>
    %27 = arith.addf %26, %25 : vector<8x384xf32>
    %28 = arith.divf %26, %27 : vector<8x384xf32>
    %29 = vector.extract_strided_slice %16 {offsets = [0, 768], sizes = [8, 384], strides = [1, 1]} : vector<8x1152xf32> to vector<8x384xf32>
    %c0_15 = arith.constant 0 : index
    %c0_16 = arith.constant 0 : index
    %30 = vector.load %arg6[%c0_15, %c0_16] : memref<1x384xf32, #tpu.memory_space<vmem>>, vector<1x384xf32>
    %31 = vector.broadcast %30 : vector<1x384xf32> to vector<8x384xf32>
    %32 = arith.mulf %22, %31 : vector<8x384xf32>
    %33 = arith.addf %29, %32 : vector<8x384xf32>
    %34 = math.tanh %33 : vector<8x384xf32>
    %cst_17 = arith.constant 1.000000e+00 : f32
    %35 = vector.broadcast %cst_17 : f32 to vector<8x384xf32>
    %36 = arith.subf %35, %28 : vector<8x384xf32>
    %37 = arith.mulf %36, %34 : vector<8x384xf32>
    %cst_18 = arith.constant 0.000000e+00 : f32
    %38 = vector.broadcast %cst_18 : f32 to vector<8x384xf32>
    %39 = arith.maximumf %37, %38 : vector<8x384xf32>
    %40 = arith.truncf %39 : vector<8x384xf32> to vector<8x384xbf16>
    %c0_19 = arith.constant 0 : index
    %c0_20 = arith.constant 0 : index
    %41 = vector.load %arg7[%c0_19, %c0_20] : memref<384x384xbf16, #tpu.memory_space<vmem>>, vector<384x384xbf16>
    %cst_21 = arith.constant dense<0.000000e+00> : vector<8x384xf32>
    %42 = tpu.matmul %40, %41, %cst_21 {dimension_numbers = #tpu.dot_dimension_numbers<[1], [0], [0], [1], [0, 0, 1, 1], [], []>} : vector<8x384xbf16>, vector<384x384xbf16>, vector<8x384xf32> -> vector<8x384xf32>
    %c0_22 = arith.constant 0 : index
    %c0_23 = arith.constant 0 : index
    %43 = vector.load %arg3[%c0_22, %c0_23] : memref<1x384xf32, #tpu.memory_space<vmem>>, vector<1x384xf32>
    %44 = vector.shape_cast %43 : vector<1x384xf32> to vector<1x384xf32>
    %45 = vector.broadcast %44 : vector<1x384xf32> to vector<8x384xf32>
    %c0_i32_24 = arith.constant 0 : i32
    %46 = tpu.memref_slice %arg15[%c0_i32_24] : memref<2x!tpu.dma_semaphore, #tpu.memory_space<semaphore_mem>> -> memref<1x!tpu.dma_semaphore, #tpu.memory_space<semaphore_mem>>
    %47 = tpu.memref_squeeze %46 : memref<1x!tpu.dma_semaphore, #tpu.memory_space<semaphore_mem>> -> memref<!tpu.dma_semaphore, #tpu.memory_space<semaphore_mem>>
    tpu.wait_dma2 semaphore(%47 : memref<!tpu.dma_semaphore, #tpu.memory_space<semaphore_mem>>) src(%arg9 : memref<384x1152xbf16, #tpu.memory_space<any>>) dst(%arg13 : memref<384x1152xbf16, #tpu.memory_space<vmem>>)
    %cst_25 = arith.constant 0.000000e+00 : f32
    %48 = vector.broadcast %cst_25 : f32 to vector<8x384xf32>
    %c0_i32_26 = arith.constant 0 : i32
    %c8_i32 = arith.constant 8 : i32
    %49 = arith.muli %c0_i32_26, %c8_i32 : i32
    %50 = tpu.assume_multiple %49, 8 : i32
    %51 = arith.index_cast %50 : i32 to index
    %c0_27 = arith.constant 0 : index
    %52 = vector.load %arg12[%51, %c0_27] : memref<64x1152xf32, #tpu.memory_space<vmem>>, vector<8x1152xf32>
    %53 = arith.truncf %48 : vector<8x384xf32> to vector<8x384xbf16>
    %c0_28 = arith.constant 0 : index
    %c0_29 = arith.constant 0 : index
    %54 = vector.load %arg13[%c0_28, %c0_29] : memref<384x1152xbf16, #tpu.memory_space<vmem>>, vector<384x1152xbf16>
    %cst_30 = arith.constant dense<0.000000e+00> : vector<8x1152xf32>
    %55 = tpu.matmul %53, %54, %cst_30 {dimension_numbers = #tpu.dot_dimension_numbers<[1], [0], [0], [1], [0, 0, 1, 1], [], []>} : vector<8x384xbf16>, vector<384x1152xbf16>, vector<8x1152xf32> -> vector<8x1152xf32>
    %56 = vector.extract_strided_slice %52 {offsets = [0, 0], sizes = [8, 384], strides = [1, 1]} : vector<8x1152xf32> to vector<8x384xf32>
    %57 = vector.extract_strided_slice %55 {offsets = [0, 0], sizes = [8, 384], strides = [1, 1]} : vector<8x1152xf32> to vector<8x384xf32>
    %58 = arith.addf %56, %57 : vector<8x384xf32>
    %59 = arith.negf %58 : vector<8x384xf32>
    %60 = math.exp %59 : vector<8x384xf32>
    %cst_31 = arith.constant 1.000000e+00 : f32
    %61 = vector.broadcast %cst_31 : f32 to vector<8x384xf32>
    %62 = arith.addf %61, %60 : vector<8x384xf32>
    %63 = arith.divf %61, %62 : vector<8x384xf32>
    %64 = vector.extract_strided_slice %52 {offsets = [0, 384], sizes = [8, 384], strides = [1, 1]} : vector<8x1152xf32> to vector<8x384xf32>
    %65 = vector.extract_strided_slice %55 {offsets = [0, 384], sizes = [8, 384], strides = [1, 1]} : vector<8x1152xf32> to vector<8x384xf32>
    %66 = arith.addf %64, %65 : vector<8x384xf32>
    %67 = arith.negf %66 : vector<8x384xf32>
    %68 = math.exp %67 : vector<8x384xf32>
    %cst_32 = arith.constant 1.000000e+00 : f32
    %69 = vector.broadcast %cst_32 : f32 to vector<8x384xf32>
    %70 = arith.addf %69, %68 : vector<8x384xf32>
    %71 = arith.divf %69, %70 : vector<8x384xf32>
    %72 = vector.extract_strided_slice %52 {offsets = [0, 768], sizes = [8, 384], strides = [1, 1]} : vector<8x1152xf32> to vector<8x384xf32>
    %73 = vector.extract_strided_slice %55 {offsets = [0, 768], sizes = [8, 384], strides = [1, 1]} : vector<8x1152xf32> to vector<8x384xf32>
    %74 = arith.addf %73, %45 : vector<8x384xf32>
    %75 = arith.mulf %63, %74 : vector<8x384xf32>
    %76 = arith.addf %72, %75 : vector<8x384xf32>
    %77 = math.tanh %76 : vector<8x384xf32>
    %78 = arith.subf %48, %77 : vector<8x384xf32>
    %79 = arith.mulf %71, %78 : vector<8x384xf32>
    %80 = arith.addf %77, %79 : vector<8x384xf32>
    %c1_i32_33 = arith.constant 1 : i32
    %c8_i32_34 = arith.constant 8 : i32
    %81 = arith.muli %c1_i32_33, %c8_i32_34 : i32
    %82 = tpu.assume_multiple %81, 8 : i32
    %83 = arith.index_cast %82 : i32 to index
    %c0_35 = arith.constant 0 : index
    %84 = vector.load %arg12[%83, %c0_35] : memref<64x1152xf32, #tpu.memory_space<vmem>>, vector<8x1152xf32>
    %85 = arith.truncf %80 : vector<8x384xf32> to vector<8x384xbf16>
    %c0_36 = arith.constant 0 : index
    %c0_37 = arith.constant 0 : index
    %86 = vector.load %arg13[%c0_36, %c0_37] : memref<384x1152xbf16, #tpu.memory_space<vmem>>, vector<384x1152xbf16>
    %cst_38 = arith.constant dense<0.000000e+00> : vector<8x1152xf32>
    %87 = tpu.matmul %85, %86, %cst_38 {dimension_numbers = #tpu.dot_dimension_numbers<[1], [0], [0], [1], [0, 0, 1, 1], [], []>} : vector<8x384xbf16>, vector<384x1152xbf16>, vector<8x1152xf32> -> vector<8x1152xf32>
    %88 = vector.extract_strided_slice %84 {offsets = [0, 0], sizes = [8, 384], strides = [1, 1]} : vector<8x1152xf32> to vector<8x384xf32>
    %89 = vector.extract_strided_slice %87 {offsets = [0, 0], sizes = [8, 384], strides = [1, 1]} : vector<8x1152xf32> to vector<8x384xf32>
    %90 = arith.addf %88, %89 : vector<8x384xf32>
    %91 = arith.negf %90 : vector<8x384xf32>
    %92 = math.exp %91 : vector<8x384xf32>
    %cst_39 = arith.constant 1.000000e+00 : f32
    %93 = vector.broadcast %cst_39 : f32 to vector<8x384xf32>
    %94 = arith.addf %93, %92 : vector<8x384xf32>
    %95 = arith.divf %93, %94 : vector<8x384xf32>
    %96 = vector.extract_strided_slice %84 {offsets = [0, 384], sizes = [8, 384], strides = [1, 1]} : vector<8x1152xf32> to vector<8x384xf32>
    %97 = vector.extract_strided_slice %87 {offsets = [0, 384], sizes = [8, 384], strides = [1, 1]} : vector<8x1152xf32> to vector<8x384xf32>
    %98 = arith.addf %96, %97 : vector<8x384xf32>
    %99 = arith.negf %98 : vector<8x384xf32>
    %100 = math.exp %99 : vector<8x384xf32>
    %cst_40 = arith.constant 1.000000e+00 : f32
    %101 = vector.broadcast %cst_40 : f32 to vector<8x384xf32>
    %102 = arith.addf %101, %100 : vector<8x384xf32>
    %103 = arith.divf %101, %102 : vector<8x384xf32>
    %104 = vector.extract_strided_slice %84 {offsets = [0, 768], sizes = [8, 384], strides = [1, 1]} : vector<8x1152xf32> to vector<8x384xf32>
    %105 = vector.extract_strided_slice %87 {offsets = [0, 768], sizes = [8, 384], strides = [1, 1]} : vector<8x1152xf32> to vector<8x384xf32>
    %106 = arith.addf %105, %45 : vector<8x384xf32>
    %107 = arith.mulf %95, %106 : vector<8x384xf32>
    %108 = arith.addf %104, %107 : vector<8x384xf32>
    %109 = math.tanh %108 : vector<8x384xf32>
    %110 = arith.subf %80, %109 : vector<8x384xf32>
    %111 = arith.mulf %103, %110 : vector<8x384xf32>
    %112 = arith.addf %109, %111 : vector<8x384xf32>
    %c2_i32 = arith.constant 2 : i32
    %c8_i32_41 = arith.constant 8 : i32
    %113 = arith.muli %c2_i32, %c8_i32_41 : i32
    %114 = tpu.assume_multiple %113, 8 : i32
    %115 = arith.index_cast %114 : i32 to index
    %c0_42 = arith.constant 0 : index
    %116 = vector.load %arg12[%115, %c0_42] : memref<64x1152xf32, #tpu.memory_space<vmem>>, vector<8x1152xf32>
    %117 = arith.truncf %112 : vector<8x384xf32> to vector<8x384xbf16>
    %c0_43 = arith.constant 0 : index
    %c0_44 = arith.constant 0 : index
    %118 = vector.load %arg13[%c0_43, %c0_44] : memref<384x1152xbf16, #tpu.memory_space<vmem>>, vector<384x1152xbf16>
    %cst_45 = arith.constant dense<0.000000e+00> : vector<8x1152xf32>
    %119 = tpu.matmul %117, %118, %cst_45 {dimension_numbers = #tpu.dot_dimension_numbers<[1], [0], [0], [1], [0, 0, 1, 1], [], []>} : vector<8x384xbf16>, vector<384x1152xbf16>, vector<8x1152xf32> -> vector<8x1152xf32>
    %120 = vector.extract_strided_slice %116 {offsets = [0, 0], sizes = [8, 384], strides = [1, 1]} : vector<8x1152xf32> to vector<8x384xf32>
    %121 = vector.extract_strided_slice %119 {offsets = [0, 0], sizes = [8, 384], strides = [1, 1]} : vector<8x1152xf32> to vector<8x384xf32>
    %122 = arith.addf %120, %121 : vector<8x384xf32>
    %123 = arith.negf %122 : vector<8x384xf32>
    %124 = math.exp %123 : vector<8x384xf32>
    %cst_46 = arith.constant 1.000000e+00 : f32
    %125 = vector.broadcast %cst_46 : f32 to vector<8x384xf32>
    %126 = arith.addf %125, %124 : vector<8x384xf32>
    %127 = arith.divf %125, %126 : vector<8x384xf32>
    %128 = vector.extract_strided_slice %116 {offsets = [0, 384], sizes = [8, 384], strides = [1, 1]} : vector<8x1152xf32> to vector<8x384xf32>
    %129 = vector.extract_strided_slice %119 {offsets = [0, 384], sizes = [8, 384], strides = [1, 1]} : vector<8x1152xf32> to vector<8x384xf32>
    %130 = arith.addf %128, %129 : vector<8x384xf32>
    %131 = arith.negf %130 : vector<8x384xf32>
    %132 = math.exp %131 : vector<8x384xf32>
    %cst_47 = arith.constant 1.000000e+00 : f32
    %133 = vector.broadcast %cst_47 : f32 to vector<8x384xf32>
    %134 = arith.addf %133, %132 : vector<8x384xf32>
    %135 = arith.divf %133, %134 : vector<8x384xf32>
    %136 = vector.extract_strided_slice %116 {offsets = [0, 768], sizes = [8, 384], strides = [1, 1]} : vector<8x1152xf32> to vector<8x384xf32>
    %137 = vector.extract_strided_slice %119 {offsets = [0, 768], sizes = [8, 384], strides = [1, 1]} : vector<8x1152xf32> to vector<8x384xf32>
    %138 = arith.addf %137, %45 : vector<8x384xf32>
    %139 = arith.mulf %127, %138 : vector<8x384xf32>
    %140 = arith.addf %136, %139 : vector<8x384xf32>
    %141 = math.tanh %140 : vector<8x384xf32>
    %142 = arith.subf %112, %141 : vector<8x384xf32>
    %143 = arith.mulf %135, %142 : vector<8x384xf32>
    %144 = arith.addf %141, %143 : vector<8x384xf32>
    %c3_i32 = arith.constant 3 : i32
    %c8_i32_48 = arith.constant 8 : i32
    %145 = arith.muli %c3_i32, %c8_i32_48 : i32
    %146 = tpu.assume_multiple %145, 8 : i32
    %147 = arith.index_cast %146 : i32 to index
    %c0_49 = arith.constant 0 : index
    %148 = vector.load %arg12[%147, %c0_49] : memref<64x1152xf32, #tpu.memory_space<vmem>>, vector<8x1152xf32>
    %149 = arith.truncf %144 : vector<8x384xf32> to vector<8x384xbf16>
    %c0_50 = arith.constant 0 : index
    %c0_51 = arith.constant 0 : index
    %150 = vector.load %arg13[%c0_50, %c0_51] : memref<384x1152xbf16, #tpu.memory_space<vmem>>, vector<384x1152xbf16>
    %cst_52 = arith.constant dense<0.000000e+00> : vector<8x1152xf32>
    %151 = tpu.matmul %149, %150, %cst_52 {dimension_numbers = #tpu.dot_dimension_numbers<[1], [0], [0], [1], [0, 0, 1, 1], [], []>} : vector<8x384xbf16>, vector<384x1152xbf16>, vector<8x1152xf32> -> vector<8x1152xf32>
    %152 = vector.extract_strided_slice %148 {offsets = [0, 0], sizes = [8, 384], strides = [1, 1]} : vector<8x1152xf32> to vector<8x384xf32>
    %153 = vector.extract_strided_slice %151 {offsets = [0, 0], sizes = [8, 384], strides = [1, 1]} : vector<8x1152xf32> to vector<8x384xf32>
    %154 = arith.addf %152, %153 : vector<8x384xf32>
    %155 = arith.negf %154 : vector<8x384xf32>
    %156 = math.exp %155 : vector<8x384xf32>
    %cst_53 = arith.constant 1.000000e+00 : f32
    %157 = vector.broadcast %cst_53 : f32 to vector<8x384xf32>
    %158 = arith.addf %157, %156 : vector<8x384xf32>
    %159 = arith.divf %157, %158 : vector<8x384xf32>
    %160 = vector.extract_strided_slice %148 {offsets = [0, 384], sizes = [8, 384], strides = [1, 1]} : vector<8x1152xf32> to vector<8x384xf32>
    %161 = vector.extract_strided_slice %151 {offsets = [0, 384], sizes = [8, 384], strides = [1, 1]} : vector<8x1152xf32> to vector<8x384xf32>
    %162 = arith.addf %160, %161 : vector<8x384xf32>
    %163 = arith.negf %162 : vector<8x384xf32>
    %164 = math.exp %163 : vector<8x384xf32>
    %cst_54 = arith.constant 1.000000e+00 : f32
    %165 = vector.broadcast %cst_54 : f32 to vector<8x384xf32>
    %166 = arith.addf %165, %164 : vector<8x384xf32>
    %167 = arith.divf %165, %166 : vector<8x384xf32>
    %168 = vector.extract_strided_slice %148 {offsets = [0, 768], sizes = [8, 384], strides = [1, 1]} : vector<8x1152xf32> to vector<8x384xf32>
    %169 = vector.extract_strided_slice %151 {offsets = [0, 768], sizes = [8, 384], strides = [1, 1]} : vector<8x1152xf32> to vector<8x384xf32>
    %170 = arith.addf %169, %45 : vector<8x384xf32>
    %171 = arith.mulf %159, %170 : vector<8x384xf32>
    %172 = arith.addf %168, %171 : vector<8x384xf32>
    %173 = math.tanh %172 : vector<8x384xf32>
    %174 = arith.subf %144, %173 : vector<8x384xf32>
    %175 = arith.mulf %167, %174 : vector<8x384xf32>
    %176 = arith.addf %173, %175 : vector<8x384xf32>
    %c4_i32 = arith.constant 4 : i32
    %c8_i32_55 = arith.constant 8 : i32
    %177 = arith.muli %c4_i32, %c8_i32_55 : i32
    %178 = tpu.assume_multiple %177, 8 : i32
    %179 = arith.index_cast %178 : i32 to index
    %c0_56 = arith.constant 0 : index
    %180 = vector.load %arg12[%179, %c0_56] : memref<64x1152xf32, #tpu.memory_space<vmem>>, vector<8x1152xf32>
    %181 = arith.truncf %176 : vector<8x384xf32> to vector<8x384xbf16>
    %c0_57 = arith.constant 0 : index
    %c0_58 = arith.constant 0 : index
    %182 = vector.load %arg13[%c0_57, %c0_58] : memref<384x1152xbf16, #tpu.memory_space<vmem>>, vector<384x1152xbf16>
    %cst_59 = arith.constant dense<0.000000e+00> : vector<8x1152xf32>
    %183 = tpu.matmul %181, %182, %cst_59 {dimension_numbers = #tpu.dot_dimension_numbers<[1], [0], [0], [1], [0, 0, 1, 1], [], []>} : vector<8x384xbf16>, vector<384x1152xbf16>, vector<8x1152xf32> -> vector<8x1152xf32>
    %184 = vector.extract_strided_slice %180 {offsets = [0, 0], sizes = [8, 384], strides = [1, 1]} : vector<8x1152xf32> to vector<8x384xf32>
    %185 = vector.extract_strided_slice %183 {offsets = [0, 0], sizes = [8, 384], strides = [1, 1]} : vector<8x1152xf32> to vector<8x384xf32>
    %186 = arith.addf %184, %185 : vector<8x384xf32>
    %187 = arith.negf %186 : vector<8x384xf32>
    %188 = math.exp %187 : vector<8x384xf32>
    %cst_60 = arith.constant 1.000000e+00 : f32
    %189 = vector.broadcast %cst_60 : f32 to vector<8x384xf32>
    %190 = arith.addf %189, %188 : vector<8x384xf32>
    %191 = arith.divf %189, %190 : vector<8x384xf32>
    %192 = vector.extract_strided_slice %180 {offsets = [0, 384], sizes = [8, 384], strides = [1, 1]} : vector<8x1152xf32> to vector<8x384xf32>
    %193 = vector.extract_strided_slice %183 {offsets = [0, 384], sizes = [8, 384], strides = [1, 1]} : vector<8x1152xf32> to vector<8x384xf32>
    %194 = arith.addf %192, %193 : vector<8x384xf32>
    %195 = arith.negf %194 : vector<8x384xf32>
    %196 = math.exp %195 : vector<8x384xf32>
    %cst_61 = arith.constant 1.000000e+00 : f32
    %197 = vector.broadcast %cst_61 : f32 to vector<8x384xf32>
    %198 = arith.addf %197, %196 : vector<8x384xf32>
    %199 = arith.divf %197, %198 : vector<8x384xf32>
    %200 = vector.extract_strided_slice %180 {offsets = [0, 768], sizes = [8, 384], strides = [1, 1]} : vector<8x1152xf32> to vector<8x384xf32>
    %201 = vector.extract_strided_slice %183 {offsets = [0, 768], sizes = [8, 384], strides = [1, 1]} : vector<8x1152xf32> to vector<8x384xf32>
    %202 = arith.addf %201, %45 : vector<8x384xf32>
    %203 = arith.mulf %191, %202 : vector<8x384xf32>
    %204 = arith.addf %200, %203 : vector<8x384xf32>
    %205 = math.tanh %204 : vector<8x384xf32>
    %206 = arith.subf %176, %205 : vector<8x384xf32>
    %207 = arith.mulf %199, %206 : vector<8x384xf32>
    %208 = arith.addf %205, %207 : vector<8x384xf32>
    %c5_i32 = arith.constant 5 : i32
    %c8_i32_62 = arith.constant 8 : i32
    %209 = arith.muli %c5_i32, %c8_i32_62 : i32
    %210 = tpu.assume_multiple %209, 8 : i32
    %211 = arith.index_cast %210 : i32 to index
    %c0_63 = arith.constant 0 : index
    %212 = vector.load %arg12[%211, %c0_63] : memref<64x1152xf32, #tpu.memory_space<vmem>>, vector<8x1152xf32>
    %213 = arith.truncf %208 : vector<8x384xf32> to vector<8x384xbf16>
    %c0_64 = arith.constant 0 : index
    %c0_65 = arith.constant 0 : index
    %214 = vector.load %arg13[%c0_64, %c0_65] : memref<384x1152xbf16, #tpu.memory_space<vmem>>, vector<384x1152xbf16>
    %cst_66 = arith.constant dense<0.000000e+00> : vector<8x1152xf32>
    %215 = tpu.matmul %213, %214, %cst_66 {dimension_numbers = #tpu.dot_dimension_numbers<[1], [0], [0], [1], [0, 0, 1, 1], [], []>} : vector<8x384xbf16>, vector<384x1152xbf16>, vector<8x1152xf32> -> vector<8x1152xf32>
    %216 = vector.extract_strided_slice %212 {offsets = [0, 0], sizes = [8, 384], strides = [1, 1]} : vector<8x1152xf32> to vector<8x384xf32>
    %217 = vector.extract_strided_slice %215 {offsets = [0, 0], sizes = [8, 384], strides = [1, 1]} : vector<8x1152xf32> to vector<8x384xf32>
    %218 = arith.addf %216, %217 : vector<8x384xf32>
    %219 = arith.negf %218 : vector<8x384xf32>
    %220 = math.exp %219 : vector<8x384xf32>
    %cst_67 = arith.constant 1.000000e+00 : f32
    %221 = vector.broadcast %cst_67 : f32 to vector<8x384xf32>
    %222 = arith.addf %221, %220 : vector<8x384xf32>
    %223 = arith.divf %221, %222 : vector<8x384xf32>
    %224 = vector.extract_strided_slice %212 {offsets = [0, 384], sizes = [8, 384], strides = [1, 1]} : vector<8x1152xf32> to vector<8x384xf32>
    %225 = vector.extract_strided_slice %215 {offsets = [0, 384], sizes = [8, 384], strides = [1, 1]} : vector<8x1152xf32> to vector<8x384xf32>
    %226 = arith.addf %224, %225 : vector<8x384xf32>
    %227 = arith.negf %226 : vector<8x384xf32>
    %228 = math.exp %227 : vector<8x384xf32>
    %cst_68 = arith.constant 1.000000e+00 : f32
    %229 = vector.broadcast %cst_68 : f32 to vector<8x384xf32>
    %230 = arith.addf %229, %228 : vector<8x384xf32>
    %231 = arith.divf %229, %230 : vector<8x384xf32>
    %232 = vector.extract_strided_slice %212 {offsets = [0, 768], sizes = [8, 384], strides = [1, 1]} : vector<8x1152xf32> to vector<8x384xf32>
    %233 = vector.extract_strided_slice %215 {offsets = [0, 768], sizes = [8, 384], strides = [1, 1]} : vector<8x1152xf32> to vector<8x384xf32>
    %234 = arith.addf %233, %45 : vector<8x384xf32>
    %235 = arith.mulf %223, %234 : vector<8x384xf32>
    %236 = arith.addf %232, %235 : vector<8x384xf32>
    %237 = math.tanh %236 : vector<8x384xf32>
    %238 = arith.subf %208, %237 : vector<8x384xf32>
    %239 = arith.mulf %231, %238 : vector<8x384xf32>
    %240 = arith.addf %237, %239 : vector<8x384xf32>
    %c6_i32 = arith.constant 6 : i32
    %c8_i32_69 = arith.constant 8 : i32
    %241 = arith.muli %c6_i32, %c8_i32_69 : i32
    %242 = tpu.assume_multiple %241, 8 : i32
    %243 = arith.index_cast %242 : i32 to index
    %c0_70 = arith.constant 0 : index
    %244 = vector.load %arg12[%243, %c0_70] : memref<64x1152xf32, #tpu.memory_space<vmem>>, vector<8x1152xf32>
    %245 = arith.truncf %240 : vector<8x384xf32> to vector<8x384xbf16>
    %c0_71 = arith.constant 0 : index
    %c0_72 = arith.constant 0 : index
    %246 = vector.load %arg13[%c0_71, %c0_72] : memref<384x1152xbf16, #tpu.memory_space<vmem>>, vector<384x1152xbf16>
    %cst_73 = arith.constant dense<0.000000e+00> : vector<8x1152xf32>
    %247 = tpu.matmul %245, %246, %cst_73 {dimension_numbers = #tpu.dot_dimension_numbers<[1], [0], [0], [1], [0, 0, 1, 1], [], []>} : vector<8x384xbf16>, vector<384x1152xbf16>, vector<8x1152xf32> -> vector<8x1152xf32>
    %248 = vector.extract_strided_slice %244 {offsets = [0, 0], sizes = [8, 384], strides = [1, 1]} : vector<8x1152xf32> to vector<8x384xf32>
    %249 = vector.extract_strided_slice %247 {offsets = [0, 0], sizes = [8, 384], strides = [1, 1]} : vector<8x1152xf32> to vector<8x384xf32>
    %250 = arith.addf %248, %249 : vector<8x384xf32>
    %251 = arith.negf %250 : vector<8x384xf32>
    %252 = math.exp %251 : vector<8x384xf32>
    %cst_74 = arith.constant 1.000000e+00 : f32
    %253 = vector.broadcast %cst_74 : f32 to vector<8x384xf32>
    %254 = arith.addf %253, %252 : vector<8x384xf32>
    %255 = arith.divf %253, %254 : vector<8x384xf32>
    %256 = vector.extract_strided_slice %244 {offsets = [0, 384], sizes = [8, 384], strides = [1, 1]} : vector<8x1152xf32> to vector<8x384xf32>
    %257 = vector.extract_strided_slice %247 {offsets = [0, 384], sizes = [8, 384], strides = [1, 1]} : vector<8x1152xf32> to vector<8x384xf32>
    %258 = arith.addf %256, %257 : vector<8x384xf32>
    %259 = arith.negf %258 : vector<8x384xf32>
    %260 = math.exp %259 : vector<8x384xf32>
    %cst_75 = arith.constant 1.000000e+00 : f32
    %261 = vector.broadcast %cst_75 : f32 to vector<8x384xf32>
    %262 = arith.addf %261, %260 : vector<8x384xf32>
    %263 = arith.divf %261, %262 : vector<8x384xf32>
    %264 = vector.extract_strided_slice %244 {offsets = [0, 768], sizes = [8, 384], strides = [1, 1]} : vector<8x1152xf32> to vector<8x384xf32>
    %265 = vector.extract_strided_slice %247 {offsets = [0, 768], sizes = [8, 384], strides = [1, 1]} : vector<8x1152xf32> to vector<8x384xf32>
    %266 = arith.addf %265, %45 : vector<8x384xf32>
    %267 = arith.mulf %255, %266 : vector<8x384xf32>
    %268 = arith.addf %264, %267 : vector<8x384xf32>
    %269 = math.tanh %268 : vector<8x384xf32>
    %270 = arith.subf %240, %269 : vector<8x384xf32>
    %271 = arith.mulf %263, %270 : vector<8x384xf32>
    %272 = arith.addf %269, %271 : vector<8x384xf32>
    %c7_i32 = arith.constant 7 : i32
    %c8_i32_76 = arith.constant 8 : i32
    %273 = arith.muli %c7_i32, %c8_i32_76 : i32
    %274 = tpu.assume_multiple %273, 8 : i32
    %275 = arith.index_cast %274 : i32 to index
    %c0_77 = arith.constant 0 : index
    %276 = vector.load %arg12[%275, %c0_77] : memref<64x1152xf32, #tpu.memory_space<vmem>>, vector<8x1152xf32>
    %277 = arith.truncf %272 : vector<8x384xf32> to vector<8x384xbf16>
    %c0_78 = arith.constant 0 : index
    %c0_79 = arith.constant 0 : index
    %278 = vector.load %arg13[%c0_78, %c0_79] : memref<384x1152xbf16, #tpu.memory_space<vmem>>, vector<384x1152xbf16>
    %cst_80 = arith.constant dense<0.000000e+00> : vector<8x1152xf32>
    %279 = tpu.matmul %277, %278, %cst_80 {dimension_numbers = #tpu.dot_dimension_numbers<[1], [0], [0], [1], [0, 0, 1, 1], [], []>} : vector<8x384xbf16>, vector<384x1152xbf16>, vector<8x1152xf32> -> vector<8x1152xf32>
    %280 = vector.extract_strided_slice %276 {offsets = [0, 0], sizes = [8, 384], strides = [1, 1]} : vector<8x1152xf32> to vector<8x384xf32>
    %281 = vector.extract_strided_slice %279 {offsets = [0, 0], sizes = [8, 384], strides = [1, 1]} : vector<8x1152xf32> to vector<8x384xf32>
    %282 = arith.addf %280, %281 : vector<8x384xf32>
    %283 = arith.negf %282 : vector<8x384xf32>
    %284 = math.exp %283 : vector<8x384xf32>
    %cst_81 = arith.constant 1.000000e+00 : f32
    %285 = vector.broadcast %cst_81 : f32 to vector<8x384xf32>
    %286 = arith.addf %285, %284 : vector<8x384xf32>
    %287 = arith.divf %285, %286 : vector<8x384xf32>
    %288 = vector.extract_strided_slice %276 {offsets = [0, 384], sizes = [8, 384], strides = [1, 1]} : vector<8x1152xf32> to vector<8x384xf32>
    %289 = vector.extract_strided_slice %279 {offsets = [0, 384], sizes = [8, 384], strides = [1, 1]} : vector<8x1152xf32> to vector<8x384xf32>
    %290 = arith.addf %288, %289 : vector<8x384xf32>
    %291 = arith.negf %290 : vector<8x384xf32>
    %292 = math.exp %291 : vector<8x384xf32>
    %cst_82 = arith.constant 1.000000e+00 : f32
    %293 = vector.broadcast %cst_82 : f32 to vector<8x384xf32>
    %294 = arith.addf %293, %292 : vector<8x384xf32>
    %295 = arith.divf %293, %294 : vector<8x384xf32>
    %296 = vector.extract_strided_slice %276 {offsets = [0, 768], sizes = [8, 384], strides = [1, 1]} : vector<8x1152xf32> to vector<8x384xf32>
    %297 = vector.extract_strided_slice %279 {offsets = [0, 768], sizes = [8, 384], strides = [1, 1]} : vector<8x1152xf32> to vector<8x384xf32>
    %298 = arith.addf %297, %45 : vector<8x384xf32>
    %299 = arith.mulf %287, %298 : vector<8x384xf32>
    %300 = arith.addf %296, %299 : vector<8x384xf32>
    %301 = math.tanh %300 : vector<8x384xf32>
    %302 = arith.subf %272, %301 : vector<8x384xf32>
    %303 = arith.mulf %295, %302 : vector<8x384xf32>
    %304 = arith.addf %301, %303 : vector<8x384xf32>
    %c8_i32_83 = arith.constant 8 : i32
    %c1_i32_84 = arith.constant 1 : i32
    %305 = tpu.memref_slice %arg15[%c1_i32_84] : memref<2x!tpu.dma_semaphore, #tpu.memory_space<semaphore_mem>> -> memref<1x!tpu.dma_semaphore, #tpu.memory_space<semaphore_mem>>
    %306 = tpu.memref_squeeze %305 : memref<1x!tpu.dma_semaphore, #tpu.memory_space<semaphore_mem>> -> memref<!tpu.dma_semaphore, #tpu.memory_space<semaphore_mem>>
    tpu.wait_dma2 semaphore(%306 : memref<!tpu.dma_semaphore, #tpu.memory_space<semaphore_mem>>) src(%arg10 : memref<384x384xbf16, #tpu.memory_space<any>>) dst(%arg14 : memref<384x384xbf16, #tpu.memory_space<vmem>>)
    %cst_85 = arith.constant 0.000000e+00 : f32
    %307 = vector.broadcast %cst_85 : f32 to vector<8x384xf32>
    %308 = arith.maximumf %304, %307 : vector<8x384xf32>
    %309 = arith.truncf %308 : vector<8x384xf32> to vector<8x384xbf16>
    %c0_86 = arith.constant 0 : index
    %c0_87 = arith.constant 0 : index
    %310 = vector.load %arg14[%c0_86, %c0_87] : memref<384x384xbf16, #tpu.memory_space<vmem>>, vector<384x384xbf16>
    %cst_88 = arith.constant dense<0.000000e+00> : vector<8x384xf32>
    %311 = tpu.matmul %309, %310, %cst_88 {dimension_numbers = #tpu.dot_dimension_numbers<[1], [0], [0], [1], [0, 0, 1, 1], [], []>} : vector<8x384xbf16>, vector<384x384xbf16>, vector<8x384xf32> -> vector<8x384xf32>
    %312 = arith.addf %311, %42 : vector<8x384xf32>
    %c0_89 = arith.constant 0 : index
    %c0_90 = arith.constant 0 : index
    %313 = vector.load %arg8[%c0_89, %c0_90] : memref<1x384xf32, #tpu.memory_space<vmem>>, vector<1x384xf32>
    %314 = vector.broadcast %313 : vector<1x384xf32> to vector<8x384xf32>
    %315 = arith.addf %312, %314 : vector<8x384xf32>
    %cst_91 = arith.constant 0.000000e+00 : f32
    %316 = vector.broadcast %cst_91 : f32 to vector<8x384xf32>
    %317 = arith.maximumf %315, %316 : vector<8x384xf32>
    %c0_92 = arith.constant 0 : index
    %c0_93 = arith.constant 0 : index
    %318 = vector.load %arg11[%c0_92, %c0_93] : memref<8x384xf32, #tpu.memory_space<vmem>>, vector<8x384xf32>
    tpu.vector_store %arg11[%c0_92, %c0_93], %317 {strides = array<i32>} : memref<8x384xf32, #tpu.memory_space<vmem>>, vector<8x384xf32>,
    return
  }
}

</mosaic_0001>

<bundles_post_ra>
// kernel: tpu_custom_call.1
= control target key start
LH: loop header
LB: loop body
LE: loop exit
PB: predicated region body
PF: predicated region fallthrough
CT: control target
= control target key end

     0   :  { %16 = vsyncpa [#allocation7], 0  ;;  %s12670_s0 = inlined_call_operand.vmem [shape: bf16[64,16], index: 0, kind: input, shape index: {}]   ;;  %s12671_s1 = inlined_call_operand.hbm [shape: bf16[16,1152], index: 1, kind: input, shape index: {}]   ;;  %s12672_s2 = inlined_call_operand.vmem [shape: f32[1,1152], index: 2, kind: input, shape index: {}]   ;;  %s12673_s3 = inlined_call_operand.vmem [shape: f32[1,384], index: 3, kind: input, shape index: {}]   ;;  %s12674_s4 = inlined_call_operand.hbm [shape: bf16[16,1152], index: 4, kind: input, shape index: {}]   ;;  %s12675_s5 = inlined_call_operand.vmem [shape: f32[1,1152], index: 5, kind: input, shape index: {}]   ;;  %s12676_s6 = inlined_call_operand.vmem [shape: f32[1,384], index: 6, kind: input, shape index: {}]   ;;  %s12677_s7 = inlined_call_operand.hbm [shape: bf16[384,384], index: 7, kind: input, shape index: {}]   ;;  %s12678_s8 = inlined_call_operand.vmem [shape: f32[1,384], index: 8, kind: input, shape index: {}]   ;;  %s12679_s9 = inlined_call_operand.hbm [shape: bf16[384,1152], index: 9, kind: input, shape index: {}]   ;;  %s12680_s10 = inlined_call_operand.hbm [shape: bf16[384,384], index: 10, kind: input, shape index: {}]   ;;  %s12681_s11 = inlined_call_operand.hbm [shape: f32[8,384], index: 11, kind: output, shape index: {}]  }
   0x1   :  { %17 = vsyncpa [#allocation10], 0 }
   0x2   :  { %18 = vsyncpa [#allocation8], 0  ;;  %s8155_s17 = smov [#allocation9]   ;;  %s8156_s19 = smov [#allocation6]  }
   0x3   :  { %s42_s18 = sshll.u32 %s8155_s17, 4  ;;  %s26_s20 = sshll.u32 %s8156_s19, 4  ;;  %s43_s18 = int_to_ptr.vmem [resolvable:$true] %s42_s18  ;;  %s8240_s20 = int_to_ptr.vmem [resolvable:$true] %s26_s20 }
   0x4   :  { %s8057_s23 = scalar_lea.hbm %s12674_s4, 1152 }
   0x5   :  { %p8058_p0 = scmp.ne.s32.totalorder %s12674_s4, %s8057_s23  ;;  %p8061_p1 = scmp.lt.u32.totalorder %s8057_s23, %s12674_s4 }
   0x7   :  { %p8063_p2 = pnand %p8061_p1, %p8058_p0 }
   0x9   :  { %8066 = shalt.err (!%p8063_p2)
}
   0xa   :  { %s8067_s28 = scalar_lea.vmem %s43_s18, 1152  ;;  %p8072_p4 = scmp.lt.s32.totalorder %s43_s18, %s43_s18 }
   0xb   :  { %p8068_p3 = scmp.ne.s32.totalorder %s43_s18, %s8067_s28  ;;  %p8073_p5 = scmp.lt.s32.totalorder %s8067_s28, %s8067_s28 }
   0xd   :  { %p8074_p6 = por %p8073_p5, %p8072_p4 }
   0xf   :  { %p8075_p7 = pnand %p8074_p6, %p8068_p3 }
  0x11   :  { %8078 = shalt.err (!%p8075_p7)
}
  0x12   :  { %s8157_s29 = smov 576   ;;  %s8158_s30 = smov 36  }
  0x13   :  { %48 = dma.hbm_to_vmem [thread:$0]  %s12674_s4, 1152, %s43_s18, [#allocation10], %s8157_s29, %s8157_s29, %s8158_s30  }
  0x14   :  { %s8079_s16 = scalar_lea.hbm %s12671_s1, 1152 }
  0x15   :  { %p8080_p8 = scmp.ne.s32.totalorder %s12671_s1, %s8079_s16  ;;  %p8083_p9 = scmp.lt.u32.totalorder %s8079_s16, %s12671_s1 }
  0x17   :  { %p8085_p10 = pnand %p8083_p9, %p8080_p8 }
  0x19   :  { %8088 = shalt.err (!%p8085_p10)
}
  0x1a   :  { %s8089_s23 = scalar_lea.vmem %s8240_s20, 1152  ;;  %p8094_p12 = scmp.lt.s32.totalorder %s8240_s20, %s8240_s20 }
  0x1b   :  { %p8090_p11 = scmp.ne.s32.totalorder %s8240_s20, %s8089_s23  ;;  %p8095_p13 = scmp.lt.s32.totalorder %s8089_s23, %s8089_s23 }
  0x1d   :  { %p8096_p0 = por %p8095_p13, %p8094_p12 }
  0x1f   :  { %p8097_p1 = pnand %p8096_p0, %p8090_p11 }
  0x21   :  { %8100 = shalt.err (!%p8097_p1)
}
  0x22   :  { %32 = dma.hbm_to_vmem [thread:$0]  %s12671_s1, 1152, %s8240_s20, [#allocation7], %s8157_s29, %s8157_s29, %s8158_s30  }
  0x23   :  { %s8159_s24 = smov [#allocation11]   ;;  %s8101_s28 = scalar_lea.hbm %s12677_s7, 9216 }
  0x24   :  { %s58_s25 = sshll.u32 %s8159_s24, 4  ;;  %p8102_p2 = scmp.ne.s32.totalorder %s12677_s7, %s8101_s28  ;;  %s59_s25 = int_to_ptr.vmem [resolvable:$true] %s58_s25 }
  0x25   :  { %p8105_p3 = scmp.lt.u32.totalorder %s8101_s28, %s12677_s7 }
  0x27   :  { %p8107_p4 = pnand %p8105_p3, %p8102_p2 }
  0x29   :  { %8110 = shalt.err (!%p8107_p4)
}
  0x2a   :  { %s8111_s16 = scalar_lea.vmem %s59_s25, 9216  ;;  %p8116_p6 = scmp.lt.s32.totalorder %s59_s25, %s59_s25 }
  0x2b   :  { %p8112_p5 = scmp.ne.s32.totalorder %s59_s25, %s8111_s16  ;;  %p8117_p7 = scmp.lt.s32.totalorder %s8111_s16, %s8111_s16 }
  0x2d   :  { %p8118_p8 = por %p8117_p7, %p8116_p6 }
  0x2f   :  { %p8119_p9 = pnand %p8118_p8, %p8112_p5 }
  0x31   :  { %8122 = shalt.err (!%p8119_p9)
}
  0x32   :  { %s8160_s1 = smov 192   ;;  %s8161_s20 = smov 12  }
  0x33   :  { %64 = dma.hbm_to_vmem [thread:$0]  %s12677_s7, 9216, %s59_s25, [#allocation10], %s8160_s1, %s8160_s1, %s8161_s20  }
  0x34   :  { %8145 = dma.done.wait [#allocation7], 1152  }
  0x35   :  { %8146 = vsyncadd [#allocation7], 4294966144 }
  0x36   :  { %8147 = dma.done.wait [#allocation10], 10368  }
  0x37   :  { %8148 = vsyncadd [#allocation10], 4294956928  ;;  %s81_s19 = sld [smem:[#allocation0]]   ;;  %s8162_s21 = smov 1152   ;;  %v12682_v0 = vmov 0   ;;  %vm280_vm0 = vcmask 130048   ;;  %v169_v24 = vlaneseq }
  0x38   :  { %93 = sst [smem:[#allocation14]] %s8162_s21  ;;  %325 = vmatprep.mubr.bf16.mxu0 %v12682_v0  ;;  %398 = vmatprep.mubr.bf16.mxu1 %v12682_v0  ;;  %s8164_s22 = smov 9   ;;  %v12684_v22 = vmov 0.0   ;;  %vm8178_vm1 = vmmov 0  }
  0x39   :  { %95 = sst [smem:[#allocation14 + $0x1]] %s8162_s21  ;;  %s8165_s23 = smov [#allocation3]   ;;  %v8355_v26 = vshrl.u32 %v169_v24, 7 }
  0x3a   :  { %97 = sst [smem:[#allocation14 + $0x2]] %s8164_s22  ;;  %s89_s4 = sshll.u32 %s8165_s23, 4  ;;  %s90_s4 = int_to_ptr.vmem [resolvable:$true] %s89_s4 }
  0x3b   :  { %105 = sst [smem:[#allocation14 + $0x6]] %s8157_s29  ;;  %s8166_s7 = smov 64   ;;  %v8362_v27 = vsub.s32 2, %v8355_v26  ;;  %v8368_v29 = vsub.s32 0, %v8355_v26  ;;  %v8371_v30 = vsub.s32 1, %v8355_v26 }
  0x3c   :  { %99 = sst [smem:[#allocation14 + $0x3]] %s8166_s7  ;;  %s8167_s24 = smov 128  }
  0x3d   :  { %s6178_s18 = sshll.u32 %s81_s19, 26  ;;  %101 = sst [smem:[#allocation14 + $0x4]] %s8167_s24 }
  0x3e   :  { %s6179_s25 = sadd.s32 134217728, %s6178_s18  ;;  %s8168_s26 = smov 2  }
  0x3f   :  { %103 = sst [smem:[#allocation14 + $0x5]] %s8168_s26  ;;  %s8169_s27 = smov 4  }
  0x40   :  { %107 = sst [smem:[#allocation14 + $0x7]] %s8166_s7  ;;  %s8170_s28 = smov [#allocation5]  }
  0x41   :  { %109 = sst [smem:[#allocation14 + $0x8]] %s8169_s27  ;;  %s8171_s12 = smov [#allocation13]  }
  0x42   :  { %111 = dma.general %s12679_s9, 27648, %s90_s4, %s8170_s28, %s8171_s12, [#allocation14], %s6179_s25, 0  }
  0x43   :  { %s8172_s15 = smov 384   ;;  %s8173_s29 = smov 3  }
  0x44   :  { %128 = sst [smem:[#allocation16]] %s8172_s15  ;;  %s8174_s16 = smov [#allocation4]  }
  0x45   :  { %130 = sst [smem:[#allocation16 + $0x1]] %s8172_s15  ;;  %s124_s20 = sshll.u32 %s8174_s16, 4  ;;  %s125_s20 = int_to_ptr.vmem [resolvable:$true] %s124_s20 }
  0x46   :  { %132 = sst [smem:[#allocation16 + $0x2]] %s8173_s29  ;;  %s8175_s30 = smov [#allocation5 + $0x1]  }
  0x47   :  { %134 = sst [smem:[#allocation16 + $0x3]] %s8166_s7  ;;  %s8176_s17 = smov [#allocation15]  }
  0x48   :  { %136 = sst [smem:[#allocation16 + $0x4]] %s8167_s24 }
  0x49   :  { %138 = sst [smem:[#allocation16 + $0x5]] %s8168_s26 }
  0x4a   :  { %140 = sst [smem:[#allocation16 + $0x6]] %s8160_s1 }
  0x4b   :  { %142 = sst [smem:[#allocation16 + $0x7]] %s8166_s7 }
  0x4c   :  { %144 = sst [smem:[#allocation16 + $0x8]] %s8169_s27 }
  0x4d   :  { %146 = dma.general %s12680_s10, 9216, %s125_s20, %s8175_s30, %s8176_s17, [#allocation16], %s6179_s25, 0  }
  0x4e   :  { %v7013_v1 = vld [vmem:[#allocation6 + $0x4] ss:$36 sps:$4 sm:$0xff]   ;;  %v7015_v2 = vld [vmem:[#allocation6 + $0xc] ss:$36 sps:$4 sm:$0xff]   ;;  %v7020_v6 = vld [vmem:[#allocation6 + $0x18] ss:$36 sps:$4 sm:$0xff]  }
  0x4f   :  { %293 = vmatprep.subr.bf16.mxu0 %v7013_v1  ;;  %v7017_v3 = vld [vmem:[#allocation6] ss:$36 sps:$4 sm:$0xff]   ;;  %v7018_v4 = vld [vmem:[#allocation6 + $0x8] ss:$36 sps:$4 sm:$0xff]   ;;  %366 = vmatprep.subr.bf16.mxu1 %v7015_v2  ;;  %v7023_v8 = vld [vmem:[#allocation6 + $0x10] ss:$36 sps:$4 sm:$0xff]  }
  0x50   :  { %v7019_v5 = vld [vmem:[%s12670_s0] sm:$0xff]   ;;  %294 = vmatpush1.bf16.msra.mxu0 %v7017_v3  ;;  %367 = vmatpush1.bf16.msra.mxu1 %v7018_v4  ;;  %v7025_v9 = vld [vmem:[#allocation6 + $0x14] ss:$36 sps:$4 sm:$0xff]   ;;  %v7031_v10 = vld [vmem:[#allocation9 + $0x4] ss:$36 sps:$4 sm:$0xff]   ;;  %13337 = vst [vmem:[#allocation22_spill] sm:$0xff] %v8362_v27 }
  0x51   :  { %v7022_v7 = vld [vmem:[#allocation6 + $0x1c] ss:$36 sps:$4 sm:$0xff]   ;;  %439 = vmatprep.subr.bf16.mxu0 %v7025_v9  ;;  %v7026_v11 = vld [vmem:[%s12670_s0 + $0x8] sm:$0xff]   ;;  %v7027_v13 = vld [vmem:[%s12670_s0 + $0x10] sm:$0xff]   ;;  %13338 = vst [vmem:[#allocation23_spill] sm:$0xff] %v8368_v29 }
  0x52   :  { %512 = vmatprep.subr.bf16.mxu1 %v7022_v7  ;;  %v7032_v12 = vld [vmem:[#allocation6 + $0x20] ss:$36 sps:$4 sm:$0xff]   ;;  %v7028_v14 = vld [vmem:[%s12670_s0 + $0x18] sm:$0xff]   ;;  %v7029_v15 = vld [vmem:[#allocation9] ss:$36 sps:$4 sm:$0xff]   ;;  %13339 = vst [vmem:[#allocation24_spill] sm:$0xff] %v8371_v30 }
  0x53   :  { %6196 = vmatmul.mubr.msk.bf16.vlgmr.msra.gmra.mrb[0].mxu0 %vm280_vm0, %v7019_v5  ;;  %6200 = vmatmul.mubr.msk.bf16.vlgmr.msra.gmra.mrb[0].mxu1 %vm280_vm0, %v7019_v5  ;;  %v7035_v16 = vld [vmem:[#allocation9 + $0xc] ss:$36 sps:$4 sm:$0xff]   ;;  %v7038_v17 = vld [vmem:[#allocation9 + $0x14] ss:$36 sps:$4 sm:$0xff]   ;;  %v7041_v21 = vld [vmem:[#allocation9 + $0x1c] ss:$36 sps:$4 sm:$0xff]  }
  0x54   :  { %513 = vmatpush1.bf16.msra.mxu1 %v7020_v6  ;;  %440 = vmatpush1.bf16.msra.mxu0 %v7023_v8  ;;  %v722_v18 = vld [vmem:[%s12670_s0 + $0x1c] sm:$0xf]  ;;  %v7033_v19 = vld [vmem:[#allocation9 + $0x8] ss:$36 sps:$4 sm:$0xff]   ;;  %v7039_v23 = vld [vmem:[#allocation9 + $0x18] ss:$36 sps:$4 sm:$0xff]  }
  0x55   :  { %335 = vmatprep.mubr.bf16.mxu0 %v12682_v0  ;;  %408 = vmatprep.mubr.bf16.mxu1 %v12682_v0  ;;  %v7036_v20 = vld [vmem:[#allocation9 + $0x10] ss:$36 sps:$4 sm:$0xff]   ;;  %v7042_v25 = vld [vmem:[#allocation9 + $0x20] ss:$36 sps:$4 sm:$0xff]   ;;  %v1751_v28 = vld [vmem:[%s12673_s3] sm:$0x7] }
  0x56   :  { %831 = vmatprep.subr.bf16.mxu1 %v7031_v10  ;;  %6676 = vmatprep.subr.bf16.mxu0 %v7032_v12  ;;  %v8374_v31 = vrot.slane %v1751_v28, %v8362_v27  ;;  %v8377_v32 = vrot.slane %v1751_v28, %v8368_v29  ;;  %v8380_v33 = vrot.slane %v1751_v28, %v8371_v30  ;;  %v7045_v34 = vld [vmem:[#allocation11 + $0x4] ss:$12 sps:$4 sm:$0xff]   ;;  %v7043_v35 = vld [vmem:[#allocation11] ss:$12 sps:$4 sm:$0xff]   ;;  %v7048_v36 = vld [vmem:[#allocation11 + $0x1c] ss:$12 sps:$4 sm:$0xff]  }
  0x57   :  { %v7046_v37 = vld [vmem:[#allocation11 + $0x18] ss:$12 sps:$4 sm:$0xff]   ;;  %v7051_v38 = vld [vmem:[#allocation11 + $0x34] ss:$12 sps:$4 sm:$0xff]   ;;  %v7049_v39 = vld [vmem:[#allocation11 + $0x30] ss:$12 sps:$4 sm:$0xff]  }
  0x58   :  { %13340 = vst [vmem:[#allocation25_spill] sm:$0xff] %v8374_v31  ;;  %13341 = vst [vmem:[#allocation26_spill] sm:$0xff] %v8377_v32  ;;  %v7054_v40 = vld [vmem:[#allocation11 + $0x4c] ss:$12 sps:$4 sm:$0xff]   ;;  %v7052_v41 = vld [vmem:[#allocation11 + $0x48] ss:$12 sps:$4 sm:$0xff]  }
  0x59   :  { %13342 = vst [vmem:[#allocation27_spill] sm:$0xff] %v8380_v33  ;;  %v7057_v42 = vld [vmem:[#allocation11 + $0x64] ss:$12 sps:$4 sm:$0xff]   ;;  %v7055_v43 = vld [vmem:[#allocation11 + $0x60] ss:$12 sps:$4 sm:$0xff]  }
  0x5a   :  { %v7060_v44 = vld [vmem:[#allocation11 + $0x7c] ss:$12 sps:$4 sm:$0xff]   ;;  %v7058_v45 = vld [vmem:[#allocation11 + $0x78] ss:$12 sps:$4 sm:$0xff]   ;;  %v7063_v46 = vld [vmem:[#allocation11 + $0x94] ss:$12 sps:$4 sm:$0xff]  }
  0x5b   :  { %6197 = vmatmul.mubr.msk.bf16.gmra.mrb[4].mxu0 %vm280_vm0, %v7026_v11  ;;  %6201 = vmatmul.mubr.msk.bf16.gmra.mrb[4].mxu1 %vm280_vm0, %v7026_v11  ;;  %v7061_v47 = vld [vmem:[#allocation11 + $0x90] ss:$12 sps:$4 sm:$0xff]   ;;  %v7066_v48 = vld [vmem:[#allocation11 + $0xac] ss:$12 sps:$4 sm:$0xff]   ;;  %v7064_v49 = vld [vmem:[#allocation11 + $0xa8] ss:$12 sps:$4 sm:$0xff]  }
  0x5c   :  { %345 = vmatprep.mubr.bf16.mxu0 %v12682_v0  ;;  %418 = vmatprep.mubr.bf16.mxu1 %v12682_v0  ;;  %v7069_v50 = vld [vmem:[#allocation11 + $0xc4] ss:$12 sps:$4 sm:$0xff]   ;;  %v7067_v51 = vld [vmem:[#allocation11 + $0xc0] ss:$12 sps:$4 sm:$0xff]   ;;  %v7072_v52 = vld [vmem:[#allocation11 + $0xdc] ss:$12 sps:$4 sm:$0xff]  }
  0x5d   :  { %v7075_v53 = vld [vmem:[#allocation11 + $0x184] ss:$12 sps:$4 sm:$0xff]   ;;  %v7073_v55 = vld [vmem:[#allocation11 + $0x180] ss:$12 sps:$4 sm:$0xff]   ;;  %v7081_v57 = vld [vmem:[#allocation11 + $0x19c] ss:$12 sps:$4 sm:$0xff]  }
  0x5e   :  { %v7070_v54 = vld [vmem:[#allocation11 + $0xd8] ss:$12 sps:$4 sm:$0xff]   ;;  %v7078_v56 = vld [vmem:[#allocation11 + $0xf4] ss:$12 sps:$4 sm:$0xff]   ;;  %v7076_v58 = vld [vmem:[#allocation11 + $0xf0] ss:$12 sps:$4 sm:$0xff]  }
  0x5f   :  { %v7079_v59 = vld [vmem:[#allocation11 + $0x198] ss:$12 sps:$4 sm:$0xff]   ;;  %v7087_v61 = vld [vmem:[#allocation11 + $0x1b4] ss:$12 sps:$4 sm:$0xff]   ;;  %v7085_v63 = vld [vmem:[#allocation11 + $0x1b0] ss:$12 sps:$4 sm:$0xff]  }
  0x60   :  { %v7084_v60 = vld [vmem:[#allocation11 + $0x10c] ss:$12 sps:$4 sm:$0xff]   ;;  %v7082_v62 = vld [vmem:[#allocation11 + $0x108] ss:$12 sps:$4 sm:$0xff]   ;;  %v7090_v1 = vld [vmem:[#allocation11 + $0x124] ss:$12 sps:$4 sm:$0xff]  }
  0x61   :  { %v7093_v2 = vld [vmem:[#allocation11 + $0x1cc] ss:$12 sps:$4 sm:$0xff]   ;;  %v7091_v4 = vld [vmem:[#allocation11 + $0x1c8] ss:$12 sps:$4 sm:$0xff]   ;;  %v7099_v6 = vld [vmem:[#allocation11 + $0x1e4] ss:$12 sps:$4 sm:$0xff]  }
  0x62   :  { %v7088_v3 = vld [vmem:[#allocation11 + $0x120] ss:$12 sps:$4 sm:$0xff]   ;;  %v7094_v7 = vld [vmem:[#allocation11 + $0x138] ss:$12 sps:$4 sm:$0xff]   ;;  %v7105_v10 = vld [vmem:[#allocation11 + $0x1fc] ss:$12 sps:$4 sm:$0xff]  }
  0x63   :  { %6198 = vmatmul.mubr.msk.bf16.gmra.mrb[8].mxu0 %vm280_vm0, %v7027_v13  ;;  %6202 = vmatmul.mubr.msk.bf16.gmra.mrb[8].mxu1 %vm280_vm0, %v7027_v13  ;;  %v7097_v8 = vld [vmem:[#allocation11 + $0x1e0] ss:$12 sps:$4 sm:$0xff]  }
  0x64   :  { %355 = vmatprep.mubr.bf16.mxu0 %v12682_v0  ;;  %428 = vmatprep.mubr.bf16.mxu1 %v12682_v0  ;;  %v7102_v9 = vld [vmem:[#allocation11 + $0x154] ss:$12 sps:$4 sm:$0xff]  }
  0x6b   :  { %6199 = vmatmul.mubr.msk.bf16.gmra.mrb[12].mxu0 %vm280_vm0, %v7028_v14  ;;  %6203 = vmatmul.mubr.msk.bf16.gmra.mrb[12].mxu1 %vm280_vm0, %v7028_v14 }
  0x6c   :  { %471 = vmatprep.mubr.bf16.mxu0 %v12682_v0  ;;  %544 = vmatprep.mubr.bf16.mxu1 %v12682_v0 }
  0x73   :  { %6204 = vmatmul.mubr.msk.bf16.vlgmr.msra.gmra.mrb[16].mxu0 %vm280_vm0, %v7019_v5  ;;  %6208 = vmatmul.mubr.msk.bf16.vlgmr.msra.gmra.mrb[16].mxu1 %vm280_vm0, %v7019_v5 }
  0x74   :  { %832 = vmatpush1.bf16.msra.mxu1 %v7029_v15  ;;  %6677 = vmatpush3.bf16.msra.mxu0 %v7032_v12  ;;  %v7103_v12 = vld [vmem:[#allocation11 + $0x1f8] ss:$12 sps:$4 sm:$0xff]   ;;  %v7106_v15 = vld [vmem:[#allocation11 + $0x168] ss:$12 sps:$4 sm:$0xff]  }
  0x75   :  { %481 = vmatprep.mubr.bf16.mxu0 %v12682_v0  ;;  %554 = vmatprep.mubr.bf16.mxu1 %v12682_v0 }
  0x76   :  { %872 = vmatprep.subr.bf16.mxu1 %v7035_v16  ;;  %913 = vmatprep.subr.bf16.mxu0 %v7038_v17  ;;  %v7109_v16 = vld [vmem:[#allocation11 + $0x210] ss:$12 sps:$4 sm:$0xff]   ;;  %v7112_v17 = vld [vmem:[#allocation11 + $0x228] ss:$12 sps:$4 sm:$0xff]  }
  0x7b   :  { %6205 = vmatmul.mubr.msk.bf16.gmra.mrb[20].mxu0 %vm280_vm0, %v7026_v11  ;;  %6209 = vmatmul.mubr.msk.bf16.gmra.mrb[20].mxu1 %vm280_vm0, %v7026_v11 }
  0x7c   :  { %491 = vmatprep.mubr.bf16.mxu0 %v12682_v0  ;;  %564 = vmatprep.mubr.bf16.mxu1 %v12682_v0 }
  0x83   :  { %6206 = vmatmul.mubr.msk.bf16.gmra.mrb[24].mxu0 %vm280_vm0, %v7027_v13  ;;  %6210 = vmatmul.mubr.msk.bf16.gmra.mrb[24].mxu1 %vm280_vm0, %v7027_v13 }
  0x84   :  { %501 = vmatprep.mubr.bf16.mxu0 %v12682_v0  ;;  %574 = vmatprep.mubr.bf16.mxu1 %v12682_v0 }
  0x8b   :  { %6207 = vmatmul.mubr.msk.bf16.gmra.mrb[28].mxu0 %vm280_vm0, %v7028_v14  ;;  %6211 = vmatmul.mubr.msk.bf16.gmra.mrb[28].mxu1 %vm280_vm0, %v7028_v14 }
  0x8c   :  { %6678 = vmatprep.mubr.msk.bf16.mxu0 %vm280_vm0, %v7019_v5  ;;  %863 = vmatprep.mubr.bf16.mxu1 %v12682_v0  ;;  %v7096_v5 = vld [vmem:[#allocation11 + $0x13c] ss:$12 sps:$4 sm:$0xff]  }
  0x93   :  { %6679 = vmatmul.mubr.msk.bf16.vlgmr.msra.gmra.mrb[32].mxu0 %vm280_vm0, %v7026_v11  ;;  %6226 = vmatmul.mubr.msk.bf16.vlgmr.msra.gmra.mrb[32].mxu1 %vm280_vm0, %v722_v18  ;;  %v7100_v11 = vld [vmem:[#allocation11 + $0x150] ss:$12 sps:$4 sm:$0xff]  }
  0x94   :  { %873 = vmatpush1.bf16.msra.mxu1 %v7033_v19  ;;  %914 = vmatpush1.bf16.msra.mxu0 %v7036_v20  ;;  %v7116_v19 = vld [vmem:[#allocation11 + $0xc8] ss:$12 sps:$4 sm:$0xff]  }
  0x95   :  { %6682 = vmatprep.mubr.msk.bf16.mxu0 %vm280_vm0, %v7027_v13  ;;  %904 = vmatprep.mubr.bf16.mxu1 %v12682_v0  ;;  %v7108_v13 = vld [vmem:[#allocation11 + $0x16c] ss:$12 sps:$4 sm:$0xff]   ;;  %v8388_v20 = vld [vmem:[%s12672_s2] sm:$0xff] }
  0x96   :  { %954 = vmatprep.subr.bf16.mxu1 %v7041_v21  ;;  %6686 = vmatprep.subr.bf16.mxu0 %v12684_v22  ;;  %v12690_v21 = vsub.s32 3, %v8355_v26  ;;  %v8397_v24 = vrot.slane %v8388_v20, %v8368_v29  ;;  %v8406_v28 = vrot.slane %v8388_v20, %v8371_v30 }
  0x9b   :  { %6683 = vmatmul.mubr.msk.bf16.gmra.mrb[36].mxu0 %vm280_vm0, %v7028_v14  ;;  %6227 = vmatmul.mubr.msk.bf16.vlgmr.msra.gmra.mrb[36].mxu1 %vm280_vm0, %v722_v18  ;;  %v7111_v14 = vld [vmem:[#allocation11 + $0x214] ss:$12 sps:$4 sm:$0xff]  }
  0x9c   :  { %945 = vmatprep.mubr.bf16.mxu0 %v12682_v0  ;;  %955 = vmatpush1.bf16.msra.mxu1 %v7039_v23  ;;  %v8393_v23 = vrot.slane %v8388_v20, %v8362_v27 }
  0x9d   :  { %986 = vmatprep.mubr.bf16.mxu1 %v12682_v0  ;;  %1589 = vmatprep.subr.bf16.mxu1 %v7045_v34 }
  0xa3   :  { %6228 = vmatmul.mubr.msk.bf16.vlgmr.msra.gmra.mrb[40].mxu0 %vm280_vm0, %v722_v18  ;;  %6229 = vmatmul.mubr.msk.bf16.vlgmr.msra.gmra.mrb[40].mxu1 %vm280_vm0, %v722_v18 }
  0xa4   :  { %6687 = vmatpush3.bf16.msra.mxu0 %v7042_v25  ;;  %6688 = vmatprep.mubr.msk.bf16.mxu0 %vm8178_vm1, %v12684_v22  ;;  %v8402_v25 = vrot.slane %v8388_v20, %v12690_v21 }
  0xa5   :  { %1590 = vmatpush1.bf16.msra.mxu1 %v7043_v35  ;;  %1630 = vmatprep.subr.bf16.mxu0 %v7075_v53 }
  0xa6   :  { %1591 = vmatprep.subr.bf16.mxu1 %v7048_v36 }
  0xa9   :  { %1592 = vmatpush1.bf16.msra.mxu1 %v7046_v37 }
  0xaa   :  { %1593 = vmatprep.subr.bf16.mxu1 %v7051_v38 }
  0xab   :  { %6689 = vmatmul.mubr.msk.bf16.vlgmr.msra.gmra.mrb[44].mxu0 %vm280_vm0, %v722_v18  ;;  %v7114_v18 = vld [vmem:[#allocation11 + $0x22c] ss:$12 sps:$4 sm:$0xff]  }
  0xac   :  { %1662 = vmatprep.mubr.bf16.mxu0 %v12682_v0  ;;  %1631 = vmatpush1.bf16.msra.mxu0 %v7073_v55 }
  0xad   :  { %1594 = vmatpush1.bf16.msra.mxu1 %v7049_v39  ;;  %1632 = vmatprep.subr.bf16.mxu0 %v7081_v57 }
  0xae   :  { %1595 = vmatprep.subr.bf16.mxu1 %v7054_v40 }
  0xb0   :  { %1633 = vmatpush1.bf16.msra.mxu0 %v7079_v59 }
  0xb1   :  { %1596 = vmatpush1.bf16.msra.mxu1 %v7052_v41  ;;  %1634 = vmatprep.subr.bf16.mxu0 %v7087_v61 }
  0xb2   :  { %1597 = vmatprep.subr.bf16.mxu1 %v7057_v42 }
  0xb4   :  { %1635 = vmatpush1.bf16.msra.mxu0 %v7085_v63 }
  0xb5   :  { %1598 = vmatpush1.bf16.msra.mxu1 %v7055_v43  ;;  %1636 = vmatprep.subr.bf16.mxu0 %v7093_v2 }
  0xb6   :  { %1599 = vmatprep.subr.bf16.mxu1 %v7060_v44 }
  0xb8   :  { %1637 = vmatpush1.bf16.msra.mxu0 %v7091_v4 }
  0xb9   :  { %1600 = vmatpush1.bf16.msra.mxu1 %v7058_v45  ;;  %1638 = vmatprep.subr.bf16.mxu0 %v7099_v6 }
  0xba   :  { %1601 = vmatprep.subr.bf16.mxu1 %v7063_v46 }
  0xbc   :  { %1639 = vmatpush1.bf16.msra.mxu0 %v7097_v8 }
  0xbd   :  { %1602 = vmatpush1.bf16.msra.mxu1 %v7061_v47  ;;  %1640 = vmatprep.subr.bf16.mxu0 %v7105_v10 }
  0xbe   :  { %1603 = vmatprep.subr.bf16.mxu1 %v7066_v48 }
  0xc0   :  { %1641 = vmatpush1.bf16.msra.mxu0 %v7103_v12 }
  0xc1   :  { %1604 = vmatpush1.bf16.msra.mxu1 %v7064_v49  ;;  %1642 = vmatprep.subr.bf16.mxu0 %v7111_v14 }
  0xc2   :  { %1605 = vmatprep.subr.bf16.mxu1 %v7069_v50 }
  0xc4   :  { %1643 = vmatpush1.bf16.msra.mxu0 %v7109_v16 }
  0xc5   :  { %1606 = vmatpush1.bf16.msra.mxu1 %v7067_v51  ;;  %1644 = vmatprep.subr.bf16.mxu0 %v7114_v18 }
  0xc6   :  { %1607 = vmatprep.subr.bf16.mxu1 %v7072_v52 }
  0xc8   :  { %1645 = vmatpush1.bf16.msra.mxu0 %v7112_v17 }
  0xc9   :  { %1608 = vmatpush1.bf16.msra.mxu1 %v7070_v54  ;;  %6366 = vmatprep.subr.bf16.mxu0 %v7116_v19 }
  0xca   :  { %1609 = vmatprep.subr.bf16.mxu1 %v7078_v56 }
  0xcd   :  { %1610 = vmatpush1.bf16.msra.mxu1 %v7076_v58 }
  0xce   :  { %1611 = vmatprep.subr.bf16.mxu1 %v7084_v60 }
  0xd1   :  { %1612 = vmatpush1.bf16.msra.mxu1 %v7082_v62 }
  0xd2   :  { %1613 = vmatprep.subr.bf16.mxu1 %v7090_v1 }
  0xd5   :  { %1614 = vmatpush1.bf16.msra.mxu1 %v7088_v3 }
  0xd6   :  { %1615 = vmatprep.subr.bf16.mxu1 %v7096_v5 }
  0xd9   :  { %1616 = vmatpush1.bf16.msra.mxu1 %v7094_v7 }
  0xda   :  { %1617 = vmatprep.subr.bf16.mxu1 %v7102_v9 }
  0xdd   :  { %1618 = vmatpush1.bf16.msra.mxu1 %v7100_v11 }
  0xde   :  { %1619 = vmatprep.subr.bf16.mxu1 %v7108_v13 }
  0xe1   :  { %1620 = vmatpush1.bf16.msra.mxu1 %v7106_v15 }
  0xe2   :  { %6692 = vmatprep.subr.bf16.mxu1 %v12684_v22 }
 0x126   :  { %v400_v34 = vpop.f32.mrb[0].mxu1  ;;  %v327_v35 = vpop.f32.mrb[0].mxu0 }
 0x127   :  { %v8409_v36 = vadd.f32 %v400_v34, %v8393_v23  ;;  %v402_v37 = vpop.f32.mrb[1].mxu1  ;;  %v8412_v38 = vadd.f32 %v327_v35, %v8397_v24  ;;  %v329_v39 = vpop.f32.mrb[1].mxu0 }
 0x128   :  { %v8415_v40 = vadd.f32 %v402_v37, %v8402_v25  ;;  %v404_v41 = vpop.f32.mrb[2].mxu1  ;;  %v8418_v42 = vadd.f32 %v329_v39, %v8406_v28  ;;  %v331_v43 = vpop.f32.mrb[2].mxu0 }
 0x129   :  { %13343 = vst [vmem:[#allocation28_spill] sm:$0xff] %v8409_v36  ;;  %13344 = vst [vmem:[#allocation29_spill] sm:$0xff] %v8412_v38  ;;  %v8421_v44 = vadd.f32 %v404_v41, %v8393_v23  ;;  %v406_v45 = vpop.f32.mrb[3].mxu1  ;;  %v8424_v46 = vadd.f32 %v331_v43, %v8397_v24  ;;  %v333_v47 = vpop.f32.mrb[3].mxu0  ;;  %v12687_v43 = vsub.s32 6, %v8355_v26 }
 0x12a   :  { %13345 = vst [vmem:[#allocation30_spill] sm:$0xff] %v8415_v40  ;;  %13346 = vst [vmem:[#allocation31_spill] sm:$0xff] %v8418_v42  ;;  %v8427_v48 = vadd.f32 %v406_v45, %v8402_v25  ;;  %v8430_v49 = vadd.f32 %v333_v47, %v8406_v28  ;;  %v12689_v45 = vsub.s32 4, %v8355_v26 }
 0x12b   :  { %13347 = vst [vmem:[#allocation32_spill] sm:$0xff] %v8421_v44  ;;  %13348 = vst [vmem:[#allocation33_spill] sm:$0xff] %v8424_v46 }
 0x12c   :  { %13349 = vst [vmem:[#allocation34_spill] sm:$0xff] %v8427_v48  ;;  %13350 = vst [vmem:[#allocation35_spill] sm:$0xff] %v8430_v49 }
 0x12e   :  { %v410_v50 = vpop.f32.mrb[4].mxu1  ;;  %v337_v51 = vpop.f32.mrb[4].mxu0 }
 0x12f   :  { %v8433_v52 = vadd.f32 %v410_v50, %v8393_v23  ;;  %v412_v53 = vpop.f32.mrb[5].mxu1  ;;  %v8436_v54 = vadd.f32 %v337_v51, %v8397_v24  ;;  %v339_v55 = vpop.f32.mrb[5].mxu0 }
 0x130   :  { %v8439_v56 = vadd.f32 %v412_v53, %v8402_v25  ;;  %v414_v57 = vpop.f32.mrb[6].mxu1  ;;  %v8442_v58 = vadd.f32 %v339_v55, %v8406_v28  ;;  %v341_v59 = vpop.f32.mrb[6].mxu0  ;;  %v12686_v55 = vsub.s32 7, %v8355_v26 }
 0x131   :  { %13351 = vst [vmem:[#allocation36_spill] sm:$0xff] %v8433_v52  ;;  %13352 = vst [vmem:[#allocation37_spill] sm:$0xff] %v8436_v54  ;;  %v8445_v60 = vadd.f32 %v414_v57, %v8393_v23  ;;  %v416_v61 = vpop.f32.mrb[7].mxu1  ;;  %v8448_v62 = vadd.f32 %v341_v59, %v8397_v24  ;;  %v343_v63 = vpop.f32.mrb[7].mxu0  ;;  %v12688_v57 = vsub.s32 5, %v8355_v26 }
 0x132   :  { %13353 = vst [vmem:[#allocation38_spill] sm:$0xff] %v8439_v56  ;;  %13354 = vst [vmem:[#allocation39_spill] sm:$0xff] %v8442_v58  ;;  %v8451_v1 = vadd.f32 %v416_v61, %v8402_v25  ;;  %v8454_v2 = vadd.f32 %v343_v63, %v8406_v28 }
 0x133   :  { %13355 = vst [vmem:[#allocation40_spill] sm:$0xff] %v8445_v60  ;;  %13356 = vst [vmem:[#allocation41_spill] sm:$0xff] %v8448_v62 }
 0x134   :  { %13357 = vst [vmem:[#allocation42_spill] sm:$0xff] %v8451_v1  ;;  %13358 = vst [vmem:[#allocation43_spill] sm:$0xff] %v8454_v2 }
 0x136   :  { %v420_v3 = vpop.f32.mrb[8].mxu1  ;;  %v347_v4 = vpop.f32.mrb[8].mxu0 }
 0x137   :  { %v8457_v5 = vadd.f32 %v420_v3, %v8393_v23  ;;  %v422_v6 = vpop.f32.mrb[9].mxu1  ;;  %v8460_v7 = vadd.f32 %v347_v4, %v8397_v24  ;;  %v349_v8 = vpop.f32.mrb[9].mxu0 }
 0x138   :  { %v8463_v9 = vadd.f32 %v422_v6, %v8402_v25  ;;  %v424_v10 = vpop.f32.mrb[10].mxu1  ;;  %v8466_v11 = vadd.f32 %v349_v8, %v8406_v28  ;;  %v351_v12 = vpop.f32.mrb[10].mxu0  ;;  %v8511_v8 = vrot.slane %v8388_v20, %v12687_v43 }
 0x139   :  { %13359 = vst [vmem:[#allocation44_spill] sm:$0xff] %v8457_v5  ;;  %13360 = vst [vmem:[#allocation45_spill] sm:$0xff] %v8460_v7  ;;  %v8469_v13 = vadd.f32 %v424_v10, %v8393_v23  ;;  %v426_v14 = vpop.f32.mrb[11].mxu1  ;;  %v8472_v15 = vadd.f32 %v351_v12, %v8397_v24  ;;  %v353_v16 = vpop.f32.mrb[11].mxu0 }
 0x13a   :  { %13361 = vst [vmem:[#allocation46_spill] sm:$0xff] %v8463_v9  ;;  %13362 = vst [vmem:[#allocation47_spill] sm:$0xff] %v8466_v11  ;;  %v8475_v17 = vadd.f32 %v426_v14, %v8402_v25  ;;  %v8478_v18 = vadd.f32 %v353_v16, %v8406_v28 }
 0x13b   :  { %13363 = vst [vmem:[#allocation48_spill] sm:$0xff] %v8469_v13  ;;  %13364 = vst [vmem:[#allocation49_spill] sm:$0xff] %v8472_v15 }
 0x13c   :  { %13365 = vst [vmem:[#allocation50_spill] sm:$0xff] %v8475_v17  ;;  %13366 = vst [vmem:[#allocation51_spill] sm:$0xff] %v8478_v18 }
 0x13e   :  { %v430_v19 = vpop.f32.mrb[12].mxu1  ;;  %v357_v34 = vpop.f32.mrb[12].mxu0 }
 0x13f   :  { %v8481_v35 = vadd.f32 %v430_v19, %v8393_v23  ;;  %v432_v37 = vpop.f32.mrb[13].mxu1  ;;  %v8484_v39 = vadd.f32 %v357_v34, %v8397_v24  ;;  %v359_v41 = vpop.f32.mrb[13].mxu0 }
 0x140   :  { %v8489_v47 = vadd.f32 %v432_v37, %v8402_v25  ;;  %v434_v50 = vpop.f32.mrb[14].mxu1  ;;  %v8492_v51 = vadd.f32 %v359_v41, %v8406_v28  ;;  %v361_v53 = vpop.f32.mrb[14].mxu0 }
 0x141   :  { %13367 = vst [vmem:[#allocation52_spill] sm:$0xff] %v8481_v35  ;;  %13368 = vst [vmem:[#allocation53_spill] sm:$0xff] %v8484_v39  ;;  %v8497_v59 = vadd.f32 %v434_v50, %v8393_v23  ;;  %v436_v61 = vpop.f32.mrb[15].mxu1  ;;  %v8500_v63 = vadd.f32 %v361_v53, %v8397_v24  ;;  %v363_v3 = vpop.f32.mrb[15].mxu0  ;;  %v8516_v23 = vrot.slane %v8388_v20, %v12689_v45 }
 0x142   :  { %13369 = vst [vmem:[#allocation54_spill] sm:$0xff] %v8489_v47  ;;  %13370 = vst [vmem:[#allocation55_spill] sm:$0xff] %v8492_v51  ;;  %v8503_v4 = vadd.f32 %v436_v61, %v8402_v25  ;;  %v8506_v6 = vadd.f32 %v363_v3, %v8406_v28  ;;  %v8521_v24 = vrot.slane %v8388_v20, %v12686_v55 }
 0x143   :  { %13371 = vst [vmem:[#allocation56_spill] sm:$0xff] %v8497_v59  ;;  %13372 = vst [vmem:[#allocation57_spill] sm:$0xff] %v8500_v63  ;;  %v8526_v25 = vrot.slane %v8388_v20, %v12688_v57 }
 0x144   :  { %13373 = vst [vmem:[#allocation58_spill] sm:$0xff] %v8503_v4  ;;  %13374 = vst [vmem:[#allocation59_spill] sm:$0xff] %v8506_v6 }
 0x146   :  { %v546_v28 = vpop.f32.mrb[16].mxu1  ;;  %v473_v10 = vpop.f32.mrb[16].mxu0 }
 0x147   :  { %v8529_v12 = vadd.f32 %v546_v28, %v8511_v8  ;;  %v548_v14 = vpop.f32.mrb[17].mxu1  ;;  %v8532_v16 = vadd.f32 %v473_v10, %v8516_v23  ;;  %v475_v19 = vpop.f32.mrb[17].mxu0 }
 0x148   :  { %v8535_v34 = vadd.f32 %v548_v14, %v8521_v24  ;;  %v550_v37 = vpop.f32.mrb[18].mxu1  ;;  %v8538_v41 = vadd.f32 %v475_v19, %v8526_v25  ;;  %v477_v50 = vpop.f32.mrb[18].mxu0 }
 0x149   :  { %13375 = vst [vmem:[#allocation60_spill] sm:$0xff] %v8529_v12  ;;  %13376 = vst [vmem:[#allocation61_spill] sm:$0xff] %v8532_v16  ;;  %v8541_v20 = vadd.f32 %v550_v37, %v8511_v8  ;;  %v552_v53 = vpop.f32.mrb[19].mxu1  ;;  %v8544_v61 = vadd.f32 %v477_v50, %v8516_v23  ;;  %v479_v3 = vpop.f32.mrb[19].mxu0 }
 0x14a   :  { %13377 = vst [vmem:[#allocation62_spill] sm:$0xff] %v8535_v34  ;;  %13378 = vst [vmem:[#allocation63_spill] sm:$0xff] %v8538_v41  ;;  %v8547_v28 = vadd.f32 %v552_v53, %v8521_v24  ;;  %v8550_v10 = vadd.f32 %v479_v3, %v8526_v25 }
 0x14b   :  { %13379 = vst [vmem:[#allocation64_spill] sm:$0xff] %v8541_v20  ;;  %13380 = vst [vmem:[#allocation65_spill] sm:$0xff] %v8544_v61 }
 0x14c   :  { %13381 = vst [vmem:[#allocation66_spill] sm:$0xff] %v8547_v28  ;;  %13382 = vst [vmem:[#allocation67_spill] sm:$0xff] %v8550_v10 }
 0x14e   :  { %v556_v14 = vpop.f32.mrb[20].mxu1  ;;  %v483_v0 = vpop.f32.mrb[20].mxu0 }
 0x14f   :  { %v8553_v19 = vadd.f32 %v556_v14, %v8511_v8  ;;  %v558_v22 = vpop.f32.mrb[21].mxu1  ;;  %v8556_v37 = vadd.f32 %v483_v0, %v8516_v23  ;;  %v485_v55 = vpop.f32.mrb[21].mxu0 }
 0x150   :  { %v8559_v50 = vadd.f32 %v558_v22, %v8521_v24  ;;  %v560_v43 = vpop.f32.mrb[22].mxu1  ;;  %v8562_v53 = vadd.f32 %v485_v55, %v8526_v25  ;;  %v487_v57 = vpop.f32.mrb[22].mxu0 }
 0x151   :  { %13383 = vst [vmem:[#allocation68_spill] sm:$0xff] %v8553_v19  ;;  %13384 = vst [vmem:[#allocation69_spill] sm:$0xff] %v8556_v37  ;;  %v8565_v3 = vadd.f32 %v560_v43, %v8511_v8  ;;  %v562_v45 = vpop.f32.mrb[23].mxu1  ;;  %v8568_v14 = vadd.f32 %v487_v57, %v8516_v23  ;;  %v489_v21 = vpop.f32.mrb[23].mxu0 }
 0x152   :  { %13385 = vst [vmem:[#allocation70_spill] sm:$0xff] %v8559_v50  ;;  %13386 = vst [vmem:[#allocation71_spill] sm:$0xff] %v8562_v53  ;;  %v8571_v0 = vadd.f32 %v562_v45, %v8521_v24  ;;  %v8574_v59 = vadd.f32 %v489_v21, %v8526_v25 }
 0x153   :  { %13387 = vst [vmem:[#allocation72_spill] sm:$0xff] %v8565_v3  ;;  %13388 = vst [vmem:[#allocation73_spill] sm:$0xff] %v8568_v14 }
 0x154   :  { %13389 = vst [vmem:[#allocation74_spill] sm:$0xff] %v8571_v0  ;;  %13390 = vst [vmem:[#allocation75_spill] sm:$0xff] %v8574_v59 }
 0x156   :  { %v566_v22 = vpop.f32.mrb[24].mxu1  ;;  %v493_v4 = vpop.f32.mrb[24].mxu0 }
 0x157   :  { %v8577_v55 = vadd.f32 %v566_v22, %v8511_v8  ;;  %v568_v6 = vpop.f32.mrb[25].mxu1  ;;  %v8580_v43 = vadd.f32 %v493_v4, %v8516_v23  ;;  %v495_v63 = vpop.f32.mrb[25].mxu0 }
 0x158   :  { %v8583_v57 = vadd.f32 %v568_v6, %v8521_v24  ;;  %v570_v35 = vpop.f32.mrb[26].mxu1  ;;  %v8586_v45 = vadd.f32 %v495_v63, %v8526_v25  ;;  %v497_v47 = vpop.f32.mrb[26].mxu0 }
 0x159   :  { %13391 = vst [vmem:[#allocation76_spill] sm:$0xff] %v8577_v55  ;;  %13392 = vst [vmem:[#allocation77_spill] sm:$0xff] %v8580_v43  ;;  %v8589_v21 = vadd.f32 %v570_v35, %v8511_v8  ;;  %v572_v51 = vpop.f32.mrb[27].mxu1  ;;  %v8592_v22 = vadd.f32 %v497_v47, %v8516_v23  ;;  %v499_v39 = vpop.f32.mrb[27].mxu0 }
 0x15a   :  { %13393 = vst [vmem:[#allocation78_spill] sm:$0xff] %v8583_v57  ;;  %13394 = vst [vmem:[#allocation79_spill] sm:$0xff] %v8586_v45  ;;  %v8595_v4 = vadd.f32 %v572_v51, %v8521_v24  ;;  %v8598_v13 = vadd.f32 %v499_v39, %v8526_v25  ;;  %v8615_v39 = vld [vmem:[%s12675_s5] sm:$0xff] }
 0x15b   :  { %13395 = vst [vmem:[#allocation80_spill] sm:$0xff] %v8589_v21  ;;  %13396 = vst [vmem:[#allocation81_spill] sm:$0xff] %v8592_v22 }
 0x15c   :  { %13397 = vst [vmem:[#allocation82_spill] sm:$0xff] %v8595_v4  ;;  %13398 = vst [vmem:[#allocation83_spill] sm:$0xff] %v8598_v13 }
 0x15e   :  { %v576_v6 = vpop.f32.mrb[28].mxu1  ;;  %v503_v17 = vpop.f32.mrb[28].mxu0 }
 0x15f   :  { %v8601_v63 = vadd.f32 %v576_v6, %v8511_v8  ;;  %v578_v18 = vpop.f32.mrb[29].mxu1  ;;  %v8604_v35 = vadd.f32 %v503_v17, %v8516_v23  ;;  %v505_v21 = vpop.f32.mrb[29].mxu0 }
 0x160   :  { %v8607_v47 = vadd.f32 %v578_v18, %v8521_v24  ;;  %v580_v22 = vpop.f32.mrb[30].mxu1  ;;  %v8610_v51 = vadd.f32 %v505_v21, %v8526_v25  ;;  %v507_v4 = vpop.f32.mrb[30].mxu0 }
 0x161   :  { %13399 = vst [vmem:[#allocation84_spill] sm:$0xff] %v8601_v63  ;;  %13400 = vst [vmem:[#allocation85_spill] sm:$0xff] %v8604_v35  ;;  %v8618_v6 = vadd.f32 %v580_v22, %v8511_v8  ;;  %v582_v63 = vpop.f32.mrb[31].mxu1  ;;  %v8621_v17 = vadd.f32 %v507_v4, %v8516_v23  ;;  %v509_v35 = vpop.f32.mrb[31].mxu0  ;;  %v6182_v8 = vld [vmem:[%s12672_s2 + $0x8] ss:$0 sm:$0xff] }
 0x162   :  { %13401 = vst [vmem:[#allocation86_spill] sm:$0xff] %v8607_v47  ;;  %13402 = vst [vmem:[#allocation87_spill] sm:$0xff] %v8610_v51  ;;  %v8624_v18 = vadd.f32 %v582_v63, %v8521_v24  ;;  %v8627_v21 = vadd.f32 %v509_v35, %v8526_v25  ;;  %v740_v51 = vrot.slane %v8615_v39, %v8368_v29 }
 0x163   :  { %13403 = vst [vmem:[#allocation88_spill] sm:$0xff] %v8618_v6  ;;  %13404 = vst [vmem:[#allocation89_spill] sm:$0xff] %v8621_v17  ;;  %v744_v47 = vrot.slane %v8615_v39, %v8371_v30 }
 0x164   :  { %13405 = vst [vmem:[#allocation90_spill] sm:$0xff] %v8624_v18  ;;  %13406 = vst [vmem:[#allocation91_spill] sm:$0xff] %v8627_v21 }
 0x166   :  { %v865_v22 = vpop.f32.mrb[32].mxu1  ;;  %v6680_v23 = vpop.f32.mrb[32].mxu0 }
 0x167   :  { %v866_v4 = vadd.f32 %v865_v22, %v740_v51  ;;  %v867_v6 = vpop.f32.mrb[33].mxu1  ;;  %v8636_v17 = vadd.f32 %v6680_v23, %v6182_v8  ;;  %v619_v24 = vpop.f32.mrb[33].mxu0  ;;  %v748_v51 = vrot.slane %v8615_v39, %v8362_v27  ;;  %v13411_v22 = vsub.s32 3, %v8355_v26 }
 0x168   :  { %v868_v63 = vadd.f32 %v867_v6, %v744_v47  ;;  %v869_v25 = vpop.f32.mrb[34].mxu1  ;;  %v8638_v35 = vadd.f32 %v6182_v8, %v619_v24  ;;  %v6681_v21 = vpop.f32.mrb[34].mxu0 }
 0x169   :  { %13407 = vst [vmem:[#allocation92_spill] sm:$0xff] %v8636_v17  ;;  %v6231_v18 = vmul.f32 -1.442695, %v866_v4  ;;  %v870_v13 = vpop.f32.mrb[35].mxu1  ;;  %v8640_v15 = vadd.f32 %v6681_v21, %v6182_v8  ;;  %v622_v45 = vpop.f32.mrb[35].mxu0  ;;  %v752_v47 = vrot.slane %v8615_v39, %v13411_v22 }
 0x16a   :  { %13408 = vst [vmem:[#allocation93_spill] sm:$0xff] %v8638_v35  ;;  %v6232_v57 = vmul.f32 -1.442695, %v868_v63  ;;  %v8642_v55 = vadd.f32 %v6182_v8, %v622_v45 }
 0x16b   :  { %13409 = vst [vmem:[#allocation94_spill] sm:$0xff] %v8640_v15  ;;  %7139 = vpow2.f32 %v6231_v18 }
 0x16c   :  { %13410 = vst [vmem:[#allocation95_spill] sm:$0xff] %v8642_v55  ;;  %7141 = vpow2.f32 %v6232_v57 }
 0x16e   :  { %v906_v6 = vpop.f32.mrb[36].mxu1  ;;  %v6684_v23 = vpop.f32.mrb[36].mxu0 }
 0x16f   :  { %v907_v24 = vadd.f32 %v906_v6, %v748_v51  ;;  %v908_v4 = vpop.f32.mrb[37].mxu1  ;;  %v8649_v13 = vadd.f32 %v6684_v23, %v6182_v8  ;;  %v635_v21 = vpop.f32.mrb[37].mxu0  ;;  %v13416_v51 = vsub.s32 4, %v8355_v26 }
 0x170   :  { %v909_v25 = vadd.f32 %v908_v4, %v752_v47  ;;  %v910_v63 = vpop.f32.mrb[38].mxu1  ;;  %v8651_v45 = vadd.f32 %v6182_v8, %v635_v21  ;;  %v6685_v18 = vpop.f32.mrb[38].mxu0  ;;  %v13417_v47 = vsub.s32 5, %v8355_v26 }
 0x171   :  { %13412 = vst [vmem:[#allocation96_spill] sm:$0xff] %v8649_v13  ;;  %v6233_v5 = vmul.f32 -1.442695, %v907_v24  ;;  %v911_v43 = vpop.f32.mrb[39].mxu1  ;;  %v8653_v9 = vadd.f32 %v6685_v18, %v6182_v8  ;;  %v638_v57 = vpop.f32.mrb[39].mxu0  ;;  %v756_v22 = vrot.slane %v8615_v39, %v13416_v51 }
 0x172   :  { %13413 = vst [vmem:[#allocation97_spill] sm:$0xff] %v8651_v45  ;;  %v6234_v11 = vmul.f32 -1.442695, %v909_v25  ;;  %v8655_v7 = vadd.f32 %v6182_v8, %v638_v57  ;;  %v760_v6 = vrot.slane %v8615_v39, %v13417_v47  ;;  %v1071_v47 = vld [vmem:[%s12676_s6] sm:$0x7] }
 0x173   :  { %13414 = vst [vmem:[#allocation98_spill] sm:$0xff] %v8653_v9  ;;  %7143 = vpow2.f32 %v6233_v5 }
 0x174   :  { %13415 = vst [vmem:[#allocation99_spill] sm:$0xff] %v8655_v7  ;;  %7145 = vpow2.f32 %v6234_v11 }
 0x175   :  { %v7140_v23 = vpop.eup %7139 }
 0x176   :  { %v7142_v4 = vpop.eup %7141  ;;  %v1044_v24 = vadd.f32 1.0, %v7140_v23  ;;  %v947_v43 = vpop.f32.mrb[40].mxu0 }
 0x177   :  { %v988_v21 = vpop.f32.mrb[40].mxu1  ;;  %v1045_v63 = vadd.f32 1.0, %v7142_v4  ;;  %v948_v18 = vadd.f32 %v947_v43, %v756_v22  ;;  %v949_v25 = vpop.f32.mrb[41].mxu0  ;;  %v13418_v22 = vsub.s32 6, %v8355_v26 }
 0x178   :  { %v990_v8 = vpop.f32.mrb[41].mxu1  ;;  %7147 = vrcp.f32 %v1044_v24  ;;  %v950_v5 = vadd.f32 %v949_v25, %v760_v6  ;;  %v951_v57 = vpop.f32.mrb[42].mxu0  ;;  %v1080_v25 = vrot.slane %v1071_v47, %v8371_v30 }
 0x179   :  { %v992_v9 = vpop.f32.mrb[42].mxu1  ;;  %7149 = vrcp.f32 %v1045_v63  ;;  %v6235_v51 = vmul.f32 -1.442695, %v948_v18  ;;  %v952_v11 = vpop.f32.mrb[43].mxu0  ;;  %v764_v4 = vrot.slane %v8615_v39, %v13418_v22  ;;  %v1076_v18 = vrot.slane %v1071_v47, %v8368_v29 }
 0x17a   :  { %v993_v13 = vpop.f32.mrb[43].mxu1  ;;  %v6236_v7 = vmul.f32 -1.442695, %v950_v5  ;;  %v13419_v9 = vsub.s32 7, %v8355_v26 }
 0x17b   :  { %7151 = vpow2.f32 %v6235_v51  ;;  %v989_v57 = vadd.f32 %v988_v21, %v764_v4  ;;  %v1084_v21 = vrot.slane %v1071_v47, %v8362_v27 }
 0x17c   :  { %7153 = vpow2.f32 %v6236_v7  ;;  %v768_v43 = vrot.slane %v8615_v39, %v13419_v9 }
 0x17d   :  { %v7144_v23 = vpop.eup %7143 }
 0x17e   :  { %v7146_v24 = vpop.eup %7145  ;;  %v1046_v6 = vadd.f32 1.0, %v7144_v23  ;;  %v1029_v63 = vpop.f32.mrb[44].mxu0  ;;  %v991_v45 = vadd.f32 %v990_v8, %v768_v43 }
 0x17f   :  { %v1062_v13 = vadd.f32 1.0, %v7146_v24  ;;  %v6690_v7 = vpop.f32.mrb[45].mxu0 }
 0x180   :  { %7155 = vrcp.f32 %v1046_v6  ;;  %v1032_v5 = vpop.f32.mrb[46].mxu0  ;;  %v6216_v6 = vld [vmem:[%s12675_s5 + $0x8] ss:$0 sm:$0xff] }
 0x181   :  { %v6691_v51 = vpop.f32.mrb[47].mxu0  ;;  %7157 = vrcp.f32 %v1062_v13  ;;  %v1030_v8 = vadd.f32 %v6216_v6, %v1029_v63  ;;  %v7115_v63 = vld [vmem:[#allocation11 + $0x188] ss:$12 sps:$4 sm:$0xff]  }
 0x182   :  { %v7148_v11 = vpop.eup %7147 }
 0x183   :  { %v7150_v22 = vpop.eup %7149  ;;  %v1088_v23 = vmul.f32 %v7148_v11, %v1076_v18 }
 0x184   :  { %v1089_v15 = vmul.f32 %v7150_v22, %v1080_v25 }
 0x185   :  { %v7152_v26 = vpop.eup %7151  ;;  %v1091_v59 = vadd.f32 %v1088_v23, %v989_v57 }
 0x186   :  { %v7154_v39 = vpop.eup %7153  ;;  %v1063_v9 = vadd.f32 1.0, %v7152_v26  ;;  %v1092_v24 = vadd.f32 %v1089_v15, %v991_v45 }
 0x187   :  { %v1064_v7 = vadd.f32 1.0, %v7154_v39  ;;  %7159 = vtanh.f32 %v1091_v59 }
 0x188   :  { %7161 = vrcp.f32 %v1063_v9 }
 0x189   :  { %7163 = vrcp.f32 %v1064_v7  ;;  %v7117_v7 = vld [vmem:[#allocation11 + $0x8] ss:$12 sps:$4 sm:$0xff]  }
 0x18a   :  { %v7156_v4 = vpop.eup %7155  ;;  %7165 = vtanh.f32 %v1092_v24 }
 0x18b   :  { %v1090_v43 = vmul.f32 %v7156_v4, %v1084_v21  ;;  %v7158_v13 = vpop.eup %7157  ;;  %v7118_v21 = vld [vmem:[#allocation11 + $0x1a0] ss:$12 sps:$4 sm:$0xff]  }
 0x18c   :  { %v1097_v25 = vsub.f32 1.0, %v7158_v13  ;;  %v7120_v13 = vld [vmem:[#allocation11 + $0x20] ss:$12 sps:$4 sm:$0xff]  }
 0x18d   :  { %v1093_v18 = vadd.f32 %v1090_v43, %v1030_v8  ;;  %v13420_v8 = vmov 0.0   ;;  %v7119_v43 = vld [vmem:[#allocation11 + $0xe0] ss:$12 sps:$4 sm:$0xff]  }
 0x18f   :  { %7167 = vtanh.f32 %v1093_v18  ;;  %v7121_v18 = vld [vmem:[#allocation11 + $0x1b8] ss:$12 sps:$4 sm:$0xff]  }
 0x191   :  { %v7160_v5 = vpop.eup %7159 }
 0x192   :  { %v7162_v15 = vpop.eup %7161  ;;  %v1100_v45 = vmul.f32 %v7160_v5, %v1097_v25  ;;  %v7122_v25 = vld [vmem:[#allocation11 + $0xf8] ss:$12 sps:$4 sm:$0xff]  }
 0x193   :  { %v7164_v57 = vpop.eup %7163  ;;  %v1098_v51 = vsub.f32 1.0, %v7162_v15  ;;  %v7123_v5 = vld [vmem:[#allocation11 + $0x38] ss:$12 sps:$4 sm:$0xff]   ;;  %v7124_v15 = vld [vmem:[#allocation11 + $0x1d0] ss:$12 sps:$4 sm:$0xff]  }
 0x194   :  { %v7166_v11 = vpop.eup %7165  ;;  %v1099_v59 = vsub.f32 1.0, %v7164_v57  ;;  %v1103_v23 = vmax.f32 %v1100_v45, 0.0  ;;  %v7125_v45 = vld [vmem:[#allocation11 + $0x110] ss:$12 sps:$4 sm:$0xff]  }
 0x195   :  { %v1101_v22 = vmul.f32 %v7166_v11, %v1098_v51  ;;  %v7126_v57 = vld [vmem:[#allocation11 + $0x50] ss:$12 sps:$4 sm:$0xff]   ;;  %v7127_v51 = vld [vmem:[#allocation11 + $0x1e8] ss:$12 sps:$4 sm:$0xff]  }
 0x196   :  { %v1106_v9 = vpack.c.bf16 %v1103_v23, %v1103_v23  ;;  %v7128_v11 = vld [vmem:[#allocation11 + $0x128] ss:$12 sps:$4 sm:$0xff]   ;;  %v7131_v23 = vld [vmem:[#allocation11 + $0x140] ss:$12 sps:$4 sm:$0xff]  }
 0x197   :  { %v1104_v47 = vmax.f32 %v1101_v22, 0.0  ;;  %v7129_v22 = vld [vmem:[#allocation11 + $0x68] ss:$12 sps:$4 sm:$0xff]  }
 0x199   :  { %v7168_v26 = vpop.eup %7167  ;;  %v1107_v39 = vpack.c.bf16 %v1104_v47, %v1104_v47  ;;  %v7132_v47 = vld [vmem:[#allocation11 + $0x80] ss:$12 sps:$4 sm:$0xff]  }
 0x19a   :  { %v1102_v24 = vmul.f32 %v7168_v26, %v1099_v59  ;;  %v7130_v59 = vld [vmem:[#allocation11 + $0x200] ss:$12 sps:$4 sm:$0xff]   ;;  %v7133_v26 = vld [vmem:[#allocation11 + $0x218] ss:$12 sps:$4 sm:$0xff]  }
 0x19b   :  { %1621 = vmatprep.mubr.bf16.mxu1 %v1107_v39 }
 0x19c   :  { %1622 = vmatmul.mubr.bf16.vlgmr.msra.gmra.mrb[44].mxu1 %v1106_v9  ;;  %v1105_v6 = vmax.f32 %v1102_v24, 0.0  ;;  %v7136_v24 = vld [vmem:[#allocation11 + $0x230] ss:$12 sps:$4 sm:$0xff]  }
 0x19d   :  { %6693 = vmatpush3.bf16.msra.mxu1 %v7115_v63  ;;  %6708 = vmatprep.mubr.msk.bf16.mxu1 %vm8178_vm1, %v13420_v8  ;;  %v7135_v63 = vld [vmem:[#allocation11 + $0x98] ss:$12 sps:$4 sm:$0xff]  }
 0x19e   :  { %6694 = vmatprep.subr.bf16.mxu1 %v13420_v8  ;;  %v1108_v4 = vpack.c.bf16 %v1105_v6, %v1105_v6  ;;  %v7137_v6 = vld [vmem:[#allocation11 + $0x170] ss:$12 sps:$4 sm:$0xff]  }
 0x1a0   :  { %1663 = vmatmul.mubr.bf16.vlgmr.msra.gmra.mrb[48].mxu0 %v1108_v4 }
 0x1a1   :  { %6367 = vmatpush3.bf16.msra.mxu0 %v7117_v7  ;;  %6695 = vmatpush3.bf16.msra.mxu1 %v7118_v21  ;;  %v7138_v7 = vld [vmem:[#allocation11 + $0xb0] ss:$12 sps:$4 sm:$0xff]  }
 0x1a2   :  { %1703 = vmatprep.mubr.bf16.mxu0 %v1107_v39  ;;  %6368 = vmatprep.subr.bf16.mxu0 %v7119_v43  ;;  %v7134_v39 = vld [vmem:[#allocation11 + $0x158] ss:$12 sps:$4 sm:$0xff]  }
 0x1a3   :  { %6696 = vmatprep.subr.bf16.mxu1 %v13420_v8 }
 0x1a5   :  { %6369 = vmatpush3.bf16.msra.mxu0 %v7120_v13  ;;  %6697 = vmatpush3.bf16.msra.mxu1 %v7121_v18 }
 0x1a6   :  { %6370 = vmatprep.subr.bf16.mxu0 %v7122_v25  ;;  %6698 = vmatprep.subr.bf16.mxu1 %v13420_v8 }
 0x1a9   :  { %6371 = vmatpush3.bf16.msra.mxu0 %v7123_v5  ;;  %6699 = vmatpush3.bf16.msra.mxu1 %v7124_v15 }
 0x1aa   :  { %6372 = vmatprep.subr.bf16.mxu0 %v7125_v45  ;;  %6700 = vmatprep.subr.bf16.mxu1 %v13420_v8 }
 0x1ad   :  { %6373 = vmatpush3.bf16.msra.mxu0 %v7126_v57  ;;  %6701 = vmatpush3.bf16.msra.mxu1 %v7127_v51 }
 0x1ae   :  { %6374 = vmatprep.subr.bf16.mxu0 %v7128_v11  ;;  %6702 = vmatprep.subr.bf16.mxu1 %v13420_v8 }
 0x1b1   :  { %6375 = vmatpush3.bf16.msra.mxu0 %v7129_v22  ;;  %6703 = vmatpush3.bf16.msra.mxu1 %v7130_v59 }
 0x1b2   :  { %6376 = vmatprep.subr.bf16.mxu0 %v7131_v23  ;;  %6704 = vmatprep.subr.bf16.mxu1 %v13420_v8 }
 0x1b5   :  { %6377 = vmatpush3.bf16.msra.mxu0 %v7132_v47  ;;  %6705 = vmatpush3.bf16.msra.mxu1 %v7133_v26 }
 0x1b6   :  { %6378 = vmatprep.subr.bf16.mxu0 %v7134_v39  ;;  %6706 = vmatprep.subr.bf16.mxu1 %v13420_v8 }
 0x1b9   :  { %6379 = vmatpush3.bf16.msra.mxu0 %v7135_v63  ;;  %6707 = vmatpush3.bf16.msra.mxu1 %v7136_v24 }
 0x1ba   :  { %6380 = vmatprep.subr.bf16.mxu0 %v7137_v6 }
 0x1bc   :  { %6709 = vmatmul.mubr.bf16.vlgmr.msra.gmra.mrb[48].mxu1 %v1108_v4 }
 0x1bd   :  { %6381 = vmatpush3.bf16.msra.mxu0 %v7138_v7 }
 0x1c0   :  { %1704 = vmatmul.mubr.bf16.vlgmr.msra.gmra.mrb[52].mxu0 %v1106_v9 }
 0x26f   :  { %v1623_v21 = vpop.f32.mrb[44].mxu1 }
 0x270   :  { %v1625_v43 = vpop.f32.mrb[45].mxu1 }
 0x271   :  { %v1627_v13 = vpop.f32.mrb[46].mxu1 }
 0x272   :  { %v1628_v18 = vpop.f32.mrb[47].mxu1 }
 0x273   :  { %v1664_v25 = vpop.f32.mrb[48].mxu0 }
 0x274   :  { %v8687_v5 = vadd.f32 %v1664_v25, %v1623_v21  ;;  %v1666_v15 = vpop.f32.mrb[49].mxu0 }
 0x275   :  { %v8689_v45 = vadd.f32 %v1666_v15, %v1625_v43  ;;  %v1668_v57 = vpop.f32.mrb[50].mxu0 }
 0x276   :  { %13421 = vst [vmem:[#allocation100_spill] sm:$0xff] %v8687_v5  ;;  %v1669_v51 = vpop.f32.mrb[51].mxu0 }
 0x277   :  { %13422 = vst [vmem:[#allocation101_spill] sm:$0xff] %v8689_v45 }
 0x28f   :  { %v1745_v11 = vpop.f32.mrb[48].mxu1 }
 0x290   :  { %v6710_v22 = vpop.f32.mrb[49].mxu1 }
 0x291   :  { %v1748_v59 = vpop.f32.mrb[50].mxu1 }
 0x292   :  { %v6711_v23 = vpop.f32.mrb[51].mxu1 }
 0x293   :  { %v6382_v47 = vpop.f32.mrb[52].mxu0 }
 0x294   :  { %v6383_v4 = vpop.f32.mrb[53].mxu0 }
 0x295   :  { %v6384_v26 = vadd.f32 %v6383_v4, %v6382_v47  ;;  %v6385_v9 = vpop.f32.mrb[54].mxu0 }
 0x296   :  { %v6386_v39 = vpop.f32.mrb[55].mxu0 }
 0x297   :  { %v8691_v63 = vadd.f32 %v6384_v26, %v1745_v11 }
 0x299   :  { %13423 = vst [vmem:[#allocation102_spill] sm:$0xff] %v8691_v63 }
 0x29a   :  { %8149 = dma.done.wait [#allocation5], 27648 }
 0x29b   :  { %8150 = vsyncadd [#allocation5], 4294939648  ;;  %v13424_v24 = vmov 0   ;;  %v8695_v6 = vld [vmem:[#allocation3 + $0x8] sm:$0xff]  ;;  %v8697_v7 = vld [vmem:[#allocation3 + $0x18] sm:$0xff] }
 0x29c   :  { %2032 = vmatprep.mubr.bf16.mxu0 %v13424_v24  ;;  %2114 = vmatprep.mubr.bf16.mxu1 %v13424_v24  ;;  %v8699_v21 = vld [vmem:[#allocation3] sm:$0xff]  ;;  %v8703_v43 = vld [vmem:[#allocation3 + $0x10] sm:$0xff]  ;;  %v8713_v25 = vld [vmem:[#allocation3 + $0x48] sm:$0xff] }
 0x29d   :  { %2000 = vmatprep.subr.bf16.mxu0 %v8695_v6  ;;  %2082 = vmatprep.subr.bf16.mxu1 %v8697_v7  ;;  %v8705_v13 = vld [vmem:[#allocation3 + $0x50] sm:$0xff]  ;;  %v8707_v18 = vld [vmem:[#allocation3 + $0x60] sm:$0xff]  ;;  %v8715_v15 = vld [vmem:[#allocation3 + $0x58] sm:$0xff] }
 0x29e   :  { %2001 = vmatpush1.bf16.msra.mxu0 %v8699_v21  ;;  %2083 = vmatpush1.bf16.msra.mxu1 %v8703_v43  ;;  %v8717_v57 = vld [vmem:[#allocation3 + $0x98] sm:$0xff]  ;;  %v8719_v51 = vld [vmem:[#allocation3 + $0xa8] sm:$0xff]  ;;  %v8725_v11 = vld [vmem:[#allocation3 + $0x90] sm:$0xff] }
 0x29f   :  { %2002 = vmatprep.subr.bf16.mxu0 %v8705_v13  ;;  %2084 = vmatprep.subr.bf16.mxu1 %v8707_v18  ;;  %v8727_v22 = vld [vmem:[#allocation3 + $0xa0] sm:$0xff]  ;;  %v8731_v23 = vld [vmem:[#allocation3 + $0xf0] sm:$0xff]  ;;  %v8737_v47 = vld [vmem:[#allocation3 + $0xd8] sm:$0xff] }
 0x2a0   :  { %v8729_v59 = vld [vmem:[#allocation3 + $0xe0] sm:$0xff]  ;;  %v8739_v4 = vld [vmem:[#allocation3 + $0xe8] sm:$0xff]  ;;  %v8743_v9 = vld [vmem:[#allocation3 + $0x138] sm:$0xff] }
 0x2a1   :  { %v8741_v26 = vld [vmem:[#allocation3 + $0x128] sm:$0xff]  ;;  %v8749_v39 = vld [vmem:[#allocation3 + $0x120] sm:$0xff]  ;;  %v8751_v27 = vld [vmem:[#allocation3 + $0x130] sm:$0xff] }
 0x2a2   :  { %2003 = vmatpush1.bf16.msra.mxu0 %v8713_v25  ;;  %2085 = vmatpush1.bf16.msra.mxu1 %v8715_v15  ;;  %v8753_v63 = vld [vmem:[#allocation3 + $0x170] sm:$0xff]  ;;  %v8755_v30 = vld [vmem:[#allocation3 + $0x180] sm:$0xff]  ;;  %v8761_v45 = vld [vmem:[#allocation3 + $0x168] sm:$0xff] }
 0x2a3   :  { %2004 = vmatprep.subr.bf16.mxu0 %v8717_v57  ;;  %2086 = vmatprep.subr.bf16.mxu1 %v8719_v51  ;;  %v8763_v29 = vld [vmem:[#allocation3 + $0x178] sm:$0xff]  ;;  %v8767_v0 = vld [vmem:[#allocation3 + $0x1c8] sm:$0xff]  ;;  %v8773_v3 = vld [vmem:[#allocation3 + $0x1b0] sm:$0xff] }
 0x2a4   :  { %v8765_v5 = vld [vmem:[#allocation3 + $0x1b8] sm:$0xff]  ;;  %v8775_v60 = vld [vmem:[#allocation3 + $0x1c0] sm:$0xff]  ;;  %v8779_v1 = vld [vmem:[#allocation3 + $0x210] sm:$0xff] }
 0x2a5   :  { %v8777_v14 = vld [vmem:[#allocation3 + $0x200] sm:$0xff]  ;;  %v8785_v2 = vld [vmem:[#allocation3 + $0x1f8] sm:$0xff]  ;;  %v8787_v62 = vld [vmem:[#allocation3 + $0x208] sm:$0xff] }
 0x2a6   :  { %2005 = vmatpush1.bf16.msra.mxu0 %v8725_v11  ;;  %2087 = vmatpush1.bf16.msra.mxu1 %v8727_v22  ;;  %v8789_v17 = vld [vmem:[#allocation3 + $0x248] sm:$0xff]  ;;  %v8791_v53 = vld [vmem:[#allocation3 + $0x258] sm:$0xff]  ;;  %v8797_v50 = vld [vmem:[#allocation3 + $0x240] sm:$0xff] }
 0x2a7   :  { %2006 = vmatprep.subr.bf16.mxu0 %v8729_v59  ;;  %2088 = vmatprep.subr.bf16.mxu1 %v8731_v23  ;;  %v8799_v19 = vld [vmem:[#allocation3 + $0x250] sm:$0xff]  ;;  %v8803_v37 = vld [vmem:[#allocation3 + $0x2a0] sm:$0xff]  ;;  %v8809_v56 = vld [vmem:[#allocation3 + $0x288] sm:$0xff] }
 0x2a8   :  { %v8801_v52 = vld [vmem:[#allocation3 + $0x290] sm:$0xff]  ;;  %v8811_v58 = vld [vmem:[#allocation3 + $0x298] sm:$0xff]  ;;  %v8815_v55 = vld [vmem:[#allocation3 + $0x2e8] sm:$0xff] }
 0x2a9   :  { %v8813_v54 = vld [vmem:[#allocation3 + $0x2d8] sm:$0xff]  ;;  %v8821_v10 = vld [vmem:[#allocation3 + $0x2d0] sm:$0xff]  ;;  %v8823_v28 = vld [vmem:[#allocation3 + $0x2e0] sm:$0xff] }
 0x2aa   :  { %2007 = vmatpush1.bf16.msra.mxu0 %v8737_v47  ;;  %2089 = vmatpush1.bf16.msra.mxu1 %v8739_v4  ;;  %v8825_v20 = vld [vmem:[#allocation3 + $0x320] sm:$0xff]  ;;  %v8827_v44 = vld [vmem:[#allocation3 + $0x330] sm:$0xff]  ;;  %v8833_v61 = vld [vmem:[#allocation3 + $0x318] sm:$0xff] }
 0x2ab   :  { %2008 = vmatprep.subr.bf16.mxu0 %v8741_v26  ;;  %2090 = vmatprep.subr.bf16.mxu1 %v8743_v9  ;;  %v8835_v48 = vld [vmem:[#allocation3 + $0x328] sm:$0xff]  ;;  %v8839_v46 = vld [vmem:[#allocation3 + $0x378] sm:$0xff]  ;;  %v8845_v35 = vld [vmem:[#allocation3 + $0x360] sm:$0xff] }
 0x2ac   :  { %v8837_v49 = vld [vmem:[#allocation3 + $0x368] sm:$0xff]  ;;  %v8847_v31 = vld [vmem:[#allocation3 + $0x370] sm:$0xff]  ;;  %v8851_v34 = vld [vmem:[#allocation3 + $0x3c0] sm:$0xff] }
 0x2ad   :  { %v8849_v41 = vld [vmem:[#allocation3 + $0x3b0] sm:$0xff]  ;;  %v8857_v12 = vld [vmem:[#allocation3 + $0x3a8] sm:$0xff]  ;;  %v8859_v33 = vld [vmem:[#allocation3 + $0x3b8] sm:$0xff] }
 0x2ae   :  { %2009 = vmatpush1.bf16.msra.mxu0 %v8749_v39  ;;  %2091 = vmatpush1.bf16.msra.mxu1 %v8751_v27  ;;  %13425 = vst [vmem:[#allocation103_spill] sm:$0xff] %v8857_v12  ;;  %13426 = vst [vmem:[#allocation104_spill] sm:$0xff] %v8859_v33  ;;  %v8861_v32 = vld [vmem:[#allocation3 + $0x3f8] sm:$0xff]  ;;  %v8863_v36 = vld [vmem:[#allocation3 + $0x408] sm:$0xff] }
 0x2af   :  { %2010 = vmatprep.subr.bf16.mxu0 %v8753_v63  ;;  %2092 = vmatprep.subr.bf16.mxu1 %v8755_v30  ;;  %13427 = vst [vmem:[#allocation105_spill] sm:$0xff] %v8861_v32  ;;  %13428 = vst [vmem:[#allocation106_spill] sm:$0xff] %v8863_v36  ;;  %v8869_v16 = vld [vmem:[#allocation3 + $0x3f0] sm:$0xff]  ;;  %v8871_v40 = vld [vmem:[#allocation3 + $0x400] sm:$0xff] }
 0x2b0   :  { %13429 = vst [vmem:[#allocation107_spill] sm:$0xff] %v8869_v16  ;;  %13430 = vst [vmem:[#allocation108_spill] sm:$0xff] %v8871_v40  ;;  %v8873_v42 = vld [vmem:[#allocation3 + $0x440] sm:$0xff]  ;;  %v8875_v38 = vld [vmem:[#allocation3 + $0x450] sm:$0xff] }
 0x2b1   :  { %13431 = vst [vmem:[#allocation109_spill] sm:$0xff] %v8873_v42  ;;  %13432 = vst [vmem:[#allocation110_spill] sm:$0xff] %v8875_v38 }
 0x2b2   :  { %2011 = vmatpush1.bf16.msra.mxu0 %v8761_v45  ;;  %2093 = vmatpush1.bf16.msra.mxu1 %v8763_v29 }
 0x2b3   :  { %2012 = vmatprep.subr.bf16.mxu0 %v8765_v5  ;;  %2094 = vmatprep.subr.bf16.mxu1 %v8767_v0 }
 0x2b6   :  { %2013 = vmatpush1.bf16.msra.mxu0 %v8773_v3  ;;  %2095 = vmatpush1.bf16.msra.mxu1 %v8775_v60 }
 0x2b7   :  { %2014 = vmatprep.subr.bf16.mxu0 %v8777_v14  ;;  %2096 = vmatprep.subr.bf16.mxu1 %v8779_v1 }
 0x2ba   :  { %2015 = vmatpush1.bf16.msra.mxu0 %v8785_v2  ;;  %2097 = vmatpush1.bf16.msra.mxu1 %v8787_v62 }
 0x2bb   :  { %2016 = vmatprep.subr.bf16.mxu0 %v8789_v17  ;;  %2098 = vmatprep.subr.bf16.mxu1 %v8791_v53 }
 0x2be   :  { %2017 = vmatpush1.bf16.msra.mxu0 %v8797_v50  ;;  %2099 = vmatpush1.bf16.msra.mxu1 %v8799_v19 }
 0x2bf   :  { %2018 = vmatprep.subr.bf16.mxu0 %v8801_v52  ;;  %2100 = vmatprep.subr.bf16.mxu1 %v8803_v37 }
 0x2c2   :  { %2019 = vmatpush1.bf16.msra.mxu0 %v8809_v56  ;;  %2101 = vmatpush1.bf16.msra.mxu1 %v8811_v58 }
 0x2c3   :  { %2020 = vmatprep.subr.bf16.mxu0 %v8813_v54  ;;  %2102 = vmatprep.subr.bf16.mxu1 %v8815_v55 }
 0x2c6   :  { %2021 = vmatpush1.bf16.msra.mxu0 %v8821_v10  ;;  %2103 = vmatpush1.bf16.msra.mxu1 %v8823_v28 }
 0x2c7   :  { %2022 = vmatprep.subr.bf16.mxu0 %v8825_v20  ;;  %2104 = vmatprep.subr.bf16.mxu1 %v8827_v44 }
 0x2ca   :  { %2023 = vmatpush1.bf16.msra.mxu0 %v8833_v61  ;;  %2105 = vmatpush1.bf16.msra.mxu1 %v8835_v48 }
 0x2cb   :  { %2024 = vmatprep.subr.bf16.mxu0 %v8837_v49  ;;  %2106 = vmatprep.subr.bf16.mxu1 %v8839_v46 }
 0x2ce   :  { %2025 = vmatpush1.bf16.msra.mxu0 %v8845_v35  ;;  %2107 = vmatpush1.bf16.msra.mxu1 %v8847_v31 }
 0x2cf   :  { %2026 = vmatprep.subr.bf16.mxu0 %v8849_v41  ;;  %2108 = vmatprep.subr.bf16.mxu1 %v8851_v34 }
 0x2d2   :  { %2027 = vmatpush1.bf16.msra.mxu0 %v8857_v12  ;;  %2109 = vmatpush1.bf16.msra.mxu1 %v8859_v33  ;;  %v8881_v33 = vld [vmem:[#allocation3 + $0x438] sm:$0xff] }
 0x2d3   :  { %2028 = vmatprep.subr.bf16.mxu0 %v8861_v32  ;;  %2110 = vmatprep.subr.bf16.mxu1 %v8863_v36  ;;  %13433 = vst [vmem:[#allocation111_spill] sm:$0xff] %v8881_v33  ;;  %v8883_v32 = vld [vmem:[#allocation3 + $0x448] sm:$0xff]  ;;  %v8887_v12 = vld [vmem:[#allocation3 + $0x498] sm:$0xff] }
 0x2d4   :  { %13434 = vst [vmem:[#allocation112_spill] sm:$0xff] %v8883_v32  ;;  %v8885_v36 = vld [vmem:[#allocation3 + $0x488] sm:$0xff]  ;;  %13436 = vst [vmem:[#allocation114_spill] sm:$0xff] %v8887_v12 }
 0x2d5   :  { %13435 = vst [vmem:[#allocation113_spill] sm:$0xff] %v8885_v36 }
 0x2d6   :  { %2029 = vmatpush1.bf16.msra.mxu0 %v8869_v16  ;;  %2111 = vmatpush1.bf16.msra.mxu1 %v8871_v40  ;;  %v8893_v40 = vld [vmem:[#allocation3 + $0x480] sm:$0xff] }
 0x2d7   :  { %2030 = vmatprep.subr.bf16.mxu0 %v8873_v42  ;;  %2112 = vmatprep.subr.bf16.mxu1 %v8875_v38  ;;  %13437 = vst [vmem:[#allocation115_spill] sm:$0xff] %v8893_v40  ;;  %v8895_v42 = vld [vmem:[#allocation3 + $0x490] sm:$0xff]  ;;  %v8899_v16 = vld [vmem:[#allocation3 + $0x4e0] sm:$0xff] }
 0x2d8   :  { %13438 = vst [vmem:[#allocation116_spill] sm:$0xff] %v8895_v42  ;;  %v8897_v38 = vld [vmem:[#allocation3 + $0x4d0] sm:$0xff]  ;;  %13440 = vst [vmem:[#allocation118_spill] sm:$0xff] %v8899_v16 }
 0x2d9   :  { %13439 = vst [vmem:[#allocation117_spill] sm:$0xff] %v8897_v38 }
 0x2da   :  { %2031 = vmatpush1.bf16.msra.mxu0 %v8881_v33  ;;  %2113 = vmatpush1.bf16.msra.mxu1 %v8883_v32  ;;  %v8911_v32 = vld [vmem:[#allocation3 + $0x518] sm:$0xff]  ;;  %v8913_v33 = vld [vmem:[#allocation3 + $0x528] sm:$0xff] }
 0x2db   :  { %2041 = vmatprep.subr.bf16.mxu0 %v8885_v36  ;;  %2123 = vmatprep.subr.bf16.mxu1 %v8887_v12  ;;  %v8907_v12 = vld [vmem:[#allocation3 + $0x4c8] sm:$0xff]  ;;  %v8909_v36 = vld [vmem:[#allocation3 + $0x4d8] sm:$0xff]  ;;  %13443 = vst [vmem:[#allocation121_spill] sm:$0xff] %v8911_v32  ;;  %13444 = vst [vmem:[#allocation122_spill] sm:$0xff] %v8913_v33 }
 0x2dc   :  { %13441 = vst [vmem:[#allocation119_spill] sm:$0xff] %v8907_v12  ;;  %13442 = vst [vmem:[#allocation120_spill] sm:$0xff] %v8909_v36 }
 0x2dd   :  { %2033 = vmatmul.mubr.bf16.vlgmr.msra.gmra.mrb[56].mxu0 %v13424_v24  ;;  %2115 = vmatmul.mubr.bf16.vlgmr.msra.gmra.mrb[52].mxu1 %v13424_v24 }
 0x2de   :  { %2042 = vmatpush1.bf16.msra.mxu0 %v8893_v40  ;;  %2124 = vmatpush1.bf16.msra.mxu1 %v8895_v42  ;;  %v8925_v42 = vld [vmem:[#allocation3 + $0x560] sm:$0xff]  ;;  %v8927_v40 = vld [vmem:[#allocation3 + $0x570] sm:$0xff] }
 0x2df   :  { %2043 = vmatprep.subr.bf16.mxu0 %v8897_v38  ;;  %2125 = vmatprep.subr.bf16.mxu1 %v8899_v16  ;;  %v8921_v16 = vld [vmem:[#allocation3 + $0x510] sm:$0xff]  ;;  %v8923_v38 = vld [vmem:[#allocation3 + $0x520] sm:$0xff]  ;;  %13447 = vst [vmem:[#allocation125_spill] sm:$0xff] %v8925_v42  ;;  %13448 = vst [vmem:[#allocation126_spill] sm:$0xff] %v8927_v40 }
 0x2e0   :  { %2073 = vmatprep.mubr.bf16.mxu0 %v13424_v24  ;;  %2155 = vmatprep.mubr.bf16.mxu1 %v13424_v24  ;;  %13445 = vst [vmem:[#allocation123_spill] sm:$0xff] %v8921_v16  ;;  %13446 = vst [vmem:[#allocation124_spill] sm:$0xff] %v8923_v38 }
 0x2e2   :  { %2044 = vmatpush1.bf16.msra.mxu0 %v8907_v12  ;;  %2126 = vmatpush1.bf16.msra.mxu1 %v8909_v36  ;;  %v8933_v36 = vld [vmem:[#allocation3 + $0x558] sm:$0xff] }
 0x2e3   :  { %2045 = vmatprep.subr.bf16.mxu0 %v8911_v32  ;;  %2127 = vmatprep.subr.bf16.mxu1 %v8913_v33  ;;  %13449 = vst [vmem:[#allocation127_spill] sm:$0xff] %v8933_v36  ;;  %v8935_v32 = vld [vmem:[#allocation3 + $0x568] sm:$0xff]  ;;  %v8939_v12 = vld [vmem:[#allocation3 + $0x5b8] sm:$0xff] }
 0x2e4   :  { %13450 = vst [vmem:[#allocation128_spill] sm:$0xff] %v8935_v32  ;;  %v8937_v33 = vld [vmem:[#allocation3 + $0x5a8] sm:$0xff]  ;;  %13452 = vst [vmem:[#allocation130_spill] sm:$0xff] %v8939_v12 }
 0x2e5   :  { %13451 = vst [vmem:[#allocation129_spill] sm:$0xff] %v8937_v33 }
 0x2e6   :  { %2046 = vmatpush1.bf16.msra.mxu0 %v8921_v16  ;;  %2128 = vmatpush1.bf16.msra.mxu1 %v8923_v38  ;;  %v8945_v38 = vld [vmem:[#allocation3 + $0x5a0] sm:$0xff] }
 0x2e7   :  { %2047 = vmatprep.subr.bf16.mxu0 %v8925_v42  ;;  %2129 = vmatprep.subr.bf16.mxu1 %v8927_v40  ;;  %13453 = vst [vmem:[#allocation131_spill] sm:$0xff] %v8945_v38  ;;  %v8947_v42 = vld [vmem:[#allocation3 + $0x5b0] sm:$0xff]  ;;  %v8951_v16 = vld [vmem:[#allocation3 + $0x600] sm:$0xff] }
 0x2e8   :  { %13454 = vst [vmem:[#allocation132_spill] sm:$0xff] %v8947_v42  ;;  %v8949_v40 = vld [vmem:[#allocation3 + $0x5f0] sm:$0xff]  ;;  %13456 = vst [vmem:[#allocation134_spill] sm:$0xff] %v8951_v16 }
 0x2e9   :  { %13455 = vst [vmem:[#allocation133_spill] sm:$0xff] %v8949_v40 }
 0x2ea   :  { %2048 = vmatpush1.bf16.msra.mxu0 %v8933_v36  ;;  %2130 = vmatpush1.bf16.msra.mxu1 %v8935_v32  ;;  %v8957_v32 = vld [vmem:[#allocation3 + $0x5e8] sm:$0xff] }
 0x2eb   :  { %2049 = vmatprep.subr.bf16.mxu0 %v8937_v33  ;;  %2131 = vmatprep.subr.bf16.mxu1 %v8939_v12  ;;  %13457 = vst [vmem:[#allocation135_spill] sm:$0xff] %v8957_v32  ;;  %v8959_v33 = vld [vmem:[#allocation3 + $0x5f8] sm:$0xff]  ;;  %v8963_v36 = vld [vmem:[#allocation3 + $0x648] sm:$0xff] }
 0x2ec   :  { %13458 = vst [vmem:[#allocation136_spill] sm:$0xff] %v8959_v33  ;;  %v8961_v12 = vld [vmem:[#allocation3 + $0x638] sm:$0xff]  ;;  %13460 = vst [vmem:[#allocation138_spill] sm:$0xff] %v8963_v36 }
 0x2ed   :  { %13459 = vst [vmem:[#allocation137_spill] sm:$0xff] %v8961_v12 }
 0x2ee   :  { %2050 = vmatpush1.bf16.msra.mxu0 %v8945_v38  ;;  %2132 = vmatpush1.bf16.msra.mxu1 %v8947_v42  ;;  %v8969_v42 = vld [vmem:[#allocation3 + $0x630] sm:$0xff] }
 0x2ef   :  { %2051 = vmatprep.subr.bf16.mxu0 %v8949_v40  ;;  %2133 = vmatprep.subr.bf16.mxu1 %v8951_v16  ;;  %13461 = vst [vmem:[#allocation139_spill] sm:$0xff] %v8969_v42  ;;  %v8971_v40 = vld [vmem:[#allocation3 + $0x640] sm:$0xff]  ;;  %v8975_v38 = vld [vmem:[#allocation3 + $0x690] sm:$0xff] }
 0x2f0   :  { %13462 = vst [vmem:[#allocation140_spill] sm:$0xff] %v8971_v40  ;;  %v8973_v16 = vld [vmem:[#allocation3 + $0x680] sm:$0xff]  ;;  %13464 = vst [vmem:[#allocation142_spill] sm:$0xff] %v8975_v38 }
 0x2f1   :  { %13463 = vst [vmem:[#allocation141_spill] sm:$0xff] %v8973_v16 }
 0x2f2   :  { %2052 = vmatpush1.bf16.msra.mxu0 %v8957_v32  ;;  %2134 = vmatpush1.bf16.msra.mxu1 %v8959_v33  ;;  %v8981_v33 = vld [vmem:[#allocation3 + $0x678] sm:$0xff] }
 0x2f3   :  { %2053 = vmatprep.subr.bf16.mxu0 %v8961_v12  ;;  %2135 = vmatprep.subr.bf16.mxu1 %v8963_v36  ;;  %13465 = vst [vmem:[#allocation143_spill] sm:$0xff] %v8981_v33  ;;  %v8983_v12 = vld [vmem:[#allocation3 + $0x688] sm:$0xff]  ;;  %v8987_v32 = vld [vmem:[#allocation3 + $0x38] sm:$0xff] }
 0x2f4   :  { %13466 = vst [vmem:[#allocation144_spill] sm:$0xff] %v8983_v12  ;;  %v8985_v36 = vld [vmem:[#allocation3 + $0x28] sm:$0xff]  ;;  %13468 = vst [vmem:[#allocation146_spill] sm:$0xff] %v8987_v32 }
 0x2f5   :  { %13467 = vst [vmem:[#allocation145_spill] sm:$0xff] %v8985_v36 }
 0x2f6   :  { %2054 = vmatpush1.bf16.msra.mxu0 %v8969_v42  ;;  %2136 = vmatpush1.bf16.msra.mxu1 %v8971_v40  ;;  %v8993_v40 = vld [vmem:[#allocation3 + $0x20] sm:$0xff] }
 0x2f7   :  { %2055 = vmatprep.subr.bf16.mxu0 %v8973_v16  ;;  %2137 = vmatprep.subr.bf16.mxu1 %v8975_v38  ;;  %13469 = vst [vmem:[#allocation147_spill] sm:$0xff] %v8993_v40  ;;  %v8995_v16 = vld [vmem:[#allocation3 + $0x30] sm:$0xff]  ;;  %v8999_v42 = vld [vmem:[#allocation3 + $0x80] sm:$0xff] }
 0x2f8   :  { %13470 = vst [vmem:[#allocation148_spill] sm:$0xff] %v8995_v16  ;;  %v8997_v38 = vld [vmem:[#allocation3 + $0x70] sm:$0xff]  ;;  %13472 = vst [vmem:[#allocation150_spill] sm:$0xff] %v8999_v42 }
 0x2f9   :  { %13471 = vst [vmem:[#allocation149_spill] sm:$0xff] %v8997_v38 }
 0x2fa   :  { %2056 = vmatpush1.bf16.msra.mxu0 %v8981_v33  ;;  %2138 = vmatpush1.bf16.msra.mxu1 %v8983_v12  ;;  %v9011_v12 = vld [vmem:[#allocation3 + $0xb8] sm:$0xff]  ;;  %v9013_v33 = vld [vmem:[#allocation3 + $0xc8] sm:$0xff] }
 0x2fb   :  { %2164 = vmatprep.subr.bf16.mxu0 %v8985_v36  ;;  %2246 = vmatprep.subr.bf16.mxu1 %v8987_v32  ;;  %v9007_v32 = vld [vmem:[#allocation3 + $0x68] sm:$0xff]  ;;  %v9009_v36 = vld [vmem:[#allocation3 + $0x78] sm:$0xff]  ;;  %13475 = vst [vmem:[#allocation153_spill] sm:$0xff] %v9011_v12  ;;  %13476 = vst [vmem:[#allocation154_spill] sm:$0xff] %v9013_v33 }
 0x2fc   :  { %13473 = vst [vmem:[#allocation151_spill] sm:$0xff] %v9007_v32  ;;  %13474 = vst [vmem:[#allocation152_spill] sm:$0xff] %v9009_v36 }
 0x2fd   :  { %2074 = vmatmul.mubr.bf16.vlgmr.msra.gmra.mrb[56].mxu0 %v13424_v24  ;;  %2156 = vmatmul.mubr.bf16.vlgmr.msra.gmra.mrb[52].mxu1 %v13424_v24 }
 0x2fe   :  { %2165 = vmatpush1.bf16.msra.mxu0 %v8993_v40  ;;  %2247 = vmatpush1.bf16.msra.mxu1 %v8995_v16  ;;  %v9025_v16 = vld [vmem:[#allocation3 + $0x100] sm:$0xff]  ;;  %v9027_v40 = vld [vmem:[#allocation3 + $0x110] sm:$0xff] }
 0x2ff   :  { %2166 = vmatprep.subr.bf16.mxu0 %v8997_v38  ;;  %2248 = vmatprep.subr.bf16.mxu1 %v8999_v42  ;;  %v9021_v42 = vld [vmem:[#allocation3 + $0xb0] sm:$0xff]  ;;  %v9023_v38 = vld [vmem:[#allocation3 + $0xc0] sm:$0xff]  ;;  %13479 = vst [vmem:[#allocation157_spill] sm:$0xff] %v9025_v16  ;;  %13480 = vst [vmem:[#allocation158_spill] sm:$0xff] %v9027_v40 }
 0x300   :  { %2196 = vmatprep.mubr.bf16.mxu0 %v13424_v24  ;;  %2278 = vmatprep.mubr.bf16.mxu1 %v13424_v24  ;;  %13477 = vst [vmem:[#allocation155_spill] sm:$0xff] %v9021_v42  ;;  %13478 = vst [vmem:[#allocation156_spill] sm:$0xff] %v9023_v38 }
 0x302   :  { %2167 = vmatpush1.bf16.msra.mxu0 %v9007_v32  ;;  %2249 = vmatpush1.bf16.msra.mxu1 %v9009_v36  ;;  %v9033_v36 = vld [vmem:[#allocation3 + $0xf8] sm:$0xff] }
 0x303   :  { %2168 = vmatprep.subr.bf16.mxu0 %v9011_v12  ;;  %2250 = vmatprep.subr.bf16.mxu1 %v9013_v33  ;;  %13481 = vst [vmem:[#allocation159_spill] sm:$0xff] %v9033_v36  ;;  %v9035_v12 = vld [vmem:[#allocation3 + $0x108] sm:$0xff]  ;;  %v9039_v32 = vld [vmem:[#allocation3 + $0x158] sm:$0xff] }
 0x304   :  { %13482 = vst [vmem:[#allocation160_spill] sm:$0xff] %v9035_v12  ;;  %v9037_v33 = vld [vmem:[#allocation3 + $0x148] sm:$0xff]  ;;  %13484 = vst [vmem:[#allocation162_spill] sm:$0xff] %v9039_v32 }
 0x305   :  { %13483 = vst [vmem:[#allocation161_spill] sm:$0xff] %v9037_v33 }
 0x306   :  { %2169 = vmatpush1.bf16.msra.mxu0 %v9021_v42  ;;  %2251 = vmatpush1.bf16.msra.mxu1 %v9023_v38  ;;  %v9045_v38 = vld [vmem:[#allocation3 + $0x140] sm:$0xff] }
 0x307   :  { %2170 = vmatprep.subr.bf16.mxu0 %v9025_v16  ;;  %2252 = vmatprep.subr.bf16.mxu1 %v9027_v40  ;;  %13485 = vst [vmem:[#allocation163_spill] sm:$0xff] %v9045_v38  ;;  %v9047_v16 = vld [vmem:[#allocation3 + $0x150] sm:$0xff]  ;;  %v9051_v42 = vld [vmem:[#allocation3 + $0x1a0] sm:$0xff] }
 0x308   :  { %13486 = vst [vmem:[#allocation164_spill] sm:$0xff] %v9047_v16  ;;  %v9049_v40 = vld [vmem:[#allocation3 + $0x190] sm:$0xff]  ;;  %13488 = vst [vmem:[#allocation166_spill] sm:$0xff] %v9051_v42 }
 0x309   :  { %13487 = vst [vmem:[#allocation165_spill] sm:$0xff] %v9049_v40 }
 0x30a   :  { %2171 = vmatpush1.bf16.msra.mxu0 %v9033_v36  ;;  %2253 = vmatpush1.bf16.msra.mxu1 %v9035_v12  ;;  %v9057_v12 = vld [vmem:[#allocation3 + $0x188] sm:$0xff] }
 0x30b   :  { %2172 = vmatprep.subr.bf16.mxu0 %v9037_v33  ;;  %2254 = vmatprep.subr.bf16.mxu1 %v9039_v32  ;;  %13489 = vst [vmem:[#allocation167_spill] sm:$0xff] %v9057_v12  ;;  %v9059_v33 = vld [vmem:[#allocation3 + $0x198] sm:$0xff]  ;;  %v9063_v36 = vld [vmem:[#allocation3 + $0x1e8] sm:$0xff] }
 0x30c   :  { %13490 = vst [vmem:[#allocation168_spill] sm:$0xff] %v9059_v33  ;;  %v9061_v32 = vld [vmem:[#allocation3 + $0x1d8] sm:$0xff]  ;;  %13492 = vst [vmem:[#allocation170_spill] sm:$0xff] %v9063_v36 }
 0x30d   :  { %13491 = vst [vmem:[#allocation169_spill] sm:$0xff] %v9061_v32 }
 0x30e   :  { %2173 = vmatpush1.bf16.msra.mxu0 %v9045_v38  ;;  %2255 = vmatpush1.bf16.msra.mxu1 %v9047_v16  ;;  %v9069_v16 = vld [vmem:[#allocation3 + $0x1d0] sm:$0xff] }
 0x30f   :  { %2174 = vmatprep.subr.bf16.mxu0 %v9049_v40  ;;  %2256 = vmatprep.subr.bf16.mxu1 %v9051_v42  ;;  %13493 = vst [vmem:[#allocation171_spill] sm:$0xff] %v9069_v16  ;;  %v9071_v40 = vld [vmem:[#allocation3 + $0x1e0] sm:$0xff]  ;;  %v9075_v38 = vld [vmem:[#allocation3 + $0x230] sm:$0xff] }
 0x310   :  { %13494 = vst [vmem:[#allocation172_spill] sm:$0xff] %v9071_v40  ;;  %v9073_v42 = vld [vmem:[#allocation3 + $0x220] sm:$0xff]  ;;  %13496 = vst [vmem:[#allocation174_spill] sm:$0xff] %v9075_v38 }
 0x311   :  { %13495 = vst [vmem:[#allocation173_spill] sm:$0xff] %v9073_v42 }
 0x312   :  { %2175 = vmatpush1.bf16.msra.mxu0 %v9057_v12  ;;  %2257 = vmatpush1.bf16.msra.mxu1 %v9059_v33  ;;  %v9081_v33 = vld [vmem:[#allocation3 + $0x218] sm:$0xff] }
 0x313   :  { %2176 = vmatprep.subr.bf16.mxu0 %v9061_v32  ;;  %2258 = vmatprep.subr.bf16.mxu1 %v9063_v36  ;;  %13497 = vst [vmem:[#allocation175_spill] sm:$0xff] %v9081_v33  ;;  %v9083_v32 = vld [vmem:[#allocation3 + $0x228] sm:$0xff]  ;;  %v9087_v12 = vld [vmem:[#allocation3 + $0x278] sm:$0xff] }
 0x314   :  { %13498 = vst [vmem:[#allocation176_spill] sm:$0xff] %v9083_v32  ;;  %v9085_v36 = vld [vmem:[#allocation3 + $0x268] sm:$0xff]  ;;  %13500 = vst [vmem:[#allocation178_spill] sm:$0xff] %v9087_v12 }
 0x315   :  { %13499 = vst [vmem:[#allocation177_spill] sm:$0xff] %v9085_v36 }
 0x316   :  { %2177 = vmatpush1.bf16.msra.mxu0 %v9069_v16  ;;  %2259 = vmatpush1.bf16.msra.mxu1 %v9071_v40  ;;  %v9093_v40 = vld [vmem:[#allocation3 + $0x260] sm:$0xff] }
 0x317   :  { %2178 = vmatprep.subr.bf16.mxu0 %v9073_v42  ;;  %2260 = vmatprep.subr.bf16.mxu1 %v9075_v38  ;;  %13501 = vst [vmem:[#allocation179_spill] sm:$0xff] %v9093_v40  ;;  %v9095_v42 = vld [vmem:[#allocation3 + $0x270] sm:$0xff]  ;;  %v9099_v16 = vld [vmem:[#allocation3 + $0x2c0] sm:$0xff] }
 0x318   :  { %13502 = vst [vmem:[#allocation180_spill] sm:$0xff] %v9095_v42  ;;  %v9097_v38 = vld [vmem:[#allocation3 + $0x2b0] sm:$0xff]  ;;  %13504 = vst [vmem:[#allocation182_spill] sm:$0xff] %v9099_v16 }
 0x319   :  { %13503 = vst [vmem:[#allocation181_spill] sm:$0xff] %v9097_v38 }
 0x31a   :  { %2179 = vmatpush1.bf16.msra.mxu0 %v9081_v33  ;;  %2261 = vmatpush1.bf16.msra.mxu1 %v9083_v32  ;;  %v9105_v32 = vld [vmem:[#allocation3 + $0x2a8] sm:$0xff] }
 0x31b   :  { %2180 = vmatprep.subr.bf16.mxu0 %v9085_v36  ;;  %2262 = vmatprep.subr.bf16.mxu1 %v9087_v12  ;;  %13505 = vst [vmem:[#allocation183_spill] sm:$0xff] %v9105_v32  ;;  %v9107_v36 = vld [vmem:[#allocation3 + $0x2b8] sm:$0xff]  ;;  %v9111_v33 = vld [vmem:[#allocation3 + $0x308] sm:$0xff] }
 0x31c   :  { %13506 = vst [vmem:[#allocation184_spill] sm:$0xff] %v9107_v36  ;;  %v9109_v12 = vld [vmem:[#allocation3 + $0x2f8] sm:$0xff]  ;;  %13508 = vst [vmem:[#allocation186_spill] sm:$0xff] %v9111_v33 }
 0x31d   :  { %13507 = vst [vmem:[#allocation185_spill] sm:$0xff] %v9109_v12 }
 0x31e   :  { %2181 = vmatpush1.bf16.msra.mxu0 %v9093_v40  ;;  %2263 = vmatpush1.bf16.msra.mxu1 %v9095_v42  ;;  %v9117_v42 = vld [vmem:[#allocation3 + $0x2f0] sm:$0xff] }
 0x31f   :  { %2182 = vmatprep.subr.bf16.mxu0 %v9097_v38  ;;  %2264 = vmatprep.subr.bf16.mxu1 %v9099_v16  ;;  %13509 = vst [vmem:[#allocation187_spill] sm:$0xff] %v9117_v42  ;;  %v9119_v38 = vld [vmem:[#allocation3 + $0x300] sm:$0xff]  ;;  %v9123_v40 = vld [vmem:[#allocation3 + $0x350] sm:$0xff] }
 0x320   :  { %13510 = vst [vmem:[#allocation188_spill] sm:$0xff] %v9119_v38  ;;  %v9121_v16 = vld [vmem:[#allocation3 + $0x340] sm:$0xff]  ;;  %13512 = vst [vmem:[#allocation190_spill] sm:$0xff] %v9123_v40 }
 0x321   :  { %13511 = vst [vmem:[#allocation189_spill] sm:$0xff] %v9121_v16 }
 0x322   :  { %2183 = vmatpush1.bf16.msra.mxu0 %v9105_v32  ;;  %2265 = vmatpush1.bf16.msra.mxu1 %v9107_v36  ;;  %v9129_v36 = vld [vmem:[#allocation3 + $0x338] sm:$0xff] }
 0x323   :  { %2184 = vmatprep.subr.bf16.mxu0 %v9109_v12  ;;  %2266 = vmatprep.subr.bf16.mxu1 %v9111_v33  ;;  %13513 = vst [vmem:[#allocation191_spill] sm:$0xff] %v9129_v36  ;;  %v9131_v12 = vld [vmem:[#allocation3 + $0x348] sm:$0xff]  ;;  %v9135_v32 = vld [vmem:[#allocation3 + $0x398] sm:$0xff] }
 0x324   :  { %13514 = vst [vmem:[#allocation192_spill] sm:$0xff] %v9131_v12  ;;  %v9133_v33 = vld [vmem:[#allocation3 + $0x388] sm:$0xff]  ;;  %13516 = vst [vmem:[#allocation194_spill] sm:$0xff] %v9135_v32 }
 0x325   :  { %13515 = vst [vmem:[#allocation193_spill] sm:$0xff] %v9133_v33 }
 0x326   :  { %2185 = vmatpush1.bf16.msra.mxu0 %v9117_v42  ;;  %2267 = vmatpush1.bf16.msra.mxu1 %v9119_v38  ;;  %v9141_v38 = vld [vmem:[#allocation3 + $0x380] sm:$0xff] }
 0x327   :  { %2186 = vmatprep.subr.bf16.mxu0 %v9121_v16  ;;  %2268 = vmatprep.subr.bf16.mxu1 %v9123_v40  ;;  %13517 = vst [vmem:[#allocation195_spill] sm:$0xff] %v9141_v38  ;;  %v9143_v16 = vld [vmem:[#allocation3 + $0x390] sm:$0xff]  ;;  %v9147_v42 = vld [vmem:[#allocation3 + $0x3e0] sm:$0xff] }
 0x328   :  { %13518 = vst [vmem:[#allocation196_spill] sm:$0xff] %v9143_v16  ;;  %v9145_v40 = vld [vmem:[#allocation3 + $0x3d0] sm:$0xff]  ;;  %13520 = vst [vmem:[#allocation198_spill] sm:$0xff] %v9147_v42 }
 0x329   :  { %13519 = vst [vmem:[#allocation197_spill] sm:$0xff] %v9145_v40 }
 0x32a   :  { %2187 = vmatpush1.bf16.msra.mxu0 %v9129_v36  ;;  %2269 = vmatpush1.bf16.msra.mxu1 %v9131_v12  ;;  %v9153_v12 = vld [vmem:[#allocation3 + $0x3c8] sm:$0xff] }
 0x32b   :  { %2188 = vmatprep.subr.bf16.mxu0 %v9133_v33  ;;  %2270 = vmatprep.subr.bf16.mxu1 %v9135_v32  ;;  %13521 = vst [vmem:[#allocation199_spill] sm:$0xff] %v9153_v12  ;;  %v9155_v33 = vld [vmem:[#allocation3 + $0x3d8] sm:$0xff]  ;;  %v9159_v36 = vld [vmem:[#allocation3 + $0x428] sm:$0xff] }
 0x32c   :  { %13522 = vst [vmem:[#allocation200_spill] sm:$0xff] %v9155_v33  ;;  %v9157_v32 = vld [vmem:[#allocation3 + $0x418] sm:$0xff]  ;;  %13524 = vst [vmem:[#allocation202_spill] sm:$0xff] %v9159_v36 }
 0x32d   :  { %13523 = vst [vmem:[#allocation201_spill] sm:$0xff] %v9157_v32 }
 0x32e   :  { %2189 = vmatpush1.bf16.msra.mxu0 %v9141_v38  ;;  %2271 = vmatpush1.bf16.msra.mxu1 %v9143_v16  ;;  %v9165_v16 = vld [vmem:[#allocation3 + $0x410] sm:$0xff] }
 0x32f   :  { %2190 = vmatprep.subr.bf16.mxu0 %v9145_v40  ;;  %2272 = vmatprep.subr.bf16.mxu1 %v9147_v42  ;;  %13525 = vst [vmem:[#allocation203_spill] sm:$0xff] %v9165_v16  ;;  %v9167_v40 = vld [vmem:[#allocation3 + $0x420] sm:$0xff]  ;;  %v9171_v38 = vld [vmem:[#allocation3 + $0x470] sm:$0xff] }
 0x330   :  { %13526 = vst [vmem:[#allocation204_spill] sm:$0xff] %v9167_v40  ;;  %v9169_v42 = vld [vmem:[#allocation3 + $0x460] sm:$0xff]  ;;  %13528 = vst [vmem:[#allocation206_spill] sm:$0xff] %v9171_v38 }
 0x331   :  { %13527 = vst [vmem:[#allocation205_spill] sm:$0xff] %v9169_v42 }
 0x332   :  { %2191 = vmatpush1.bf16.msra.mxu0 %v9153_v12  ;;  %2273 = vmatpush1.bf16.msra.mxu1 %v9155_v33  ;;  %v9177_v33 = vld [vmem:[#allocation3 + $0x458] sm:$0xff] }
 0x333   :  { %2192 = vmatprep.subr.bf16.mxu0 %v9157_v32  ;;  %2274 = vmatprep.subr.bf16.mxu1 %v9159_v36  ;;  %13529 = vst [vmem:[#allocation207_spill] sm:$0xff] %v9177_v33  ;;  %v9179_v32 = vld [vmem:[#allocation3 + $0x468] sm:$0xff]  ;;  %v9183_v12 = vld [vmem:[#allocation3 + $0x4b8] sm:$0xff] }
 0x334   :  { %13530 = vst [vmem:[#allocation208_spill] sm:$0xff] %v9179_v32  ;;  %v9181_v36 = vld [vmem:[#allocation3 + $0x4a8] sm:$0xff]  ;;  %13532 = vst [vmem:[#allocation210_spill] sm:$0xff] %v9183_v12 }
 0x335   :  { %13531 = vst [vmem:[#allocation209_spill] sm:$0xff] %v9181_v36 }
 0x336   :  { %2193 = vmatpush1.bf16.msra.mxu0 %v9165_v16  ;;  %2275 = vmatpush1.bf16.msra.mxu1 %v9167_v40  ;;  %v9189_v40 = vld [vmem:[#allocation3 + $0x4a0] sm:$0xff] }
 0x337   :  { %2194 = vmatprep.subr.bf16.mxu0 %v9169_v42  ;;  %2276 = vmatprep.subr.bf16.mxu1 %v9171_v38  ;;  %13533 = vst [vmem:[#allocation211_spill] sm:$0xff] %v9189_v40  ;;  %v9191_v42 = vld [vmem:[#allocation3 + $0x4b0] sm:$0xff]  ;;  %v9195_v16 = vld [vmem:[#allocation3 + $0x500] sm:$0xff] }
 0x338   :  { %13534 = vst [vmem:[#allocation212_spill] sm:$0xff] %v9191_v42  ;;  %v9193_v38 = vld [vmem:[#allocation3 + $0x4f0] sm:$0xff]  ;;  %13536 = vst [vmem:[#allocation214_spill] sm:$0xff] %v9195_v16 }
 0x339   :  { %13535 = vst [vmem:[#allocation213_spill] sm:$0xff] %v9193_v38 }
 0x33a   :  { %2195 = vmatpush1.bf16.msra.mxu0 %v9177_v33  ;;  %2277 = vmatpush1.bf16.msra.mxu1 %v9179_v32  ;;  %v9207_v32 = vld [vmem:[#allocation3 + $0x538] sm:$0xff]  ;;  %v9209_v33 = vld [vmem:[#allocation3 + $0x548] sm:$0xff] }
 0x33b   :  { %2205 = vmatprep.subr.bf16.mxu0 %v9181_v36  ;;  %2287 = vmatprep.subr.bf16.mxu1 %v9183_v12  ;;  %v9203_v12 = vld [vmem:[#allocation3 + $0x4e8] sm:$0xff]  ;;  %v9205_v36 = vld [vmem:[#allocation3 + $0x4f8] sm:$0xff]  ;;  %13539 = vst [vmem:[#allocation217_spill] sm:$0xff] %v9207_v32  ;;  %13540 = vst [vmem:[#allocation218_spill] sm:$0xff] %v9209_v33 }
 0x33c   :  { %13537 = vst [vmem:[#allocation215_spill] sm:$0xff] %v9203_v12  ;;  %13538 = vst [vmem:[#allocation216_spill] sm:$0xff] %v9205_v36 }
 0x33d   :  { %2197 = vmatmul.mubr.bf16.vlgmr.msra.gmra.mrb[60].mxu0 %v13424_v24  ;;  %2279 = vmatmul.mubr.bf16.vlgmr.msra.gmra.mrb[56].mxu1 %v13424_v24 }
 0x33e   :  { %2206 = vmatpush1.bf16.msra.mxu0 %v9189_v40  ;;  %2288 = vmatpush1.bf16.msra.mxu1 %v9191_v42  ;;  %v9221_v42 = vld [vmem:[#allocation3 + $0x580] sm:$0xff]  ;;  %v9223_v40 = vld [vmem:[#allocation3 + $0x590] sm:$0xff] }
 0x33f   :  { %2207 = vmatprep.subr.bf16.mxu0 %v9193_v38  ;;  %2289 = vmatprep.subr.bf16.mxu1 %v9195_v16  ;;  %v9217_v16 = vld [vmem:[#allocation3 + $0x530] sm:$0xff]  ;;  %v9219_v38 = vld [vmem:[#allocation3 + $0x540] sm:$0xff]  ;;  %13543 = vst [vmem:[#allocation221_spill] sm:$0xff] %v9221_v42  ;;  %13544 = vst [vmem:[#allocation222_spill] sm:$0xff] %v9223_v40 }
 0x340   :  { %2237 = vmatprep.mubr.bf16.mxu0 %v13424_v24  ;;  %2319 = vmatprep.mubr.bf16.mxu1 %v13424_v24  ;;  %13541 = vst [vmem:[#allocation219_spill] sm:$0xff] %v9217_v16  ;;  %13542 = vst [vmem:[#allocation220_spill] sm:$0xff] %v9219_v38 }
 0x342   :  { %2208 = vmatpush1.bf16.msra.mxu0 %v9203_v12  ;;  %2290 = vmatpush1.bf16.msra.mxu1 %v9205_v36  ;;  %v9229_v36 = vld [vmem:[#allocation3 + $0x578] sm:$0xff] }
 0x343   :  { %2209 = vmatprep.subr.bf16.mxu0 %v9207_v32  ;;  %2291 = vmatprep.subr.bf16.mxu1 %v9209_v33  ;;  %13545 = vst [vmem:[#allocation223_spill] sm:$0xff] %v9229_v36  ;;  %v9231_v32 = vld [vmem:[#allocation3 + $0x588] sm:$0xff]  ;;  %v9235_v12 = vld [vmem:[#allocation3 + $0x5d8] sm:$0xff] }
 0x344   :  { %13546 = vst [vmem:[#allocation224_spill] sm:$0xff] %v9231_v32  ;;  %v9233_v33 = vld [vmem:[#allocation3 + $0x5c8] sm:$0xff]  ;;  %13548 = vst [vmem:[#allocation226_spill] sm:$0xff] %v9235_v12 }
 0x345   :  { %13547 = vst [vmem:[#allocation225_spill] sm:$0xff] %v9233_v33 }
 0x346   :  { %2210 = vmatpush1.bf16.msra.mxu0 %v9217_v16  ;;  %2292 = vmatpush1.bf16.msra.mxu1 %v9219_v38  ;;  %v9241_v38 = vld [vmem:[#allocation3 + $0x5c0] sm:$0xff] }
 0x347   :  { %2211 = vmatprep.subr.bf16.mxu0 %v9221_v42  ;;  %2293 = vmatprep.subr.bf16.mxu1 %v9223_v40  ;;  %13549 = vst [vmem:[#allocation227_spill] sm:$0xff] %v9241_v38  ;;  %v9243_v42 = vld [vmem:[#allocation3 + $0x5d0] sm:$0xff]  ;;  %v9247_v16 = vld [vmem:[#allocation3 + $0x620] sm:$0xff] }
 0x348   :  { %13550 = vst [vmem:[#allocation228_spill] sm:$0xff] %v9243_v42  ;;  %v9245_v40 = vld [vmem:[#allocation3 + $0x610] sm:$0xff]  ;;  %13552 = vst [vmem:[#allocation230_spill] sm:$0xff] %v9247_v16 }
 0x349   :  { %13551 = vst [vmem:[#allocation229_spill] sm:$0xff] %v9245_v40 }
 0x34a   :  { %2212 = vmatpush1.bf16.msra.mxu0 %v9229_v36  ;;  %2294 = vmatpush1.bf16.msra.mxu1 %v9231_v32  ;;  %v9253_v32 = vld [vmem:[#allocation3 + $0x608] sm:$0xff] }
 0x34b   :  { %2213 = vmatprep.subr.bf16.mxu0 %v9233_v33  ;;  %2295 = vmatprep.subr.bf16.mxu1 %v9235_v12  ;;  %13553 = vst [vmem:[#allocation231_spill] sm:$0xff] %v9253_v32  ;;  %v9255_v33 = vld [vmem:[#allocation3 + $0x618] sm:$0xff]  ;;  %v9259_v36 = vld [vmem:[#allocation3 + $0x668] sm:$0xff] }
 0x34c   :  { %13554 = vst [vmem:[#allocation232_spill] sm:$0xff] %v9255_v33  ;;  %v9257_v12 = vld [vmem:[#allocation3 + $0x658] sm:$0xff]  ;;  %13556 = vst [vmem:[#allocation234_spill] sm:$0xff] %v9259_v36 }
 0x34d   :  { %13555 = vst [vmem:[#allocation233_spill] sm:$0xff] %v9257_v12 }
 0x34e   :  { %2214 = vmatpush1.bf16.msra.mxu0 %v9241_v38  ;;  %2296 = vmatpush1.bf16.msra.mxu1 %v9243_v42  ;;  %v9265_v42 = vld [vmem:[#allocation3 + $0x650] sm:$0xff] }
 0x34f   :  { %2215 = vmatprep.subr.bf16.mxu0 %v9245_v40  ;;  %2297 = vmatprep.subr.bf16.mxu1 %v9247_v16  ;;  %v9267_v40 = vld [vmem:[#allocation3 + $0x660] sm:$0xff]  ;;  %v9271_v38 = vld [vmem:[#allocation3 + $0x6b0] sm:$0xff] }
 0x350   :  { %13557 = vst [vmem:[#allocation235_spill] sm:$0xff] %v9267_v40  ;;  %v9269_v16 = vld [vmem:[#allocation3 + $0x6a0] sm:$0xff]  ;;  %13559 = vst [vmem:[#allocation237_spill] sm:$0xff] %v9271_v38 }
 0x351   :  { %13558 = vst [vmem:[#allocation236_spill] sm:$0xff] %v9269_v16 }
 0x352   :  { %2216 = vmatpush1.bf16.msra.mxu0 %v9253_v32  ;;  %2298 = vmatpush1.bf16.msra.mxu1 %v9255_v33  ;;  %v9277_v33 = vld [vmem:[#allocation3 + $0x698] sm:$0xff]  ;;  %v9286_v32 = vld [vmem:[#allocation3 + $0x40] sm:$0xff] }
 0x353   :  { %2217 = vmatprep.subr.bf16.mxu0 %v9257_v12  ;;  %2299 = vmatprep.subr.bf16.mxu1 %v9259_v36  ;;  %13560 = vst [vmem:[#allocation238_spill] sm:$0xff] %v9277_v33  ;;  %v9279_v12 = vld [vmem:[#allocation3 + $0x6a8] sm:$0xff]  ;;  %v9281_v36 = vld [vmem:[#allocation3 + $0x280] sm:$0xff]  ;;  %13563 = vst [vmem:[#allocation241_spill] sm:$0xff] %v9286_v32 }
 0x354   :  { %13561 = vst [vmem:[#allocation239_spill] sm:$0xff] %v9279_v12  ;;  %13562 = vst [vmem:[#allocation240_spill] sm:$0xff] %v9281_v36 }
 0x356   :  { %2218 = vmatpush1.bf16.msra.mxu0 %v9265_v42  ;;  %2300 = vmatpush1.bf16.msra.mxu1 %v9267_v40  ;;  %v9289_v40 = vld [vmem:[#allocation3 + $0x4c0] sm:$0xff] }
 0x357   :  { %2219 = vmatprep.subr.bf16.mxu0 %v9269_v16  ;;  %2301 = vmatprep.subr.bf16.mxu1 %v9271_v38  ;;  %13564 = vst [vmem:[#allocation242_spill] sm:$0xff] %v9289_v40  ;;  %v9291_v16 = vld [vmem:[#allocation3 + $0x2c8] sm:$0xff]  ;;  %v9321_v38 = vld [vmem:[#allocation3 + $0x118] sm:$0xff] }
 0x358   :  { %13565 = vst [vmem:[#allocation243_spill] sm:$0xff] %v9291_v16  ;;  %13572 = vst [vmem:[#allocation250_spill] sm:$0xff] %v9321_v38 }
 0x35a   :  { %2220 = vmatpush1.bf16.msra.mxu0 %v9277_v33  ;;  %2302 = vmatpush1.bf16.msra.mxu1 %v9279_v12  ;;  %v9298_v12 = vld [vmem:[#allocation3 + $0x88] sm:$0xff]  ;;  %v9303_v33 = vld [vmem:[#allocation3 + $0x310] sm:$0xff] }
 0x35b   :  { %6397 = vmatprep.subr.bf16.mxu0 %v9281_v36  ;;  %6712 = vmatprep.subr.bf16.mxu1 %v13420_v8  ;;  %13566 = vst [vmem:[#allocation244_spill] sm:$0xff] %v9298_v12  ;;  %v9301_v36 = vld [vmem:[#allocation3 + $0x508] sm:$0xff]  ;;  %13568 = vst [vmem:[#allocation246_spill] sm:$0xff] %v9303_v33 }
 0x35c   :  { %13567 = vst [vmem:[#allocation245_spill] sm:$0xff] %v9301_v36 }
 0x35d   :  { %2238 = vmatmul.mubr.bf16.vlgmr.msra.gmra.mrb[60].mxu0 %v13424_v24  ;;  %2320 = vmatmul.mubr.bf16.vlgmr.msra.gmra.mrb[60].mxu1 %v13424_v24 }
 0x35e   :  { %6398 = vmatpush3.bf16.msra.mxu0 %v9286_v32  ;;  %6713 = vmatpush3.bf16.msra.mxu1 %v9289_v40  ;;  %v9314_v40 = vld [vmem:[#allocation3 + $0x550] sm:$0xff]  ;;  %v9316_v32 = vld [vmem:[#allocation3 + $0x358] sm:$0xff] }
 0x35f   :  { %6399 = vmatprep.subr.bf16.mxu0 %v9291_v16  ;;  %6714 = vmatprep.subr.bf16.mxu1 %v13420_v8  ;;  %v9311_v16 = vld [vmem:[#allocation3 + $0xd0] sm:$0xff]  ;;  %13570 = vst [vmem:[#allocation248_spill] sm:$0xff] %v9314_v40  ;;  %13571 = vst [vmem:[#allocation249_spill] sm:$0xff] %v9316_v32 }
 0x360   :  { %2360 = vmatprep.mubr.bf16.mxu0 %v13424_v24  ;;  %6728 = vmatprep.mubr.msk.bf16.mxu1 %vm8178_vm1, %v13420_v8  ;;  %13569 = vst [vmem:[#allocation247_spill] sm:$0xff] %v9311_v16 }
 0x362   :  { %6400 = vmatpush3.bf16.msra.mxu0 %v9298_v12  ;;  %6715 = vmatpush3.bf16.msra.mxu1 %v9301_v36  ;;  %v9324_v36 = vld [vmem:[#allocation3 + $0x598] sm:$0xff]  ;;  %v9331_v12 = vld [vmem:[#allocation3 + $0x160] sm:$0xff] }
 0x363   :  { %6401 = vmatprep.subr.bf16.mxu0 %v9303_v33  ;;  %6716 = vmatprep.subr.bf16.mxu1 %v13420_v8  ;;  %13573 = vst [vmem:[#allocation251_spill] sm:$0xff] %v9324_v36  ;;  %v9326_v33 = vld [vmem:[#allocation3 + $0x3a0] sm:$0xff]  ;;  %13575 = vst [vmem:[#allocation253_spill] sm:$0xff] %v9331_v12 }
 0x364   :  { %13574 = vst [vmem:[#allocation252_spill] sm:$0xff] %v9326_v33 }
 0x366   :  { %6402 = vmatpush3.bf16.msra.mxu0 %v9311_v16  ;;  %6717 = vmatpush3.bf16.msra.mxu1 %v9314_v40  ;;  %v9334_v40 = vld [vmem:[#allocation3 + $0x5e0] sm:$0xff]  ;;  %v9341_v16 = vld [vmem:[#allocation3 + $0x1a8] sm:$0xff] }
 0x367   :  { %6403 = vmatprep.subr.bf16.mxu0 %v9316_v32  ;;  %6718 = vmatprep.subr.bf16.mxu1 %v13420_v8  ;;  %13576 = vst [vmem:[#allocation254_spill] sm:$0xff] %v9334_v40  ;;  %v9336_v32 = vld [vmem:[#allocation3 + $0x3e8] sm:$0xff] }
 0x368   :  { %13577 = vst [vmem:[#allocation255_spill] sm:$0xff] %v9336_v32 }
 0x36a   :  { %6404 = vmatpush3.bf16.msra.mxu0 %v9321_v38  ;;  %6719 = vmatpush3.bf16.msra.mxu1 %v9324_v36  ;;  %v9344_v36 = vld [vmem:[#allocation3 + $0x628] sm:$0xff]  ;;  %v9351_v38 = vld [vmem:[#allocation3 + $0x1f0] sm:$0xff] }
 0x36b   :  { %6405 = vmatprep.subr.bf16.mxu0 %v9326_v33  ;;  %6720 = vmatprep.subr.bf16.mxu1 %v13420_v8  ;;  %13578 = vst [vmem:[#allocation256_spill] sm:$0xff] %v9344_v36  ;;  %v9346_v33 = vld [vmem:[#allocation3 + $0x430] sm:$0xff] }
 0x36e   :  { %6406 = vmatpush3.bf16.msra.mxu0 %v9331_v12  ;;  %6721 = vmatpush3.bf16.msra.mxu1 %v9334_v40  ;;  %v9354_v40 = vld [vmem:[#allocation3 + $0x670] sm:$0xff]  ;;  %v9361_v12 = vld [vmem:[#allocation3 + $0x238] sm:$0xff] }
 0x36f   :  { %6407 = vmatprep.subr.bf16.mxu0 %v9336_v32  ;;  %6722 = vmatprep.subr.bf16.mxu1 %v13420_v8  ;;  %v9356_v32 = vld [vmem:[#allocation3 + $0x478] sm:$0xff] }
 0x372   :  { %6408 = vmatpush3.bf16.msra.mxu0 %v9341_v16  ;;  %6723 = vmatpush3.bf16.msra.mxu1 %v9344_v36  ;;  %v9364_v36 = vld [vmem:[#allocation3 + $0x6b8] sm:$0xff] }
 0x373   :  { %6409 = vmatprep.subr.bf16.mxu0 %v9346_v33  ;;  %6724 = vmatprep.subr.bf16.mxu1 %v13420_v8 }
 0x376   :  { %6410 = vmatpush3.bf16.msra.mxu0 %v9351_v38  ;;  %6725 = vmatpush3.bf16.msra.mxu1 %v9354_v40 }
 0x377   :  { %6411 = vmatprep.subr.bf16.mxu0 %v9356_v32  ;;  %6726 = vmatprep.subr.bf16.mxu1 %v13420_v8 }
 0x37a   :  { %6412 = vmatpush3.bf16.msra.mxu0 %v9361_v12  ;;  %6727 = vmatpush3.bf16.msra.mxu1 %v9364_v36 }
 0x37b   :  { %2486 = vmatprep.subr.bf16.mxu0 %v8695_v6  ;;  %2568 = vmatprep.subr.bf16.mxu1 %v8697_v7 }
 0x37d   :  { %2361 = vmatmul.mubr.bf16.vlgmr.msra.gmra.mrb[64].mxu0 %v13424_v24  ;;  %6729 = vmatmul.mubr.bf16.vlgmr.msra.gmra.mrb[64].mxu1 %v13424_v24 }
 0x37e   :  { %2487 = vmatpush1.bf16.msra.mxu0 %v8699_v21  ;;  %2569 = vmatpush1.bf16.msra.mxu1 %v8703_v43 }
 0x37f   :  { %2488 = vmatprep.subr.bf16.mxu0 %v8705_v13  ;;  %2570 = vmatprep.subr.bf16.mxu1 %v8707_v18  ;;  %v13594_v13 = vld [vmem:[#allocation61_spill] sm:$0xff] }
 0x382   :  { %2489 = vmatpush1.bf16.msra.mxu0 %v8713_v25  ;;  %2571 = vmatpush1.bf16.msra.mxu1 %v8715_v15 }
 0x383   :  { %2490 = vmatprep.subr.bf16.mxu0 %v8717_v57  ;;  %2572 = vmatprep.subr.bf16.mxu1 %v8719_v51  ;;  %v13595_v51 = vld [vmem:[#allocation28_spill] sm:$0xff] }
 0x386   :  { %2491 = vmatpush1.bf16.msra.mxu0 %v8725_v11  ;;  %2573 = vmatpush1.bf16.msra.mxu1 %v8727_v22 }
 0x387   :  { %2492 = vmatprep.subr.bf16.mxu0 %v8729_v59  ;;  %2574 = vmatprep.subr.bf16.mxu1 %v8731_v23 }
 0x38a   :  { %2493 = vmatpush1.bf16.msra.mxu0 %v8737_v47  ;;  %2575 = vmatpush1.bf16.msra.mxu1 %v8739_v4 }
 0x38b   :  { %2494 = vmatprep.subr.bf16.mxu0 %v8741_v26  ;;  %2576 = vmatprep.subr.bf16.mxu1 %v8743_v9  ;;  %v13596_v26 = vld [vmem:[#allocation26_spill] sm:$0xff] }
 0x38e   :  { %2495 = vmatpush1.bf16.msra.mxu0 %v8749_v39  ;;  %2577 = vmatpush1.bf16.msra.mxu1 %v8751_v27  ;;  %v13579_v27 = vld [vmem:[#allocation103_spill] sm:$0xff] }
 0x38f   :  { %2496 = vmatprep.subr.bf16.mxu0 %v8753_v63  ;;  %2578 = vmatprep.subr.bf16.mxu1 %v8755_v30  ;;  %v13581_v30 = vld [vmem:[#allocation105_spill] sm:$0xff] }
 0x392   :  { %2497 = vmatpush1.bf16.msra.mxu0 %v8761_v45  ;;  %2579 = vmatpush1.bf16.msra.mxu1 %v8763_v29  ;;  %v13580_v29 = vld [vmem:[#allocation104_spill] sm:$0xff] }
 0x393   :  { %2498 = vmatprep.subr.bf16.mxu0 %v8765_v5  ;;  %2580 = vmatprep.subr.bf16.mxu1 %v8767_v0 }
 0x396   :  { %2499 = vmatpush1.bf16.msra.mxu0 %v8773_v3  ;;  %2581 = vmatpush1.bf16.msra.mxu1 %v8775_v60 }
 0x397   :  { %2500 = vmatprep.subr.bf16.mxu0 %v8777_v14  ;;  %2582 = vmatprep.subr.bf16.mxu1 %v8779_v1 }
 0x39a   :  { %2501 = vmatpush1.bf16.msra.mxu0 %v8785_v2  ;;  %2583 = vmatpush1.bf16.msra.mxu1 %v8787_v62 }
 0x39b   :  { %2502 = vmatprep.subr.bf16.mxu0 %v8789_v17  ;;  %2584 = vmatprep.subr.bf16.mxu1 %v8791_v53  ;;  %v13593_v17 = vld [vmem:[#allocation30_spill] sm:$0xff] }
 0x39e   :  { %2503 = vmatpush1.bf16.msra.mxu0 %v8797_v50  ;;  %2585 = vmatpush1.bf16.msra.mxu1 %v8799_v19  ;;  %v13592_v50 = vld [vmem:[#allocation31_spill] sm:$0xff] }
 0x39f   :  { %2504 = vmatprep.subr.bf16.mxu0 %v8801_v52  ;;  %2586 = vmatprep.subr.bf16.mxu1 %v8803_v37  ;;  %v13586_v52 = vld [vmem:[#allocation110_spill] sm:$0xff] }
 0x3a2   :  { %2505 = vmatpush1.bf16.msra.mxu0 %v8809_v56  ;;  %2587 = vmatpush1.bf16.msra.mxu1 %v8811_v58  ;;  %v13589_v56 = vld [vmem:[#allocation113_spill] sm:$0xff]  ;;  %v13590_v58 = vld [vmem:[#allocation114_spill] sm:$0xff] }
 0x3a3   :  { %2506 = vmatprep.subr.bf16.mxu0 %v8813_v54  ;;  %2588 = vmatprep.subr.bf16.mxu1 %v8815_v55  ;;  %v13588_v54 = vld [vmem:[#allocation112_spill] sm:$0xff] }
 0x3a6   :  { %2507 = vmatpush1.bf16.msra.mxu0 %v8821_v10  ;;  %2589 = vmatpush1.bf16.msra.mxu1 %v8823_v28  ;;  %v13591_v10 = vld [vmem:[#allocation29_spill] sm:$0xff] }
 0x3a7   :  { %2508 = vmatprep.subr.bf16.mxu0 %v8825_v20  ;;  %2590 = vmatprep.subr.bf16.mxu1 %v8827_v44  ;;  %v13582_v44 = vld [vmem:[#allocation106_spill] sm:$0xff] }
 0x3aa   :  { %2509 = vmatpush1.bf16.msra.mxu0 %v8833_v61  ;;  %2591 = vmatpush1.bf16.msra.mxu1 %v8835_v48  ;;  %v13583_v48 = vld [vmem:[#allocation107_spill] sm:$0xff] }
 0x3ab   :  { %2510 = vmatprep.subr.bf16.mxu0 %v8837_v49  ;;  %2592 = vmatprep.subr.bf16.mxu1 %v8839_v46  ;;  %v13584_v49 = vld [vmem:[#allocation108_spill] sm:$0xff]  ;;  %v13585_v46 = vld [vmem:[#allocation109_spill] sm:$0xff] }
 0x3ae   :  { %2511 = vmatpush1.bf16.msra.mxu0 %v8845_v35  ;;  %2593 = vmatpush1.bf16.msra.mxu1 %v8847_v31  ;;  %v13587_v31 = vld [vmem:[#allocation111_spill] sm:$0xff] }
 0x3af   :  { %2512 = vmatprep.subr.bf16.mxu0 %v8849_v41  ;;  %2594 = vmatprep.subr.bf16.mxu1 %v8851_v34 }
 0x3b2   :  { %2513 = vmatpush1.bf16.msra.mxu0 %v13579_v27  ;;  %2595 = vmatpush1.bf16.msra.mxu1 %v13580_v29 }
 0x3b3   :  { %2514 = vmatprep.subr.bf16.mxu0 %v13581_v30  ;;  %2596 = vmatprep.subr.bf16.mxu1 %v13582_v44  ;;  %v13597_v30 = vld [vmem:[#allocation27_spill] sm:$0xff] }
 0x3b6   :  { %2515 = vmatpush1.bf16.msra.mxu0 %v13583_v48  ;;  %2597 = vmatpush1.bf16.msra.mxu1 %v13584_v49 }
 0x3b7   :  { %2516 = vmatprep.subr.bf16.mxu0 %v13585_v46  ;;  %2598 = vmatprep.subr.bf16.mxu1 %v13586_v52 }
 0x3ba   :  { %2517 = vmatpush1.bf16.msra.mxu0 %v13587_v31  ;;  %2599 = vmatpush1.bf16.msra.mxu1 %v13588_v54  ;;  %v13598_v54 = vld [vmem:[#allocation60_spill] sm:$0xff] }
 0x3bb   :  { %2527 = vmatprep.subr.bf16.mxu0 %v13589_v56  ;;  %2609 = vmatprep.subr.bf16.mxu1 %v13590_v58  ;;  %v13599_v58 = vld [vmem:[#allocation62_spill] sm:$0xff] }
 0x3d0   :  { %v2075_v60 = vpop.f32.mrb[56].mxu0  ;;  %v2157_v62 = vpop.f32.mrb[52].mxu1 }
 0x3d1   :  { %v2077_v1 = vpop.f32.mrb[57].mxu0  ;;  %v2159_v2 = vpop.f32.mrb[53].mxu1  ;;  %v2408_v19 = vadd.f32 %v2075_v60, %v13591_v10  ;;  %v2410_v11 = vadd.f32 %v2157_v62, %v13595_v51 }
 0x3d2   :  { %v2079_v34 = vpop.f32.mrb[58].mxu0  ;;  %v2161_v41 = vpop.f32.mrb[54].mxu1  ;;  %v2409_v53 = vadd.f32 %v2077_v1, %v13592_v50  ;;  %v2429_v35 = vadd.f32 %v2159_v2, %v13593_v17 }
 0x3d3   :  { %v2080_v20 = vpop.f32.mrb[59].mxu0  ;;  %v2162_v61 = vpop.f32.mrb[55].mxu1  ;;  %v6309_v0 = vmul.f32 -1.442695, %v2408_v19  ;;  %v6311_v46 = vmul.f32 -1.442695, %v2410_v11 }
 0x3d4   :  { %v6310_v55 = vmul.f32 -1.442695, %v2409_v53  ;;  %v6312_v63 = vmul.f32 -1.442695, %v2429_v35  ;;  %v13600_v61 = vld [vmem:[#allocation63_spill] sm:$0xff]  ;;  %v13603_v11 = vld [vmem:[#allocation25_spill] sm:$0xff] }
 0x3d5   :  { %7169 = vpow2.f32 %v6309_v0 }
 0x3d6   :  { %7171 = vpow2.f32 %v6310_v55 }
 0x3d7   :  { %7173 = vpow2.f32 %v6312_v63 }
 0x3df   :  { %v7170_v5 = vpop.eup %7169 }
 0x3e0   :  { %v7172_v45 = vpop.eup %7171  ;;  %v2420_v6 = vadd.f32 1.0, %v7170_v5 }
 0x3e1   :  { %v2421_v7 = vadd.f32 1.0, %v7172_v45  ;;  %v7174_v47 = vpop.eup %7173 }
 0x3e2   :  { %7175 = vrcp.f32 %v2420_v6  ;;  %v2441_v31 = vadd.f32 1.0, %v7174_v47 }
 0x3e3   :  { %7177 = vrcp.f32 %v2421_v7 }
 0x3ec   :  { %v7176_v29 = vpop.eup %7175 }
 0x3ed   :  { %v7178_v48 = vpop.eup %7177 }
 0x410   :  { %v2280_v28 = vpop.f32.mrb[56].mxu1 }
 0x411   :  { %v2282_v37 = vpop.f32.mrb[57].mxu1 }
 0x412   :  { %v2284_v3 = vpop.f32.mrb[58].mxu1 }
 0x413   :  { %v2285_v14 = vpop.f32.mrb[59].mxu1 }
 0x430   :  { %v2239_v21 = vpop.f32.mrb[60].mxu0  ;;  %v2321_v43 = vpop.f32.mrb[60].mxu1 }
 0x431   :  { %v2430_v18 = vadd.f32 %v2239_v21, %v13594_v13  ;;  %v2322_v25 = vadd.f32 %v2321_v43, %v2280_v28  ;;  %v2241_v15 = vpop.f32.mrb[61].mxu0  ;;  %v2323_v57 = vpop.f32.mrb[61].mxu1 }
 0x432   :  { %v2324_v22 = vadd.f32 %v2323_v57, %v2282_v37  ;;  %v2243_v59 = vpop.f32.mrb[62].mxu0  ;;  %v2325_v23 = vpop.f32.mrb[62].mxu1  ;;  %v2431_v28 = vadd.f32 %v2241_v15, %v13600_v61  ;;  %v13601_v15 = vld [vmem:[#allocation115_spill] sm:$0xff]  ;;  %v13602_v57 = vld [vmem:[#allocation116_spill] sm:$0xff] }
 0x433   :  { %v6313_v4 = vmul.f32 -1.442695, %v2430_v18  ;;  %v2450_v9 = vadd.f32 %v2322_v25, %v13596_v26  ;;  %v2244_v39 = vpop.f32.mrb[63].mxu0  ;;  %v2326_v27 = vpop.f32.mrb[63].mxu1  ;;  %v13604_v59 = vld [vmem:[#allocation117_spill] sm:$0xff]  ;;  %v13605_v23 = vld [vmem:[#allocation118_spill] sm:$0xff] }
 0x434   :  { %v2451_v44 = vadd.f32 %v2324_v22, %v13597_v30  ;;  %v6314_v53 = vmul.f32 -1.442695, %v2431_v28  ;;  %v13607_v39 = vld [vmem:[#allocation120_spill] sm:$0xff] }
 0x435   :  { %7179 = vpow2.f32 %v6313_v4  ;;  %v2453_v49 = vmul.f32 %v7176_v29, %v2450_v9  ;;  %v13606_v9 = vld [vmem:[#allocation119_spill] sm:$0xff]  ;;  %v13608_v29 = vld [vmem:[#allocation93_spill] sm:$0xff] }
 0x436   :  { %v2454_v52 = vmul.f32 %v7178_v48, %v2451_v44  ;;  %v13609_v48 = vld [vmem:[#allocation121_spill] sm:$0xff] }
 0x437   :  { %v2456_v56 = vadd.f32 %v2453_v49, %v13598_v54  ;;  %v13610_v49 = vld [vmem:[#allocation122_spill] sm:$0xff] }
 0x438   :  { %v2457_v60 = vadd.f32 %v2454_v52, %v13599_v58  ;;  %v13612_v52 = vld [vmem:[#allocation124_spill] sm:$0xff]  ;;  %v13614_v54 = vld [vmem:[#allocation126_spill] sm:$0xff] }
 0x439   :  { %7181 = vtanh.f32 %v2456_v56  ;;  %v13615_v56 = vld [vmem:[#allocation127_spill] sm:$0xff]  ;;  %v13616_v58 = vld [vmem:[#allocation128_spill] sm:$0xff] }
 0x43a   :  { %7183 = vpow2.f32 %v6311_v46  ;;  %v13611_v46 = vld [vmem:[#allocation123_spill] sm:$0xff] }
 0x43b   :  { %7185 = vrcp.f32 %v2441_v31  ;;  %v13613_v31 = vld [vmem:[#allocation125_spill] sm:$0xff] }
 0x43c   :  { %7187 = vtanh.f32 %v2457_v60  ;;  %v13617_v60 = vld [vmem:[#allocation129_spill] sm:$0xff] }
 0x43f   :  { %v7180_v62 = vpop.eup %7179 }
 0x440   :  { %v2442_v1 = vadd.f32 1.0, %v7180_v62  ;;  %v13618_v62 = vld [vmem:[#allocation130_spill] sm:$0xff] }
 0x442   :  { %7189 = vrcp.f32 %v2442_v1  ;;  %v13619_v1 = vld [vmem:[#allocation131_spill] sm:$0xff] }
 0x443   :  { %v7182_v2 = vpop.eup %7181 }
 0x444   :  { %v7184_v34 = vpop.eup %7183  ;;  %v2462_v41 = vsub.f32 0.0, %v7182_v2 }
 0x445   :  { %v7186_v20 = vpop.eup %7185  ;;  %v2422_v37 = vadd.f32 1.0, %v7184_v34 }
 0x446   :  { %v2465_v10 = vmul.f32 %v7186_v20, %v2462_v41  ;;  %v7188_v19 = vpop.eup %7187  ;;  %v13621_v41 = vld [vmem:[#allocation133_spill] sm:$0xff]  ;;  %v13622_v20 = vld [vmem:[#allocation134_spill] sm:$0xff] }
 0x447   :  { %v2463_v3 = vsub.f32 0.0, %v7188_v19  ;;  %7191 = vrcp.f32 %v2422_v37 }
 0x448   :  { %v9446_v50 = vadd.f32 %v7182_v2, %v2465_v10  ;;  %7193 = vpow2.f32 %v6314_v53  ;;  %v13620_v2 = vld [vmem:[#allocation132_spill] sm:$0xff]  ;;  %v13623_v10 = vld [vmem:[#allocation135_spill] sm:$0xff]  ;;  %v13625_v53 = vld [vmem:[#allocation137_spill] sm:$0xff] }
 0x44a   :  { %v9456_v21 = vpack.c.bf16 %v9446_v50, %v9446_v50 }
 0x44c   :  { %v7190_v14 = vpop.eup %7189 }
 0x44d   :  { %v2466_v0 = vmul.f32 %v7190_v14, %v2463_v3  ;;  %v13626_v3 = vld [vmem:[#allocation138_spill] sm:$0xff] }
 0x44f   :  { %v9448_v55 = vadd.f32 %v7188_v19, %v2466_v0  ;;  %v13624_v19 = vld [vmem:[#allocation136_spill] sm:$0xff]  ;;  %v13627_v0 = vld [vmem:[#allocation139_spill] sm:$0xff] }
 0x450   :  { %v6413_v17 = vpop.f32.mrb[64].mxu0  ;;  %v2402_v35 = vpop.f32.mrb[64].mxu1 }
 0x451   :  { %v6414_v5 = vpop.f32.mrb[65].mxu0  ;;  %v9452_v45 = vpack.c.bf16 %v9448_v55, %v9448_v55  ;;  %v6730_v63 = vpop.f32.mrb[65].mxu1 }
 0x452   :  { %v6415_v6 = vadd.f32 %v6414_v5, %v6413_v17  ;;  %v6416_v7 = vpop.f32.mrb[66].mxu0  ;;  %v2405_v43 = vpop.f32.mrb[66].mxu1  ;;  %v13628_v17 = vld [vmem:[#allocation140_spill] sm:$0xff]  ;;  %v13630_v5 = vld [vmem:[#allocation142_spill] sm:$0xff]  ;;  %v13631_v63 = vld [vmem:[#allocation143_spill] sm:$0xff] }
 0x453   :  { %2518 = vmatprep.mubr.bf16.mxu0 %v9452_v45  ;;  %2600 = vmatprep.mubr.bf16.mxu1 %v9452_v45  ;;  %v6417_v13 = vpop.f32.mrb[67].mxu0  ;;  %v6731_v18 = vpop.f32.mrb[67].mxu1  ;;  %v13633_v43 = vld [vmem:[#allocation145_spill] sm:$0xff] }
 0x454   :  { %v2403_v25 = vadd.f32 %v6415_v6, %v2402_v35  ;;  %2519 = vmatmul.mubr.bf16.vlgmr.msra.gmra.mrb[68].mxu0 %v9456_v21  ;;  %2601 = vmatmul.mubr.bf16.vlgmr.msra.gmra.mrb[68].mxu1 %v9456_v21  ;;  %v7192_v51 = vpop.eup %7191  ;;  %v13629_v35 = vld [vmem:[#allocation141_spill] sm:$0xff]  ;;  %v13632_v6 = vld [vmem:[#allocation144_spill] sm:$0xff]  ;;  %v13634_v13 = vld [vmem:[#allocation146_spill] sm:$0xff] }
 0x455   :  { %2528 = vmatpush1.bf16.msra.mxu0 %v13601_v15  ;;  %2610 = vmatpush1.bf16.msra.mxu1 %v13602_v57  ;;  %v7194_v47 = vpop.eup %7193  ;;  %v13635_v18 = vld [vmem:[#allocation147_spill] sm:$0xff]  ;;  %v13637_v15 = vld [vmem:[#allocation149_spill] sm:$0xff]  ;;  %v13638_v57 = vld [vmem:[#allocation150_spill] sm:$0xff] }
 0x456   :  { %v2452_v22 = vadd.f32 %v2403_v25, %v13603_v11  ;;  %2529 = vmatprep.subr.bf16.mxu0 %v13604_v59  ;;  %2611 = vmatprep.subr.bf16.mxu1 %v13605_v23  ;;  %v2443_v27 = vadd.f32 1.0, %v7194_v47  ;;  %v13636_v25 = vld [vmem:[#allocation148_spill] sm:$0xff]  ;;  %v13641_v59 = vld [vmem:[#allocation153_spill] sm:$0xff]  ;;  %v13642_v23 = vld [vmem:[#allocation154_spill] sm:$0xff] }
 0x457   :  { %2559 = vmatprep.mubr.bf16.mxu0 %v13424_v24  ;;  %2641 = vmatprep.mubr.bf16.mxu1 %v13424_v24  ;;  %v13643_v47 = vld [vmem:[#allocation155_spill] sm:$0xff] }
 0x458   :  { %v2455_v4 = vmul.f32 %v7192_v51, %v2452_v22  ;;  %v13639_v51 = vld [vmem:[#allocation151_spill] sm:$0xff]  ;;  %v13640_v22 = vld [vmem:[#allocation152_spill] sm:$0xff] }
 0x459   :  { %2530 = vmatpush1.bf16.msra.mxu0 %v13606_v9  ;;  %2612 = vmatpush1.bf16.msra.mxu1 %v13607_v39  ;;  %v13645_v9 = vld [vmem:[#allocation157_spill] sm:$0xff]  ;;  %v13646_v39 = vld [vmem:[#allocation158_spill] sm:$0xff] }
 0x45a   :  { %v2458_v44 = vadd.f32 %v2455_v4, %v13608_v29  ;;  %2531 = vmatprep.subr.bf16.mxu0 %v13609_v48  ;;  %2613 = vmatprep.subr.bf16.mxu1 %v13610_v49  ;;  %v13644_v4 = vld [vmem:[#allocation156_spill] sm:$0xff]  ;;  %v13650_v48 = vld [vmem:[#allocation162_spill] sm:$0xff]  ;;  %v13651_v49 = vld [vmem:[#allocation163_spill] sm:$0xff] }
 0x45b   :  { %v13648_v29 = vld [vmem:[#allocation160_spill] sm:$0xff] }
 0x45c   :  { %7195 = vtanh.f32 %v2458_v44  ;;  %v13649_v44 = vld [vmem:[#allocation161_spill] sm:$0xff] }
 0x45d   :  { %2532 = vmatpush1.bf16.msra.mxu0 %v13611_v46  ;;  %2614 = vmatpush1.bf16.msra.mxu1 %v13612_v52  ;;  %7197 = vrcp.f32 %v2443_v27  ;;  %v13647_v27 = vld [vmem:[#allocation159_spill] sm:$0xff]  ;;  %v13652_v46 = vld [vmem:[#allocation164_spill] sm:$0xff]  ;;  %v13653_v52 = vld [vmem:[#allocation165_spill] sm:$0xff] }
 0x45e   :  { %2533 = vmatprep.subr.bf16.mxu0 %v13613_v31  ;;  %2615 = vmatprep.subr.bf16.mxu1 %v13614_v54  ;;  %v13654_v31 = vld [vmem:[#allocation166_spill] sm:$0xff]  ;;  %v13655_v54 = vld [vmem:[#allocation167_spill] sm:$0xff] }
 0x461   :  { %2534 = vmatpush1.bf16.msra.mxu0 %v13615_v56  ;;  %2616 = vmatpush1.bf16.msra.mxu1 %v13616_v58  ;;  %v13656_v56 = vld [vmem:[#allocation168_spill] sm:$0xff]  ;;  %v13657_v58 = vld [vmem:[#allocation169_spill] sm:$0xff] }
 0x462   :  { %2535 = vmatprep.subr.bf16.mxu0 %v13617_v60  ;;  %2617 = vmatprep.subr.bf16.mxu1 %v13618_v62  ;;  %v13658_v60 = vld [vmem:[#allocation170_spill] sm:$0xff]  ;;  %v13659_v62 = vld [vmem:[#allocation171_spill] sm:$0xff] }
 0x465   :  { %2536 = vmatpush1.bf16.msra.mxu0 %v13619_v1  ;;  %2618 = vmatpush1.bf16.msra.mxu1 %v13620_v2  ;;  %v13660_v1 = vld [vmem:[#allocation172_spill] sm:$0xff]  ;;  %v13661_v2 = vld [vmem:[#allocation173_spill] sm:$0xff] }
 0x466   :  { %v7196_v34 = vpop.eup %7195  ;;  %2537 = vmatprep.subr.bf16.mxu0 %v13621_v41  ;;  %2619 = vmatprep.subr.bf16.mxu1 %v13622_v20  ;;  %v13663_v41 = vld [vmem:[#allocation175_spill] sm:$0xff]  ;;  %v13664_v20 = vld [vmem:[#allocation176_spill] sm:$0xff] }
 0x467   :  { %v2464_v61 = vsub.f32 0.0, %v7196_v34  ;;  %v7198_v28 = vpop.eup %7197 }
 0x469   :  { %2538 = vmatpush1.bf16.msra.mxu0 %v13623_v10  ;;  %2620 = vmatpush1.bf16.msra.mxu1 %v13624_v19  ;;  %v2467_v37 = vmul.f32 %v7198_v28, %v2464_v61  ;;  %v13665_v61 = vld [vmem:[#allocation177_spill] sm:$0xff]  ;;  %v13666_v28 = vld [vmem:[#allocation178_spill] sm:$0xff]  ;;  %v13667_v10 = vld [vmem:[#allocation179_spill] sm:$0xff] }
 0x46a   :  { %2539 = vmatprep.subr.bf16.mxu0 %v13625_v53  ;;  %2621 = vmatprep.subr.bf16.mxu1 %v13626_v3  ;;  %v13668_v19 = vld [vmem:[#allocation180_spill] sm:$0xff]  ;;  %v13670_v53 = vld [vmem:[#allocation182_spill] sm:$0xff]  ;;  %v13671_v3 = vld [vmem:[#allocation183_spill] sm:$0xff] }
 0x46b   :  { %v9490_v14 = vadd.f32 %v7196_v34, %v2467_v37  ;;  %v13662_v34 = vld [vmem:[#allocation174_spill] sm:$0xff]  ;;  %v13669_v37 = vld [vmem:[#allocation181_spill] sm:$0xff] }
 0x46d   :  { %2540 = vmatpush1.bf16.msra.mxu0 %v13627_v0  ;;  %2622 = vmatpush1.bf16.msra.mxu1 %v13628_v17  ;;  %v9500_v7 = vpack.c.bf16 %v9490_v14, %v9490_v14  ;;  %v13672_v0 = vld [vmem:[#allocation184_spill] sm:$0xff]  ;;  %v13673_v17 = vld [vmem:[#allocation185_spill] sm:$0xff] }
 0x46e   :  { %2541 = vmatprep.subr.bf16.mxu0 %v13629_v35  ;;  %2623 = vmatprep.subr.bf16.mxu1 %v13630_v5  ;;  %v13674_v35 = vld [vmem:[#allocation186_spill] sm:$0xff]  ;;  %v13675_v5 = vld [vmem:[#allocation187_spill] sm:$0xff] }
 0x471   :  { %2542 = vmatpush1.bf16.msra.mxu0 %v13631_v63  ;;  %2624 = vmatpush1.bf16.msra.mxu1 %v13632_v6  ;;  %v13676_v63 = vld [vmem:[#allocation188_spill] sm:$0xff]  ;;  %v13677_v6 = vld [vmem:[#allocation189_spill] sm:$0xff] }
 0x472   :  { %2650 = vmatprep.subr.bf16.mxu0 %v13633_v43  ;;  %2732 = vmatprep.subr.bf16.mxu1 %v13634_v13  ;;  %v13678_v43 = vld [vmem:[#allocation190_spill] sm:$0xff]  ;;  %v13679_v13 = vld [vmem:[#allocation191_spill] sm:$0xff] }
 0x474   :  { %2560 = vmatmul.mubr.bf16.vlgmr.msra.gmra.mrb[68].mxu0 %v9500_v7  ;;  %2642 = vmatmul.mubr.bf16.vlgmr.msra.gmra.mrb[68].mxu1 %v9500_v7 }
 0x475   :  { %2651 = vmatpush1.bf16.msra.mxu0 %v13635_v18  ;;  %2682 = vmatprep.mubr.bf16.mxu0 %v9452_v45  ;;  %v13680_v18 = vld [vmem:[#allocation192_spill] sm:$0xff] }
 0x476   :  { %2733 = vmatpush1.bf16.msra.mxu1 %v13636_v25  ;;  %2764 = vmatprep.mubr.bf16.mxu1 %v9452_v45  ;;  %v13681_v25 = vld [vmem:[#allocation193_spill] sm:$0xff] }
 0x477   :  { %2652 = vmatprep.subr.bf16.mxu0 %v13637_v15  ;;  %2734 = vmatprep.subr.bf16.mxu1 %v13638_v57  ;;  %v13682_v15 = vld [vmem:[#allocation194_spill] sm:$0xff]  ;;  %v13683_v57 = vld [vmem:[#allocation195_spill] sm:$0xff] }
 0x479   :  { %2653 = vmatpush1.bf16.msra.mxu0 %v13639_v51  ;;  %v13684_v51 = vld [vmem:[#allocation196_spill] sm:$0xff] }
 0x47a   :  { %2735 = vmatpush1.bf16.msra.mxu1 %v13640_v22  ;;  %2654 = vmatprep.subr.bf16.mxu0 %v13641_v59  ;;  %v13685_v22 = vld [vmem:[#allocation197_spill] sm:$0xff]  ;;  %v13686_v59 = vld [vmem:[#allocation198_spill] sm:$0xff] }
 0x47b   :  { %2736 = vmatprep.subr.bf16.mxu1 %v13642_v23  ;;  %v13687_v23 = vld [vmem:[#allocation199_spill] sm:$0xff] }
 0x47d   :  { %2655 = vmatpush1.bf16.msra.mxu0 %v13643_v47  ;;  %v13688_v47 = vld [vmem:[#allocation200_spill] sm:$0xff] }
 0x47e   :  { %2737 = vmatpush1.bf16.msra.mxu1 %v13644_v4  ;;  %2656 = vmatprep.subr.bf16.mxu0 %v13645_v9  ;;  %v13689_v4 = vld [vmem:[#allocation201_spill] sm:$0xff]  ;;  %v13690_v9 = vld [vmem:[#allocation202_spill] sm:$0xff] }
 0x47f   :  { %2738 = vmatprep.subr.bf16.mxu1 %v13646_v39  ;;  %v13691_v39 = vld [vmem:[#allocation203_spill] sm:$0xff] }
 0x481   :  { %2657 = vmatpush1.bf16.msra.mxu0 %v13647_v27  ;;  %v13692_v27 = vld [vmem:[#allocation204_spill] sm:$0xff] }
 0x482   :  { %2739 = vmatpush1.bf16.msra.mxu1 %v13648_v29  ;;  %2658 = vmatprep.subr.bf16.mxu0 %v13649_v44  ;;  %v13693_v29 = vld [vmem:[#allocation205_spill] sm:$0xff]  ;;  %v13694_v44 = vld [vmem:[#allocation206_spill] sm:$0xff] }
 0x483   :  { %2740 = vmatprep.subr.bf16.mxu1 %v13650_v48  ;;  %v13695_v48 = vld [vmem:[#allocation207_spill] sm:$0xff] }
 0x485   :  { %2659 = vmatpush1.bf16.msra.mxu0 %v13651_v49  ;;  %v13696_v49 = vld [vmem:[#allocation208_spill] sm:$0xff] }
 0x486   :  { %2741 = vmatpush1.bf16.msra.mxu1 %v13652_v46  ;;  %2660 = vmatprep.subr.bf16.mxu0 %v13653_v52  ;;  %v13697_v46 = vld [vmem:[#allocation209_spill] sm:$0xff]  ;;  %v13698_v52 = vld [vmem:[#allocation210_spill] sm:$0xff] }
 0x487   :  { %2742 = vmatprep.subr.bf16.mxu1 %v13654_v31  ;;  %v13699_v31 = vld [vmem:[#allocation211_spill] sm:$0xff] }
 0x489   :  { %2661 = vmatpush1.bf16.msra.mxu0 %v13655_v54  ;;  %v13700_v54 = vld [vmem:[#allocation212_spill] sm:$0xff] }
 0x48a   :  { %2743 = vmatpush1.bf16.msra.mxu1 %v13656_v56  ;;  %2662 = vmatprep.subr.bf16.mxu0 %v13657_v58  ;;  %v13701_v56 = vld [vmem:[#allocation213_spill] sm:$0xff]  ;;  %v13702_v58 = vld [vmem:[#allocation214_spill] sm:$0xff] }
 0x48b   :  { %2744 = vmatprep.subr.bf16.mxu1 %v13658_v60  ;;  %v13703_v60 = vld [vmem:[#allocation215_spill] sm:$0xff] }
 0x48d   :  { %2663 = vmatpush1.bf16.msra.mxu0 %v13659_v62  ;;  %v13704_v62 = vld [vmem:[#allocation216_spill] sm:$0xff] }
 0x48e   :  { %2745 = vmatpush1.bf16.msra.mxu1 %v13660_v1  ;;  %2664 = vmatprep.subr.bf16.mxu0 %v13661_v2  ;;  %v13705_v1 = vld [vmem:[#allocation217_spill] sm:$0xff]  ;;  %v13706_v2 = vld [vmem:[#allocation218_spill] sm:$0xff] }
 0x48f   :  { %2746 = vmatprep.subr.bf16.mxu1 %v13662_v34  ;;  %v13707_v34 = vld [vmem:[#allocation219_spill] sm:$0xff] }
 0x491   :  { %2665 = vmatpush1.bf16.msra.mxu0 %v13663_v41  ;;  %v13708_v41 = vld [vmem:[#allocation220_spill] sm:$0xff] }
 0x492   :  { %2747 = vmatpush1.bf16.msra.mxu1 %v13664_v20  ;;  %2666 = vmatprep.subr.bf16.mxu0 %v13665_v61  ;;  %v13709_v20 = vld [vmem:[#allocation221_spill] sm:$0xff]  ;;  %v13710_v61 = vld [vmem:[#allocation222_spill] sm:$0xff] }
 0x493   :  { %2748 = vmatprep.subr.bf16.mxu1 %v13666_v28  ;;  %v13711_v28 = vld [vmem:[#allocation223_spill] sm:$0xff] }
 0x495   :  { %2667 = vmatpush1.bf16.msra.mxu0 %v13667_v10  ;;  %v13712_v10 = vld [vmem:[#allocation224_spill] sm:$0xff] }
 0x496   :  { %2749 = vmatpush1.bf16.msra.mxu1 %v13668_v19  ;;  %2668 = vmatprep.subr.bf16.mxu0 %v13669_v37  ;;  %v13713_v19 = vld [vmem:[#allocation225_spill] sm:$0xff]  ;;  %v13714_v37 = vld [vmem:[#allocation226_spill] sm:$0xff] }
 0x497   :  { %2750 = vmatprep.subr.bf16.mxu1 %v13670_v53  ;;  %v13715_v53 = vld [vmem:[#allocation227_spill] sm:$0xff] }
 0x499   :  { %2669 = vmatpush1.bf16.msra.mxu0 %v13671_v3  ;;  %v13716_v3 = vld [vmem:[#allocation228_spill] sm:$0xff] }
 0x49a   :  { %2751 = vmatpush1.bf16.msra.mxu1 %v13672_v0  ;;  %2670 = vmatprep.subr.bf16.mxu0 %v13673_v17  ;;  %v13717_v0 = vld [vmem:[#allocation229_spill] sm:$0xff]  ;;  %v13718_v17 = vld [vmem:[#allocation230_spill] sm:$0xff] }
 0x49b   :  { %2752 = vmatprep.subr.bf16.mxu1 %v13674_v35  ;;  %v13719_v35 = vld [vmem:[#allocation231_spill] sm:$0xff] }
 0x49d   :  { %2671 = vmatpush1.bf16.msra.mxu0 %v13675_v5  ;;  %v13720_v5 = vld [vmem:[#allocation232_spill] sm:$0xff] }
 0x49e   :  { %2753 = vmatpush1.bf16.msra.mxu1 %v13676_v63  ;;  %2672 = vmatprep.subr.bf16.mxu0 %v13677_v6  ;;  %v13721_v63 = vld [vmem:[#allocation233_spill] sm:$0xff]  ;;  %v13722_v6 = vld [vmem:[#allocation234_spill] sm:$0xff] }
 0x49f   :  { %2754 = vmatprep.subr.bf16.mxu1 %v13678_v43  ;;  %v13723_v43 = vld [vmem:[#allocation235_spill] sm:$0xff] }
 0x4a1   :  { %2673 = vmatpush1.bf16.msra.mxu0 %v13679_v13  ;;  %v13724_v13 = vld [vmem:[#allocation236_spill] sm:$0xff] }
 0x4a2   :  { %2755 = vmatpush1.bf16.msra.mxu1 %v13680_v18  ;;  %2674 = vmatprep.subr.bf16.mxu0 %v13681_v25  ;;  %v13725_v18 = vld [vmem:[#allocation237_spill] sm:$0xff]  ;;  %v13726_v25 = vld [vmem:[#allocation238_spill] sm:$0xff] }
 0x4a3   :  { %2756 = vmatprep.subr.bf16.mxu1 %v13682_v15  ;;  %v13727_v15 = vld [vmem:[#allocation239_spill] sm:$0xff] }
 0x4a5   :  { %2675 = vmatpush1.bf16.msra.mxu0 %v13683_v57  ;;  %v13728_v57 = vld [vmem:[#allocation240_spill] sm:$0xff] }
 0x4a6   :  { %2757 = vmatpush1.bf16.msra.mxu1 %v13684_v51  ;;  %2676 = vmatprep.subr.bf16.mxu0 %v13685_v22  ;;  %v13729_v51 = vld [vmem:[#allocation241_spill] sm:$0xff]  ;;  %v13731_v22 = vld [vmem:[#allocation243_spill] sm:$0xff] }
 0x4a7   :  { %2758 = vmatprep.subr.bf16.mxu1 %v13686_v59  ;;  %v13732_v59 = vld [vmem:[#allocation244_spill] sm:$0xff] }
 0x4a9   :  { %2677 = vmatpush1.bf16.msra.mxu0 %v13687_v23  ;;  %v13733_v23 = vld [vmem:[#allocation245_spill] sm:$0xff] }
 0x4aa   :  { %2759 = vmatpush1.bf16.msra.mxu1 %v13688_v47  ;;  %2678 = vmatprep.subr.bf16.mxu0 %v13689_v4  ;;  %v13734_v47 = vld [vmem:[#allocation246_spill] sm:$0xff]  ;;  %v13735_v4 = vld [vmem:[#allocation247_spill] sm:$0xff] }
 0x4ab   :  { %2760 = vmatprep.subr.bf16.mxu1 %v13690_v9  ;;  %v13737_v9 = vld [vmem:[#allocation249_spill] sm:$0xff] }
 0x4ad   :  { %2679 = vmatpush1.bf16.msra.mxu0 %v13691_v39  ;;  %v13738_v39 = vld [vmem:[#allocation250_spill] sm:$0xff] }
 0x4ae   :  { %2761 = vmatpush1.bf16.msra.mxu1 %v13692_v27  ;;  %2680 = vmatprep.subr.bf16.mxu0 %v13693_v29  ;;  %v13739_v27 = vld [vmem:[#allocation251_spill] sm:$0xff]  ;;  %v13740_v29 = vld [vmem:[#allocation252_spill] sm:$0xff] }
 0x4af   :  { %2762 = vmatprep.subr.bf16.mxu1 %v13694_v44  ;;  %v13741_v44 = vld [vmem:[#allocation253_spill] sm:$0xff] }
 0x4b1   :  { %2681 = vmatpush1.bf16.msra.mxu0 %v13695_v48  ;;  %v13742_v48 = vld [vmem:[#allocation254_spill] sm:$0xff] }
 0x4b2   :  { %2763 = vmatpush1.bf16.msra.mxu1 %v13696_v49  ;;  %2691 = vmatprep.subr.bf16.mxu0 %v13697_v46  ;;  %v13743_v49 = vld [vmem:[#allocation255_spill] sm:$0xff]  ;;  %v13744_v46 = vld [vmem:[#allocation256_spill] sm:$0xff] }
 0x4b3   :  { %2773 = vmatprep.subr.bf16.mxu1 %v13698_v52  ;;  %v9643_v52 = vld [vmem:[#allocation3 + $0x8] sm:$0xff] }
 0x4b4   :  { %2683 = vmatmul.mubr.bf16.vlgmr.msra.gmra.mrb[72].mxu0 %v9456_v21 }
 0x4b5   :  { %2765 = vmatmul.mubr.bf16.vlgmr.msra.gmra.mrb[72].mxu1 %v9456_v21  ;;  %2692 = vmatpush1.bf16.msra.mxu0 %v13699_v31  ;;  %v9675_v31 = vld [vmem:[#allocation3 + $0x90] sm:$0xff] }
 0x4b6   :  { %2774 = vmatpush1.bf16.msra.mxu1 %v13700_v54  ;;  %2693 = vmatprep.subr.bf16.mxu0 %v13701_v56  ;;  %v9678_v54 = vld [vmem:[#allocation3 + $0xa0] sm:$0xff] }
 0x4b7   :  { %2775 = vmatprep.subr.bf16.mxu1 %v13702_v58  ;;  %2723 = vmatprep.mubr.bf16.mxu0 %v13424_v24  ;;  %v9681_v56 = vld [vmem:[#allocation3 + $0xe0] sm:$0xff]  ;;  %v9684_v58 = vld [vmem:[#allocation3 + $0xf0] sm:$0xff] }
 0x4b8   :  { %2805 = vmatprep.mubr.bf16.mxu1 %v13424_v24 }
 0x4b9   :  { %2694 = vmatpush1.bf16.msra.mxu0 %v13703_v60  ;;  %v9687_v60 = vld [vmem:[#allocation3 + $0xd8] sm:$0xff] }
 0x4ba   :  { %2776 = vmatpush1.bf16.msra.mxu1 %v13704_v62  ;;  %2695 = vmatprep.subr.bf16.mxu0 %v13705_v1  ;;  %v9690_v62 = vld [vmem:[#allocation3 + $0xe8] sm:$0xff] }
 0x4bb   :  { %2777 = vmatprep.subr.bf16.mxu1 %v13706_v2  ;;  %v9693_v1 = vld [vmem:[#allocation3 + $0x128] sm:$0xff]  ;;  %v9696_v2 = vld [vmem:[#allocation3 + $0x138] sm:$0xff] }
 0x4bd   :  { %2696 = vmatpush1.bf16.msra.mxu0 %v13707_v34  ;;  %v9699_v34 = vld [vmem:[#allocation3 + $0x120] sm:$0xff] }
 0x4be   :  { %2778 = vmatpush1.bf16.msra.mxu1 %v13708_v41  ;;  %2697 = vmatprep.subr.bf16.mxu0 %v13709_v20  ;;  %v9702_v41 = vld [vmem:[#allocation3 + $0x130] sm:$0xff] }
 0x4bf   :  { %2779 = vmatprep.subr.bf16.mxu1 %v13710_v61  ;;  %v9705_v20 = vld [vmem:[#allocation3 + $0x170] sm:$0xff]  ;;  %v9708_v61 = vld [vmem:[#allocation3 + $0x180] sm:$0xff] }
 0x4c1   :  { %2698 = vmatpush1.bf16.msra.mxu0 %v13711_v28  ;;  %v9711_v28 = vld [vmem:[#allocation3 + $0x168] sm:$0xff] }
 0x4c2   :  { %2780 = vmatpush1.bf16.msra.mxu1 %v13712_v10  ;;  %2699 = vmatprep.subr.bf16.mxu0 %v13713_v19  ;;  %v9714_v10 = vld [vmem:[#allocation3 + $0x178] sm:$0xff] }
 0x4c3   :  { %2781 = vmatprep.subr.bf16.mxu1 %v13714_v37  ;;  %v9717_v19 = vld [vmem:[#allocation3 + $0x1b8] sm:$0xff]  ;;  %v9720_v37 = vld [vmem:[#allocation3 + $0x1c8] sm:$0xff] }
 0x4c5   :  { %2700 = vmatpush1.bf16.msra.mxu0 %v13715_v53  ;;  %v9723_v53 = vld [vmem:[#allocation3 + $0x1b0] sm:$0xff] }
 0x4c6   :  { %2782 = vmatpush1.bf16.msra.mxu1 %v13716_v3  ;;  %2701 = vmatprep.subr.bf16.mxu0 %v13717_v0  ;;  %v9726_v3 = vld [vmem:[#allocation3 + $0x1c0] sm:$0xff] }
 0x4c7   :  { %2783 = vmatprep.subr.bf16.mxu1 %v13718_v17  ;;  %v9729_v0 = vld [vmem:[#allocation3 + $0x200] sm:$0xff]  ;;  %v9732_v17 = vld [vmem:[#allocation3 + $0x210] sm:$0xff] }
 0x4c9   :  { %2702 = vmatpush1.bf16.msra.mxu0 %v13719_v35  ;;  %v9735_v35 = vld [vmem:[#allocation3 + $0x1f8] sm:$0xff] }
 0x4ca   :  { %2784 = vmatpush1.bf16.msra.mxu1 %v13720_v5  ;;  %2703 = vmatprep.subr.bf16.mxu0 %v13721_v63  ;;  %v9738_v5 = vld [vmem:[#allocation3 + $0x208] sm:$0xff] }
 0x4cb   :  { %2785 = vmatprep.subr.bf16.mxu1 %v13722_v6  ;;  %v9741_v63 = vld [vmem:[#allocation3 + $0x248] sm:$0xff]  ;;  %v9744_v6 = vld [vmem:[#allocation3 + $0x258] sm:$0xff] }
 0x4cc   :  { %13745 = vst [vmem:[#allocation103_spill] sm:$0xff] %v9741_v63  ;;  %13746 = vst [vmem:[#allocation104_spill] sm:$0xff] %v9744_v6 }
 0x4cd   :  { %2704 = vmatpush1.bf16.msra.mxu0 %v9265_v42  ;;  %v13730_v42 = vld [vmem:[#allocation242_spill] sm:$0xff] }
 0x4ce   :  { %2786 = vmatpush1.bf16.msra.mxu1 %v13723_v43  ;;  %2705 = vmatprep.subr.bf16.mxu0 %v13724_v13  ;;  %v9747_v43 = vld [vmem:[#allocation3 + $0x240] sm:$0xff]  ;;  %v9750_v13 = vld [vmem:[#allocation3 + $0x250] sm:$0xff] }
 0x4cf   :  { %2787 = vmatprep.subr.bf16.mxu1 %v13725_v18  ;;  %13747 = vst [vmem:[#allocation105_spill] sm:$0xff] %v9747_v43  ;;  %13748 = vst [vmem:[#allocation106_spill] sm:$0xff] %v9750_v13  ;;  %v9753_v18 = vld [vmem:[#allocation3 + $0x290] sm:$0xff] }
 0x4d0   :  { %13749 = vst [vmem:[#allocation107_spill] sm:$0xff] %v9753_v18 }
 0x4d1   :  { %2706 = vmatpush1.bf16.msra.mxu0 %v13726_v25  ;;  %v9756_v25 = vld [vmem:[#allocation3 + $0x2a0] sm:$0xff] }
 0x4d2   :  { %2788 = vmatpush1.bf16.msra.mxu1 %v13727_v15  ;;  %6428 = vmatprep.subr.bf16.mxu0 %v13728_v57  ;;  %13750 = vst [vmem:[#allocation108_spill] sm:$0xff] %v9756_v25  ;;  %v9759_v15 = vld [vmem:[#allocation3 + $0x288] sm:$0xff]  ;;  %v9762_v57 = vld [vmem:[#allocation3 + $0x298] sm:$0xff] }
 0x4d3   :  { %6732 = vmatprep.subr.bf16.mxu1 %v13420_v8  ;;  %13751 = vst [vmem:[#allocation109_spill] sm:$0xff] %v9759_v15  ;;  %13752 = vst [vmem:[#allocation110_spill] sm:$0xff] %v9762_v57 }
 0x4d4   :  { %2724 = vmatmul.mubr.bf16.vlgmr.msra.gmra.mrb[72].mxu0 %v9500_v7 }
 0x4d5   :  { %2806 = vmatmul.mubr.bf16.vlgmr.msra.gmra.mrb[76].mxu1 %v9500_v7  ;;  %6429 = vmatpush3.bf16.msra.mxu0 %v13729_v51  ;;  %v9765_v51 = vld [vmem:[#allocation3 + $0x2d8] sm:$0xff] }
 0x4d6   :  { %2846 = vmatprep.mubr.bf16.mxu0 %v9452_v45  ;;  %6733 = vmatpush3.bf16.msra.mxu1 %v13730_v42  ;;  %v13736_v45 = vld [vmem:[#allocation248_spill] sm:$0xff]  ;;  %13753 = vst [vmem:[#allocation111_spill] sm:$0xff] %v9765_v51  ;;  %v9768_v42 = vld [vmem:[#allocation3 + $0x2e8] sm:$0xff] }
 0x4d7   :  { %6430 = vmatprep.subr.bf16.mxu0 %v13731_v22  ;;  %6734 = vmatprep.subr.bf16.mxu1 %v13420_v8  ;;  %13754 = vst [vmem:[#allocation112_spill] sm:$0xff] %v9768_v42  ;;  %v9771_v22 = vld [vmem:[#allocation3 + $0x2d0] sm:$0xff] }
 0x4d8   :  { %6748 = vmatprep.mubr.msk.bf16.mxu1 %vm8178_vm1, %v13420_v8  ;;  %13755 = vst [vmem:[#allocation113_spill] sm:$0xff] %v9771_v22 }
 0x4d9   :  { %6431 = vmatpush3.bf16.msra.mxu0 %v13732_v59  ;;  %v9774_v59 = vld [vmem:[#allocation3 + $0x2e0] sm:$0xff] }
 0x4da   :  { %6735 = vmatpush3.bf16.msra.mxu1 %v13733_v23  ;;  %6432 = vmatprep.subr.bf16.mxu0 %v13734_v47  ;;  %13756 = vst [vmem:[#allocation114_spill] sm:$0xff] %v9774_v59  ;;  %v9777_v23 = vld [vmem:[#allocation3 + $0x320] sm:$0xff]  ;;  %v9780_v47 = vld [vmem:[#allocation3 + $0x330] sm:$0xff] }
 0x4db   :  { %6736 = vmatprep.subr.bf16.mxu1 %v13420_v8  ;;  %13757 = vst [vmem:[#allocation29_spill] sm:$0xff] %v9777_v23  ;;  %13758 = vst [vmem:[#allocation31_spill] sm:$0xff] %v9780_v47 }
 0x4dd   :  { %6433 = vmatpush3.bf16.msra.mxu0 %v13735_v4  ;;  %v9783_v4 = vld [vmem:[#allocation3 + $0x318] sm:$0xff] }
 0x4de   :  { %6737 = vmatpush3.bf16.msra.mxu1 %v13736_v45  ;;  %6434 = vmatprep.subr.bf16.mxu0 %v13737_v9  ;;  %13759 = vst [vmem:[#allocation30_spill] sm:$0xff] %v9783_v4  ;;  %v9786_v45 = vld [vmem:[#allocation3 + $0x328] sm:$0xff] }
 0x4df   :  { %6738 = vmatprep.subr.bf16.mxu1 %v13420_v8  ;;  %13760 = vst [vmem:[#allocation61_spill] sm:$0xff] %v9786_v45  ;;  %v9789_v9 = vld [vmem:[#allocation3 + $0x368] sm:$0xff] }
 0x4e0   :  { %13761 = vst [vmem:[#allocation28_spill] sm:$0xff] %v9789_v9 }
 0x4e1   :  { %6435 = vmatpush3.bf16.msra.mxu0 %v13738_v39  ;;  %v9792_v39 = vld [vmem:[#allocation3 + $0x378] sm:$0xff] }
 0x4e2   :  { %6739 = vmatpush3.bf16.msra.mxu1 %v13739_v27  ;;  %6436 = vmatprep.subr.bf16.mxu0 %v13740_v29  ;;  %13762 = vst [vmem:[#allocation26_spill] sm:$0xff] %v9792_v39  ;;  %v9795_v27 = vld [vmem:[#allocation3 + $0x360] sm:$0xff]  ;;  %v9798_v29 = vld [vmem:[#allocation3 + $0x370] sm:$0xff] }
 0x4e3   :  { %6740 = vmatprep.subr.bf16.mxu1 %v13420_v8  ;;  %13763 = vst [vmem:[#allocation27_spill] sm:$0xff] %v9795_v27  ;;  %13764 = vst [vmem:[#allocation60_spill] sm:$0xff] %v9798_v29 }
 0x4e5   :  { %6437 = vmatpush3.bf16.msra.mxu0 %v13741_v44  ;;  %v9801_v44 = vld [vmem:[#allocation3 + $0x3b0] sm:$0xff] }
 0x4e6   :  { %6741 = vmatpush3.bf16.msra.mxu1 %v13742_v48  ;;  %6438 = vmatprep.subr.bf16.mxu0 %v13743_v49  ;;  %13765 = vst [vmem:[#allocation62_spill] sm:$0xff] %v9801_v44  ;;  %v9804_v48 = vld [vmem:[#allocation3 + $0x3c0] sm:$0xff]  ;;  %v9807_v49 = vld [vmem:[#allocation3 + $0x3a8] sm:$0xff] }
 0x4e7   :  { %6742 = vmatprep.subr.bf16.mxu1 %v13420_v8  ;;  %13766 = vst [vmem:[#allocation63_spill] sm:$0xff] %v9804_v48  ;;  %13767 = vst [vmem:[#allocation115_spill] sm:$0xff] %v9807_v49 }
 0x4e9   :  { %6439 = vmatpush3.bf16.msra.mxu0 %v9341_v16  ;;  %v9646_v16 = vld [vmem:[#allocation3 + $0x18] sm:$0xff] }
 0x4ea   :  { %6743 = vmatpush3.bf16.msra.mxu1 %v13744_v46  ;;  %6440 = vmatprep.subr.bf16.mxu0 %v9346_v33  ;;  %v9651_v33 = vld [vmem:[#allocation3] sm:$0xff]  ;;  %v9810_v46 = vld [vmem:[#allocation3 + $0x3b8] sm:$0xff] }
 0x4eb   :  { %6744 = vmatprep.subr.bf16.mxu1 %v13420_v8  ;;  %13768 = vst [vmem:[#allocation116_spill] sm:$0xff] %v9810_v46 }
 0x4ed   :  { %6441 = vmatpush3.bf16.msra.mxu0 %v9351_v38  ;;  %v9660_v38 = vld [vmem:[#allocation3 + $0x60] sm:$0xff] }
 0x4ee   :  { %6745 = vmatpush3.bf16.msra.mxu1 %v9354_v40  ;;  %6442 = vmatprep.subr.bf16.mxu0 %v9356_v32  ;;  %v9654_v32 = vld [vmem:[#allocation3 + $0x10] sm:$0xff]  ;;  %v9663_v40 = vld [vmem:[#allocation3 + $0x48] sm:$0xff] }
 0x4ef   :  { %6746 = vmatprep.subr.bf16.mxu1 %v13420_v8 }
 0x4f1   :  { %6443 = vmatpush3.bf16.msra.mxu0 %v9361_v12  ;;  %v9666_v12 = vld [vmem:[#allocation3 + $0x58] sm:$0xff] }
 0x4f2   :  { %6747 = vmatpush3.bf16.msra.mxu1 %v9364_v36  ;;  %2972 = vmatprep.subr.bf16.mxu0 %v9643_v52  ;;  %v9657_v36 = vld [vmem:[#allocation3 + $0x50] sm:$0xff] }
 0x4f3   :  { %3054 = vmatprep.subr.bf16.mxu1 %v9646_v16 }
 0x4f4   :  { %2847 = vmatmul.mubr.bf16.vlgmr.msra.gmra.mrb[76].mxu0 %v9456_v21  ;;  %v9669_v21 = vld [vmem:[#allocation3 + $0x98] sm:$0xff] }
 0x4f5   :  { %6749 = vmatmul.mubr.bf16.vlgmr.msra.gmra.mrb[80].mxu1 %v9500_v7  ;;  %2973 = vmatpush1.bf16.msra.mxu0 %v9651_v33  ;;  %v9672_v7 = vld [vmem:[#allocation3 + $0xa8] sm:$0xff] }
 0x4f6   :  { %3055 = vmatpush1.bf16.msra.mxu1 %v9654_v32  ;;  %2974 = vmatprep.subr.bf16.mxu0 %v9657_v36 }
 0x4f7   :  { %3056 = vmatprep.subr.bf16.mxu1 %v9660_v38 }
 0x4f9   :  { %2975 = vmatpush1.bf16.msra.mxu0 %v9663_v40 }
 0x4fa   :  { %3057 = vmatpush1.bf16.msra.mxu1 %v9666_v12  ;;  %2976 = vmatprep.subr.bf16.mxu0 %v9669_v21 }
 0x4fb   :  { %3058 = vmatprep.subr.bf16.mxu1 %v9672_v7 }
 0x4fd   :  { %2977 = vmatpush1.bf16.msra.mxu0 %v9675_v31 }
 0x4fe   :  { %3059 = vmatpush1.bf16.msra.mxu1 %v9678_v54  ;;  %2978 = vmatprep.subr.bf16.mxu0 %v9681_v56 }
 0x4ff   :  { %3060 = vmatprep.subr.bf16.mxu1 %v9684_v58 }
 0x501   :  { %2979 = vmatpush1.bf16.msra.mxu0 %v9687_v60 }
 0x502   :  { %3061 = vmatpush1.bf16.msra.mxu1 %v9690_v62  ;;  %2980 = vmatprep.subr.bf16.mxu0 %v9693_v1 }
 0x503   :  { %3062 = vmatprep.subr.bf16.mxu1 %v9696_v2 }
 0x505   :  { %2981 = vmatpush1.bf16.msra.mxu0 %v9699_v34 }
 0x506   :  { %3063 = vmatpush1.bf16.msra.mxu1 %v9702_v41  ;;  %2982 = vmatprep.subr.bf16.mxu0 %v9705_v20 }
 0x507   :  { %3064 = vmatprep.subr.bf16.mxu1 %v9708_v61 }
 0x509   :  { %2983 = vmatpush1.bf16.msra.mxu0 %v9711_v28 }
 0x50a   :  { %3065 = vmatpush1.bf16.msra.mxu1 %v9714_v10  ;;  %2984 = vmatprep.subr.bf16.mxu0 %v9717_v19 }
 0x50b   :  { %3066 = vmatprep.subr.bf16.mxu1 %v9720_v37 }
 0x50d   :  { %2985 = vmatpush1.bf16.msra.mxu0 %v9723_v53 }
 0x50e   :  { %3067 = vmatpush1.bf16.msra.mxu1 %v9726_v3  ;;  %2986 = vmatprep.subr.bf16.mxu0 %v9729_v0 }
 0x50f   :  { %3068 = vmatprep.subr.bf16.mxu1 %v9732_v17 }
 0x511   :  { %2987 = vmatpush1.bf16.msra.mxu0 %v9735_v35 }
 0x512   :  { %3069 = vmatpush1.bf16.msra.mxu1 %v9738_v5  ;;  %2988 = vmatprep.subr.bf16.mxu0 %v9741_v63 }
 0x513   :  { %3070 = vmatprep.subr.bf16.mxu1 %v9744_v6 }
 0x515   :  { %2989 = vmatpush1.bf16.msra.mxu0 %v9747_v43 }
 0x516   :  { %3071 = vmatpush1.bf16.msra.mxu1 %v9750_v13  ;;  %2990 = vmatprep.subr.bf16.mxu0 %v9753_v18 }
 0x517   :  { %3072 = vmatprep.subr.bf16.mxu1 %v9756_v25 }
 0x519   :  { %2991 = vmatpush1.bf16.msra.mxu0 %v9759_v15 }
 0x51a   :  { %3073 = vmatpush1.bf16.msra.mxu1 %v9762_v57  ;;  %2992 = vmatprep.subr.bf16.mxu0 %v9765_v51 }
 0x51b   :  { %3074 = vmatprep.subr.bf16.mxu1 %v9768_v42  ;;  %v13780_v42 = vld [vmem:[#allocation35_spill] sm:$0xff] }
 0x51d   :  { %2993 = vmatpush1.bf16.msra.mxu0 %v9771_v22 }
 0x51e   :  { %3075 = vmatpush1.bf16.msra.mxu1 %v9774_v59  ;;  %2994 = vmatprep.subr.bf16.mxu0 %v9777_v23  ;;  %v13779_v59 = vld [vmem:[#allocation33_spill] sm:$0xff] }
 0x51f   :  { %3076 = vmatprep.subr.bf16.mxu1 %v9780_v47 }
 0x521   :  { %2995 = vmatpush1.bf16.msra.mxu0 %v9783_v4 }
 0x522   :  { %3077 = vmatpush1.bf16.msra.mxu1 %v9786_v45  ;;  %2996 = vmatprep.subr.bf16.mxu0 %v9789_v9 }
 0x523   :  { %3078 = vmatprep.subr.bf16.mxu1 %v9792_v39 }
 0x525   :  { %2997 = vmatpush1.bf16.msra.mxu0 %v9795_v27  ;;  %v9813_v27 = vld [vmem:[#allocation3 + $0x3f8] sm:$0xff] }
 0x526   :  { %3079 = vmatpush1.bf16.msra.mxu1 %v9798_v29  ;;  %2998 = vmatprep.subr.bf16.mxu0 %v9801_v44  ;;  %13769 = vst [vmem:[#allocation25_spill] sm:$0xff] %v9813_v27  ;;  %v9816_v29 = vld [vmem:[#allocation3 + $0x408] sm:$0xff]  ;;  %v9819_v44 = vld [vmem:[#allocation3 + $0x3f0] sm:$0xff] }
 0x527   :  { %3080 = vmatprep.subr.bf16.mxu1 %v9804_v48  ;;  %13770 = vst [vmem:[#allocation117_spill] sm:$0xff] %v9816_v29  ;;  %13771 = vst [vmem:[#allocation118_spill] sm:$0xff] %v9819_v44  ;;  %v9822_v48 = vld [vmem:[#allocation3 + $0x400] sm:$0xff] }
 0x528   :  { %13772 = vst [vmem:[#allocation119_spill] sm:$0xff] %v9822_v48 }
 0x529   :  { %2999 = vmatpush1.bf16.msra.mxu0 %v9807_v49  ;;  %v9825_v49 = vld [vmem:[#allocation3 + $0x440] sm:$0xff] }
 0x52a   :  { %3081 = vmatpush1.bf16.msra.mxu1 %v9810_v46  ;;  %3000 = vmatprep.subr.bf16.mxu0 %v9813_v27  ;;  %13773 = vst [vmem:[#allocation120_spill] sm:$0xff] %v9825_v49  ;;  %v9828_v46 = vld [vmem:[#allocation3 + $0x450] sm:$0xff]  ;;  %v9831_v27 = vld [vmem:[#allocation3 + $0x438] sm:$0xff] }
 0x52b   :  { %3082 = vmatprep.subr.bf16.mxu1 %v9816_v29  ;;  %13774 = vst [vmem:[#allocation93_spill] sm:$0xff] %v9828_v46  ;;  %13775 = vst [vmem:[#allocation121_spill] sm:$0xff] %v9831_v27  ;;  %v9834_v29 = vld [vmem:[#allocation3 + $0x448] sm:$0xff] }
 0x52c   :  { %13776 = vst [vmem:[#allocation122_spill] sm:$0xff] %v9834_v29 }
 0x52d   :  { %3001 = vmatpush1.bf16.msra.mxu0 %v9819_v44  ;;  %v9837_v44 = vld [vmem:[#allocation3 + $0x488] sm:$0xff] }
 0x52e   :  { %3083 = vmatpush1.bf16.msra.mxu1 %v9822_v48  ;;  %3002 = vmatprep.subr.bf16.mxu0 %v9825_v49  ;;  %13777 = vst [vmem:[#allocation123_spill] sm:$0xff] %v9837_v44  ;;  %v9840_v48 = vld [vmem:[#allocation3 + $0x498] sm:$0xff] }
 0x52f   :  { %3084 = vmatprep.subr.bf16.mxu1 %v9828_v46  ;;  %13778 = vst [vmem:[#allocation124_spill] sm:$0xff] %v9840_v48 }
 0x531   :  { %3003 = vmatpush1.bf16.msra.mxu0 %v9831_v27 }
 0x532   :  { %3085 = vmatpush1.bf16.msra.mxu1 %v9834_v29  ;;  %3013 = vmatprep.subr.bf16.mxu0 %v9837_v44 }
 0x533   :  { %3095 = vmatprep.subr.bf16.mxu1 %v9840_v48  ;;  %v13781_v48 = vld [vmem:[#allocation34_spill] sm:$0xff] }
 0x547   :  { %v2561_v49 = vpop.f32.mrb[68].mxu0  ;;  %v2643_v39 = vpop.f32.mrb[68].mxu1 }
 0x548   :  { %v2563_v9 = vpop.f32.mrb[69].mxu0  ;;  %v2645_v46 = vpop.f32.mrb[69].mxu1  ;;  %v2894_v22 = vadd.f32 %v2561_v49, %v13779_v59 }
 0x549   :  { %v2565_v45 = vpop.f32.mrb[70].mxu0  ;;  %v2647_v4 = vpop.f32.mrb[70].mxu1  ;;  %v2895_v51 = vadd.f32 %v2563_v9, %v13780_v42  ;;  %v2915_v18 = vadd.f32 %v2645_v46, %v13781_v48 }
 0x54a   :  { %v2566_v47 = vpop.f32.mrb[71].mxu0  ;;  %v2648_v27 = vpop.f32.mrb[71].mxu1  ;;  %v6315_v15 = vmul.f32 -1.442695, %v2894_v22 }
 0x54b   :  { %v6316_v25 = vmul.f32 -1.442695, %v2895_v51  ;;  %v6318_v45 = vmul.f32 -1.442695, %v2915_v18  ;;  %v13782_v27 = vld [vmem:[#allocation65_spill] sm:$0xff] }
 0x54c   :  { %7199 = vpow2.f32 %v6315_v15  ;;  %v13783_v15 = vld [vmem:[#allocation32_spill] sm:$0xff] }
 0x54d   :  { %7201 = vpow2.f32 %v6316_v25  ;;  %v2896_v25 = vadd.f32 %v2643_v39, %v13783_v15  ;;  %v13785_v39 = vld [vmem:[#allocation66_spill] sm:$0xff] }
 0x54e   :  { %7203 = vpow2.f32 %v6318_v45 }
 0x556   :  { %v7200_v13 = vpop.eup %7199 }
 0x557   :  { %v7202_v43 = vpop.eup %7201  ;;  %v2906_v4 = vadd.f32 1.0, %v7200_v13 }
 0x558   :  { %v2907_v47 = vadd.f32 1.0, %v7202_v43  ;;  %v7204_v18 = vpop.eup %7203 }
 0x559   :  { %7205 = vrcp.f32 %v2906_v4 }
 0x55a   :  { %7207 = vrcp.f32 %v2907_v47 }
 0x563   :  { %v7206_v45 = vpop.eup %7205 }
 0x564   :  { %v7208_v47 = vpop.eup %7207 }
 0x588   :  { %v2766_v23 = vpop.f32.mrb[72].mxu1 }
 0x589   :  { %v2768_v29 = vpop.f32.mrb[73].mxu1 }
 0x58a   :  { %v2770_v57 = vpop.f32.mrb[74].mxu1 }
 0x58b   :  { %v2771_v44 = vpop.f32.mrb[75].mxu1 }
 0x5a7   :  { %v2725_v59 = vpop.f32.mrb[72].mxu0 }
 0x5a8   :  { %v2916_v49 = vadd.f32 %v2725_v59, %v13782_v27  ;;  %v2807_v42 = vpop.f32.mrb[76].mxu1  ;;  %v2727_v57 = vpop.f32.mrb[73].mxu0  ;;  %v6317_v27 = vmul.f32 -1.442695, %v2896_v25 }
 0x5a9   :  { %v2808_v9 = vadd.f32 %v2807_v42, %v2766_v23  ;;  %v2809_v22 = vpop.f32.mrb[77].mxu1  ;;  %v2729_v51 = vpop.f32.mrb[74].mxu0  ;;  %v2927_v42 = vadd.f32 1.0, %v7204_v18 }
 0x5aa   :  { %v6319_v44 = vmul.f32 -1.442695, %v2916_v49  ;;  %v2810_v48 = vadd.f32 %v2809_v22, %v2768_v29  ;;  %v2811_v46 = vpop.f32.mrb[78].mxu1  ;;  %v2730_v6 = vpop.f32.mrb[75].mxu0  ;;  %v13784_v51 = vld [vmem:[#allocation64_spill] sm:$0xff] }
 0x5ab   :  { %v2936_v43 = vadd.f32 %v2808_v9, %v13596_v26  ;;  %v2812_v13 = vpop.f32.mrb[79].mxu1 }
 0x5ac   :  { %7209 = vpow2.f32 %v6319_v44  ;;  %v2937_v4 = vadd.f32 %v2810_v48, %v13597_v30  ;;  %v13786_v44 = vld [vmem:[#allocation67_spill] sm:$0xff] }
 0x5ad   :  { %v2939_v59 = vmul.f32 %v7206_v45, %v2936_v43  ;;  %v2917_v48 = vadd.f32 %v2727_v57, %v13786_v44 }
 0x5ae   :  { %v2940_v23 = vmul.f32 %v7208_v47, %v2937_v4 }
 0x5af   :  { %v2942_v63 = vadd.f32 %v2939_v59, %v13784_v51  ;;  %v6320_v13 = vmul.f32 -1.442695, %v2917_v48 }
 0x5b0   :  { %v2943_v29 = vadd.f32 %v2940_v23, %v13785_v39 }
 0x5b1   :  { %7211 = vtanh.f32 %v2942_v63 }
 0x5b2   :  { %7213 = vpow2.f32 %v6317_v27 }
 0x5b3   :  { %7215 = vrcp.f32 %v2927_v42 }
 0x5b4   :  { %7217 = vtanh.f32 %v2943_v29 }
 0x5b6   :  { %v7210_v6 = vpop.eup %7209 }
 0x5b7   :  { %v2928_v49 = vadd.f32 1.0, %v7210_v6 }
 0x5b9   :  { %7219 = vrcp.f32 %v2928_v49 }
 0x5bb   :  { %v7212_v9 = vpop.eup %7211 }
 0x5bc   :  { %v7214_v22 = vpop.eup %7213  ;;  %v2948_v15 = vsub.f32 %v9446_v50, %v7212_v9 }
 0x5bd   :  { %v7216_v25 = vpop.eup %7215  ;;  %v2908_v43 = vadd.f32 1.0, %v7214_v22  ;;  %v9871_v22 = vld [vmem:[#allocation3 + $0x480] sm:$0xff] }
 0x5be   :  { %v2951_v46 = vmul.f32 %v7216_v25, %v2948_v15  ;;  %v7218_v18 = vpop.eup %7217  ;;  %v9874_v15 = vld [vmem:[#allocation3 + $0x490] sm:$0xff] }
 0x5bf   :  { %v2949_v45 = vsub.f32 %v9448_v55, %v7218_v18  ;;  %7221 = vrcp.f32 %v2908_v43  ;;  %v9878_v25 = vld [vmem:[#allocation3 + $0x4d0] sm:$0xff] }
 0x5c0   :  { %v9854_v63 = vadd.f32 %v7212_v9, %v2951_v46  ;;  %7223 = vpow2.f32 %v6320_v13  ;;  %v9881_v46 = vld [vmem:[#allocation3 + $0x4e0] sm:$0xff]  ;;  %v9886_v13 = vld [vmem:[#allocation3 + $0x4c8] sm:$0xff] }
 0x5c2   :  { %v9865_v29 = vpack.c.bf16 %v9854_v63, %v9854_v63 }
 0x5c3   :  { %v7220_v4 = vpop.eup %7219 }
 0x5c4   :  { %v2952_v47 = vmul.f32 %v7220_v4, %v2949_v45  ;;  %v9889_v45 = vld [vmem:[#allocation3 + $0x4d8] sm:$0xff] }
 0x5c6   :  { %v9857_v59 = vadd.f32 %v7218_v18, %v2952_v47  ;;  %v13787_v47 = vld [vmem:[#allocation95_spill] sm:$0xff] }
 0x5c7   :  { %v6444_v27 = vpop.f32.mrb[76].mxu0 }
 0x5c8   :  { %v2888_v23 = vpop.f32.mrb[80].mxu1  ;;  %v6445_v50 = vpop.f32.mrb[77].mxu0  ;;  %v9861_v57 = vpack.c.bf16 %v9857_v59, %v9857_v59 }
 0x5c9   :  { %v6446_v42 = vadd.f32 %v6445_v50, %v6444_v27  ;;  %v6750_v51 = vpop.f32.mrb[81].mxu1  ;;  %v6447_v39 = vpop.f32.mrb[78].mxu0  ;;  %v9896_v50 = vld [vmem:[#allocation3 + $0x528] sm:$0xff] }
 0x5ca   :  { %v2891_v55 = vpop.f32.mrb[82].mxu1  ;;  %v6448_v6 = vpop.f32.mrb[79].mxu0  ;;  %3004 = vmatprep.mubr.bf16.mxu0 %v9861_v57  ;;  %3086 = vmatprep.mubr.bf16.mxu1 %v9861_v57  ;;  %v9902_v51 = vld [vmem:[#allocation3 + $0x520] sm:$0xff] }
 0x5cb   :  { %v2889_v49 = vadd.f32 %v6446_v42, %v2888_v23  ;;  %v6751_v9 = vpop.f32.mrb[83].mxu1  ;;  %3005 = vmatmul.mubr.bf16.vlgmr.msra.gmra.mrb[80].mxu0 %v9865_v29  ;;  %3087 = vmatmul.mubr.bf16.vlgmr.msra.gmra.mrb[84].mxu1 %v9865_v29  ;;  %v7222_v44 = vpop.eup %7221  ;;  %v9893_v23 = vld [vmem:[#allocation3 + $0x518] sm:$0xff]  ;;  %v9899_v42 = vld [vmem:[#allocation3 + $0x510] sm:$0xff]  ;;  %v9905_v39 = vld [vmem:[#allocation3 + $0x560] sm:$0xff] }
 0x5cc   :  { %3014 = vmatpush1.bf16.msra.mxu0 %v9871_v22  ;;  %3096 = vmatpush1.bf16.msra.mxu1 %v9874_v15  ;;  %v7224_v18 = vpop.eup %7223  ;;  %v9908_v55 = vld [vmem:[#allocation3 + $0x570] sm:$0xff]  ;;  %v9911_v6 = vld [vmem:[#allocation3 + $0x558] sm:$0xff]  ;;  %v9917_v9 = vld [vmem:[#allocation3 + $0x5a8] sm:$0xff] }
 0x5cd   :  { %v2938_v48 = vadd.f32 %v2889_v49, %v13603_v11  ;;  %3015 = vmatprep.subr.bf16.mxu0 %v9878_v25  ;;  %3097 = vmatprep.subr.bf16.mxu1 %v9881_v46  ;;  %v2929_v4 = vadd.f32 1.0, %v7224_v18  ;;  %v9914_v49 = vld [vmem:[#allocation3 + $0x568] sm:$0xff]  ;;  %13789 = vst [vmem:[#allocation126_spill] sm:$0xff] %v9917_v9  ;;  %v9926_v18 = vld [vmem:[#allocation3 + $0x5b0] sm:$0xff] }
 0x5ce   :  { %3045 = vmatprep.mubr.bf16.mxu0 %v13424_v24  ;;  %3127 = vmatprep.mubr.bf16.mxu1 %v13424_v24  ;;  %13788 = vst [vmem:[#allocation125_spill] sm:$0xff] %v9914_v49  ;;  %13792 = vst [vmem:[#allocation129_spill] sm:$0xff] %v9926_v18 }
 0x5cf   :  { %v2941_v43 = vmul.f32 %v7222_v44, %v2938_v48  ;;  %v9920_v44 = vld [vmem:[#allocation3 + $0x5b8] sm:$0xff]  ;;  %v9923_v48 = vld [vmem:[#allocation3 + $0x5a0] sm:$0xff] }
 0x5d0   :  { %3016 = vmatpush1.bf16.msra.mxu0 %v9886_v13  ;;  %3098 = vmatpush1.bf16.msra.mxu1 %v9889_v45  ;;  %13790 = vst [vmem:[#allocation127_spill] sm:$0xff] %v9920_v44  ;;  %13791 = vst [vmem:[#allocation128_spill] sm:$0xff] %v9923_v48 }
 0x5d1   :  { %v2944_v27 = vadd.f32 %v2941_v43, %v13787_v47  ;;  %3017 = vmatprep.subr.bf16.mxu0 %v9893_v23  ;;  %3099 = vmatprep.subr.bf16.mxu1 %v9896_v50  ;;  %v9932_v47 = vld [vmem:[#allocation3 + $0x600] sm:$0xff] }
 0x5d2   :  { %13794 = vst [vmem:[#allocation131_spill] sm:$0xff] %v9932_v47 }
 0x5d3   :  { %7225 = vtanh.f32 %v2944_v27 }
 0x5d4   :  { %3018 = vmatpush1.bf16.msra.mxu0 %v9899_v42  ;;  %3100 = vmatpush1.bf16.msra.mxu1 %v9902_v51  ;;  %7227 = vrcp.f32 %v2929_v4  ;;  %v9929_v4 = vld [vmem:[#allocation3 + $0x5f0] sm:$0xff] }
 0x5d5   :  { %3019 = vmatprep.subr.bf16.mxu0 %v9905_v39  ;;  %3101 = vmatprep.subr.bf16.mxu1 %v9908_v55  ;;  %13793 = vst [vmem:[#allocation130_spill] sm:$0xff] %v9929_v4 }
 0x5d8   :  { %3020 = vmatpush1.bf16.msra.mxu0 %v9911_v6  ;;  %3102 = vmatpush1.bf16.msra.mxu1 %v9914_v49  ;;  %v9942_v49 = vld [vmem:[#allocation3 + $0x638] sm:$0xff] }
 0x5d9   :  { %3021 = vmatprep.subr.bf16.mxu0 %v9917_v9  ;;  %3103 = vmatprep.subr.bf16.mxu1 %v9920_v44  ;;  %v9936_v9 = vld [vmem:[#allocation3 + $0x5e8] sm:$0xff] }
 0x5da   :  { %13795 = vst [vmem:[#allocation132_spill] sm:$0xff] %v9936_v9 }
 0x5dc   :  { %3022 = vmatpush1.bf16.msra.mxu0 %v9923_v48  ;;  %3104 = vmatpush1.bf16.msra.mxu1 %v9926_v18  ;;  %v9939_v48 = vld [vmem:[#allocation3 + $0x5f8] sm:$0xff] }
 0x5dd   :  { %v7226_v43 = vpop.eup %7225  ;;  %3023 = vmatprep.subr.bf16.mxu0 %v9929_v4  ;;  %3105 = vmatprep.subr.bf16.mxu1 %v9932_v47  ;;  %13796 = vst [vmem:[#allocation133_spill] sm:$0xff] %v9939_v48  ;;  %v9945_v4 = vld [vmem:[#allocation3 + $0x648] sm:$0xff] }
 0x5de   :  { %v2950_v27 = vsub.f32 %v9490_v14, %v7226_v43  ;;  %v7228_v44 = vpop.eup %7227  ;;  %v9950_v14 = vld [vmem:[#allocation3 + $0x630] sm:$0xff] }
 0x5df   :  { %13797 = vst [vmem:[#allocation134_spill] sm:$0xff] %v9950_v14 }
 0x5e0   :  { %3024 = vmatpush1.bf16.msra.mxu0 %v9936_v9  ;;  %3106 = vmatpush1.bf16.msra.mxu1 %v9939_v48  ;;  %v2953_v18 = vmul.f32 %v7228_v44, %v2950_v27  ;;  %v9953_v9 = vld [vmem:[#allocation3 + $0x640] sm:$0xff]  ;;  %v9959_v44 = vld [vmem:[#allocation3 + $0x690] sm:$0xff]  ;;  %v9962_v27 = vld [vmem:[#allocation3 + $0x678] sm:$0xff] }
 0x5e1   :  { %3025 = vmatprep.subr.bf16.mxu0 %v9942_v49  ;;  %3107 = vmatprep.subr.bf16.mxu1 %v9945_v4  ;;  %13798 = vst [vmem:[#allocation135_spill] sm:$0xff] %v9953_v9  ;;  %v9956_v48 = vld [vmem:[#allocation3 + $0x680] sm:$0xff]  ;;  %13800 = vst [vmem:[#allocation137_spill] sm:$0xff] %v9959_v44 }
 0x5e2   :  { %v9948_v47 = vadd.f32 %v7226_v43, %v2953_v18  ;;  %13799 = vst [vmem:[#allocation136_spill] sm:$0xff] %v9956_v48  ;;  %13801 = vst [vmem:[#allocation138_spill] sm:$0xff] %v9962_v27  ;;  %v9965_v18 = vld [vmem:[#allocation3 + $0x688] sm:$0xff] }
 0x5e3   :  { %13802 = vst [vmem:[#allocation139_spill] sm:$0xff] %v9965_v18 }
 0x5e4   :  { %3026 = vmatpush1.bf16.msra.mxu0 %v9950_v14  ;;  %3108 = vmatpush1.bf16.msra.mxu1 %v9953_v9  ;;  %v9970_v43 = vpack.c.bf16 %v9948_v47, %v9948_v47  ;;  %v9972_v9 = vld [vmem:[#allocation3 + $0x28] sm:$0xff]  ;;  %v10000_v14 = vld [vmem:[#allocation3 + $0xb8] sm:$0xff] }
 0x5e5   :  { %3027 = vmatprep.subr.bf16.mxu0 %v9956_v48  ;;  %3109 = vmatprep.subr.bf16.mxu1 %v9959_v44  ;;  %13803 = vst [vmem:[#allocation140_spill] sm:$0xff] %v9972_v9  ;;  %v9975_v48 = vld [vmem:[#allocation3 + $0x38] sm:$0xff]  ;;  %v9994_v44 = vld [vmem:[#allocation3 + $0x68] sm:$0xff]  ;;  %13811 = vst [vmem:[#allocation148_spill] sm:$0xff] %v10000_v14 }
 0x5e6   :  { %13804 = vst [vmem:[#allocation141_spill] sm:$0xff] %v9975_v48  ;;  %13809 = vst [vmem:[#allocation146_spill] sm:$0xff] %v9994_v44 }
 0x5e8   :  { %3028 = vmatpush1.bf16.msra.mxu0 %v9962_v27  ;;  %3110 = vmatpush1.bf16.msra.mxu1 %v9965_v18  ;;  %v9980_v27 = vld [vmem:[#allocation3 + $0x20] sm:$0xff]  ;;  %v9984_v18 = vld [vmem:[#allocation3 + $0x30] sm:$0xff] }
 0x5e9   :  { %3136 = vmatprep.subr.bf16.mxu0 %v9972_v9  ;;  %3218 = vmatprep.subr.bf16.mxu1 %v9975_v48  ;;  %13805 = vst [vmem:[#allocation142_spill] sm:$0xff] %v9980_v27  ;;  %13806 = vst [vmem:[#allocation143_spill] sm:$0xff] %v9984_v18  ;;  %v9988_v9 = vld [vmem:[#allocation3 + $0x70] sm:$0xff]  ;;  %v9991_v48 = vld [vmem:[#allocation3 + $0x80] sm:$0xff] }
 0x5ea   :  { %13807 = vst [vmem:[#allocation144_spill] sm:$0xff] %v9988_v9  ;;  %13808 = vst [vmem:[#allocation145_spill] sm:$0xff] %v9991_v48 }
 0x5eb   :  { %3046 = vmatmul.mubr.bf16.vlgmr.msra.gmra.mrb[80].mxu0 %v9970_v43  ;;  %3128 = vmatmul.mubr.bf16.vlgmr.msra.gmra.mrb[84].mxu1 %v9970_v43 }
 0x5ec   :  { %3137 = vmatpush1.bf16.msra.mxu0 %v9980_v27  ;;  %3168 = vmatprep.mubr.bf16.mxu0 %v9861_v57  ;;  %v9997_v27 = vld [vmem:[#allocation3 + $0x78] sm:$0xff] }
 0x5ed   :  { %3219 = vmatpush1.bf16.msra.mxu1 %v9984_v18  ;;  %3250 = vmatprep.mubr.bf16.mxu1 %v9861_v57  ;;  %13810 = vst [vmem:[#allocation147_spill] sm:$0xff] %v9997_v27  ;;  %v10003_v18 = vld [vmem:[#allocation3 + $0xc8] sm:$0xff] }
 0x5ee   :  { %3138 = vmatprep.subr.bf16.mxu0 %v9988_v9  ;;  %3220 = vmatprep.subr.bf16.mxu1 %v9991_v48  ;;  %13812 = vst [vmem:[#allocation149_spill] sm:$0xff] %v10003_v18  ;;  %v10006_v9 = vld [vmem:[#allocation3 + $0xb0] sm:$0xff]  ;;  %v10009_v48 = vld [vmem:[#allocation3 + $0xc0] sm:$0xff] }
 0x5ef   :  { %13813 = vst [vmem:[#allocation150_spill] sm:$0xff] %v10006_v9  ;;  %13814 = vst [vmem:[#allocation151_spill] sm:$0xff] %v10009_v48 }
 0x5f0   :  { %3139 = vmatpush1.bf16.msra.mxu0 %v9994_v44  ;;  %v10012_v44 = vld [vmem:[#allocation3 + $0x100] sm:$0xff] }
 0x5f1   :  { %3221 = vmatpush1.bf16.msra.mxu1 %v9997_v27  ;;  %3140 = vmatprep.subr.bf16.mxu0 %v10000_v14  ;;  %13815 = vst [vmem:[#allocation152_spill] sm:$0xff] %v10012_v44  ;;  %v10015_v27 = vld [vmem:[#allocation3 + $0x110] sm:$0xff]  ;;  %v10018_v14 = vld [vmem:[#allocation3 + $0xf8] sm:$0xff] }
 0x5f2   :  { %3222 = vmatprep.subr.bf16.mxu1 %v10003_v18  ;;  %13816 = vst [vmem:[#allocation153_spill] sm:$0xff] %v10015_v27  ;;  %13817 = vst [vmem:[#allocation154_spill] sm:$0xff] %v10018_v14  ;;  %v10021_v18 = vld [vmem:[#allocation3 + $0x108] sm:$0xff] }
 0x5f3   :  { %13818 = vst [vmem:[#allocation155_spill] sm:$0xff] %v10021_v18 }
 0x5f4   :  { %3141 = vmatpush1.bf16.msra.mxu0 %v10006_v9  ;;  %v10024_v9 = vld [vmem:[#allocation3 + $0x148] sm:$0xff] }
 0x5f5   :  { %3223 = vmatpush1.bf16.msra.mxu1 %v10009_v48  ;;  %3142 = vmatprep.subr.bf16.mxu0 %v10012_v44  ;;  %13819 = vst [vmem:[#allocation156_spill] sm:$0xff] %v10024_v9  ;;  %v10027_v48 = vld [vmem:[#allocation3 + $0x158] sm:$0xff]  ;;  %v10030_v44 = vld [vmem:[#allocation3 + $0x140] sm:$0xff] }
 0x5f6   :  { %3224 = vmatprep.subr.bf16.mxu1 %v10015_v27  ;;  %13820 = vst [vmem:[#allocation157_spill] sm:$0xff] %v10027_v48  ;;  %13821 = vst [vmem:[#allocation158_spill] sm:$0xff] %v10030_v44  ;;  %v10033_v27 = vld [vmem:[#allocation3 + $0x150] sm:$0xff] }
 0x5f7   :  { %13822 = vst [vmem:[#allocation159_spill] sm:$0xff] %v10033_v27 }
 0x5f8   :  { %3143 = vmatpush1.bf16.msra.mxu0 %v10018_v14  ;;  %v10036_v14 = vld [vmem:[#allocation3 + $0x190] sm:$0xff] }
 0x5f9   :  { %3225 = vmatpush1.bf16.msra.mxu1 %v10021_v18  ;;  %3144 = vmatprep.subr.bf16.mxu0 %v10024_v9  ;;  %13823 = vst [vmem:[#allocation160_spill] sm:$0xff] %v10036_v14  ;;  %v10039_v18 = vld [vmem:[#allocation3 + $0x1a0] sm:$0xff]  ;;  %v10042_v9 = vld [vmem:[#allocation3 + $0x188] sm:$0xff] }
 0x5fa   :  { %3226 = vmatprep.subr.bf16.mxu1 %v10027_v48  ;;  %13824 = vst [vmem:[#allocation161_spill] sm:$0xff] %v10039_v18  ;;  %13825 = vst [vmem:[#allocation162_spill] sm:$0xff] %v10042_v9  ;;  %v10045_v48 = vld [vmem:[#allocation3 + $0x198] sm:$0xff] }
 0x5fb   :  { %13826 = vst [vmem:[#allocation163_spill] sm:$0xff] %v10045_v48 }
 0x5fc   :  { %3145 = vmatpush1.bf16.msra.mxu0 %v10030_v44  ;;  %v10048_v44 = vld [vmem:[#allocation3 + $0x1d8] sm:$0xff] }
 0x5fd   :  { %3227 = vmatpush1.bf16.msra.mxu1 %v10033_v27  ;;  %3146 = vmatprep.subr.bf16.mxu0 %v10036_v14  ;;  %13827 = vst [vmem:[#allocation164_spill] sm:$0xff] %v10048_v44  ;;  %v10051_v27 = vld [vmem:[#allocation3 + $0x1e8] sm:$0xff]  ;;  %v10054_v14 = vld [vmem:[#allocation3 + $0x1d0] sm:$0xff] }
 0x5fe   :  { %3228 = vmatprep.subr.bf16.mxu1 %v10039_v18  ;;  %13828 = vst [vmem:[#allocation165_spill] sm:$0xff] %v10051_v27  ;;  %13829 = vst [vmem:[#allocation166_spill] sm:$0xff] %v10054_v14  ;;  %v10057_v18 = vld [vmem:[#allocation3 + $0x1e0] sm:$0xff] }
 0x5ff   :  { %13830 = vst [vmem:[#allocation167_spill] sm:$0xff] %v10057_v18 }
 0x600   :  { %3147 = vmatpush1.bf16.msra.mxu0 %v10042_v9  ;;  %v10060_v9 = vld [vmem:[#allocation3 + $0x220] sm:$0xff] }
 0x601   :  { %3229 = vmatpush1.bf16.msra.mxu1 %v10045_v48  ;;  %3148 = vmatprep.subr.bf16.mxu0 %v10048_v44  ;;  %13831 = vst [vmem:[#allocation168_spill] sm:$0xff] %v10060_v9  ;;  %v10063_v48 = vld [vmem:[#allocation3 + $0x230] sm:$0xff]  ;;  %v10066_v44 = vld [vmem:[#allocation3 + $0x218] sm:$0xff] }
 0x602   :  { %3230 = vmatprep.subr.bf16.mxu1 %v10051_v27  ;;  %13832 = vst [vmem:[#allocation169_spill] sm:$0xff] %v10063_v48  ;;  %13833 = vst [vmem:[#allocation170_spill] sm:$0xff] %v10066_v44  ;;  %v10069_v27 = vld [vmem:[#allocation3 + $0x228] sm:$0xff] }
 0x603   :  { %13834 = vst [vmem:[#allocation171_spill] sm:$0xff] %v10069_v27 }
 0x604   :  { %3149 = vmatpush1.bf16.msra.mxu0 %v10054_v14  ;;  %v10072_v14 = vld [vmem:[#allocation3 + $0x268] sm:$0xff] }
 0x605   :  { %3231 = vmatpush1.bf16.msra.mxu1 %v10057_v18  ;;  %3150 = vmatprep.subr.bf16.mxu0 %v10060_v9  ;;  %13835 = vst [vmem:[#allocation172_spill] sm:$0xff] %v10072_v14  ;;  %v10075_v18 = vld [vmem:[#allocation3 + $0x278] sm:$0xff]  ;;  %v10078_v9 = vld [vmem:[#allocation3 + $0x260] sm:$0xff] }
 0x606   :  { %3232 = vmatprep.subr.bf16.mxu1 %v10063_v48  ;;  %13836 = vst [vmem:[#allocation173_spill] sm:$0xff] %v10075_v18  ;;  %13837 = vst [vmem:[#allocation174_spill] sm:$0xff] %v10078_v9  ;;  %v10081_v48 = vld [vmem:[#allocation3 + $0x270] sm:$0xff] }
 0x607   :  { %13838 = vst [vmem:[#allocation175_spill] sm:$0xff] %v10081_v48 }
 0x608   :  { %3151 = vmatpush1.bf16.msra.mxu0 %v10066_v44  ;;  %v10084_v44 = vld [vmem:[#allocation3 + $0x2b0] sm:$0xff] }
 0x609   :  { %3233 = vmatpush1.bf16.msra.mxu1 %v10069_v27  ;;  %3152 = vmatprep.subr.bf16.mxu0 %v10072_v14  ;;  %13839 = vst [vmem:[#allocation176_spill] sm:$0xff] %v10084_v44  ;;  %v10087_v27 = vld [vmem:[#allocation3 + $0x2c0] sm:$0xff]  ;;  %v10090_v14 = vld [vmem:[#allocation3 + $0x2a8] sm:$0xff] }
 0x60a   :  { %3234 = vmatprep.subr.bf16.mxu1 %v10075_v18  ;;  %13840 = vst [vmem:[#allocation177_spill] sm:$0xff] %v10087_v27  ;;  %13841 = vst [vmem:[#allocation178_spill] sm:$0xff] %v10090_v14  ;;  %v10093_v18 = vld [vmem:[#allocation3 + $0x2b8] sm:$0xff] }
 0x60b   :  { %13842 = vst [vmem:[#allocation179_spill] sm:$0xff] %v10093_v18 }
 0x60c   :  { %3153 = vmatpush1.bf16.msra.mxu0 %v10078_v9  ;;  %v10096_v9 = vld [vmem:[#allocation3 + $0x2f8] sm:$0xff] }
 0x60d   :  { %3235 = vmatpush1.bf16.msra.mxu1 %v10081_v48  ;;  %3154 = vmatprep.subr.bf16.mxu0 %v10084_v44  ;;  %13843 = vst [vmem:[#allocation180_spill] sm:$0xff] %v10096_v9  ;;  %v10099_v48 = vld [vmem:[#allocation3 + $0x308] sm:$0xff]  ;;  %v10102_v44 = vld [vmem:[#allocation3 + $0x2f0] sm:$0xff] }
 0x60e   :  { %3236 = vmatprep.subr.bf16.mxu1 %v10087_v27  ;;  %13844 = vst [vmem:[#allocation181_spill] sm:$0xff] %v10099_v48  ;;  %13845 = vst [vmem:[#allocation182_spill] sm:$0xff] %v10102_v44  ;;  %v10105_v27 = vld [vmem:[#allocation3 + $0x300] sm:$0xff] }
 0x60f   :  { %13846 = vst [vmem:[#allocation183_spill] sm:$0xff] %v10105_v27 }
 0x610   :  { %3155 = vmatpush1.bf16.msra.mxu0 %v10090_v14  ;;  %v10108_v14 = vld [vmem:[#allocation3 + $0x340] sm:$0xff] }
 0x611   :  { %3237 = vmatpush1.bf16.msra.mxu1 %v10093_v18  ;;  %3156 = vmatprep.subr.bf16.mxu0 %v10096_v9  ;;  %13847 = vst [vmem:[#allocation184_spill] sm:$0xff] %v10108_v14  ;;  %v10111_v18 = vld [vmem:[#allocation3 + $0x350] sm:$0xff]  ;;  %v10114_v9 = vld [vmem:[#allocation3 + $0x338] sm:$0xff] }
 0x612   :  { %3238 = vmatprep.subr.bf16.mxu1 %v10099_v48  ;;  %13848 = vst [vmem:[#allocation185_spill] sm:$0xff] %v10111_v18  ;;  %13849 = vst [vmem:[#allocation186_spill] sm:$0xff] %v10114_v9  ;;  %v10117_v48 = vld [vmem:[#allocation3 + $0x348] sm:$0xff] }
 0x613   :  { %13850 = vst [vmem:[#allocation187_spill] sm:$0xff] %v10117_v48 }
 0x614   :  { %3157 = vmatpush1.bf16.msra.mxu0 %v10102_v44  ;;  %v10120_v44 = vld [vmem:[#allocation3 + $0x388] sm:$0xff] }
 0x615   :  { %3239 = vmatpush1.bf16.msra.mxu1 %v10105_v27  ;;  %3158 = vmatprep.subr.bf16.mxu0 %v10108_v14  ;;  %13851 = vst [vmem:[#allocation188_spill] sm:$0xff] %v10120_v44  ;;  %v10123_v27 = vld [vmem:[#allocation3 + $0x398] sm:$0xff]  ;;  %v10126_v14 = vld [vmem:[#allocation3 + $0x380] sm:$0xff] }
 0x616   :  { %3240 = vmatprep.subr.bf16.mxu1 %v10111_v18  ;;  %13852 = vst [vmem:[#allocation189_spill] sm:$0xff] %v10123_v27  ;;  %13853 = vst [vmem:[#allocation190_spill] sm:$0xff] %v10126_v14  ;;  %v10129_v18 = vld [vmem:[#allocation3 + $0x390] sm:$0xff] }
 0x617   :  { %13854 = vst [vmem:[#allocation191_spill] sm:$0xff] %v10129_v18 }
 0x618   :  { %3159 = vmatpush1.bf16.msra.mxu0 %v10114_v9  ;;  %v10132_v9 = vld [vmem:[#allocation3 + $0x3d0] sm:$0xff] }
 0x619   :  { %3241 = vmatpush1.bf16.msra.mxu1 %v10117_v48  ;;  %3160 = vmatprep.subr.bf16.mxu0 %v10120_v44  ;;  %13855 = vst [vmem:[#allocation192_spill] sm:$0xff] %v10132_v9  ;;  %v10135_v48 = vld [vmem:[#allocation3 + $0x3e0] sm:$0xff]  ;;  %v10138_v44 = vld [vmem:[#allocation3 + $0x3c8] sm:$0xff] }
 0x61a   :  { %3242 = vmatprep.subr.bf16.mxu1 %v10123_v27  ;;  %13856 = vst [vmem:[#allocation193_spill] sm:$0xff] %v10135_v48  ;;  %13857 = vst [vmem:[#allocation194_spill] sm:$0xff] %v10138_v44  ;;  %v10141_v27 = vld [vmem:[#allocation3 + $0x3d8] sm:$0xff] }
 0x61b   :  { %13858 = vst [vmem:[#allocation195_spill] sm:$0xff] %v10141_v27 }
 0x61c   :  { %3161 = vmatpush1.bf16.msra.mxu0 %v10126_v14  ;;  %v10144_v14 = vld [vmem:[#allocation3 + $0x418] sm:$0xff] }
 0x61d   :  { %3243 = vmatpush1.bf16.msra.mxu1 %v10129_v18  ;;  %3162 = vmatprep.subr.bf16.mxu0 %v10132_v9  ;;  %13859 = vst [vmem:[#allocation196_spill] sm:$0xff] %v10144_v14  ;;  %v10147_v18 = vld [vmem:[#allocation3 + $0x428] sm:$0xff]  ;;  %v10150_v9 = vld [vmem:[#allocation3 + $0x410] sm:$0xff] }
 0x61e   :  { %3244 = vmatprep.subr.bf16.mxu1 %v10135_v48  ;;  %13860 = vst [vmem:[#allocation197_spill] sm:$0xff] %v10147_v18  ;;  %13861 = vst [vmem:[#allocation198_spill] sm:$0xff] %v10150_v9  ;;  %v10153_v48 = vld [vmem:[#allocation3 + $0x420] sm:$0xff] }
 0x61f   :  { %13862 = vst [vmem:[#allocation199_spill] sm:$0xff] %v10153_v48 }
 0x620   :  { %3163 = vmatpush1.bf16.msra.mxu0 %v10138_v44  ;;  %v10156_v44 = vld [vmem:[#allocation3 + $0x460] sm:$0xff] }
 0x621   :  { %3245 = vmatpush1.bf16.msra.mxu1 %v10141_v27  ;;  %3164 = vmatprep.subr.bf16.mxu0 %v10144_v14  ;;  %13863 = vst [vmem:[#allocation200_spill] sm:$0xff] %v10156_v44  ;;  %v10159_v27 = vld [vmem:[#allocation3 + $0x470] sm:$0xff]  ;;  %v10162_v14 = vld [vmem:[#allocation3 + $0x458] sm:$0xff] }
 0x622   :  { %3246 = vmatprep.subr.bf16.mxu1 %v10147_v18  ;;  %13864 = vst [vmem:[#allocation201_spill] sm:$0xff] %v10159_v27  ;;  %13865 = vst [vmem:[#allocation202_spill] sm:$0xff] %v10162_v14  ;;  %v10165_v18 = vld [vmem:[#allocation3 + $0x468] sm:$0xff] }
 0x623   :  { %13866 = vst [vmem:[#allocation203_spill] sm:$0xff] %v10165_v18 }
 0x624   :  { %3165 = vmatpush1.bf16.msra.mxu0 %v10150_v9  ;;  %v10168_v9 = vld [vmem:[#allocation3 + $0x4a8] sm:$0xff] }
 0x625   :  { %3247 = vmatpush1.bf16.msra.mxu1 %v10153_v48  ;;  %3166 = vmatprep.subr.bf16.mxu0 %v10156_v44  ;;  %13867 = vst [vmem:[#allocation204_spill] sm:$0xff] %v10168_v9  ;;  %v10171_v48 = vld [vmem:[#allocation3 + $0x4b8] sm:$0xff]  ;;  %v10205_v44 = vld [vmem:[#allocation3 + $0x540] sm:$0xff] }
 0x626   :  { %3248 = vmatprep.subr.bf16.mxu1 %v10159_v27  ;;  %13868 = vst [vmem:[#allocation205_spill] sm:$0xff] %v10171_v48  ;;  %v10176_v27 = vld [vmem:[#allocation3 + $0x4a0] sm:$0xff]  ;;  %13878 = vst [vmem:[#allocation215_spill] sm:$0xff] %v10205_v44 }
 0x627   :  { %13869 = vst [vmem:[#allocation206_spill] sm:$0xff] %v10176_v27 }
 0x628   :  { %3167 = vmatpush1.bf16.msra.mxu0 %v10162_v14  ;;  %v10179_v14 = vld [vmem:[#allocation3 + $0x4b0] sm:$0xff] }
 0x629   :  { %3249 = vmatpush1.bf16.msra.mxu1 %v10165_v18  ;;  %3177 = vmatprep.subr.bf16.mxu0 %v10168_v9  ;;  %13870 = vst [vmem:[#allocation207_spill] sm:$0xff] %v10179_v14  ;;  %v10182_v18 = vld [vmem:[#allocation3 + $0x4f0] sm:$0xff]  ;;  %v10185_v9 = vld [vmem:[#allocation3 + $0x500] sm:$0xff] }
 0x62a   :  { %3259 = vmatprep.subr.bf16.mxu1 %v10171_v48  ;;  %13871 = vst [vmem:[#allocation208_spill] sm:$0xff] %v10182_v18  ;;  %13872 = vst [vmem:[#allocation209_spill] sm:$0xff] %v10185_v9  ;;  %v10190_v48 = vld [vmem:[#allocation3 + $0x4e8] sm:$0xff] }
 0x62b   :  { %3169 = vmatmul.mubr.bf16.vlgmr.msra.gmra.mrb[84].mxu0 %v9865_v29  ;;  %13873 = vst [vmem:[#allocation210_spill] sm:$0xff] %v10190_v48 }
 0x62c   :  { %3251 = vmatmul.mubr.bf16.vlgmr.msra.gmra.mrb[88].mxu1 %v9865_v29  ;;  %3178 = vmatpush1.bf16.msra.mxu0 %v10176_v27  ;;  %v10193_v27 = vld [vmem:[#allocation3 + $0x4f8] sm:$0xff] }
 0x62d   :  { %3260 = vmatpush1.bf16.msra.mxu1 %v10179_v14  ;;  %3179 = vmatprep.subr.bf16.mxu0 %v10182_v18  ;;  %13874 = vst [vmem:[#allocation211_spill] sm:$0xff] %v10193_v27  ;;  %v10196_v14 = vld [vmem:[#allocation3 + $0x538] sm:$0xff]  ;;  %v10199_v18 = vld [vmem:[#allocation3 + $0x548] sm:$0xff] }
 0x62e   :  { %3261 = vmatprep.subr.bf16.mxu1 %v10185_v9  ;;  %3209 = vmatprep.mubr.bf16.mxu0 %v13424_v24  ;;  %13875 = vst [vmem:[#allocation212_spill] sm:$0xff] %v10196_v14  ;;  %13876 = vst [vmem:[#allocation213_spill] sm:$0xff] %v10199_v18  ;;  %v10202_v9 = vld [vmem:[#allocation3 + $0x530] sm:$0xff] }
 0x62f   :  { %3291 = vmatprep.mubr.bf16.mxu1 %v13424_v24  ;;  %13877 = vst [vmem:[#allocation214_spill] sm:$0xff] %v10202_v9 }
 0x630   :  { %3180 = vmatpush1.bf16.msra.mxu0 %v10190_v48  ;;  %v10208_v48 = vld [vmem:[#allocation3 + $0x580] sm:$0xff] }
 0x631   :  { %3262 = vmatpush1.bf16.msra.mxu1 %v10193_v27  ;;  %3181 = vmatprep.subr.bf16.mxu0 %v10196_v14  ;;  %13879 = vst [vmem:[#allocation216_spill] sm:$0xff] %v10208_v48  ;;  %v10211_v27 = vld [vmem:[#allocation3 + $0x590] sm:$0xff]  ;;  %v10214_v14 = vld [vmem:[#allocation3 + $0x578] sm:$0xff] }
 0x632   :  { %3263 = vmatprep.subr.bf16.mxu1 %v10199_v18  ;;  %13880 = vst [vmem:[#allocation217_spill] sm:$0xff] %v10211_v27  ;;  %13881 = vst [vmem:[#allocation218_spill] sm:$0xff] %v10214_v14  ;;  %v10217_v18 = vld [vmem:[#allocation3 + $0x588] sm:$0xff] }
 0x633   :  { %13882 = vst [vmem:[#allocation219_spill] sm:$0xff] %v10217_v18 }
 0x634   :  { %3182 = vmatpush1.bf16.msra.mxu0 %v10202_v9  ;;  %v10220_v9 = vld [vmem:[#allocation3 + $0x5c8] sm:$0xff] }
 0x635   :  { %3264 = vmatpush1.bf16.msra.mxu1 %v10205_v44  ;;  %3183 = vmatprep.subr.bf16.mxu0 %v10208_v48  ;;  %13883 = vst [vmem:[#allocation220_spill] sm:$0xff] %v10220_v9  ;;  %v10223_v44 = vld [vmem:[#allocation3 + $0x5d8] sm:$0xff]  ;;  %v10226_v48 = vld [vmem:[#allocation3 + $0x5c0] sm:$0xff] }
 0x636   :  { %3265 = vmatprep.subr.bf16.mxu1 %v10211_v27  ;;  %13884 = vst [vmem:[#allocation221_spill] sm:$0xff] %v10223_v44  ;;  %13885 = vst [vmem:[#allocation222_spill] sm:$0xff] %v10226_v48  ;;  %v10229_v27 = vld [vmem:[#allocation3 + $0x5d0] sm:$0xff] }
 0x637   :  { %13886 = vst [vmem:[#allocation223_spill] sm:$0xff] %v10229_v27 }
 0x638   :  { %3184 = vmatpush1.bf16.msra.mxu0 %v10214_v14  ;;  %v10232_v14 = vld [vmem:[#allocation3 + $0x610] sm:$0xff] }
 0x639   :  { %3266 = vmatpush1.bf16.msra.mxu1 %v10217_v18  ;;  %3185 = vmatprep.subr.bf16.mxu0 %v10220_v9  ;;  %13887 = vst [vmem:[#allocation224_spill] sm:$0xff] %v10232_v14  ;;  %v10235_v18 = vld [vmem:[#allocation3 + $0x620] sm:$0xff]  ;;  %v10238_v9 = vld [vmem:[#allocation3 + $0x608] sm:$0xff] }
 0x63a   :  { %3267 = vmatprep.subr.bf16.mxu1 %v10223_v44  ;;  %13888 = vst [vmem:[#allocation225_spill] sm:$0xff] %v10235_v18  ;;  %13889 = vst [vmem:[#allocation226_spill] sm:$0xff] %v10238_v9  ;;  %v10241_v44 = vld [vmem:[#allocation3 + $0x618] sm:$0xff] }
 0x63b   :  { %13890 = vst [vmem:[#allocation227_spill] sm:$0xff] %v10241_v44 }
 0x63c   :  { %3186 = vmatpush1.bf16.msra.mxu0 %v10226_v48  ;;  %v10244_v48 = vld [vmem:[#allocation3 + $0x658] sm:$0xff] }
 0x63d   :  { %3268 = vmatpush1.bf16.msra.mxu1 %v10229_v27  ;;  %3187 = vmatprep.subr.bf16.mxu0 %v10232_v14  ;;  %13891 = vst [vmem:[#allocation228_spill] sm:$0xff] %v10244_v48  ;;  %v10247_v27 = vld [vmem:[#allocation3 + $0x668] sm:$0xff]  ;;  %v10250_v14 = vld [vmem:[#allocation3 + $0x650] sm:$0xff] }
 0x63e   :  { %3269 = vmatprep.subr.bf16.mxu1 %v10235_v18  ;;  %13892 = vst [vmem:[#allocation229_spill] sm:$0xff] %v10247_v27  ;;  %13893 = vst [vmem:[#allocation230_spill] sm:$0xff] %v10250_v14  ;;  %v10253_v18 = vld [vmem:[#allocation3 + $0x660] sm:$0xff] }
 0x640   :  { %3188 = vmatpush1.bf16.msra.mxu0 %v10238_v9  ;;  %v10256_v9 = vld [vmem:[#allocation3 + $0x6a0] sm:$0xff] }
 0x641   :  { %3270 = vmatpush1.bf16.msra.mxu1 %v10241_v44  ;;  %3189 = vmatprep.subr.bf16.mxu0 %v10244_v48  ;;  %13894 = vst [vmem:[#allocation231_spill] sm:$0xff] %v10256_v9  ;;  %v10259_v44 = vld [vmem:[#allocation3 + $0x6b0] sm:$0xff]  ;;  %v10262_v48 = vld [vmem:[#allocation3 + $0x698] sm:$0xff] }
 0x642   :  { %3271 = vmatprep.subr.bf16.mxu1 %v10247_v27  ;;  %13895 = vst [vmem:[#allocation232_spill] sm:$0xff] %v10259_v44  ;;  %13896 = vst [vmem:[#allocation233_spill] sm:$0xff] %v10262_v48  ;;  %v10265_v27 = vld [vmem:[#allocation3 + $0x6a8] sm:$0xff] }
 0x643   :  { %13897 = vst [vmem:[#allocation234_spill] sm:$0xff] %v10265_v27 }
 0x644   :  { %3190 = vmatpush1.bf16.msra.mxu0 %v10250_v14  ;;  %v10268_v14 = vld [vmem:[#allocation3 + $0x280] sm:$0xff] }
 0x645   :  { %3272 = vmatpush1.bf16.msra.mxu1 %v10253_v18  ;;  %3191 = vmatprep.subr.bf16.mxu0 %v10256_v9  ;;  %13898 = vst [vmem:[#allocation235_spill] sm:$0xff] %v10268_v14  ;;  %v10274_v9 = vld [vmem:[#allocation3 + $0x40] sm:$0xff] }
 0x646   :  { %3273 = vmatprep.subr.bf16.mxu1 %v10259_v44  ;;  %13899 = vst [vmem:[#allocation236_spill] sm:$0xff] %v10274_v9  ;;  %v10303_v44 = vld [vmem:[#allocation3 + $0x358] sm:$0xff] }
 0x647   :  { %13907 = vst [vmem:[#allocation244_spill] sm:$0xff] %v10303_v44 }
 0x648   :  { %3192 = vmatpush1.bf16.msra.mxu0 %v10262_v48  ;;  %v10278_v48 = vld [vmem:[#allocation3 + $0x4c0] sm:$0xff] }
 0x649   :  { %3274 = vmatpush1.bf16.msra.mxu1 %v10265_v27  ;;  %6459 = vmatprep.subr.bf16.mxu0 %v10268_v14  ;;  %13900 = vst [vmem:[#allocation237_spill] sm:$0xff] %v10278_v48  ;;  %v10281_v27 = vld [vmem:[#allocation3 + $0x2c8] sm:$0xff] }
 0x64a   :  { %6752 = vmatprep.subr.bf16.mxu1 %v13420_v8  ;;  %13901 = vst [vmem:[#allocation238_spill] sm:$0xff] %v10281_v27  ;;  %v10287_v14 = vld [vmem:[#allocation3 + $0x88] sm:$0xff] }
 0x64b   :  { %3210 = vmatmul.mubr.bf16.vlgmr.msra.gmra.mrb[84].mxu0 %v9970_v43  ;;  %13902 = vst [vmem:[#allocation239_spill] sm:$0xff] %v10287_v14 }
 0x64c   :  { %3292 = vmatmul.mubr.bf16.vlgmr.msra.gmra.mrb[92].mxu1 %v9970_v43  ;;  %6460 = vmatpush3.bf16.msra.mxu0 %v10274_v9  ;;  %v10290_v9 = vld [vmem:[#allocation3 + $0x508] sm:$0xff] }
 0x64d   :  { %3332 = vmatprep.mubr.bf16.mxu0 %v9861_v57  ;;  %6753 = vmatpush3.bf16.msra.mxu1 %v10278_v48  ;;  %13903 = vst [vmem:[#allocation240_spill] sm:$0xff] %v10290_v9  ;;  %v10293_v57 = vld [vmem:[#allocation3 + $0x310] sm:$0xff] }
 0x64e   :  { %6461 = vmatprep.subr.bf16.mxu0 %v10281_v27  ;;  %6754 = vmatprep.subr.bf16.mxu1 %v13420_v8  ;;  %13904 = vst [vmem:[#allocation241_spill] sm:$0xff] %v10293_v57  ;;  %v10297_v27 = vld [vmem:[#allocation3 + $0xd0] sm:$0xff] }
 0x64f   :  { %6768 = vmatprep.mubr.msk.bf16.mxu1 %vm8178_vm1, %v13420_v8  ;;  %13905 = vst [vmem:[#allocation242_spill] sm:$0xff] %v10297_v27  ;;  %v10300_v48 = vld [vmem:[#allocation3 + $0x550] sm:$0xff] }
 0x650   :  { %6462 = vmatpush3.bf16.msra.mxu0 %v10287_v14  ;;  %13906 = vst [vmem:[#allocation243_spill] sm:$0xff] %v10300_v48  ;;  %v10313_v14 = vld [vmem:[#allocation3 + $0x3a0] sm:$0xff] }
 0x651   :  { %6755 = vmatpush3.bf16.msra.mxu1 %v10290_v9  ;;  %6463 = vmatprep.subr.bf16.mxu0 %v10293_v57  ;;  %v10307_v9 = vld [vmem:[#allocation3 + $0x118] sm:$0xff]  ;;  %13910 = vst [vmem:[#allocation247_spill] sm:$0xff] %v10313_v14 }
 0x652   :  { %6756 = vmatprep.subr.bf16.mxu1 %v13420_v8  ;;  %13908 = vst [vmem:[#allocation245_spill] sm:$0xff] %v10307_v9  ;;  %v10310_v57 = vld [vmem:[#allocation3 + $0x598] sm:$0xff] }
 0x653   :  { %13909 = vst [vmem:[#allocation246_spill] sm:$0xff] %v10310_v57 }
 0x654   :  { %6464 = vmatpush3.bf16.msra.mxu0 %v10297_v27  ;;  %v10323_v27 = vld [vmem:[#allocation3 + $0x3e8] sm:$0xff] }
 0x655   :  { %6757 = vmatpush3.bf16.msra.mxu1 %v10300_v48  ;;  %6465 = vmatprep.subr.bf16.mxu0 %v10303_v44  ;;  %v10317_v48 = vld [vmem:[#allocation3 + $0x160] sm:$0xff]  ;;  %13913 = vst [vmem:[#allocation250_spill] sm:$0xff] %v10323_v27 }
 0x656   :  { %6758 = vmatprep.subr.bf16.mxu1 %v13420_v8  ;;  %13911 = vst [vmem:[#allocation248_spill] sm:$0xff] %v10317_v48  ;;  %v10320_v44 = vld [vmem:[#allocation3 + $0x5e0] sm:$0xff] }
 0x657   :  { %13912 = vst [vmem:[#allocation249_spill] sm:$0xff] %v10320_v44 }
 0x658   :  { %6466 = vmatpush3.bf16.msra.mxu0 %v10307_v9  ;;  %v10333_v9 = vld [vmem:[#allocation3 + $0x430] sm:$0xff] }
 0x659   :  { %6759 = vmatpush3.bf16.msra.mxu1 %v10310_v57  ;;  %6467 = vmatprep.subr.bf16.mxu0 %v10313_v14  ;;  %v10327_v57 = vld [vmem:[#allocation3 + $0x1a8] sm:$0xff]  ;;  %13915 = vst [vmem:[#allocation252_spill] sm:$0xff] %v10333_v9 }
 0x65a   :  { %6760 = vmatprep.subr.bf16.mxu1 %v13420_v8  ;;  %v10330_v14 = vld [vmem:[#allocation3 + $0x628] sm:$0xff] }
 0x65b   :  { %13914 = vst [vmem:[#allocation251_spill] sm:$0xff] %v10330_v14 }
 0x65c   :  { %6468 = vmatpush3.bf16.msra.mxu0 %v10317_v48  ;;  %v10343_v48 = vld [vmem:[#allocation3 + $0x478] sm:$0xff] }
 0x65d   :  { %6761 = vmatpush3.bf16.msra.mxu1 %v10320_v44  ;;  %6469 = vmatprep.subr.bf16.mxu0 %v10323_v27  ;;  %v10337_v44 = vld [vmem:[#allocation3 + $0x1f0] sm:$0xff] }
 0x65e   :  { %6762 = vmatprep.subr.bf16.mxu1 %v13420_v8  ;;  %v10340_v27 = vld [vmem:[#allocation3 + $0x670] sm:$0xff] }
 0x660   :  { %6470 = vmatpush3.bf16.msra.mxu0 %v10327_v57 }
 0x661   :  { %6763 = vmatpush3.bf16.msra.mxu1 %v10330_v14  ;;  %6471 = vmatprep.subr.bf16.mxu0 %v10333_v9  ;;  %v10347_v14 = vld [vmem:[#allocation3 + $0x238] sm:$0xff] }
 0x662   :  { %6764 = vmatprep.subr.bf16.mxu1 %v13420_v8  ;;  %v10350_v9 = vld [vmem:[#allocation3 + $0x6b8] sm:$0xff] }
 0x664   :  { %6472 = vmatpush3.bf16.msra.mxu0 %v10337_v44 }
 0x665   :  { %6765 = vmatpush3.bf16.msra.mxu1 %v10340_v27  ;;  %6473 = vmatprep.subr.bf16.mxu0 %v10343_v48 }
 0x666   :  { %6766 = vmatprep.subr.bf16.mxu1 %v13420_v8 }
 0x668   :  { %6474 = vmatpush3.bf16.msra.mxu0 %v10347_v14 }
 0x669   :  { %6767 = vmatpush3.bf16.msra.mxu1 %v10350_v9  ;;  %3458 = vmatprep.subr.bf16.mxu0 %v9643_v52  ;;  %v13916_v52 = vld [vmem:[#allocation103_spill] sm:$0xff] }
 0x66a   :  { %3540 = vmatprep.subr.bf16.mxu1 %v9646_v16  ;;  %v13917_v16 = vld [vmem:[#allocation104_spill] sm:$0xff] }
 0x66b   :  { %3333 = vmatmul.mubr.bf16.vlgmr.msra.gmra.mrb[88].mxu0 %v9865_v29  ;;  %v13948_v29 = vld [vmem:[#allocation123_spill] sm:$0xff] }
 0x66c   :  { %6769 = vmatmul.mubr.bf16.vlgmr.msra.gmra.mrb[96].mxu1 %v9970_v43  ;;  %3459 = vmatpush1.bf16.msra.mxu0 %v9651_v33  ;;  %v13918_v33 = vld [vmem:[#allocation105_spill] sm:$0xff]  ;;  %v13949_v43 = vld [vmem:[#allocation124_spill] sm:$0xff] }
 0x66d   :  { %3541 = vmatpush1.bf16.msra.mxu1 %v9654_v32  ;;  %3460 = vmatprep.subr.bf16.mxu0 %v9657_v36  ;;  %v13919_v32 = vld [vmem:[#allocation106_spill] sm:$0xff]  ;;  %v13920_v36 = vld [vmem:[#allocation107_spill] sm:$0xff] }
 0x66e   :  { %3542 = vmatprep.subr.bf16.mxu1 %v9660_v38  ;;  %v13921_v38 = vld [vmem:[#allocation108_spill] sm:$0xff] }
 0x670   :  { %3461 = vmatpush1.bf16.msra.mxu0 %v9663_v40  ;;  %v13922_v40 = vld [vmem:[#allocation109_spill] sm:$0xff] }
 0x671   :  { %3543 = vmatpush1.bf16.msra.mxu1 %v9666_v12  ;;  %3462 = vmatprep.subr.bf16.mxu0 %v9669_v21  ;;  %v13923_v12 = vld [vmem:[#allocation110_spill] sm:$0xff]  ;;  %v13924_v21 = vld [vmem:[#allocation111_spill] sm:$0xff] }
 0x672   :  { %3544 = vmatprep.subr.bf16.mxu1 %v9672_v7  ;;  %v13925_v7 = vld [vmem:[#allocation112_spill] sm:$0xff] }
 0x674   :  { %3463 = vmatpush1.bf16.msra.mxu0 %v9675_v31  ;;  %v13926_v31 = vld [vmem:[#allocation113_spill] sm:$0xff] }
 0x675   :  { %3545 = vmatpush1.bf16.msra.mxu1 %v9678_v54  ;;  %3464 = vmatprep.subr.bf16.mxu0 %v9681_v56  ;;  %v13927_v54 = vld [vmem:[#allocation114_spill] sm:$0xff]  ;;  %v13928_v56 = vld [vmem:[#allocation29_spill] sm:$0xff] }
 0x676   :  { %3546 = vmatprep.subr.bf16.mxu1 %v9684_v58  ;;  %v13929_v58 = vld [vmem:[#allocation31_spill] sm:$0xff] }
 0x678   :  { %3465 = vmatpush1.bf16.msra.mxu0 %v9687_v60  ;;  %v13930_v60 = vld [vmem:[#allocation30_spill] sm:$0xff] }
 0x679   :  { %3547 = vmatpush1.bf16.msra.mxu1 %v9690_v62  ;;  %3466 = vmatprep.subr.bf16.mxu0 %v9693_v1  ;;  %v13931_v62 = vld [vmem:[#allocation61_spill] sm:$0xff]  ;;  %v13932_v1 = vld [vmem:[#allocation28_spill] sm:$0xff] }
 0x67a   :  { %3548 = vmatprep.subr.bf16.mxu1 %v9696_v2  ;;  %v13933_v2 = vld [vmem:[#allocation26_spill] sm:$0xff] }
 0x67c   :  { %3467 = vmatpush1.bf16.msra.mxu0 %v9699_v34  ;;  %v13934_v34 = vld [vmem:[#allocation27_spill] sm:$0xff] }
 0x67d   :  { %3549 = vmatpush1.bf16.msra.mxu1 %v9702_v41  ;;  %3468 = vmatprep.subr.bf16.mxu0 %v9705_v20  ;;  %v13935_v41 = vld [vmem:[#allocation60_spill] sm:$0xff]  ;;  %v13936_v20 = vld [vmem:[#allocation62_spill] sm:$0xff] }
 0x67e   :  { %3550 = vmatprep.subr.bf16.mxu1 %v9708_v61  ;;  %v13937_v61 = vld [vmem:[#allocation63_spill] sm:$0xff] }
 0x680   :  { %3469 = vmatpush1.bf16.msra.mxu0 %v9711_v28  ;;  %v13938_v28 = vld [vmem:[#allocation115_spill] sm:$0xff] }
 0x681   :  { %3551 = vmatpush1.bf16.msra.mxu1 %v9714_v10  ;;  %3470 = vmatprep.subr.bf16.mxu0 %v9717_v19  ;;  %v13939_v10 = vld [vmem:[#allocation116_spill] sm:$0xff]  ;;  %v13940_v19 = vld [vmem:[#allocation25_spill] sm:$0xff] }
 0x682   :  { %3552 = vmatprep.subr.bf16.mxu1 %v9720_v37  ;;  %v13941_v37 = vld [vmem:[#allocation117_spill] sm:$0xff] }
 0x684   :  { %3471 = vmatpush1.bf16.msra.mxu0 %v9723_v53  ;;  %v13942_v53 = vld [vmem:[#allocation118_spill] sm:$0xff] }
 0x685   :  { %3553 = vmatpush1.bf16.msra.mxu1 %v9726_v3  ;;  %3472 = vmatprep.subr.bf16.mxu0 %v9729_v0  ;;  %v13943_v3 = vld [vmem:[#allocation119_spill] sm:$0xff]  ;;  %v13944_v0 = vld [vmem:[#allocation120_spill] sm:$0xff] }
 0x686   :  { %3554 = vmatprep.subr.bf16.mxu1 %v9732_v17  ;;  %v13945_v17 = vld [vmem:[#allocation93_spill] sm:$0xff] }
 0x688   :  { %3473 = vmatpush1.bf16.msra.mxu0 %v9735_v35  ;;  %v13946_v35 = vld [vmem:[#allocation121_spill] sm:$0xff] }
 0x689   :  { %3555 = vmatpush1.bf16.msra.mxu1 %v9738_v5  ;;  %3474 = vmatprep.subr.bf16.mxu0 %v13916_v52  ;;  %v13947_v5 = vld [vmem:[#allocation122_spill] sm:$0xff] }
 0x68a   :  { %3556 = vmatprep.subr.bf16.mxu1 %v13917_v16 }
 0x68c   :  { %3475 = vmatpush1.bf16.msra.mxu0 %v13918_v33 }
 0x68d   :  { %3557 = vmatpush1.bf16.msra.mxu1 %v13919_v32  ;;  %3476 = vmatprep.subr.bf16.mxu0 %v13920_v36 }
 0x68e   :  { %3558 = vmatprep.subr.bf16.mxu1 %v13921_v38 }
 0x690   :  { %3477 = vmatpush1.bf16.msra.mxu0 %v13922_v40 }
 0x691   :  { %3559 = vmatpush1.bf16.msra.mxu1 %v13923_v12  ;;  %3478 = vmatprep.subr.bf16.mxu0 %v13924_v21 }
 0x692   :  { %3560 = vmatprep.subr.bf16.mxu1 %v13925_v7  ;;  %v13950_v7 = vld [vmem:[#allocation37_spill] sm:$0xff] }
 0x694   :  { %3479 = vmatpush1.bf16.msra.mxu0 %v13926_v31 }
 0x695   :  { %3561 = vmatpush1.bf16.msra.mxu1 %v13927_v54  ;;  %3480 = vmatprep.subr.bf16.mxu0 %v13928_v56  ;;  %v13951_v56 = vld [vmem:[#allocation39_spill] sm:$0xff] }
 0x696   :  { %3562 = vmatprep.subr.bf16.mxu1 %v13929_v58 }
 0x698   :  { %3481 = vmatpush1.bf16.msra.mxu0 %v13930_v60 }
 0x699   :  { %3563 = vmatpush1.bf16.msra.mxu1 %v13931_v62  ;;  %3482 = vmatprep.subr.bf16.mxu0 %v13932_v1 }
 0x69a   :  { %3564 = vmatprep.subr.bf16.mxu1 %v13933_v2 }
 0x69c   :  { %3483 = vmatpush1.bf16.msra.mxu0 %v13934_v34  ;;  %v13952_v34 = vld [vmem:[#allocation38_spill] sm:$0xff] }
 0x69d   :  { %3565 = vmatpush1.bf16.msra.mxu1 %v13935_v41  ;;  %3484 = vmatprep.subr.bf16.mxu0 %v13936_v20 }
 0x69e   :  { %3566 = vmatprep.subr.bf16.mxu1 %v13937_v61 }
 0x6a0   :  { %3485 = vmatpush1.bf16.msra.mxu0 %v13938_v28 }
 0x6a1   :  { %3567 = vmatpush1.bf16.msra.mxu1 %v13939_v10  ;;  %3486 = vmatprep.subr.bf16.mxu0 %v13940_v19 }
 0x6a2   :  { %3568 = vmatprep.subr.bf16.mxu1 %v13941_v37 }
 0x6a4   :  { %3487 = vmatpush1.bf16.msra.mxu0 %v13942_v53  ;;  %v13953_v53 = vld [vmem:[#allocation69_spill] sm:$0xff] }
 0x6a5   :  { %3569 = vmatpush1.bf16.msra.mxu1 %v13943_v3  ;;  %3488 = vmatprep.subr.bf16.mxu0 %v13944_v0 }
 0x6a6   :  { %3570 = vmatprep.subr.bf16.mxu1 %v13945_v17 }
 0x6a8   :  { %3489 = vmatpush1.bf16.msra.mxu0 %v13946_v35 }
 0x6a9   :  { %3571 = vmatpush1.bf16.msra.mxu1 %v13947_v5  ;;  %3499 = vmatprep.subr.bf16.mxu0 %v13948_v29 }
 0x6aa   :  { %3581 = vmatprep.subr.bf16.mxu1 %v13949_v43  ;;  %v13954_v43 = vld [vmem:[#allocation36_spill] sm:$0xff] }
 0x6be   :  { %v3047_v52 = vpop.f32.mrb[80].mxu0  ;;  %v3129_v16 = vpop.f32.mrb[84].mxu1 }
 0x6bf   :  { %v3049_v33 = vpop.f32.mrb[81].mxu0  ;;  %v3131_v32 = vpop.f32.mrb[85].mxu1  ;;  %v3380_v31 = vadd.f32 %v3047_v52, %v13950_v7  ;;  %v3382_v52 = vadd.f32 %v3129_v16, %v13954_v43  ;;  %v13956_v16 = vld [vmem:[#allocation70_spill] sm:$0xff] }
 0x6c0   :  { %v3051_v36 = vpop.f32.mrb[82].mxu0  ;;  %v3133_v38 = vpop.f32.mrb[86].mxu1  ;;  %v3381_v58 = vadd.f32 %v3049_v33, %v13951_v56  ;;  %v3401_v41 = vadd.f32 %v3131_v32, %v13952_v34 }
 0x6c1   :  { %v3052_v40 = vpop.f32.mrb[83].mxu0  ;;  %v3134_v12 = vpop.f32.mrb[87].mxu1  ;;  %v6321_v1 = vmul.f32 -1.442695, %v3380_v31 }
 0x6c2   :  { %v6322_v2 = vmul.f32 -1.442695, %v3381_v58  ;;  %v6324_v28 = vmul.f32 -1.442695, %v3401_v41 }
 0x6c3   :  { %7229 = vpow2.f32 %v6321_v1 }
 0x6c4   :  { %7231 = vpow2.f32 %v6322_v2  ;;  %v13955_v2 = vld [vmem:[#allocation68_spill] sm:$0xff] }
 0x6c5   :  { %7233 = vpow2.f32 %v6324_v28 }
 0x6cd   :  { %v7230_v20 = vpop.eup %7229 }
 0x6ce   :  { %v7232_v61 = vpop.eup %7231  ;;  %v3392_v10 = vadd.f32 1.0, %v7230_v20 }
 0x6cf   :  { %v3393_v19 = vadd.f32 1.0, %v7232_v61  ;;  %v7234_v40 = vpop.eup %7233 }
 0x6d0   :  { %7235 = vrcp.f32 %v3392_v10  ;;  %v3413_v1 = vadd.f32 1.0, %v7234_v40 }
 0x6d1   :  { %7237 = vrcp.f32 %v3393_v19  ;;  %v13957_v19 = vld [vmem:[#allocation71_spill] sm:$0xff] }
 0x6da   :  { %v7236_v31 = vpop.eup %7235 }
 0x6db   :  { %v7238_v58 = vpop.eup %7237 }
 0x6ff   :  { %v3252_v21 = vpop.f32.mrb[88].mxu1 }
 0x700   :  { %v3254_v54 = vpop.f32.mrb[89].mxu1 }
 0x701   :  { %v3256_v60 = vpop.f32.mrb[90].mxu1 }
 0x702   :  { %v3257_v62 = vpop.f32.mrb[91].mxu1 }
 0x703   :  { %v6323_v62 = vmul.f32 -1.442695, %v3382_v52 }
 0x71e   :  { %v3211_v37 = vpop.f32.mrb[84].mxu0 }
 0x71f   :  { %v3402_v3 = vadd.f32 %v3211_v37, %v13953_v53  ;;  %v3293_v0 = vpop.f32.mrb[92].mxu1  ;;  %v3213_v17 = vpop.f32.mrb[85].mxu0 }
 0x720   :  { %v3294_v35 = vadd.f32 %v3293_v0, %v3252_v21  ;;  %v3295_v5 = vpop.f32.mrb[93].mxu1  ;;  %v3215_v29 = vpop.f32.mrb[86].mxu0  ;;  %v3403_v37 = vadd.f32 %v3213_v17, %v13957_v19  ;;  %v13973_v19 = vld [vmem:[#allocation139_spill] sm:$0xff] }
 0x721   :  { %v6325_v33 = vmul.f32 -1.442695, %v3402_v3  ;;  %v3296_v32 = vadd.f32 %v3295_v5, %v3254_v54  ;;  %v3297_v36 = vpop.f32.mrb[94].mxu1  ;;  %v3216_v38 = vpop.f32.mrb[87].mxu0 }
 0x722   :  { %v3422_v12 = vadd.f32 %v3294_v35, %v13596_v26  ;;  %v3298_v7 = vpop.f32.mrb[95].mxu1  ;;  %v6326_v5 = vmul.f32 -1.442695, %v3403_v37 }
 0x723   :  { %7239 = vpow2.f32 %v6325_v33  ;;  %v3423_v56 = vadd.f32 %v3296_v32, %v13597_v30 }
 0x724   :  { %v3425_v60 = vmul.f32 %v7236_v31, %v3422_v12 }
 0x725   :  { %v3426_v21 = vmul.f32 %v7238_v58, %v3423_v56 }
 0x726   :  { %v3428_v34 = vadd.f32 %v3425_v60, %v13955_v2 }
 0x727   :  { %v3429_v54 = vadd.f32 %v3426_v21, %v13956_v16  ;;  %v13966_v16 = vld [vmem:[#allocation132_spill] sm:$0xff] }
 0x728   :  { %7241 = vtanh.f32 %v3428_v34  ;;  %v13958_v34 = vld [vmem:[#allocation92_spill] sm:$0xff] }
 0x729   :  { %7243 = vpow2.f32 %v6323_v62 }
 0x72a   :  { %7245 = vrcp.f32 %v3413_v1 }
 0x72b   :  { %7247 = vtanh.f32 %v3429_v54 }
 0x72d   :  { %v7240_v41 = vpop.eup %7239 }
 0x72e   :  { %v3414_v20 = vadd.f32 1.0, %v7240_v41 }
 0x730   :  { %7249 = vrcp.f32 %v3414_v20  ;;  %v13968_v20 = vld [vmem:[#allocation134_spill] sm:$0xff] }
 0x732   :  { %v7242_v61 = vpop.eup %7241 }
 0x733   :  { %v7244_v28 = vpop.eup %7243  ;;  %v3434_v10 = vsub.f32 %v9854_v63, %v7242_v61 }
 0x734   :  { %v7246_v53 = vpop.eup %7245  ;;  %v3394_v35 = vadd.f32 1.0, %v7244_v28  ;;  %v13970_v28 = vld [vmem:[#allocation136_spill] sm:$0xff] }
 0x735   :  { %v3437_v3 = vmul.f32 %v7246_v53, %v3434_v10  ;;  %v7248_v0 = vpop.eup %7247  ;;  %v13971_v10 = vld [vmem:[#allocation137_spill] sm:$0xff]  ;;  %v13976_v53 = vld [vmem:[#allocation142_spill] sm:$0xff] }
 0x736   :  { %v3435_v43 = vsub.f32 %v9857_v59, %v7248_v0  ;;  %7251 = vrcp.f32 %v3394_v35  ;;  %v13979_v35 = vld [vmem:[#allocation145_spill] sm:$0xff] }
 0x737   :  { %v10432_v29 = vadd.f32 %v7242_v61, %v3437_v3  ;;  %7253 = vpow2.f32 %v6326_v5  ;;  %v13969_v61 = vld [vmem:[#allocation135_spill] sm:$0xff]  ;;  %v13980_v5 = vld [vmem:[#allocation146_spill] sm:$0xff] }
 0x738   :  { %v13977_v3 = vld [vmem:[#allocation143_spill] sm:$0xff] }
 0x739   :  { %v10443_v31 = vpack.c.bf16 %v10432_v29, %v10432_v29 }
 0x73a   :  { %v7250_v52 = vpop.eup %7249 }
 0x73b   :  { %v3438_v33 = vmul.f32 %v7250_v52, %v3435_v43  ;;  %v13981_v43 = vld [vmem:[#allocation147_spill] sm:$0xff]  ;;  %v13982_v52 = vld [vmem:[#allocation148_spill] sm:$0xff] }
 0x73d   :  { %v10435_v32 = vadd.f32 %v7248_v0, %v3438_v33  ;;  %v13978_v0 = vld [vmem:[#allocation144_spill] sm:$0xff]  ;;  %v13983_v33 = vld [vmem:[#allocation149_spill] sm:$0xff] }
 0x73e   :  { %v6475_v36 = vpop.f32.mrb[88].mxu0 }
 0x73f   :  { %v3374_v38 = vpop.f32.mrb[96].mxu1  ;;  %v6476_v63 = vpop.f32.mrb[89].mxu0  ;;  %v10439_v17 = vpack.c.bf16 %v10435_v32, %v10435_v32 }
 0x740   :  { %v6477_v40 = vadd.f32 %v6476_v63, %v6475_v36  ;;  %v6770_v12 = vpop.f32.mrb[97].mxu1  ;;  %v6478_v7 = vpop.f32.mrb[90].mxu0  ;;  %v13984_v36 = vld [vmem:[#allocation150_spill] sm:$0xff]  ;;  %v13986_v63 = vld [vmem:[#allocation152_spill] sm:$0xff] }
 0x741   :  { %v3377_v59 = vpop.f32.mrb[98].mxu1  ;;  %v6479_v56 = vpop.f32.mrb[91].mxu0  ;;  %3490 = vmatprep.mubr.bf16.mxu0 %v10439_v17  ;;  %3572 = vmatprep.mubr.bf16.mxu1 %v10439_v17  ;;  %v13988_v12 = vld [vmem:[#allocation154_spill] sm:$0xff]  ;;  %v13989_v7 = vld [vmem:[#allocation155_spill] sm:$0xff] }
 0x742   :  { %v3375_v58 = vadd.f32 %v6477_v40, %v3374_v38  ;;  %v6771_v60 = vpop.f32.mrb[99].mxu1  ;;  %3491 = vmatmul.mubr.bf16.vlgmr.msra.gmra.mrb[92].mxu0 %v10443_v31  ;;  %3573 = vmatmul.mubr.bf16.vlgmr.msra.gmra.mrb[100].mxu1 %v10443_v31  ;;  %v7252_v62 = vpop.eup %7251  ;;  %v13985_v38 = vld [vmem:[#allocation151_spill] sm:$0xff]  ;;  %v13987_v40 = vld [vmem:[#allocation153_spill] sm:$0xff]  ;;  %v13990_v59 = vld [vmem:[#allocation156_spill] sm:$0xff] }
 0x743   :  { %3500 = vmatpush1.bf16.msra.mxu0 %v9871_v22  ;;  %3582 = vmatpush1.bf16.msra.mxu1 %v9874_v15  ;;  %v7254_v1 = vpop.eup %7253  ;;  %v13991_v56 = vld [vmem:[#allocation157_spill] sm:$0xff]  ;;  %v13993_v60 = vld [vmem:[#allocation159_spill] sm:$0xff] }
 0x744   :  { %v3424_v21 = vadd.f32 %v3375_v58, %v13603_v11  ;;  %3501 = vmatprep.subr.bf16.mxu0 %v9878_v25  ;;  %3583 = vmatprep.subr.bf16.mxu1 %v9881_v46  ;;  %v3415_v22 = vadd.f32 1.0, %v7254_v1  ;;  %v13959_v25 = vld [vmem:[#allocation125_spill] sm:$0xff]  ;;  %v13960_v46 = vld [vmem:[#allocation126_spill] sm:$0xff] }
 0x745   :  { %3531 = vmatprep.mubr.bf16.mxu0 %v13424_v24  ;;  %3613 = vmatprep.mubr.bf16.mxu1 %v13424_v24  ;;  %v13992_v58 = vld [vmem:[#allocation158_spill] sm:$0xff] }
 0x746   :  { %v3427_v2 = vmul.f32 %v7252_v62, %v3424_v21  ;;  %v13994_v62 = vld [vmem:[#allocation160_spill] sm:$0xff]  ;;  %v13995_v21 = vld [vmem:[#allocation161_spill] sm:$0xff]  ;;  %v13996_v1 = vld [vmem:[#allocation162_spill] sm:$0xff] }
 0x747   :  { %3502 = vmatpush1.bf16.msra.mxu0 %v9886_v13  ;;  %3584 = vmatpush1.bf16.msra.mxu1 %v9889_v45  ;;  %v13961_v13 = vld [vmem:[#allocation127_spill] sm:$0xff]  ;;  %v13962_v45 = vld [vmem:[#allocation128_spill] sm:$0xff] }
 0x748   :  { %v3430_v15 = vadd.f32 %v3427_v2, %v13958_v34  ;;  %3503 = vmatprep.subr.bf16.mxu0 %v9893_v23  ;;  %3585 = vmatprep.subr.bf16.mxu1 %v9896_v50  ;;  %v13963_v23 = vld [vmem:[#allocation129_spill] sm:$0xff]  ;;  %v13997_v2 = vld [vmem:[#allocation163_spill] sm:$0xff] }
 0x749   :  { %v13999_v34 = vld [vmem:[#allocation165_spill] sm:$0xff] }
 0x74a   :  { %7255 = vtanh.f32 %v3430_v15  ;;  %v14000_v15 = vld [vmem:[#allocation166_spill] sm:$0xff] }
 0x74b   :  { %3504 = vmatpush1.bf16.msra.mxu0 %v9899_v42  ;;  %3586 = vmatpush1.bf16.msra.mxu1 %v9902_v51  ;;  %7257 = vrcp.f32 %v3415_v22  ;;  %v13964_v42 = vld [vmem:[#allocation130_spill] sm:$0xff]  ;;  %v13965_v51 = vld [vmem:[#allocation131_spill] sm:$0xff]  ;;  %v13998_v22 = vld [vmem:[#allocation164_spill] sm:$0xff] }
 0x74c   :  { %3505 = vmatprep.subr.bf16.mxu0 %v9905_v39  ;;  %3587 = vmatprep.subr.bf16.mxu1 %v9908_v55 }
 0x74f   :  { %3506 = vmatpush1.bf16.msra.mxu0 %v9911_v6  ;;  %3588 = vmatpush1.bf16.msra.mxu1 %v13959_v25  ;;  %v13967_v6 = vld [vmem:[#allocation133_spill] sm:$0xff]  ;;  %v14001_v25 = vld [vmem:[#allocation167_spill] sm:$0xff] }
 0x750   :  { %3507 = vmatprep.subr.bf16.mxu0 %v13960_v46  ;;  %3589 = vmatprep.subr.bf16.mxu1 %v13961_v13  ;;  %v14002_v46 = vld [vmem:[#allocation168_spill] sm:$0xff]  ;;  %v14003_v13 = vld [vmem:[#allocation169_spill] sm:$0xff] }
 0x753   :  { %3508 = vmatpush1.bf16.msra.mxu0 %v13962_v45  ;;  %3590 = vmatpush1.bf16.msra.mxu1 %v13963_v23  ;;  %v14004_v45 = vld [vmem:[#allocation170_spill] sm:$0xff]  ;;  %v14005_v23 = vld [vmem:[#allocation171_spill] sm:$0xff] }
 0x754   :  { %v7256_v50 = vpop.eup %7255  ;;  %3509 = vmatprep.subr.bf16.mxu0 %v13964_v42  ;;  %3591 = vmatprep.subr.bf16.mxu1 %v13965_v51  ;;  %v14007_v42 = vld [vmem:[#allocation173_spill] sm:$0xff]  ;;  %v14008_v51 = vld [vmem:[#allocation174_spill] sm:$0xff] }
 0x755   :  { %v3436_v39 = vsub.f32 %v9948_v47, %v7256_v50  ;;  %v7258_v55 = vpop.eup %7257  ;;  %v13972_v47 = vld [vmem:[#allocation138_spill] sm:$0xff] }
 0x757   :  { %3510 = vmatpush1.bf16.msra.mxu0 %v13966_v16  ;;  %3592 = vmatpush1.bf16.msra.mxu1 %v13967_v6  ;;  %v3439_v54 = vmul.f32 %v7258_v55, %v3436_v39  ;;  %v14009_v39 = vld [vmem:[#allocation175_spill] sm:$0xff]  ;;  %v14010_v55 = vld [vmem:[#allocation176_spill] sm:$0xff]  ;;  %v14011_v16 = vld [vmem:[#allocation177_spill] sm:$0xff] }
 0x758   :  { %3511 = vmatprep.subr.bf16.mxu0 %v9942_v49  ;;  %3593 = vmatprep.subr.bf16.mxu1 %v9945_v4  ;;  %v13974_v49 = vld [vmem:[#allocation140_spill] sm:$0xff]  ;;  %v13975_v4 = vld [vmem:[#allocation141_spill] sm:$0xff]  ;;  %v14012_v6 = vld [vmem:[#allocation178_spill] sm:$0xff] }
 0x759   :  { %v10478_v41 = vadd.f32 %v7256_v50, %v3439_v54  ;;  %v14006_v50 = vld [vmem:[#allocation172_spill] sm:$0xff]  ;;  %v14013_v54 = vld [vmem:[#allocation179_spill] sm:$0xff] }
 0x75b   :  { %3512 = vmatpush1.bf16.msra.mxu0 %v13968_v20  ;;  %3594 = vmatpush1.bf16.msra.mxu1 %v13969_v61  ;;  %v10488_v37 = vpack.c.bf16 %v10478_v41, %v10478_v41  ;;  %v14014_v20 = vld [vmem:[#allocation180_spill] sm:$0xff]  ;;  %v14015_v61 = vld [vmem:[#allocation181_spill] sm:$0xff] }
 0x75c   :  { %3513 = vmatprep.subr.bf16.mxu0 %v13970_v28  ;;  %3595 = vmatprep.subr.bf16.mxu1 %v13971_v10  ;;  %v14016_v28 = vld [vmem:[#allocation182_spill] sm:$0xff]  ;;  %v14017_v10 = vld [vmem:[#allocation183_spill] sm:$0xff] }
 0x75f   :  { %3514 = vmatpush1.bf16.msra.mxu0 %v13972_v47  ;;  %3596 = vmatpush1.bf16.msra.mxu1 %v13973_v19  ;;  %v14018_v47 = vld [vmem:[#allocation184_spill] sm:$0xff]  ;;  %v14019_v19 = vld [vmem:[#allocation185_spill] sm:$0xff] }
 0x760   :  { %3622 = vmatprep.subr.bf16.mxu0 %v13974_v49  ;;  %3704 = vmatprep.subr.bf16.mxu1 %v13975_v4  ;;  %v14020_v49 = vld [vmem:[#allocation186_spill] sm:$0xff]  ;;  %v14021_v4 = vld [vmem:[#allocation187_spill] sm:$0xff] }
 0x762   :  { %3532 = vmatmul.mubr.bf16.vlgmr.msra.gmra.mrb[92].mxu0 %v10488_v37  ;;  %3614 = vmatmul.mubr.bf16.vlgmr.msra.gmra.mrb[100].mxu1 %v10488_v37 }
 0x763   :  { %3623 = vmatpush1.bf16.msra.mxu0 %v13976_v53  ;;  %3654 = vmatprep.mubr.bf16.mxu0 %v10439_v17  ;;  %v14022_v53 = vld [vmem:[#allocation188_spill] sm:$0xff] }
 0x764   :  { %3705 = vmatpush1.bf16.msra.mxu1 %v13977_v3  ;;  %3736 = vmatprep.mubr.bf16.mxu1 %v10439_v17  ;;  %v14023_v3 = vld [vmem:[#allocation189_spill] sm:$0xff] }
 0x765   :  { %3624 = vmatprep.subr.bf16.mxu0 %v13978_v0  ;;  %3706 = vmatprep.subr.bf16.mxu1 %v13979_v35  ;;  %v14024_v0 = vld [vmem:[#allocation190_spill] sm:$0xff]  ;;  %v14025_v35 = vld [vmem:[#allocation191_spill] sm:$0xff] }
 0x767   :  { %3625 = vmatpush1.bf16.msra.mxu0 %v13980_v5  ;;  %v14026_v5 = vld [vmem:[#allocation192_spill] sm:$0xff] }
 0x768   :  { %3707 = vmatpush1.bf16.msra.mxu1 %v13981_v43  ;;  %3626 = vmatprep.subr.bf16.mxu0 %v13982_v52  ;;  %v14027_v43 = vld [vmem:[#allocation193_spill] sm:$0xff]  ;;  %v14028_v52 = vld [vmem:[#allocation194_spill] sm:$0xff] }
 0x769   :  { %3708 = vmatprep.subr.bf16.mxu1 %v13983_v33  ;;  %v14029_v33 = vld [vmem:[#allocation195_spill] sm:$0xff] }
 0x76b   :  { %3627 = vmatpush1.bf16.msra.mxu0 %v13984_v36  ;;  %v14030_v36 = vld [vmem:[#allocation196_spill] sm:$0xff] }
 0x76c   :  { %3709 = vmatpush1.bf16.msra.mxu1 %v13985_v38  ;;  %3628 = vmatprep.subr.bf16.mxu0 %v13986_v63  ;;  %v14031_v38 = vld [vmem:[#allocation197_spill] sm:$0xff]  ;;  %v14032_v63 = vld [vmem:[#allocation198_spill] sm:$0xff] }
 0x76d   :  { %3710 = vmatprep.subr.bf16.mxu1 %v13987_v40  ;;  %v14033_v40 = vld [vmem:[#allocation199_spill] sm:$0xff] }
 0x76f   :  { %3629 = vmatpush1.bf16.msra.mxu0 %v13988_v12  ;;  %v14034_v12 = vld [vmem:[#allocation200_spill] sm:$0xff] }
 0x770   :  { %3711 = vmatpush1.bf16.msra.mxu1 %v13989_v7  ;;  %3630 = vmatprep.subr.bf16.mxu0 %v13990_v59  ;;  %v14035_v7 = vld [vmem:[#allocation201_spill] sm:$0xff]  ;;  %v14036_v59 = vld [vmem:[#allocation202_spill] sm:$0xff] }
 0x771   :  { %3712 = vmatprep.subr.bf16.mxu1 %v13991_v56  ;;  %v14037_v56 = vld [vmem:[#allocation203_spill] sm:$0xff] }
 0x773   :  { %3631 = vmatpush1.bf16.msra.mxu0 %v13992_v58  ;;  %v14038_v58 = vld [vmem:[#allocation204_spill] sm:$0xff] }
 0x774   :  { %3713 = vmatpush1.bf16.msra.mxu1 %v13993_v60  ;;  %3632 = vmatprep.subr.bf16.mxu0 %v13994_v62  ;;  %v14039_v60 = vld [vmem:[#allocation205_spill] sm:$0xff]  ;;  %v14040_v62 = vld [vmem:[#allocation206_spill] sm:$0xff] }
 0x775   :  { %3714 = vmatprep.subr.bf16.mxu1 %v13995_v21  ;;  %v14041_v21 = vld [vmem:[#allocation207_spill] sm:$0xff] }
 0x777   :  { %3633 = vmatpush1.bf16.msra.mxu0 %v13996_v1  ;;  %v14042_v1 = vld [vmem:[#allocation208_spill] sm:$0xff] }
 0x778   :  { %3715 = vmatpush1.bf16.msra.mxu1 %v13997_v2  ;;  %3634 = vmatprep.subr.bf16.mxu0 %v13998_v22  ;;  %v14043_v2 = vld [vmem:[#allocation209_spill] sm:$0xff]  ;;  %v14044_v22 = vld [vmem:[#allocation210_spill] sm:$0xff] }
 0x779   :  { %3716 = vmatprep.subr.bf16.mxu1 %v13999_v34  ;;  %v14045_v34 = vld [vmem:[#allocation211_spill] sm:$0xff] }
 0x77b   :  { %3635 = vmatpush1.bf16.msra.mxu0 %v14000_v15  ;;  %v14046_v15 = vld [vmem:[#allocation212_spill] sm:$0xff] }
 0x77c   :  { %3717 = vmatpush1.bf16.msra.mxu1 %v14001_v25  ;;  %3636 = vmatprep.subr.bf16.mxu0 %v14002_v46  ;;  %v14047_v25 = vld [vmem:[#allocation213_spill] sm:$0xff]  ;;  %v14048_v46 = vld [vmem:[#allocation214_spill] sm:$0xff] }
 0x77d   :  { %3718 = vmatprep.subr.bf16.mxu1 %v14003_v13  ;;  %v14049_v13 = vld [vmem:[#allocation215_spill] sm:$0xff] }
 0x77f   :  { %3637 = vmatpush1.bf16.msra.mxu0 %v14004_v45  ;;  %v14050_v45 = vld [vmem:[#allocation216_spill] sm:$0xff] }
 0x780   :  { %3719 = vmatpush1.bf16.msra.mxu1 %v14005_v23  ;;  %3638 = vmatprep.subr.bf16.mxu0 %v14006_v50  ;;  %v14051_v23 = vld [vmem:[#allocation217_spill] sm:$0xff]  ;;  %v14052_v50 = vld [vmem:[#allocation218_spill] sm:$0xff] }
 0x781   :  { %3720 = vmatprep.subr.bf16.mxu1 %v14007_v42  ;;  %v14053_v42 = vld [vmem:[#allocation219_spill] sm:$0xff] }
 0x783   :  { %3639 = vmatpush1.bf16.msra.mxu0 %v14008_v51  ;;  %v14054_v51 = vld [vmem:[#allocation220_spill] sm:$0xff] }
 0x784   :  { %3721 = vmatpush1.bf16.msra.mxu1 %v14009_v39  ;;  %3640 = vmatprep.subr.bf16.mxu0 %v14010_v55  ;;  %v14055_v39 = vld [vmem:[#allocation221_spill] sm:$0xff]  ;;  %v14056_v55 = vld [vmem:[#allocation222_spill] sm:$0xff] }
 0x785   :  { %3722 = vmatprep.subr.bf16.mxu1 %v14011_v16  ;;  %v14057_v16 = vld [vmem:[#allocation223_spill] sm:$0xff] }
 0x787   :  { %3641 = vmatpush1.bf16.msra.mxu0 %v14012_v6  ;;  %v14058_v6 = vld [vmem:[#allocation224_spill] sm:$0xff] }
 0x788   :  { %3723 = vmatpush1.bf16.msra.mxu1 %v14013_v54  ;;  %3642 = vmatprep.subr.bf16.mxu0 %v14014_v20  ;;  %v14059_v54 = vld [vmem:[#allocation225_spill] sm:$0xff]  ;;  %v14060_v20 = vld [vmem:[#allocation226_spill] sm:$0xff] }
 0x789   :  { %3724 = vmatprep.subr.bf16.mxu1 %v14015_v61  ;;  %v14061_v61 = vld [vmem:[#allocation227_spill] sm:$0xff] }
 0x78b   :  { %3643 = vmatpush1.bf16.msra.mxu0 %v14016_v28  ;;  %v14062_v28 = vld [vmem:[#allocation228_spill] sm:$0xff] }
 0x78c   :  { %3725 = vmatpush1.bf16.msra.mxu1 %v14017_v10  ;;  %3644 = vmatprep.subr.bf16.mxu0 %v14018_v47  ;;  %v14063_v10 = vld [vmem:[#allocation229_spill] sm:$0xff]  ;;  %v14064_v47 = vld [vmem:[#allocation230_spill] sm:$0xff] }
 0x78d   :  { %3726 = vmatprep.subr.bf16.mxu1 %v14019_v19  ;;  %v14065_v19 = vld [vmem:[#allocation231_spill] sm:$0xff] }
 0x78f   :  { %3645 = vmatpush1.bf16.msra.mxu0 %v14020_v49  ;;  %v14066_v49 = vld [vmem:[#allocation232_spill] sm:$0xff] }
 0x790   :  { %3727 = vmatpush1.bf16.msra.mxu1 %v14021_v4  ;;  %3646 = vmatprep.subr.bf16.mxu0 %v14022_v53  ;;  %v14067_v4 = vld [vmem:[#allocation233_spill] sm:$0xff]  ;;  %v14068_v53 = vld [vmem:[#allocation234_spill] sm:$0xff] }
 0x791   :  { %3728 = vmatprep.subr.bf16.mxu1 %v14023_v3  ;;  %v14069_v3 = vld [vmem:[#allocation235_spill] sm:$0xff] }
 0x793   :  { %3647 = vmatpush1.bf16.msra.mxu0 %v14024_v0  ;;  %v14070_v0 = vld [vmem:[#allocation236_spill] sm:$0xff] }
 0x794   :  { %3729 = vmatpush1.bf16.msra.mxu1 %v14025_v35  ;;  %3648 = vmatprep.subr.bf16.mxu0 %v14026_v5  ;;  %v14072_v35 = vld [vmem:[#allocation238_spill] sm:$0xff]  ;;  %v14073_v5 = vld [vmem:[#allocation239_spill] sm:$0xff] }
 0x795   :  { %3730 = vmatprep.subr.bf16.mxu1 %v14027_v43  ;;  %v14074_v43 = vld [vmem:[#allocation240_spill] sm:$0xff] }
 0x797   :  { %3649 = vmatpush1.bf16.msra.mxu0 %v14028_v52  ;;  %v14075_v52 = vld [vmem:[#allocation241_spill] sm:$0xff] }
 0x798   :  { %3731 = vmatpush1.bf16.msra.mxu1 %v14029_v33  ;;  %3650 = vmatprep.subr.bf16.mxu0 %v14030_v36  ;;  %v14076_v33 = vld [vmem:[#allocation242_spill] sm:$0xff]  ;;  %v14078_v36 = vld [vmem:[#allocation244_spill] sm:$0xff] }
 0x799   :  { %3732 = vmatprep.subr.bf16.mxu1 %v14031_v38  ;;  %v14079_v38 = vld [vmem:[#allocation245_spill] sm:$0xff] }
 0x79b   :  { %3651 = vmatpush1.bf16.msra.mxu0 %v14032_v63  ;;  %v14080_v63 = vld [vmem:[#allocation246_spill] sm:$0xff] }
 0x79c   :  { %3733 = vmatpush1.bf16.msra.mxu1 %v14033_v40  ;;  %3652 = vmatprep.subr.bf16.mxu0 %v14034_v12  ;;  %v14081_v40 = vld [vmem:[#allocation247_spill] sm:$0xff]  ;;  %v14082_v12 = vld [vmem:[#allocation248_spill] sm:$0xff] }
 0x79d   :  { %3734 = vmatprep.subr.bf16.mxu1 %v14035_v7  ;;  %v14083_v7 = vld [vmem:[#allocation249_spill] sm:$0xff] }
 0x79f   :  { %3653 = vmatpush1.bf16.msra.mxu0 %v14036_v59  ;;  %v14084_v59 = vld [vmem:[#allocation250_spill] sm:$0xff] }
 0x7a0   :  { %3735 = vmatpush1.bf16.msra.mxu1 %v14037_v56  ;;  %3663 = vmatprep.subr.bf16.mxu0 %v14038_v58  ;;  %v14085_v56 = vld [vmem:[#allocation251_spill] sm:$0xff]  ;;  %v14086_v58 = vld [vmem:[#allocation252_spill] sm:$0xff] }
 0x7a1   :  { %3745 = vmatprep.subr.bf16.mxu1 %v14039_v60  ;;  %v10631_v60 = vld [vmem:[#allocation3 + $0x8] sm:$0xff] }
 0x7a2   :  { %3655 = vmatmul.mubr.bf16.vlgmr.msra.gmra.mrb[96].mxu0 %v10443_v31 }
 0x7a3   :  { %3737 = vmatmul.mubr.bf16.vlgmr.msra.gmra.mrb[104].mxu1 %v10443_v31  ;;  %3664 = vmatpush1.bf16.msra.mxu0 %v14040_v62  ;;  %v10660_v62 = vld [vmem:[#allocation3 + $0xa8] sm:$0xff] }
 0x7a4   :  { %3746 = vmatpush1.bf16.msra.mxu1 %v14041_v21  ;;  %3665 = vmatprep.subr.bf16.mxu0 %v14042_v1  ;;  %v10663_v21 = vld [vmem:[#allocation3 + $0x90] sm:$0xff]  ;;  %v10666_v1 = vld [vmem:[#allocation3 + $0xa0] sm:$0xff] }
 0x7a5   :  { %3747 = vmatprep.subr.bf16.mxu1 %v14043_v2  ;;  %3695 = vmatprep.mubr.bf16.mxu0 %v13424_v24  ;;  %v10669_v2 = vld [vmem:[#allocation3 + $0xe0] sm:$0xff] }
 0x7a6   :  { %3777 = vmatprep.mubr.bf16.mxu1 %v13424_v24 }
 0x7a7   :  { %3666 = vmatpush1.bf16.msra.mxu0 %v14044_v22  ;;  %v10672_v22 = vld [vmem:[#allocation3 + $0xf0] sm:$0xff] }
 0x7a8   :  { %3748 = vmatpush1.bf16.msra.mxu1 %v14045_v34  ;;  %3667 = vmatprep.subr.bf16.mxu0 %v14046_v15  ;;  %v10675_v34 = vld [vmem:[#allocation3 + $0xd8] sm:$0xff]  ;;  %v10678_v15 = vld [vmem:[#allocation3 + $0xe8] sm:$0xff] }
 0x7a9   :  { %3749 = vmatprep.subr.bf16.mxu1 %v14047_v25  ;;  %v10681_v25 = vld [vmem:[#allocation3 + $0x128] sm:$0xff] }
 0x7ab   :  { %3668 = vmatpush1.bf16.msra.mxu0 %v14048_v46  ;;  %v10684_v46 = vld [vmem:[#allocation3 + $0x138] sm:$0xff] }
 0x7ac   :  { %3750 = vmatpush1.bf16.msra.mxu1 %v14049_v13  ;;  %3669 = vmatprep.subr.bf16.mxu0 %v14050_v45  ;;  %v10687_v13 = vld [vmem:[#allocation3 + $0x120] sm:$0xff]  ;;  %v10690_v45 = vld [vmem:[#allocation3 + $0x130] sm:$0xff] }
 0x7ad   :  { %3751 = vmatprep.subr.bf16.mxu1 %v14051_v23  ;;  %v10693_v23 = vld [vmem:[#allocation3 + $0x170] sm:$0xff] }
 0x7af   :  { %3670 = vmatpush1.bf16.msra.mxu0 %v14052_v50  ;;  %v10696_v50 = vld [vmem:[#allocation3 + $0x180] sm:$0xff] }
 0x7b0   :  { %3752 = vmatpush1.bf16.msra.mxu1 %v14053_v42  ;;  %3671 = vmatprep.subr.bf16.mxu0 %v14054_v51  ;;  %v10699_v42 = vld [vmem:[#allocation3 + $0x168] sm:$0xff]  ;;  %v10702_v51 = vld [vmem:[#allocation3 + $0x178] sm:$0xff] }
 0x7b1   :  { %3753 = vmatprep.subr.bf16.mxu1 %v14055_v39  ;;  %v10705_v39 = vld [vmem:[#allocation3 + $0x1b8] sm:$0xff] }
 0x7b3   :  { %3672 = vmatpush1.bf16.msra.mxu0 %v14056_v55  ;;  %v10708_v55 = vld [vmem:[#allocation3 + $0x1c8] sm:$0xff] }
 0x7b4   :  { %3754 = vmatpush1.bf16.msra.mxu1 %v14057_v16  ;;  %3673 = vmatprep.subr.bf16.mxu0 %v14058_v6  ;;  %v10711_v16 = vld [vmem:[#allocation3 + $0x1b0] sm:$0xff]  ;;  %v10714_v6 = vld [vmem:[#allocation3 + $0x1c0] sm:$0xff] }
 0x7b5   :  { %3755 = vmatprep.subr.bf16.mxu1 %v14059_v54  ;;  %v10717_v54 = vld [vmem:[#allocation3 + $0x200] sm:$0xff] }
 0x7b7   :  { %3674 = vmatpush1.bf16.msra.mxu0 %v14060_v20  ;;  %v10720_v20 = vld [vmem:[#allocation3 + $0x210] sm:$0xff] }
 0x7b8   :  { %3756 = vmatpush1.bf16.msra.mxu1 %v14061_v61  ;;  %3675 = vmatprep.subr.bf16.mxu0 %v14062_v28  ;;  %v10723_v61 = vld [vmem:[#allocation3 + $0x1f8] sm:$0xff]  ;;  %v10726_v28 = vld [vmem:[#allocation3 + $0x208] sm:$0xff] }
 0x7b9   :  { %3757 = vmatprep.subr.bf16.mxu1 %v14063_v10  ;;  %v10729_v10 = vld [vmem:[#allocation3 + $0x248] sm:$0xff] }
 0x7ba   :  { %14087 = vst [vmem:[#allocation253_spill] sm:$0xff] %v10729_v10 }
 0x7bb   :  { %3676 = vmatpush1.bf16.msra.mxu0 %v14064_v47  ;;  %v10732_v47 = vld [vmem:[#allocation3 + $0x258] sm:$0xff] }
 0x7bc   :  { %3758 = vmatpush1.bf16.msra.mxu1 %v10253_v18  ;;  %3677 = vmatprep.subr.bf16.mxu0 %v14065_v19  ;;  %v14071_v18 = vld [vmem:[#allocation237_spill] sm:$0xff]  ;;  %14088 = vst [vmem:[#allocation254_spill] sm:$0xff] %v10732_v47 }
 0x7bd   :  { %3759 = vmatprep.subr.bf16.mxu1 %v14066_v49  ;;  %v10735_v19 = vld [vmem:[#allocation3 + $0x240] sm:$0xff]  ;;  %v10738_v49 = vld [vmem:[#allocation3 + $0x250] sm:$0xff] }
 0x7be   :  { %14089 = vst [vmem:[#allocation255_spill] sm:$0xff] %v10735_v19  ;;  %14090 = vst [vmem:[#allocation256_spill] sm:$0xff] %v10738_v49 }
 0x7bf   :  { %3678 = vmatpush1.bf16.msra.mxu0 %v14067_v4  ;;  %v10741_v4 = vld [vmem:[#allocation3 + $0x290] sm:$0xff] }
 0x7c0   :  { %3760 = vmatpush1.bf16.msra.mxu1 %v14068_v53  ;;  %6490 = vmatprep.subr.bf16.mxu0 %v14069_v3  ;;  %14091 = vst [vmem:[#allocation33_spill] sm:$0xff] %v10741_v4  ;;  %v10744_v53 = vld [vmem:[#allocation3 + $0x2a0] sm:$0xff]  ;;  %v10747_v3 = vld [vmem:[#allocation3 + $0x288] sm:$0xff] }
 0x7c1   :  { %6772 = vmatprep.subr.bf16.mxu1 %v13420_v8  ;;  %14092 = vst [vmem:[#allocation35_spill] sm:$0xff] %v10744_v53  ;;  %14093 = vst [vmem:[#allocation34_spill] sm:$0xff] %v10747_v3 }
 0x7c2   :  { %3696 = vmatmul.mubr.bf16.vlgmr.msra.gmra.mrb[96].mxu0 %v10488_v37 }
 0x7c3   :  { %3778 = vmatmul.mubr.bf16.vlgmr.msra.gmra.mrb[108].mxu1 %v10488_v37  ;;  %6491 = vmatpush3.bf16.msra.mxu0 %v14070_v0  ;;  %v10750_v0 = vld [vmem:[#allocation3 + $0x298] sm:$0xff] }
 0x7c4   :  { %3818 = vmatprep.mubr.bf16.mxu0 %v10439_v17  ;;  %6773 = vmatpush3.bf16.msra.mxu1 %v14071_v18  ;;  %v14077_v17 = vld [vmem:[#allocation243_spill] sm:$0xff]  ;;  %14094 = vst [vmem:[#allocation65_spill] sm:$0xff] %v10750_v0  ;;  %v10753_v18 = vld [vmem:[#allocation3 + $0x2d8] sm:$0xff] }
 0x7c5   :  { %6492 = vmatprep.subr.bf16.mxu0 %v14072_v35  ;;  %6774 = vmatprep.subr.bf16.mxu1 %v13420_v8  ;;  %14095 = vst [vmem:[#allocation32_spill] sm:$0xff] %v10753_v18  ;;  %v10756_v35 = vld [vmem:[#allocation3 + $0x2e8] sm:$0xff] }
 0x7c6   :  { %6788 = vmatprep.mubr.msk.bf16.mxu1 %vm8178_vm1, %v13420_v8  ;;  %14096 = vst [vmem:[#allocation64_spill] sm:$0xff] %v10756_v35 }
 0x7c7   :  { %6493 = vmatpush3.bf16.msra.mxu0 %v14073_v5  ;;  %v10759_v5 = vld [vmem:[#allocation3 + $0x2d0] sm:$0xff] }
 0x7c8   :  { %6775 = vmatpush3.bf16.msra.mxu1 %v14074_v43  ;;  %6494 = vmatprep.subr.bf16.mxu0 %v14075_v52  ;;  %14097 = vst [vmem:[#allocation66_spill] sm:$0xff] %v10759_v5  ;;  %v10762_v43 = vld [vmem:[#allocation3 + $0x2e0] sm:$0xff] }
 0x7c9   :  { %6776 = vmatprep.subr.bf16.mxu1 %v13420_v8  ;;  %14098 = vst [vmem:[#allocation67_spill] sm:$0xff] %v10762_v43  ;;  %v10765_v52 = vld [vmem:[#allocation3 + $0x320] sm:$0xff] }
 0x7ca   :  { %14099 = vst [vmem:[#allocation95_spill] sm:$0xff] %v10765_v52 }
 0x7cb   :  { %6495 = vmatpush3.bf16.msra.mxu0 %v14076_v33  ;;  %v10768_v33 = vld [vmem:[#allocation3 + $0x330] sm:$0xff] }
 0x7cc   :  { %6777 = vmatpush3.bf16.msra.mxu1 %v14077_v17  ;;  %6496 = vmatprep.subr.bf16.mxu0 %v14078_v36  ;;  %14100 = vst [vmem:[#allocation103_spill] sm:$0xff] %v10768_v33  ;;  %v10771_v17 = vld [vmem:[#allocation3 + $0x318] sm:$0xff]  ;;  %v10774_v36 = vld [vmem:[#allocation3 + $0x328] sm:$0xff] }
 0x7cd   :  { %6778 = vmatprep.subr.bf16.mxu1 %v13420_v8  ;;  %14101 = vst [vmem:[#allocation104_spill] sm:$0xff] %v10771_v17  ;;  %14102 = vst [vmem:[#allocation105_spill] sm:$0xff] %v10774_v36 }
 0x7cf   :  { %6497 = vmatpush3.bf16.msra.mxu0 %v14079_v38  ;;  %v10777_v38 = vld [vmem:[#allocation3 + $0x368] sm:$0xff] }
 0x7d0   :  { %6779 = vmatpush3.bf16.msra.mxu1 %v14080_v63  ;;  %6498 = vmatprep.subr.bf16.mxu0 %v14081_v40  ;;  %14103 = vst [vmem:[#allocation106_spill] sm:$0xff] %v10777_v38  ;;  %v10780_v63 = vld [vmem:[#allocation3 + $0x378] sm:$0xff]  ;;  %v10783_v40 = vld [vmem:[#allocation3 + $0x360] sm:$0xff] }
 0x7d1   :  { %6780 = vmatprep.subr.bf16.mxu1 %v13420_v8  ;;  %14104 = vst [vmem:[#allocation107_spill] sm:$0xff] %v10780_v63  ;;  %14105 = vst [vmem:[#allocation108_spill] sm:$0xff] %v10783_v40 }
 0x7d3   :  { %6499 = vmatpush3.bf16.msra.mxu0 %v14082_v12  ;;  %v10786_v12 = vld [vmem:[#allocation3 + $0x370] sm:$0xff] }
 0x7d4   :  { %6781 = vmatpush3.bf16.msra.mxu1 %v14083_v7  ;;  %6500 = vmatprep.subr.bf16.mxu0 %v14084_v59  ;;  %14106 = vst [vmem:[#allocation109_spill] sm:$0xff] %v10786_v12  ;;  %v10789_v7 = vld [vmem:[#allocation3 + $0x3b0] sm:$0xff]  ;;  %v10792_v59 = vld [vmem:[#allocation3 + $0x3c0] sm:$0xff] }
 0x7d5   :  { %6782 = vmatprep.subr.bf16.mxu1 %v13420_v8  ;;  %14107 = vst [vmem:[#allocation110_spill] sm:$0xff] %v10789_v7  ;;  %14108 = vst [vmem:[#allocation111_spill] sm:$0xff] %v10792_v59 }
 0x7d7   :  { %6501 = vmatpush3.bf16.msra.mxu0 %v10327_v57  ;;  %v10634_v57 = vld [vmem:[#allocation3 + $0x18] sm:$0xff] }
 0x7d8   :  { %6783 = vmatpush3.bf16.msra.mxu1 %v14085_v56  ;;  %6502 = vmatprep.subr.bf16.mxu0 %v14086_v58  ;;  %v10795_v56 = vld [vmem:[#allocation3 + $0x3a8] sm:$0xff]  ;;  %v10798_v58 = vld [vmem:[#allocation3 + $0x3b8] sm:$0xff] }
 0x7d9   :  { %6784 = vmatprep.subr.bf16.mxu1 %v13420_v8  ;;  %14109 = vst [vmem:[#allocation112_spill] sm:$0xff] %v10795_v56  ;;  %14110 = vst [vmem:[#allocation113_spill] sm:$0xff] %v10798_v58 }
 0x7db   :  { %6503 = vmatpush3.bf16.msra.mxu0 %v10337_v44  ;;  %v10639_v44 = vld [vmem:[#allocation3] sm:$0xff] }
 0x7dc   :  { %6785 = vmatpush3.bf16.msra.mxu1 %v10340_v27  ;;  %6504 = vmatprep.subr.bf16.mxu0 %v10343_v48  ;;  %v10642_v48 = vld [vmem:[#allocation3 + $0x10] sm:$0xff]  ;;  %v10651_v27 = vld [vmem:[#allocation3 + $0x48] sm:$0xff] }
 0x7dd   :  { %6786 = vmatprep.subr.bf16.mxu1 %v13420_v8 }
 0x7df   :  { %6505 = vmatpush3.bf16.msra.mxu0 %v10347_v14  ;;  %v10648_v14 = vld [vmem:[#allocation3 + $0x60] sm:$0xff] }
 0x7e0   :  { %6787 = vmatpush3.bf16.msra.mxu1 %v10350_v9  ;;  %3944 = vmatprep.subr.bf16.mxu0 %v10631_v60  ;;  %v10645_v9 = vld [vmem:[#allocation3 + $0x50] sm:$0xff] }
 0x7e1   :  { %4026 = vmatprep.subr.bf16.mxu1 %v10634_v57 }
 0x7e2   :  { %3819 = vmatmul.mubr.bf16.vlgmr.msra.gmra.mrb[100].mxu0 %v10443_v31  ;;  %v10654_v31 = vld [vmem:[#allocation3 + $0x58] sm:$0xff] }
 0x7e3   :  { %6789 = vmatmul.mubr.bf16.vlgmr.msra.gmra.mrb[112].mxu1 %v10488_v37  ;;  %3945 = vmatpush1.bf16.msra.mxu0 %v10639_v44  ;;  %v10657_v37 = vld [vmem:[#allocation3 + $0x98] sm:$0xff] }
 0x7e4   :  { %4027 = vmatpush1.bf16.msra.mxu1 %v10642_v48  ;;  %3946 = vmatprep.subr.bf16.mxu0 %v10645_v9 }
 0x7e5   :  { %4028 = vmatprep.subr.bf16.mxu1 %v10648_v14 }
 0x7e7   :  { %3947 = vmatpush1.bf16.msra.mxu0 %v10651_v27 }
 0x7e8   :  { %4029 = vmatpush1.bf16.msra.mxu1 %v10654_v31  ;;  %3948 = vmatprep.subr.bf16.mxu0 %v10657_v37 }
 0x7e9   :  { %4030 = vmatprep.subr.bf16.mxu1 %v10660_v62 }
 0x7eb   :  { %3949 = vmatpush1.bf16.msra.mxu0 %v10663_v21 }
 0x7ec   :  { %4031 = vmatpush1.bf16.msra.mxu1 %v10666_v1  ;;  %3950 = vmatprep.subr.bf16.mxu0 %v10669_v2 }
 0x7ed   :  { %4032 = vmatprep.subr.bf16.mxu1 %v10672_v22 }
 0x7ef   :  { %3951 = vmatpush1.bf16.msra.mxu0 %v10675_v34 }
 0x7f0   :  { %4033 = vmatpush1.bf16.msra.mxu1 %v10678_v15  ;;  %3952 = vmatprep.subr.bf16.mxu0 %v10681_v25 }
 0x7f1   :  { %4034 = vmatprep.subr.bf16.mxu1 %v10684_v46 }
 0x7f3   :  { %3953 = vmatpush1.bf16.msra.mxu0 %v10687_v13 }
 0x7f4   :  { %4035 = vmatpush1.bf16.msra.mxu1 %v10690_v45  ;;  %3954 = vmatprep.subr.bf16.mxu0 %v10693_v23 }
 0x7f5   :  { %4036 = vmatprep.subr.bf16.mxu1 %v10696_v50 }
 0x7f7   :  { %3955 = vmatpush1.bf16.msra.mxu0 %v10699_v42 }
 0x7f8   :  { %4037 = vmatpush1.bf16.msra.mxu1 %v10702_v51  ;;  %3956 = vmatprep.subr.bf16.mxu0 %v10705_v39 }
 0x7f9   :  { %4038 = vmatprep.subr.bf16.mxu1 %v10708_v55 }
 0x7fb   :  { %3957 = vmatpush1.bf16.msra.mxu0 %v10711_v16 }
 0x7fc   :  { %4039 = vmatpush1.bf16.msra.mxu1 %v10714_v6  ;;  %3958 = vmatprep.subr.bf16.mxu0 %v10717_v54 }
 0x7fd   :  { %4040 = vmatprep.subr.bf16.mxu1 %v10720_v20 }
 0x7ff   :  { %3959 = vmatpush1.bf16.msra.mxu0 %v10723_v61 }
 0x800   :  { %4041 = vmatpush1.bf16.msra.mxu1 %v10726_v28  ;;  %3960 = vmatprep.subr.bf16.mxu0 %v10729_v10 }
 0x801   :  { %4042 = vmatprep.subr.bf16.mxu1 %v10732_v47 }
 0x803   :  { %3961 = vmatpush1.bf16.msra.mxu0 %v10735_v19 }
 0x804   :  { %4043 = vmatpush1.bf16.msra.mxu1 %v10738_v49  ;;  %3962 = vmatprep.subr.bf16.mxu0 %v10741_v4 }
 0x805   :  { %4044 = vmatprep.subr.bf16.mxu1 %v10744_v53 }
 0x807   :  { %3963 = vmatpush1.bf16.msra.mxu0 %v10747_v3 }
 0x808   :  { %4045 = vmatpush1.bf16.msra.mxu1 %v10750_v0  ;;  %3964 = vmatprep.subr.bf16.mxu0 %v10753_v18 }
 0x809   :  { %4046 = vmatprep.subr.bf16.mxu1 %v10756_v35  ;;  %v14122_v35 = vld [vmem:[#allocation43_spill] sm:$0xff] }
 0x80b   :  { %3965 = vmatpush1.bf16.msra.mxu0 %v10759_v5 }
 0x80c   :  { %4047 = vmatpush1.bf16.msra.mxu1 %v10762_v43  ;;  %3966 = vmatprep.subr.bf16.mxu0 %v10765_v52  ;;  %v14121_v43 = vld [vmem:[#allocation41_spill] sm:$0xff] }
 0x80d   :  { %4048 = vmatprep.subr.bf16.mxu1 %v10768_v33 }
 0x80f   :  { %3967 = vmatpush1.bf16.msra.mxu0 %v10771_v17 }
 0x810   :  { %4049 = vmatpush1.bf16.msra.mxu1 %v10774_v36  ;;  %3968 = vmatprep.subr.bf16.mxu0 %v10777_v38 }
 0x811   :  { %4050 = vmatprep.subr.bf16.mxu1 %v10780_v63 }
 0x813   :  { %3969 = vmatpush1.bf16.msra.mxu0 %v10783_v40  ;;  %v10801_v40 = vld [vmem:[#allocation3 + $0x3f8] sm:$0xff] }
 0x814   :  { %4051 = vmatpush1.bf16.msra.mxu1 %v10786_v12  ;;  %3970 = vmatprep.subr.bf16.mxu0 %v10789_v7  ;;  %14111 = vst [vmem:[#allocation114_spill] sm:$0xff] %v10801_v40  ;;  %v10804_v12 = vld [vmem:[#allocation3 + $0x408] sm:$0xff]  ;;  %v10807_v7 = vld [vmem:[#allocation3 + $0x3f0] sm:$0xff] }
 0x815   :  { %4052 = vmatprep.subr.bf16.mxu1 %v10792_v59  ;;  %14112 = vst [vmem:[#allocation29_spill] sm:$0xff] %v10804_v12  ;;  %14113 = vst [vmem:[#allocation31_spill] sm:$0xff] %v10807_v7  ;;  %v10810_v59 = vld [vmem:[#allocation3 + $0x400] sm:$0xff] }
 0x816   :  { %14114 = vst [vmem:[#allocation30_spill] sm:$0xff] %v10810_v59 }
 0x817   :  { %3971 = vmatpush1.bf16.msra.mxu0 %v10795_v56  ;;  %v10813_v56 = vld [vmem:[#allocation3 + $0x440] sm:$0xff] }
 0x818   :  { %4053 = vmatpush1.bf16.msra.mxu1 %v10798_v58  ;;  %3972 = vmatprep.subr.bf16.mxu0 %v10801_v40  ;;  %14115 = vst [vmem:[#allocation61_spill] sm:$0xff] %v10813_v56  ;;  %v10816_v58 = vld [vmem:[#allocation3 + $0x450] sm:$0xff]  ;;  %v10819_v40 = vld [vmem:[#allocation3 + $0x438] sm:$0xff] }
 0x819   :  { %4054 = vmatprep.subr.bf16.mxu1 %v10804_v12  ;;  %14116 = vst [vmem:[#allocation28_spill] sm:$0xff] %v10816_v58  ;;  %14117 = vst [vmem:[#allocation26_spill] sm:$0xff] %v10819_v40  ;;  %v10822_v12 = vld [vmem:[#allocation3 + $0x448] sm:$0xff] }
 0x81a   :  { %14118 = vst [vmem:[#allocation27_spill] sm:$0xff] %v10822_v12 }
 0x81b   :  { %3973 = vmatpush1.bf16.msra.mxu0 %v10807_v7  ;;  %v10825_v7 = vld [vmem:[#allocation3 + $0x488] sm:$0xff] }
 0x81c   :  { %4055 = vmatpush1.bf16.msra.mxu1 %v10810_v59  ;;  %3974 = vmatprep.subr.bf16.mxu0 %v10813_v56  ;;  %14119 = vst [vmem:[#allocation60_spill] sm:$0xff] %v10825_v7  ;;  %v10828_v59 = vld [vmem:[#allocation3 + $0x498] sm:$0xff] }
 0x81d   :  { %4056 = vmatprep.subr.bf16.mxu1 %v10816_v58  ;;  %14120 = vst [vmem:[#allocation62_spill] sm:$0xff] %v10828_v59 }
 0x81f   :  { %3975 = vmatpush1.bf16.msra.mxu0 %v10819_v40 }
 0x820   :  { %4057 = vmatpush1.bf16.msra.mxu1 %v10822_v12  ;;  %3985 = vmatprep.subr.bf16.mxu0 %v10825_v7 }
 0x821   :  { %4067 = vmatprep.subr.bf16.mxu1 %v10828_v59  ;;  %v14123_v59 = vld [vmem:[#allocation42_spill] sm:$0xff] }
 0x835   :  { %v3533_v56 = vpop.f32.mrb[92].mxu0  ;;  %v3615_v63 = vpop.f32.mrb[100].mxu1 }
 0x836   :  { %v3535_v38 = vpop.f32.mrb[93].mxu0  ;;  %v3617_v58 = vpop.f32.mrb[101].mxu1  ;;  %v3866_v5 = vadd.f32 %v3533_v56, %v14121_v43 }
 0x837   :  { %v3537_v36 = vpop.f32.mrb[94].mxu0  ;;  %v3619_v17 = vpop.f32.mrb[102].mxu1  ;;  %v3867_v18 = vadd.f32 %v3535_v38, %v14122_v35  ;;  %v3887_v4 = vadd.f32 %v3617_v58, %v14123_v59 }
 0x838   :  { %v3538_v33 = vpop.f32.mrb[95].mxu0  ;;  %v3620_v40 = vpop.f32.mrb[103].mxu1  ;;  %v6327_v3 = vmul.f32 -1.442695, %v3866_v5 }
 0x839   :  { %v6328_v53 = vmul.f32 -1.442695, %v3867_v18  ;;  %v6330_v36 = vmul.f32 -1.442695, %v3887_v4  ;;  %v14124_v40 = vld [vmem:[#allocation73_spill] sm:$0xff] }
 0x83a   :  { %7259 = vpow2.f32 %v6327_v3  ;;  %v14125_v3 = vld [vmem:[#allocation40_spill] sm:$0xff] }
 0x83b   :  { %7261 = vpow2.f32 %v6328_v53  ;;  %v3868_v53 = vadd.f32 %v3615_v63, %v14125_v3  ;;  %v14127_v63 = vld [vmem:[#allocation74_spill] sm:$0xff] }
 0x83c   :  { %7263 = vpow2.f32 %v6330_v36 }
 0x844   :  { %v7260_v49 = vpop.eup %7259 }
 0x845   :  { %v7262_v19 = vpop.eup %7261  ;;  %v3878_v17 = vadd.f32 1.0, %v7260_v49 }
 0x846   :  { %v3879_v33 = vadd.f32 1.0, %v7262_v19  ;;  %v7264_v4 = vpop.eup %7263 }
 0x847   :  { %7265 = vrcp.f32 %v3878_v17 }
 0x848   :  { %7267 = vrcp.f32 %v3879_v33 }
 0x851   :  { %v7266_v36 = vpop.eup %7265 }
 0x852   :  { %v7268_v33 = vpop.eup %7267 }
 0x876   :  { %v3738_v52 = vpop.f32.mrb[104].mxu1 }
 0x877   :  { %v3740_v12 = vpop.f32.mrb[105].mxu1 }
 0x878   :  { %v3742_v0 = vpop.f32.mrb[106].mxu1 }
 0x879   :  { %v3743_v7 = vpop.f32.mrb[107].mxu1 }
 0x895   :  { %v3697_v43 = vpop.f32.mrb[96].mxu0 }
 0x896   :  { %v3888_v56 = vadd.f32 %v3697_v43, %v14124_v40  ;;  %v3779_v35 = vpop.f32.mrb[108].mxu1  ;;  %v3699_v0 = vpop.f32.mrb[97].mxu0  ;;  %v6329_v40 = vmul.f32 -1.442695, %v3868_v53 }
 0x897   :  { %v3780_v38 = vadd.f32 %v3779_v35, %v3738_v52  ;;  %v3781_v5 = vpop.f32.mrb[109].mxu1  ;;  %v3701_v18 = vpop.f32.mrb[98].mxu0  ;;  %v3899_v35 = vadd.f32 1.0, %v7264_v4 }
 0x898   :  { %v6331_v7 = vmul.f32 -1.442695, %v3888_v56  ;;  %v3782_v59 = vadd.f32 %v3781_v5, %v3740_v12  ;;  %v3783_v58 = vpop.f32.mrb[110].mxu1  ;;  %v3702_v47 = vpop.f32.mrb[99].mxu0  ;;  %v14126_v18 = vld [vmem:[#allocation72_spill] sm:$0xff] }
 0x899   :  { %v3908_v19 = vadd.f32 %v3780_v38, %v13596_v26  ;;  %v3784_v49 = vpop.f32.mrb[111].mxu1 }
 0x89a   :  { %7269 = vpow2.f32 %v6331_v7  ;;  %v3909_v17 = vadd.f32 %v3782_v59, %v13597_v30  ;;  %v14128_v7 = vld [vmem:[#allocation75_spill] sm:$0xff] }
 0x89b   :  { %v3911_v43 = vmul.f32 %v7266_v36, %v3908_v19  ;;  %v3889_v59 = vadd.f32 %v3699_v0, %v14128_v7 }
 0x89c   :  { %v3912_v52 = vmul.f32 %v7268_v33, %v3909_v17 }
 0x89d   :  { %v3914_v10 = vadd.f32 %v3911_v43, %v14126_v18  ;;  %v6332_v49 = vmul.f32 -1.442695, %v3889_v59 }
 0x89e   :  { %v3915_v12 = vadd.f32 %v3912_v52, %v14127_v63 }
 0x89f   :  { %7271 = vtanh.f32 %v3914_v10 }
 0x8a0   :  { %7273 = vpow2.f32 %v6329_v40 }
 0x8a1   :  { %7275 = vrcp.f32 %v3899_v35 }
 0x8a2   :  { %7277 = vtanh.f32 %v3915_v12 }
 0x8a4   :  { %v7270_v47 = vpop.eup %7269 }
 0x8a5   :  { %v3900_v56 = vadd.f32 1.0, %v7270_v47 }
 0x8a7   :  { %7279 = vrcp.f32 %v3900_v56 }
 0x8a9   :  { %v7272_v38 = vpop.eup %7271 }
 0x8aa   :  { %v7274_v5 = vpop.eup %7273  ;;  %v3920_v3 = vsub.f32 %v10432_v29, %v7272_v38 }
 0x8ab   :  { %v7276_v53 = vpop.eup %7275  ;;  %v3880_v19 = vadd.f32 1.0, %v7274_v5  ;;  %v10859_v5 = vld [vmem:[#allocation3 + $0x480] sm:$0xff] }
 0x8ac   :  { %v3923_v58 = vmul.f32 %v7276_v53, %v3920_v3  ;;  %v7278_v4 = vpop.eup %7277  ;;  %v10862_v3 = vld [vmem:[#allocation3 + $0x490] sm:$0xff] }
 0x8ad   :  { %v3921_v36 = vsub.f32 %v10435_v32, %v7278_v4  ;;  %7281 = vrcp.f32 %v3880_v19  ;;  %v10866_v53 = vld [vmem:[#allocation3 + $0x4d0] sm:$0xff] }
 0x8ae   :  { %v10842_v10 = vadd.f32 %v7272_v38, %v3923_v58  ;;  %7283 = vpow2.f32 %v6332_v49  ;;  %v10869_v58 = vld [vmem:[#allocation3 + $0x4e0] sm:$0xff]  ;;  %v10874_v49 = vld [vmem:[#allocation3 + $0x4c8] sm:$0xff] }
 0x8b0   :  { %v10853_v12 = vpack.c.bf16 %v10842_v10, %v10842_v10 }
 0x8b1   :  { %v7280_v17 = vpop.eup %7279 }
 0x8b2   :  { %v3924_v33 = vmul.f32 %v7280_v17, %v3921_v36  ;;  %v10877_v36 = vld [vmem:[#allocation3 + $0x4d8] sm:$0xff] }
 0x8b4   :  { %v10845_v43 = vadd.f32 %v7278_v4, %v3924_v33  ;;  %v14129_v33 = vld [vmem:[#allocation94_spill] sm:$0xff] }
 0x8b5   :  { %v6506_v40 = vpop.f32.mrb[100].mxu0 }
 0x8b6   :  { %v3860_v52 = vpop.f32.mrb[112].mxu1  ;;  %v6507_v29 = vpop.f32.mrb[101].mxu0  ;;  %v10849_v0 = vpack.c.bf16 %v10845_v43, %v10845_v43 }
 0x8b7   :  { %v6508_v35 = vadd.f32 %v6507_v29, %v6506_v40  ;;  %v6790_v18 = vpop.f32.mrb[113].mxu1  ;;  %v6509_v63 = vpop.f32.mrb[102].mxu0  ;;  %v10884_v29 = vld [vmem:[#allocation3 + $0x528] sm:$0xff] }
 0x8b8   :  { %v3863_v32 = vpop.f32.mrb[114].mxu1  ;;  %v6510_v47 = vpop.f32.mrb[103].mxu0  ;;  %3976 = vmatprep.mubr.bf16.mxu0 %v10849_v0  ;;  %4058 = vmatprep.mubr.bf16.mxu1 %v10849_v0  ;;  %v10890_v18 = vld [vmem:[#allocation3 + $0x520] sm:$0xff] }
 0x8b9   :  { %v3861_v56 = vadd.f32 %v6508_v35, %v3860_v52  ;;  %v6791_v38 = vpop.f32.mrb[115].mxu1  ;;  %3977 = vmatmul.mubr.bf16.vlgmr.msra.gmra.mrb[104].mxu0 %v10853_v12  ;;  %4059 = vmatmul.mubr.bf16.vlgmr.msra.gmra.mrb[116].mxu1 %v10853_v12  ;;  %v7282_v7 = vpop.eup %7281  ;;  %v10881_v52 = vld [vmem:[#allocation3 + $0x518] sm:$0xff]  ;;  %v10887_v35 = vld [vmem:[#allocation3 + $0x510] sm:$0xff]  ;;  %v10893_v63 = vld [vmem:[#allocation3 + $0x560] sm:$0xff] }
 0x8ba   :  { %3986 = vmatpush1.bf16.msra.mxu0 %v10859_v5  ;;  %4068 = vmatpush1.bf16.msra.mxu1 %v10862_v3  ;;  %v7284_v4 = vpop.eup %7283  ;;  %v10896_v32 = vld [vmem:[#allocation3 + $0x570] sm:$0xff]  ;;  %v10899_v47 = vld [vmem:[#allocation3 + $0x558] sm:$0xff]  ;;  %v10905_v38 = vld [vmem:[#allocation3 + $0x5a8] sm:$0xff] }
 0x8bb   :  { %v3910_v59 = vadd.f32 %v3861_v56, %v13603_v11  ;;  %3987 = vmatprep.subr.bf16.mxu0 %v10866_v53  ;;  %4069 = vmatprep.subr.bf16.mxu1 %v10869_v58  ;;  %v3901_v17 = vadd.f32 1.0, %v7284_v4  ;;  %v10902_v56 = vld [vmem:[#allocation3 + $0x568] sm:$0xff]  ;;  %14131 = vst [vmem:[#allocation115_spill] sm:$0xff] %v10905_v38  ;;  %v10914_v4 = vld [vmem:[#allocation3 + $0x5b0] sm:$0xff] }
 0x8bc   :  { %4017 = vmatprep.mubr.bf16.mxu0 %v13424_v24  ;;  %4099 = vmatprep.mubr.bf16.mxu1 %v13424_v24  ;;  %14130 = vst [vmem:[#allocation63_spill] sm:$0xff] %v10902_v56  ;;  %14134 = vst [vmem:[#allocation117_spill] sm:$0xff] %v10914_v4 }
 0x8bd   :  { %v3913_v19 = vmul.f32 %v7282_v7, %v3910_v59  ;;  %v10908_v7 = vld [vmem:[#allocation3 + $0x5b8] sm:$0xff]  ;;  %v10911_v59 = vld [vmem:[#allocation3 + $0x5a0] sm:$0xff] }
 0x8be   :  { %3988 = vmatpush1.bf16.msra.mxu0 %v10874_v49  ;;  %4070 = vmatpush1.bf16.msra.mxu1 %v10877_v36  ;;  %14132 = vst [vmem:[#allocation116_spill] sm:$0xff] %v10908_v7  ;;  %14133 = vst [vmem:[#allocation25_spill] sm:$0xff] %v10911_v59 }
 0x8bf   :  { %v3916_v40 = vadd.f32 %v3913_v19, %v14129_v33  ;;  %3989 = vmatprep.subr.bf16.mxu0 %v10881_v52  ;;  %4071 = vmatprep.subr.bf16.mxu1 %v10884_v29  ;;  %v10920_v33 = vld [vmem:[#allocation3 + $0x600] sm:$0xff] }
 0x8c0   :  { %14136 = vst [vmem:[#allocation119_spill] sm:$0xff] %v10920_v33 }
 0x8c1   :  { %7285 = vtanh.f32 %v3916_v40 }
 0x8c2   :  { %3990 = vmatpush1.bf16.msra.mxu0 %v10887_v35  ;;  %4072 = vmatpush1.bf16.msra.mxu1 %v10890_v18  ;;  %7287 = vrcp.f32 %v3901_v17  ;;  %v10917_v17 = vld [vmem:[#allocation3 + $0x5f0] sm:$0xff] }
 0x8c3   :  { %3991 = vmatprep.subr.bf16.mxu0 %v10893_v63  ;;  %4073 = vmatprep.subr.bf16.mxu1 %v10896_v32  ;;  %14135 = vst [vmem:[#allocation118_spill] sm:$0xff] %v10917_v17 }
 0x8c6   :  { %3992 = vmatpush1.bf16.msra.mxu0 %v10899_v47  ;;  %4074 = vmatpush1.bf16.msra.mxu1 %v10902_v56  ;;  %v10930_v56 = vld [vmem:[#allocation3 + $0x638] sm:$0xff] }
 0x8c7   :  { %3993 = vmatprep.subr.bf16.mxu0 %v10905_v38  ;;  %4075 = vmatprep.subr.bf16.mxu1 %v10908_v7  ;;  %v10924_v38 = vld [vmem:[#allocation3 + $0x5e8] sm:$0xff] }
 0x8c8   :  { %14137 = vst [vmem:[#allocation120_spill] sm:$0xff] %v10924_v38 }
 0x8ca   :  { %3994 = vmatpush1.bf16.msra.mxu0 %v10911_v59  ;;  %4076 = vmatpush1.bf16.msra.mxu1 %v10914_v4  ;;  %v10927_v59 = vld [vmem:[#allocation3 + $0x5f8] sm:$0xff] }
 0x8cb   :  { %v7286_v19 = vpop.eup %7285  ;;  %3995 = vmatprep.subr.bf16.mxu0 %v10917_v17  ;;  %4077 = vmatprep.subr.bf16.mxu1 %v10920_v33  ;;  %14138 = vst [vmem:[#allocation93_spill] sm:$0xff] %v10927_v59  ;;  %v10933_v17 = vld [vmem:[#allocation3 + $0x648] sm:$0xff] }
 0x8cc   :  { %v3922_v40 = vsub.f32 %v10478_v41, %v7286_v19  ;;  %v7288_v7 = vpop.eup %7287  ;;  %v10938_v41 = vld [vmem:[#allocation3 + $0x630] sm:$0xff] }
 0x8cd   :  { %14139 = vst [vmem:[#allocation121_spill] sm:$0xff] %v10938_v41 }
 0x8ce   :  { %3996 = vmatpush1.bf16.msra.mxu0 %v10924_v38  ;;  %4078 = vmatpush1.bf16.msra.mxu1 %v10927_v59  ;;  %v3925_v4 = vmul.f32 %v7288_v7, %v3922_v40  ;;  %v10941_v38 = vld [vmem:[#allocation3 + $0x640] sm:$0xff]  ;;  %v10947_v7 = vld [vmem:[#allocation3 + $0x690] sm:$0xff]  ;;  %v10950_v40 = vld [vmem:[#allocation3 + $0x678] sm:$0xff] }
 0x8cf   :  { %3997 = vmatprep.subr.bf16.mxu0 %v10930_v56  ;;  %4079 = vmatprep.subr.bf16.mxu1 %v10933_v17  ;;  %14140 = vst [vmem:[#allocation122_spill] sm:$0xff] %v10941_v38  ;;  %v10944_v59 = vld [vmem:[#allocation3 + $0x680] sm:$0xff]  ;;  %14142 = vst [vmem:[#allocation124_spill] sm:$0xff] %v10947_v7 }
 0x8d0   :  { %v10936_v33 = vadd.f32 %v7286_v19, %v3925_v4  ;;  %14141 = vst [vmem:[#allocation123_spill] sm:$0xff] %v10944_v59  ;;  %14143 = vst [vmem:[#allocation37_spill] sm:$0xff] %v10950_v40  ;;  %v10953_v4 = vld [vmem:[#allocation3 + $0x688] sm:$0xff] }
 0x8d1   :  { %14144 = vst [vmem:[#allocation39_spill] sm:$0xff] %v10953_v4 }
 0x8d2   :  { %3998 = vmatpush1.bf16.msra.mxu0 %v10938_v41  ;;  %4080 = vmatpush1.bf16.msra.mxu1 %v10941_v38  ;;  %v10958_v19 = vpack.c.bf16 %v10936_v33, %v10936_v33  ;;  %v10960_v38 = vld [vmem:[#allocation3 + $0x28] sm:$0xff]  ;;  %v10988_v41 = vld [vmem:[#allocation3 + $0xb8] sm:$0xff] }
 0x8d3   :  { %3999 = vmatprep.subr.bf16.mxu0 %v10944_v59  ;;  %4081 = vmatprep.subr.bf16.mxu1 %v10947_v7  ;;  %14145 = vst [vmem:[#allocation38_spill] sm:$0xff] %v10960_v38  ;;  %v10963_v59 = vld [vmem:[#allocation3 + $0x38] sm:$0xff]  ;;  %v10982_v7 = vld [vmem:[#allocation3 + $0x68] sm:$0xff]  ;;  %14153 = vst [vmem:[#allocation126_spill] sm:$0xff] %v10988_v41 }
 0x8d4   :  { %14146 = vst [vmem:[#allocation69_spill] sm:$0xff] %v10963_v59  ;;  %14151 = vst [vmem:[#allocation92_spill] sm:$0xff] %v10982_v7 }
 0x8d6   :  { %4000 = vmatpush1.bf16.msra.mxu0 %v10950_v40  ;;  %4082 = vmatpush1.bf16.msra.mxu1 %v10953_v4  ;;  %v10968_v40 = vld [vmem:[#allocation3 + $0x20] sm:$0xff]  ;;  %v10972_v4 = vld [vmem:[#allocation3 + $0x30] sm:$0xff] }
 0x8d7   :  { %4108 = vmatprep.subr.bf16.mxu0 %v10960_v38  ;;  %4190 = vmatprep.subr.bf16.mxu1 %v10963_v59  ;;  %14147 = vst [vmem:[#allocation36_spill] sm:$0xff] %v10968_v40  ;;  %14148 = vst [vmem:[#allocation68_spill] sm:$0xff] %v10972_v4  ;;  %v10976_v38 = vld [vmem:[#allocation3 + $0x70] sm:$0xff]  ;;  %v10979_v59 = vld [vmem:[#allocation3 + $0x80] sm:$0xff] }
 0x8d8   :  { %14149 = vst [vmem:[#allocation70_spill] sm:$0xff] %v10976_v38  ;;  %14150 = vst [vmem:[#allocation71_spill] sm:$0xff] %v10979_v59 }
 0x8d9   :  { %4018 = vmatmul.mubr.bf16.vlgmr.msra.gmra.mrb[104].mxu0 %v10958_v19  ;;  %4100 = vmatmul.mubr.bf16.vlgmr.msra.gmra.mrb[116].mxu1 %v10958_v19 }
 0x8da   :  { %4109 = vmatpush1.bf16.msra.mxu0 %v10968_v40  ;;  %4140 = vmatprep.mubr.bf16.mxu0 %v10849_v0  ;;  %v10985_v40 = vld [vmem:[#allocation3 + $0x78] sm:$0xff] }
 0x8db   :  { %4191 = vmatpush1.bf16.msra.mxu1 %v10972_v4  ;;  %4222 = vmatprep.mubr.bf16.mxu1 %v10849_v0  ;;  %14152 = vst [vmem:[#allocation125_spill] sm:$0xff] %v10985_v40  ;;  %v10991_v4 = vld [vmem:[#allocation3 + $0xc8] sm:$0xff] }
 0x8dc   :  { %4110 = vmatprep.subr.bf16.mxu0 %v10976_v38  ;;  %4192 = vmatprep.subr.bf16.mxu1 %v10979_v59  ;;  %14154 = vst [vmem:[#allocation127_spill] sm:$0xff] %v10991_v4  ;;  %v10994_v38 = vld [vmem:[#allocation3 + $0xb0] sm:$0xff]  ;;  %v10997_v59 = vld [vmem:[#allocation3 + $0xc0] sm:$0xff] }
 0x8dd   :  { %14155 = vst [vmem:[#allocation128_spill] sm:$0xff] %v10994_v38  ;;  %14156 = vst [vmem:[#allocation129_spill] sm:$0xff] %v10997_v59 }
 0x8de   :  { %4111 = vmatpush1.bf16.msra.mxu0 %v10982_v7  ;;  %v11000_v7 = vld [vmem:[#allocation3 + $0x100] sm:$0xff] }
 0x8df   :  { %4193 = vmatpush1.bf16.msra.mxu1 %v10985_v40  ;;  %4112 = vmatprep.subr.bf16.mxu0 %v10988_v41  ;;  %14157 = vst [vmem:[#allocation130_spill] sm:$0xff] %v11000_v7  ;;  %v11003_v40 = vld [vmem:[#allocation3 + $0x110] sm:$0xff]  ;;  %v11006_v41 = vld [vmem:[#allocation3 + $0xf8] sm:$0xff] }
 0x8e0   :  { %4194 = vmatprep.subr.bf16.mxu1 %v10991_v4  ;;  %14158 = vst [vmem:[#allocation131_spill] sm:$0xff] %v11003_v40  ;;  %14159 = vst [vmem:[#allocation132_spill] sm:$0xff] %v11006_v41  ;;  %v11009_v4 = vld [vmem:[#allocation3 + $0x108] sm:$0xff] }
 0x8e1   :  { %14160 = vst [vmem:[#allocation133_spill] sm:$0xff] %v11009_v4 }
 0x8e2   :  { %4113 = vmatpush1.bf16.msra.mxu0 %v10994_v38  ;;  %v11012_v38 = vld [vmem:[#allocation3 + $0x148] sm:$0xff] }
 0x8e3   :  { %4195 = vmatpush1.bf16.msra.mxu1 %v10997_v59  ;;  %4114 = vmatprep.subr.bf16.mxu0 %v11000_v7  ;;  %14161 = vst [vmem:[#allocation134_spill] sm:$0xff] %v11012_v38  ;;  %v11015_v59 = vld [vmem:[#allocation3 + $0x158] sm:$0xff]  ;;  %v11018_v7 = vld [vmem:[#allocation3 + $0x140] sm:$0xff] }
 0x8e4   :  { %4196 = vmatprep.subr.bf16.mxu1 %v11003_v40  ;;  %14162 = vst [vmem:[#allocation135_spill] sm:$0xff] %v11015_v59  ;;  %14163 = vst [vmem:[#allocation136_spill] sm:$0xff] %v11018_v7  ;;  %v11021_v40 = vld [vmem:[#allocation3 + $0x150] sm:$0xff] }
 0x8e5   :  { %14164 = vst [vmem:[#allocation137_spill] sm:$0xff] %v11021_v40 }
 0x8e6   :  { %4115 = vmatpush1.bf16.msra.mxu0 %v11006_v41  ;;  %v11024_v41 = vld [vmem:[#allocation3 + $0x190] sm:$0xff] }
 0x8e7   :  { %4197 = vmatpush1.bf16.msra.mxu1 %v11009_v4  ;;  %4116 = vmatprep.subr.bf16.mxu0 %v11012_v38  ;;  %14165 = vst [vmem:[#allocation138_spill] sm:$0xff] %v11024_v41  ;;  %v11027_v4 = vld [vmem:[#allocation3 + $0x1a0] sm:$0xff]  ;;  %v11030_v38 = vld [vmem:[#allocation3 + $0x188] sm:$0xff] }
 0x8e8   :  { %4198 = vmatprep.subr.bf16.mxu1 %v11015_v59  ;;  %14166 = vst [vmem:[#allocation139_spill] sm:$0xff] %v11027_v4  ;;  %14167 = vst [vmem:[#allocation140_spill] sm:$0xff] %v11030_v38  ;;  %v11033_v59 = vld [vmem:[#allocation3 + $0x198] sm:$0xff] }
 0x8e9   :  { %14168 = vst [vmem:[#allocation141_spill] sm:$0xff] %v11033_v59 }
 0x8ea   :  { %4117 = vmatpush1.bf16.msra.mxu0 %v11018_v7  ;;  %v11036_v7 = vld [vmem:[#allocation3 + $0x1d8] sm:$0xff] }
 0x8eb   :  { %4199 = vmatpush1.bf16.msra.mxu1 %v11021_v40  ;;  %4118 = vmatprep.subr.bf16.mxu0 %v11024_v41  ;;  %14169 = vst [vmem:[#allocation142_spill] sm:$0xff] %v11036_v7  ;;  %v11039_v40 = vld [vmem:[#allocation3 + $0x1e8] sm:$0xff]  ;;  %v11042_v41 = vld [vmem:[#allocation3 + $0x1d0] sm:$0xff] }
 0x8ec   :  { %4200 = vmatprep.subr.bf16.mxu1 %v11027_v4  ;;  %14170 = vst [vmem:[#allocation143_spill] sm:$0xff] %v11039_v40  ;;  %14171 = vst [vmem:[#allocation144_spill] sm:$0xff] %v11042_v41  ;;  %v11045_v4 = vld [vmem:[#allocation3 + $0x1e0] sm:$0xff] }
 0x8ed   :  { %14172 = vst [vmem:[#allocation145_spill] sm:$0xff] %v11045_v4 }
 0x8ee   :  { %4119 = vmatpush1.bf16.msra.mxu0 %v11030_v38  ;;  %v11048_v38 = vld [vmem:[#allocation3 + $0x220] sm:$0xff] }
 0x8ef   :  { %4201 = vmatpush1.bf16.msra.mxu1 %v11033_v59  ;;  %4120 = vmatprep.subr.bf16.mxu0 %v11036_v7  ;;  %14173 = vst [vmem:[#allocation146_spill] sm:$0xff] %v11048_v38  ;;  %v11051_v59 = vld [vmem:[#allocation3 + $0x230] sm:$0xff]  ;;  %v11054_v7 = vld [vmem:[#allocation3 + $0x218] sm:$0xff] }
 0x8f0   :  { %4202 = vmatprep.subr.bf16.mxu1 %v11039_v40  ;;  %14174 = vst [vmem:[#allocation147_spill] sm:$0xff] %v11051_v59  ;;  %14175 = vst [vmem:[#allocation148_spill] sm:$0xff] %v11054_v7  ;;  %v11057_v40 = vld [vmem:[#allocation3 + $0x228] sm:$0xff] }
 0x8f1   :  { %14176 = vst [vmem:[#allocation149_spill] sm:$0xff] %v11057_v40 }
 0x8f2   :  { %4121 = vmatpush1.bf16.msra.mxu0 %v11042_v41  ;;  %v11060_v41 = vld [vmem:[#allocation3 + $0x268] sm:$0xff] }
 0x8f3   :  { %4203 = vmatpush1.bf16.msra.mxu1 %v11045_v4  ;;  %4122 = vmatprep.subr.bf16.mxu0 %v11048_v38  ;;  %14177 = vst [vmem:[#allocation150_spill] sm:$0xff] %v11060_v41  ;;  %v11063_v4 = vld [vmem:[#allocation3 + $0x278] sm:$0xff]  ;;  %v11066_v38 = vld [vmem:[#allocation3 + $0x260] sm:$0xff] }
 0x8f4   :  { %4204 = vmatprep.subr.bf16.mxu1 %v11051_v59  ;;  %14178 = vst [vmem:[#allocation151_spill] sm:$0xff] %v11063_v4  ;;  %14179 = vst [vmem:[#allocation152_spill] sm:$0xff] %v11066_v38  ;;  %v11069_v59 = vld [vmem:[#allocation3 + $0x270] sm:$0xff] }
 0x8f5   :  { %14180 = vst [vmem:[#allocation153_spill] sm:$0xff] %v11069_v59 }
 0x8f6   :  { %4123 = vmatpush1.bf16.msra.mxu0 %v11054_v7  ;;  %v11072_v7 = vld [vmem:[#allocation3 + $0x2b0] sm:$0xff] }
 0x8f7   :  { %4205 = vmatpush1.bf16.msra.mxu1 %v11057_v40  ;;  %4124 = vmatprep.subr.bf16.mxu0 %v11060_v41  ;;  %14181 = vst [vmem:[#allocation154_spill] sm:$0xff] %v11072_v7  ;;  %v11075_v40 = vld [vmem:[#allocation3 + $0x2c0] sm:$0xff]  ;;  %v11078_v41 = vld [vmem:[#allocation3 + $0x2a8] sm:$0xff] }
 0x8f8   :  { %4206 = vmatprep.subr.bf16.mxu1 %v11063_v4  ;;  %14182 = vst [vmem:[#allocation155_spill] sm:$0xff] %v11075_v40  ;;  %14183 = vst [vmem:[#allocation156_spill] sm:$0xff] %v11078_v41  ;;  %v11081_v4 = vld [vmem:[#allocation3 + $0x2b8] sm:$0xff] }
 0x8f9   :  { %14184 = vst [vmem:[#allocation157_spill] sm:$0xff] %v11081_v4 }
 0x8fa   :  { %4125 = vmatpush1.bf16.msra.mxu0 %v11066_v38  ;;  %v11084_v38 = vld [vmem:[#allocation3 + $0x2f8] sm:$0xff] }
 0x8fb   :  { %4207 = vmatpush1.bf16.msra.mxu1 %v11069_v59  ;;  %4126 = vmatprep.subr.bf16.mxu0 %v11072_v7  ;;  %14185 = vst [vmem:[#allocation158_spill] sm:$0xff] %v11084_v38  ;;  %v11087_v59 = vld [vmem:[#allocation3 + $0x308] sm:$0xff]  ;;  %v11090_v7 = vld [vmem:[#allocation3 + $0x2f0] sm:$0xff] }
 0x8fc   :  { %4208 = vmatprep.subr.bf16.mxu1 %v11075_v40  ;;  %14186 = vst [vmem:[#allocation159_spill] sm:$0xff] %v11087_v59  ;;  %14187 = vst [vmem:[#allocation160_spill] sm:$0xff] %v11090_v7  ;;  %v11093_v40 = vld [vmem:[#allocation3 + $0x300] sm:$0xff] }
 0x8fd   :  { %14188 = vst [vmem:[#allocation161_spill] sm:$0xff] %v11093_v40 }
 0x8fe   :  { %4127 = vmatpush1.bf16.msra.mxu0 %v11078_v41  ;;  %v11096_v41 = vld [vmem:[#allocation3 + $0x340] sm:$0xff] }
 0x8ff   :  { %4209 = vmatpush1.bf16.msra.mxu1 %v11081_v4  ;;  %4128 = vmatprep.subr.bf16.mxu0 %v11084_v38  ;;  %14189 = vst [vmem:[#allocation162_spill] sm:$0xff] %v11096_v41  ;;  %v11099_v4 = vld [vmem:[#allocation3 + $0x350] sm:$0xff]  ;;  %v11102_v38 = vld [vmem:[#allocation3 + $0x338] sm:$0xff] }
 0x900   :  { %4210 = vmatprep.subr.bf16.mxu1 %v11087_v59  ;;  %14190 = vst [vmem:[#allocation163_spill] sm:$0xff] %v11099_v4  ;;  %14191 = vst [vmem:[#allocation164_spill] sm:$0xff] %v11102_v38  ;;  %v11105_v59 = vld [vmem:[#allocation3 + $0x348] sm:$0xff] }
 0x901   :  { %14192 = vst [vmem:[#allocation165_spill] sm:$0xff] %v11105_v59 }
 0x902   :  { %4129 = vmatpush1.bf16.msra.mxu0 %v11090_v7  ;;  %v11108_v7 = vld [vmem:[#allocation3 + $0x388] sm:$0xff] }
 0x903   :  { %4211 = vmatpush1.bf16.msra.mxu1 %v11093_v40  ;;  %4130 = vmatprep.subr.bf16.mxu0 %v11096_v41  ;;  %14193 = vst [vmem:[#allocation166_spill] sm:$0xff] %v11108_v7  ;;  %v11111_v40 = vld [vmem:[#allocation3 + $0x398] sm:$0xff]  ;;  %v11114_v41 = vld [vmem:[#allocation3 + $0x380] sm:$0xff] }
 0x904   :  { %4212 = vmatprep.subr.bf16.mxu1 %v11099_v4  ;;  %14194 = vst [vmem:[#allocation167_spill] sm:$0xff] %v11111_v40  ;;  %14195 = vst [vmem:[#allocation168_spill] sm:$0xff] %v11114_v41  ;;  %v11117_v4 = vld [vmem:[#allocation3 + $0x390] sm:$0xff] }
 0x905   :  { %14196 = vst [vmem:[#allocation169_spill] sm:$0xff] %v11117_v4 }
 0x906   :  { %4131 = vmatpush1.bf16.msra.mxu0 %v11102_v38  ;;  %v11120_v38 = vld [vmem:[#allocation3 + $0x3d0] sm:$0xff] }
 0x907   :  { %4213 = vmatpush1.bf16.msra.mxu1 %v11105_v59  ;;  %4132 = vmatprep.subr.bf16.mxu0 %v11108_v7  ;;  %14197 = vst [vmem:[#allocation170_spill] sm:$0xff] %v11120_v38  ;;  %v11123_v59 = vld [vmem:[#allocation3 + $0x3e0] sm:$0xff]  ;;  %v11126_v7 = vld [vmem:[#allocation3 + $0x3c8] sm:$0xff] }
 0x908   :  { %4214 = vmatprep.subr.bf16.mxu1 %v11111_v40  ;;  %14198 = vst [vmem:[#allocation171_spill] sm:$0xff] %v11123_v59  ;;  %14199 = vst [vmem:[#allocation172_spill] sm:$0xff] %v11126_v7  ;;  %v11129_v40 = vld [vmem:[#allocation3 + $0x3d8] sm:$0xff] }
 0x909   :  { %14200 = vst [vmem:[#allocation173_spill] sm:$0xff] %v11129_v40 }
 0x90a   :  { %4133 = vmatpush1.bf16.msra.mxu0 %v11114_v41  ;;  %v11132_v41 = vld [vmem:[#allocation3 + $0x418] sm:$0xff] }
 0x90b   :  { %4215 = vmatpush1.bf16.msra.mxu1 %v11117_v4  ;;  %4134 = vmatprep.subr.bf16.mxu0 %v11120_v38  ;;  %14201 = vst [vmem:[#allocation174_spill] sm:$0xff] %v11132_v41  ;;  %v11135_v4 = vld [vmem:[#allocation3 + $0x428] sm:$0xff]  ;;  %v11138_v38 = vld [vmem:[#allocation3 + $0x410] sm:$0xff] }
 0x90c   :  { %4216 = vmatprep.subr.bf16.mxu1 %v11123_v59  ;;  %14202 = vst [vmem:[#allocation175_spill] sm:$0xff] %v11135_v4  ;;  %14203 = vst [vmem:[#allocation176_spill] sm:$0xff] %v11138_v38  ;;  %v11141_v59 = vld [vmem:[#allocation3 + $0x420] sm:$0xff] }
 0x90d   :  { %14204 = vst [vmem:[#allocation177_spill] sm:$0xff] %v11141_v59 }
 0x90e   :  { %4135 = vmatpush1.bf16.msra.mxu0 %v11126_v7  ;;  %v11144_v7 = vld [vmem:[#allocation3 + $0x460] sm:$0xff] }
 0x90f   :  { %4217 = vmatpush1.bf16.msra.mxu1 %v11129_v40  ;;  %4136 = vmatprep.subr.bf16.mxu0 %v11132_v41  ;;  %14205 = vst [vmem:[#allocation178_spill] sm:$0xff] %v11144_v7  ;;  %v11147_v40 = vld [vmem:[#allocation3 + $0x470] sm:$0xff]  ;;  %v11150_v41 = vld [vmem:[#allocation3 + $0x458] sm:$0xff] }
 0x910   :  { %4218 = vmatprep.subr.bf16.mxu1 %v11135_v4  ;;  %14206 = vst [vmem:[#allocation179_spill] sm:$0xff] %v11147_v40  ;;  %14207 = vst [vmem:[#allocation180_spill] sm:$0xff] %v11150_v41  ;;  %v11153_v4 = vld [vmem:[#allocation3 + $0x468] sm:$0xff] }
 0x911   :  { %14208 = vst [vmem:[#allocation181_spill] sm:$0xff] %v11153_v4 }
 0x912   :  { %4137 = vmatpush1.bf16.msra.mxu0 %v11138_v38  ;;  %v11156_v38 = vld [vmem:[#allocation3 + $0x4a8] sm:$0xff] }
 0x913   :  { %4219 = vmatpush1.bf16.msra.mxu1 %v11141_v59  ;;  %4138 = vmatprep.subr.bf16.mxu0 %v11144_v7  ;;  %14209 = vst [vmem:[#allocation182_spill] sm:$0xff] %v11156_v38  ;;  %v11159_v59 = vld [vmem:[#allocation3 + $0x4b8] sm:$0xff]  ;;  %v11193_v7 = vld [vmem:[#allocation3 + $0x540] sm:$0xff] }
 0x914   :  { %4220 = vmatprep.subr.bf16.mxu1 %v11147_v40  ;;  %14210 = vst [vmem:[#allocation183_spill] sm:$0xff] %v11159_v59  ;;  %v11164_v40 = vld [vmem:[#allocation3 + $0x4a0] sm:$0xff]  ;;  %14220 = vst [vmem:[#allocation193_spill] sm:$0xff] %v11193_v7 }
 0x915   :  { %14211 = vst [vmem:[#allocation184_spill] sm:$0xff] %v11164_v40 }
 0x916   :  { %4139 = vmatpush1.bf16.msra.mxu0 %v11150_v41  ;;  %v11167_v41 = vld [vmem:[#allocation3 + $0x4b0] sm:$0xff] }
 0x917   :  { %4221 = vmatpush1.bf16.msra.mxu1 %v11153_v4  ;;  %4149 = vmatprep.subr.bf16.mxu0 %v11156_v38  ;;  %14212 = vst [vmem:[#allocation185_spill] sm:$0xff] %v11167_v41  ;;  %v11170_v4 = vld [vmem:[#allocation3 + $0x4f0] sm:$0xff]  ;;  %v11173_v38 = vld [vmem:[#allocation3 + $0x500] sm:$0xff] }
 0x918   :  { %4231 = vmatprep.subr.bf16.mxu1 %v11159_v59  ;;  %14213 = vst [vmem:[#allocation186_spill] sm:$0xff] %v11170_v4  ;;  %14214 = vst [vmem:[#allocation187_spill] sm:$0xff] %v11173_v38  ;;  %v11178_v59 = vld [vmem:[#allocation3 + $0x4e8] sm:$0xff] }
 0x919   :  { %4141 = vmatmul.mubr.bf16.vlgmr.msra.gmra.mrb[108].mxu0 %v10853_v12  ;;  %14215 = vst [vmem:[#allocation188_spill] sm:$0xff] %v11178_v59 }
 0x91a   :  { %4223 = vmatmul.mubr.bf16.vlgmr.msra.gmra.mrb[120].mxu1 %v10853_v12  ;;  %4150 = vmatpush1.bf16.msra.mxu0 %v11164_v40  ;;  %v11181_v40 = vld [vmem:[#allocation3 + $0x4f8] sm:$0xff] }
 0x91b   :  { %4232 = vmatpush1.bf16.msra.mxu1 %v11167_v41  ;;  %4151 = vmatprep.subr.bf16.mxu0 %v11170_v4  ;;  %14216 = vst [vmem:[#allocation189_spill] sm:$0xff] %v11181_v40  ;;  %v11184_v41 = vld [vmem:[#allocation3 + $0x538] sm:$0xff]  ;;  %v11187_v4 = vld [vmem:[#allocation3 + $0x548] sm:$0xff] }
 0x91c   :  { %4233 = vmatprep.subr.bf16.mxu1 %v11173_v38  ;;  %4181 = vmatprep.mubr.bf16.mxu0 %v13424_v24  ;;  %14217 = vst [vmem:[#allocation190_spill] sm:$0xff] %v11184_v41  ;;  %14218 = vst [vmem:[#allocation191_spill] sm:$0xff] %v11187_v4  ;;  %v11190_v38 = vld [vmem:[#allocation3 + $0x530] sm:$0xff] }
 0x91d   :  { %4263 = vmatprep.mubr.bf16.mxu1 %v13424_v24  ;;  %14219 = vst [vmem:[#allocation192_spill] sm:$0xff] %v11190_v38 }
 0x91e   :  { %4152 = vmatpush1.bf16.msra.mxu0 %v11178_v59  ;;  %v11196_v59 = vld [vmem:[#allocation3 + $0x580] sm:$0xff] }
 0x91f   :  { %4234 = vmatpush1.bf16.msra.mxu1 %v11181_v40  ;;  %4153 = vmatprep.subr.bf16.mxu0 %v11184_v41  ;;  %14221 = vst [vmem:[#allocation194_spill] sm:$0xff] %v11196_v59  ;;  %v11199_v40 = vld [vmem:[#allocation3 + $0x590] sm:$0xff]  ;;  %v11202_v41 = vld [vmem:[#allocation3 + $0x578] sm:$0xff] }
 0x920   :  { %4235 = vmatprep.subr.bf16.mxu1 %v11187_v4  ;;  %14222 = vst [vmem:[#allocation195_spill] sm:$0xff] %v11199_v40  ;;  %14223 = vst [vmem:[#allocation196_spill] sm:$0xff] %v11202_v41  ;;  %v11205_v4 = vld [vmem:[#allocation3 + $0x588] sm:$0xff] }
 0x921   :  { %14224 = vst [vmem:[#allocation197_spill] sm:$0xff] %v11205_v4 }
 0x922   :  { %4154 = vmatpush1.bf16.msra.mxu0 %v11190_v38  ;;  %v11208_v38 = vld [vmem:[#allocation3 + $0x5c8] sm:$0xff] }
 0x923   :  { %4236 = vmatpush1.bf16.msra.mxu1 %v11193_v7  ;;  %4155 = vmatprep.subr.bf16.mxu0 %v11196_v59  ;;  %14225 = vst [vmem:[#allocation198_spill] sm:$0xff] %v11208_v38  ;;  %v11211_v7 = vld [vmem:[#allocation3 + $0x5d8] sm:$0xff]  ;;  %v11214_v59 = vld [vmem:[#allocation3 + $0x5c0] sm:$0xff] }
 0x924   :  { %4237 = vmatprep.subr.bf16.mxu1 %v11199_v40  ;;  %14226 = vst [vmem:[#allocation199_spill] sm:$0xff] %v11211_v7  ;;  %14227 = vst [vmem:[#allocation200_spill] sm:$0xff] %v11214_v59  ;;  %v11217_v40 = vld [vmem:[#allocation3 + $0x5d0] sm:$0xff] }
 0x925   :  { %14228 = vst [vmem:[#allocation201_spill] sm:$0xff] %v11217_v40 }
 0x926   :  { %4156 = vmatpush1.bf16.msra.mxu0 %v11202_v41  ;;  %v11220_v41 = vld [vmem:[#allocation3 + $0x610] sm:$0xff] }
 0x927   :  { %4238 = vmatpush1.bf16.msra.mxu1 %v11205_v4  ;;  %4157 = vmatprep.subr.bf16.mxu0 %v11208_v38  ;;  %14229 = vst [vmem:[#allocation202_spill] sm:$0xff] %v11220_v41  ;;  %v11223_v4 = vld [vmem:[#allocation3 + $0x620] sm:$0xff]  ;;  %v11226_v38 = vld [vmem:[#allocation3 + $0x608] sm:$0xff] }
 0x928   :  { %4239 = vmatprep.subr.bf16.mxu1 %v11211_v7  ;;  %14230 = vst [vmem:[#allocation203_spill] sm:$0xff] %v11223_v4  ;;  %14231 = vst [vmem:[#allocation204_spill] sm:$0xff] %v11226_v38  ;;  %v11229_v7 = vld [vmem:[#allocation3 + $0x618] sm:$0xff] }
 0x929   :  { %14232 = vst [vmem:[#allocation205_spill] sm:$0xff] %v11229_v7 }
 0x92a   :  { %4158 = vmatpush1.bf16.msra.mxu0 %v11214_v59  ;;  %v11232_v59 = vld [vmem:[#allocation3 + $0x658] sm:$0xff] }
 0x92b   :  { %4240 = vmatpush1.bf16.msra.mxu1 %v11217_v40  ;;  %4159 = vmatprep.subr.bf16.mxu0 %v11220_v41  ;;  %14233 = vst [vmem:[#allocation206_spill] sm:$0xff] %v11232_v59  ;;  %v11235_v40 = vld [vmem:[#allocation3 + $0x668] sm:$0xff]  ;;  %v11238_v41 = vld [vmem:[#allocation3 + $0x650] sm:$0xff] }
 0x92c   :  { %4241 = vmatprep.subr.bf16.mxu1 %v11223_v4  ;;  %14234 = vst [vmem:[#allocation207_spill] sm:$0xff] %v11235_v40  ;;  %14235 = vst [vmem:[#allocation208_spill] sm:$0xff] %v11238_v41  ;;  %v11241_v4 = vld [vmem:[#allocation3 + $0x660] sm:$0xff] }
 0x92e   :  { %4160 = vmatpush1.bf16.msra.mxu0 %v11226_v38  ;;  %v11244_v38 = vld [vmem:[#allocation3 + $0x6a0] sm:$0xff] }
 0x92f   :  { %4242 = vmatpush1.bf16.msra.mxu1 %v11229_v7  ;;  %4161 = vmatprep.subr.bf16.mxu0 %v11232_v59  ;;  %14236 = vst [vmem:[#allocation209_spill] sm:$0xff] %v11244_v38  ;;  %v11247_v7 = vld [vmem:[#allocation3 + $0x6b0] sm:$0xff]  ;;  %v11250_v59 = vld [vmem:[#allocation3 + $0x698] sm:$0xff] }
 0x930   :  { %4243 = vmatprep.subr.bf16.mxu1 %v11235_v40  ;;  %14237 = vst [vmem:[#allocation210_spill] sm:$0xff] %v11247_v7  ;;  %14238 = vst [vmem:[#allocation211_spill] sm:$0xff] %v11250_v59  ;;  %v11253_v40 = vld [vmem:[#allocation3 + $0x6a8] sm:$0xff] }
 0x931   :  { %14239 = vst [vmem:[#allocation212_spill] sm:$0xff] %v11253_v40 }
 0x932   :  { %4162 = vmatpush1.bf16.msra.mxu0 %v11238_v41  ;;  %v11256_v41 = vld [vmem:[#allocation3 + $0x280] sm:$0xff] }
 0x933   :  { %4244 = vmatpush1.bf16.msra.mxu1 %v11241_v4  ;;  %4163 = vmatprep.subr.bf16.mxu0 %v11244_v38  ;;  %14240 = vst [vmem:[#allocation213_spill] sm:$0xff] %v11256_v41  ;;  %v11262_v38 = vld [vmem:[#allocation3 + $0x40] sm:$0xff] }
 0x934   :  { %4245 = vmatprep.subr.bf16.mxu1 %v11247_v7  ;;  %14241 = vst [vmem:[#allocation214_spill] sm:$0xff] %v11262_v38  ;;  %v11291_v7 = vld [vmem:[#allocation3 + $0x358] sm:$0xff] }
 0x935   :  { %14249 = vst [vmem:[#allocation222_spill] sm:$0xff] %v11291_v7 }
 0x936   :  { %4164 = vmatpush1.bf16.msra.mxu0 %v11250_v59  ;;  %v11266_v59 = vld [vmem:[#allocation3 + $0x4c0] sm:$0xff] }
 0x937   :  { %4246 = vmatpush1.bf16.msra.mxu1 %v11253_v40  ;;  %6521 = vmatprep.subr.bf16.mxu0 %v11256_v41  ;;  %14242 = vst [vmem:[#allocation215_spill] sm:$0xff] %v11266_v59  ;;  %v11269_v40 = vld [vmem:[#allocation3 + $0x2c8] sm:$0xff] }
 0x938   :  { %6792 = vmatprep.subr.bf16.mxu1 %v13420_v8  ;;  %14243 = vst [vmem:[#allocation216_spill] sm:$0xff] %v11269_v40  ;;  %v11275_v41 = vld [vmem:[#allocation3 + $0x88] sm:$0xff] }
 0x939   :  { %4182 = vmatmul.mubr.bf16.vlgmr.msra.gmra.mrb[108].mxu0 %v10958_v19  ;;  %14244 = vst [vmem:[#allocation217_spill] sm:$0xff] %v11275_v41 }
 0x93a   :  { %4264 = vmatmul.mubr.bf16.vlgmr.msra.gmra.mrb[124].mxu1 %v10958_v19  ;;  %6522 = vmatpush3.bf16.msra.mxu0 %v11262_v38  ;;  %v11278_v38 = vld [vmem:[#allocation3 + $0x508] sm:$0xff] }
 0x93b   :  { %4304 = vmatprep.mubr.bf16.mxu0 %v10849_v0  ;;  %6793 = vmatpush3.bf16.msra.mxu1 %v11266_v59  ;;  %14245 = vst [vmem:[#allocation218_spill] sm:$0xff] %v11278_v38  ;;  %v11281_v0 = vld [vmem:[#allocation3 + $0x310] sm:$0xff] }
 0x93c   :  { %6523 = vmatprep.subr.bf16.mxu0 %v11269_v40  ;;  %6794 = vmatprep.subr.bf16.mxu1 %v13420_v8  ;;  %14246 = vst [vmem:[#allocation219_spill] sm:$0xff] %v11281_v0  ;;  %v11285_v40 = vld [vmem:[#allocation3 + $0xd0] sm:$0xff] }
 0x93d   :  { %6808 = vmatprep.mubr.msk.bf16.mxu1 %vm8178_vm1, %v13420_v8  ;;  %14247 = vst [vmem:[#allocation220_spill] sm:$0xff] %v11285_v40  ;;  %v11288_v59 = vld [vmem:[#allocation3 + $0x550] sm:$0xff] }
 0x93e   :  { %6524 = vmatpush3.bf16.msra.mxu0 %v11275_v41  ;;  %14248 = vst [vmem:[#allocation221_spill] sm:$0xff] %v11288_v59  ;;  %v11301_v41 = vld [vmem:[#allocation3 + $0x3a0] sm:$0xff] }
 0x93f   :  { %6795 = vmatpush3.bf16.msra.mxu1 %v11278_v38  ;;  %6525 = vmatprep.subr.bf16.mxu0 %v11281_v0  ;;  %v11295_v38 = vld [vmem:[#allocation3 + $0x118] sm:$0xff]  ;;  %14252 = vst [vmem:[#allocation225_spill] sm:$0xff] %v11301_v41 }
 0x940   :  { %6796 = vmatprep.subr.bf16.mxu1 %v13420_v8  ;;  %14250 = vst [vmem:[#allocation223_spill] sm:$0xff] %v11295_v38  ;;  %v11298_v0 = vld [vmem:[#allocation3 + $0x598] sm:$0xff] }
 0x941   :  { %14251 = vst [vmem:[#allocation224_spill] sm:$0xff] %v11298_v0 }
 0x942   :  { %6526 = vmatpush3.bf16.msra.mxu0 %v11285_v40  ;;  %v11311_v40 = vld [vmem:[#allocation3 + $0x3e8] sm:$0xff] }
 0x943   :  { %6797 = vmatpush3.bf16.msra.mxu1 %v11288_v59  ;;  %6527 = vmatprep.subr.bf16.mxu0 %v11291_v7  ;;  %v11305_v59 = vld [vmem:[#allocation3 + $0x160] sm:$0xff]  ;;  %14255 = vst [vmem:[#allocation228_spill] sm:$0xff] %v11311_v40 }
 0x944   :  { %6798 = vmatprep.subr.bf16.mxu1 %v13420_v8  ;;  %14253 = vst [vmem:[#allocation226_spill] sm:$0xff] %v11305_v59  ;;  %v11308_v7 = vld [vmem:[#allocation3 + $0x5e0] sm:$0xff] }
 0x945   :  { %14254 = vst [vmem:[#allocation227_spill] sm:$0xff] %v11308_v7 }
 0x946   :  { %6528 = vmatpush3.bf16.msra.mxu0 %v11295_v38  ;;  %v11321_v38 = vld [vmem:[#allocation3 + $0x430] sm:$0xff] }
 0x947   :  { %6799 = vmatpush3.bf16.msra.mxu1 %v11298_v0  ;;  %6529 = vmatprep.subr.bf16.mxu0 %v11301_v41  ;;  %v11315_v0 = vld [vmem:[#allocation3 + $0x1a8] sm:$0xff]  ;;  %14257 = vst [vmem:[#allocation230_spill] sm:$0xff] %v11321_v38 }
 0x948   :  { %6800 = vmatprep.subr.bf16.mxu1 %v13420_v8  ;;  %v11318_v41 = vld [vmem:[#allocation3 + $0x628] sm:$0xff] }
 0x949   :  { %14256 = vst [vmem:[#allocation229_spill] sm:$0xff] %v11318_v41 }
 0x94a   :  { %6530 = vmatpush3.bf16.msra.mxu0 %v11305_v59  ;;  %v11331_v59 = vld [vmem:[#allocation3 + $0x478] sm:$0xff] }
 0x94b   :  { %6801 = vmatpush3.bf16.msra.mxu1 %v11308_v7  ;;  %6531 = vmatprep.subr.bf16.mxu0 %v11311_v40  ;;  %v11325_v7 = vld [vmem:[#allocation3 + $0x1f0] sm:$0xff] }
 0x94c   :  { %6802 = vmatprep.subr.bf16.mxu1 %v13420_v8  ;;  %v11328_v40 = vld [vmem:[#allocation3 + $0x670] sm:$0xff] }
 0x94e   :  { %6532 = vmatpush3.bf16.msra.mxu0 %v11315_v0 }
 0x94f   :  { %6803 = vmatpush3.bf16.msra.mxu1 %v11318_v41  ;;  %6533 = vmatprep.subr.bf16.mxu0 %v11321_v38  ;;  %v11335_v41 = vld [vmem:[#allocation3 + $0x238] sm:$0xff] }
 0x950   :  { %6804 = vmatprep.subr.bf16.mxu1 %v13420_v8  ;;  %v11338_v38 = vld [vmem:[#allocation3 + $0x6b8] sm:$0xff] }
 0x952   :  { %6534 = vmatpush3.bf16.msra.mxu0 %v11325_v7 }
 0x953   :  { %6805 = vmatpush3.bf16.msra.mxu1 %v11328_v40  ;;  %6535 = vmatprep.subr.bf16.mxu0 %v11331_v59 }
 0x954   :  { %6806 = vmatprep.subr.bf16.mxu1 %v13420_v8 }
 0x956   :  { %6536 = vmatpush3.bf16.msra.mxu0 %v11335_v41 }
 0x957   :  { %6807 = vmatpush3.bf16.msra.mxu1 %v11338_v38  ;;  %4430 = vmatprep.subr.bf16.mxu0 %v10631_v60  ;;  %v14258_v60 = vld [vmem:[#allocation253_spill] sm:$0xff] }
 0x958   :  { %4512 = vmatprep.subr.bf16.mxu1 %v10634_v57  ;;  %v14259_v57 = vld [vmem:[#allocation254_spill] sm:$0xff] }
 0x959   :  { %4305 = vmatmul.mubr.bf16.vlgmr.msra.gmra.mrb[112].mxu0 %v10853_v12  ;;  %v14290_v12 = vld [vmem:[#allocation60_spill] sm:$0xff] }
 0x95a   :  { %6809 = vmatmul.mubr.bf16.vlgmr.msra.gmra.mrb[128].mxu1 %v10958_v19  ;;  %4431 = vmatpush1.bf16.msra.mxu0 %v10639_v44  ;;  %v14260_v44 = vld [vmem:[#allocation255_spill] sm:$0xff]  ;;  %v14291_v19 = vld [vmem:[#allocation62_spill] sm:$0xff] }
 0x95b   :  { %4513 = vmatpush1.bf16.msra.mxu1 %v10642_v48  ;;  %4432 = vmatprep.subr.bf16.mxu0 %v10645_v9  ;;  %v14261_v48 = vld [vmem:[#allocation256_spill] sm:$0xff]  ;;  %v14262_v9 = vld [vmem:[#allocation33_spill] sm:$0xff] }
 0x95c   :  { %4514 = vmatprep.subr.bf16.mxu1 %v10648_v14  ;;  %v14263_v14 = vld [vmem:[#allocation35_spill] sm:$0xff] }
 0x95e   :  { %4433 = vmatpush1.bf16.msra.mxu0 %v10651_v27  ;;  %v14264_v27 = vld [vmem:[#allocation34_spill] sm:$0xff] }
 0x95f   :  { %4515 = vmatpush1.bf16.msra.mxu1 %v10654_v31  ;;  %4434 = vmatprep.subr.bf16.mxu0 %v10657_v37  ;;  %v14265_v31 = vld [vmem:[#allocation65_spill] sm:$0xff]  ;;  %v14266_v37 = vld [vmem:[#allocation32_spill] sm:$0xff] }
 0x960   :  { %4516 = vmatprep.subr.bf16.mxu1 %v10660_v62  ;;  %v14267_v62 = vld [vmem:[#allocation64_spill] sm:$0xff] }
 0x962   :  { %4435 = vmatpush1.bf16.msra.mxu0 %v10663_v21  ;;  %v14268_v21 = vld [vmem:[#allocation66_spill] sm:$0xff] }
 0x963   :  { %4517 = vmatpush1.bf16.msra.mxu1 %v10666_v1  ;;  %4436 = vmatprep.subr.bf16.mxu0 %v10669_v2  ;;  %v14269_v1 = vld [vmem:[#allocation67_spill] sm:$0xff] }
 0x964   :  { %4518 = vmatprep.subr.bf16.mxu1 %v10672_v22  ;;  %v14270_v2 = vld [vmem:[#allocation95_spill] sm:$0xff] }
 0x965   :  { %v14271_v22 = vld [vmem:[#allocation103_spill] sm:$0xff] }
 0x966   :  { %4437 = vmatpush1.bf16.msra.mxu0 %v10675_v34  ;;  %v14272_v34 = vld [vmem:[#allocation104_spill] sm:$0xff] }
 0x967   :  { %4519 = vmatpush1.bf16.msra.mxu1 %v10678_v15  ;;  %4438 = vmatprep.subr.bf16.mxu0 %v10681_v25  ;;  %v14273_v15 = vld [vmem:[#allocation105_spill] sm:$0xff]  ;;  %v14274_v25 = vld [vmem:[#allocation106_spill] sm:$0xff] }
 0x968   :  { %4520 = vmatprep.subr.bf16.mxu1 %v10684_v46  ;;  %v14275_v46 = vld [vmem:[#allocation107_spill] sm:$0xff] }
 0x96a   :  { %4439 = vmatpush1.bf16.msra.mxu0 %v10687_v13  ;;  %v14276_v13 = vld [vmem:[#allocation108_spill] sm:$0xff] }
 0x96b   :  { %4521 = vmatpush1.bf16.msra.mxu1 %v10690_v45  ;;  %4440 = vmatprep.subr.bf16.mxu0 %v10693_v23  ;;  %v14277_v45 = vld [vmem:[#allocation109_spill] sm:$0xff]  ;;  %v14278_v23 = vld [vmem:[#allocation110_spill] sm:$0xff] }
 0x96c   :  { %4522 = vmatprep.subr.bf16.mxu1 %v10696_v50  ;;  %v14279_v50 = vld [vmem:[#allocation111_spill] sm:$0xff] }
 0x96e   :  { %4441 = vmatpush1.bf16.msra.mxu0 %v10699_v42  ;;  %v14280_v42 = vld [vmem:[#allocation112_spill] sm:$0xff] }
 0x96f   :  { %4523 = vmatpush1.bf16.msra.mxu1 %v10702_v51  ;;  %4442 = vmatprep.subr.bf16.mxu0 %v10705_v39  ;;  %v14281_v51 = vld [vmem:[#allocation113_spill] sm:$0xff]  ;;  %v14282_v39 = vld [vmem:[#allocation114_spill] sm:$0xff] }
 0x970   :  { %4524 = vmatprep.subr.bf16.mxu1 %v10708_v55  ;;  %v14283_v55 = vld [vmem:[#allocation29_spill] sm:$0xff] }
 0x972   :  { %4443 = vmatpush1.bf16.msra.mxu0 %v10711_v16  ;;  %v14284_v16 = vld [vmem:[#allocation31_spill] sm:$0xff] }
 0x973   :  { %4525 = vmatpush1.bf16.msra.mxu1 %v10714_v6  ;;  %4444 = vmatprep.subr.bf16.mxu0 %v10717_v54  ;;  %v14285_v6 = vld [vmem:[#allocation30_spill] sm:$0xff]  ;;  %v14286_v54 = vld [vmem:[#allocation61_spill] sm:$0xff] }
 0x974   :  { %4526 = vmatprep.subr.bf16.mxu1 %v10720_v20  ;;  %v14287_v20 = vld [vmem:[#allocation28_spill] sm:$0xff] }
 0x976   :  { %4445 = vmatpush1.bf16.msra.mxu0 %v10723_v61  ;;  %v14288_v61 = vld [vmem:[#allocation26_spill] sm:$0xff] }
 0x977   :  { %4527 = vmatpush1.bf16.msra.mxu1 %v10726_v28  ;;  %4446 = vmatprep.subr.bf16.mxu0 %v14258_v60  ;;  %v14289_v28 = vld [vmem:[#allocation27_spill] sm:$0xff] }
 0x978   :  { %4528 = vmatprep.subr.bf16.mxu1 %v14259_v57 }
 0x97a   :  { %4447 = vmatpush1.bf16.msra.mxu0 %v14260_v44 }
 0x97b   :  { %4529 = vmatpush1.bf16.msra.mxu1 %v14261_v48  ;;  %4448 = vmatprep.subr.bf16.mxu0 %v14262_v9 }
 0x97c   :  { %4530 = vmatprep.subr.bf16.mxu1 %v14263_v14 }
 0x97e   :  { %4449 = vmatpush1.bf16.msra.mxu0 %v14264_v27 }
 0x97f   :  { %4531 = vmatpush1.bf16.msra.mxu1 %v14265_v31  ;;  %4450 = vmatprep.subr.bf16.mxu0 %v14266_v37 }
 0x980   :  { %4532 = vmatprep.subr.bf16.mxu1 %v14267_v62  ;;  %v14292_v62 = vld [vmem:[#allocation45_spill] sm:$0xff] }
 0x982   :  { %4451 = vmatpush1.bf16.msra.mxu0 %v14268_v21 }
 0x983   :  { %4533 = vmatpush1.bf16.msra.mxu1 %v14269_v1  ;;  %4452 = vmatprep.subr.bf16.mxu0 %v14270_v2  ;;  %v14293_v2 = vld [vmem:[#allocation47_spill] sm:$0xff] }
 0x984   :  { %4534 = vmatprep.subr.bf16.mxu1 %v14271_v22 }
 0x986   :  { %4453 = vmatpush1.bf16.msra.mxu0 %v14272_v34 }
 0x987   :  { %4535 = vmatpush1.bf16.msra.mxu1 %v14273_v15  ;;  %4454 = vmatprep.subr.bf16.mxu0 %v14274_v25 }
 0x988   :  { %4536 = vmatprep.subr.bf16.mxu1 %v14275_v46 }
 0x98a   :  { %4455 = vmatpush1.bf16.msra.mxu0 %v14276_v13  ;;  %v14294_v13 = vld [vmem:[#allocation46_spill] sm:$0xff] }
 0x98b   :  { %4537 = vmatpush1.bf16.msra.mxu1 %v14277_v45  ;;  %4456 = vmatprep.subr.bf16.mxu0 %v14278_v23 }
 0x98c   :  { %4538 = vmatprep.subr.bf16.mxu1 %v14279_v50 }
 0x98e   :  { %4457 = vmatpush1.bf16.msra.mxu0 %v14280_v42 }
 0x98f   :  { %4539 = vmatpush1.bf16.msra.mxu1 %v14281_v51  ;;  %4458 = vmatprep.subr.bf16.mxu0 %v14282_v39 }
 0x990   :  { %4540 = vmatprep.subr.bf16.mxu1 %v14283_v55 }
 0x992   :  { %4459 = vmatpush1.bf16.msra.mxu0 %v14284_v16  ;;  %v14295_v16 = vld [vmem:[#allocation77_spill] sm:$0xff] }
 0x993   :  { %4541 = vmatpush1.bf16.msra.mxu1 %v14285_v6  ;;  %4460 = vmatprep.subr.bf16.mxu0 %v14286_v54 }
 0x994   :  { %4542 = vmatprep.subr.bf16.mxu1 %v14287_v20 }
 0x996   :  { %4461 = vmatpush1.bf16.msra.mxu0 %v14288_v61 }
 0x997   :  { %4543 = vmatpush1.bf16.msra.mxu1 %v14289_v28  ;;  %4471 = vmatprep.subr.bf16.mxu0 %v14290_v12 }
 0x998   :  { %4553 = vmatprep.subr.bf16.mxu1 %v14291_v19  ;;  %v14296_v19 = vld [vmem:[#allocation44_spill] sm:$0xff] }
 0x9ac   :  { %v4019_v60 = vpop.f32.mrb[104].mxu0  ;;  %v4101_v57 = vpop.f32.mrb[116].mxu1 }
 0x9ad   :  { %v4021_v44 = vpop.f32.mrb[105].mxu0  ;;  %v4103_v48 = vpop.f32.mrb[117].mxu1  ;;  %v4352_v21 = vadd.f32 %v4019_v60, %v14292_v62  ;;  %v4354_v60 = vadd.f32 %v4101_v57, %v14296_v19  ;;  %v14298_v57 = vld [vmem:[#allocation78_spill] sm:$0xff] }
 0x9ae   :  { %v4023_v9 = vpop.f32.mrb[106].mxu0  ;;  %v4105_v14 = vpop.f32.mrb[118].mxu1  ;;  %v4353_v22 = vadd.f32 %v4021_v44, %v14293_v2  ;;  %v4373_v45 = vadd.f32 %v4103_v48, %v14294_v13 }
 0x9af   :  { %v4024_v27 = vpop.f32.mrb[107].mxu0  ;;  %v4106_v31 = vpop.f32.mrb[119].mxu1  ;;  %v6333_v25 = vmul.f32 -1.442695, %v4352_v21 }
 0x9b0   :  { %v6334_v46 = vmul.f32 -1.442695, %v4353_v22  ;;  %v6336_v42 = vmul.f32 -1.442695, %v4373_v45 }
 0x9b1   :  { %7289 = vpow2.f32 %v6333_v25 }
 0x9b2   :  { %7291 = vpow2.f32 %v6334_v46  ;;  %v14297_v46 = vld [vmem:[#allocation76_spill] sm:$0xff] }
 0x9b3   :  { %7293 = vpow2.f32 %v6336_v42 }
 0x9bb   :  { %v7290_v23 = vpop.eup %7289 }
 0x9bc   :  { %v7292_v50 = vpop.eup %7291  ;;  %v4364_v51 = vadd.f32 1.0, %v7290_v23 }
 0x9bd   :  { %v4365_v39 = vadd.f32 1.0, %v7292_v50  ;;  %v7294_v27 = vpop.eup %7293 }
 0x9be   :  { %7295 = vrcp.f32 %v4364_v51  ;;  %v4385_v25 = vadd.f32 1.0, %v7294_v27 }
 0x9bf   :  { %7297 = vrcp.f32 %v4365_v39  ;;  %v14299_v39 = vld [vmem:[#allocation79_spill] sm:$0xff] }
 0x9c8   :  { %v7296_v21 = vpop.eup %7295 }
 0x9c9   :  { %v7298_v22 = vpop.eup %7297 }
 0x9ed   :  { %v4224_v37 = vpop.f32.mrb[120].mxu1 }
 0x9ee   :  { %v4226_v1 = vpop.f32.mrb[121].mxu1 }
 0x9ef   :  { %v4228_v34 = vpop.f32.mrb[122].mxu1 }
 0x9f0   :  { %v4229_v15 = vpop.f32.mrb[123].mxu1 }
 0x9f1   :  { %v6335_v15 = vmul.f32 -1.442695, %v4354_v60 }
 0xa0c   :  { %v4183_v55 = vpop.f32.mrb[108].mxu0 }
 0xa0d   :  { %v4374_v6 = vadd.f32 %v4183_v55, %v14295_v16  ;;  %v4265_v54 = vpop.f32.mrb[124].mxu1  ;;  %v4185_v20 = vpop.f32.mrb[109].mxu0 }
 0xa0e   :  { %v4266_v61 = vadd.f32 %v4265_v54, %v4224_v37  ;;  %v4267_v28 = vpop.f32.mrb[125].mxu1  ;;  %v4187_v12 = vpop.f32.mrb[110].mxu0  ;;  %v4375_v55 = vadd.f32 %v4185_v20, %v14299_v39  ;;  %v14315_v39 = vld [vmem:[#allocation39_spill] sm:$0xff] }
 0xa0f   :  { %v6337_v44 = vmul.f32 -1.442695, %v4374_v6  ;;  %v4268_v48 = vadd.f32 %v4267_v28, %v4226_v1  ;;  %v4269_v9 = vpop.f32.mrb[126].mxu1  ;;  %v4188_v14 = vpop.f32.mrb[111].mxu0 }
 0xa10   :  { %v4394_v31 = vadd.f32 %v4266_v61, %v13596_v26  ;;  %v4270_v62 = vpop.f32.mrb[127].mxu1  ;;  %v6338_v28 = vmul.f32 -1.442695, %v4375_v55 }
 0xa11   :  { %7299 = vpow2.f32 %v6337_v44  ;;  %v4395_v2 = vadd.f32 %v4268_v48, %v13597_v30 }
 0xa12   :  { %v4397_v34 = vmul.f32 %v7296_v21, %v4394_v31 }
 0xa13   :  { %v4398_v37 = vmul.f32 %v7298_v22, %v4395_v2 }
 0xa14   :  { %v4400_v13 = vadd.f32 %v4397_v34, %v14297_v46 }
 0xa15   :  { %v4401_v1 = vadd.f32 %v4398_v37, %v14298_v57  ;;  %v14308_v57 = vld [vmem:[#allocation120_spill] sm:$0xff] }
 0xa16   :  { %7301 = vtanh.f32 %v4400_v13  ;;  %v14300_v13 = vld [vmem:[#allocation97_spill] sm:$0xff] }
 0xa17   :  { %7303 = vpow2.f32 %v6335_v15 }
 0xa18   :  { %7305 = vrcp.f32 %v4385_v25 }
 0xa19   :  { %7307 = vtanh.f32 %v4401_v1 }
 0xa1b   :  { %v7300_v45 = vpop.eup %7299 }
 0xa1c   :  { %v4386_v23 = vadd.f32 1.0, %v7300_v45 }
 0xa1e   :  { %7309 = vrcp.f32 %v4386_v23  ;;  %v14310_v23 = vld [vmem:[#allocation121_spill] sm:$0xff] }
 0xa20   :  { %v7302_v50 = vpop.eup %7301 }
 0xa21   :  { %v7304_v42 = vpop.eup %7303  ;;  %v4406_v51 = vsub.f32 %v10842_v10, %v7302_v50 }
 0xa22   :  { %v7306_v16 = vpop.eup %7305  ;;  %v4366_v61 = vadd.f32 1.0, %v7304_v42  ;;  %v14312_v42 = vld [vmem:[#allocation123_spill] sm:$0xff] }
 0xa23   :  { %v4409_v6 = vmul.f32 %v7306_v16, %v4406_v51  ;;  %v7308_v54 = vpop.eup %7307  ;;  %v14313_v51 = vld [vmem:[#allocation124_spill] sm:$0xff] }
 0xa24   :  { %v4407_v19 = vsub.f32 %v10845_v43, %v7308_v54  ;;  %7311 = vrcp.f32 %v4366_v61  ;;  %v14318_v16 = vld [vmem:[#allocation36_spill] sm:$0xff]  ;;  %v14321_v61 = vld [vmem:[#allocation71_spill] sm:$0xff] }
 0xa25   :  { %v11420_v12 = vadd.f32 %v7302_v50, %v4409_v6  ;;  %7313 = vpow2.f32 %v6338_v28  ;;  %v14311_v50 = vld [vmem:[#allocation122_spill] sm:$0xff]  ;;  %v14319_v6 = vld [vmem:[#allocation68_spill] sm:$0xff] }
 0xa26   :  { %v14322_v28 = vld [vmem:[#allocation92_spill] sm:$0xff] }
 0xa27   :  { %v11431_v21 = vpack.c.bf16 %v11420_v12, %v11420_v12 }
 0xa28   :  { %v7310_v60 = vpop.eup %7309 }
 0xa29   :  { %v4410_v44 = vmul.f32 %v7310_v60, %v4407_v19  ;;  %v14323_v19 = vld [vmem:[#allocation125_spill] sm:$0xff]  ;;  %v14324_v60 = vld [vmem:[#allocation126_spill] sm:$0xff] }
 0xa2b   :  { %v11423_v48 = vadd.f32 %v7308_v54, %v4410_v44  ;;  %v14320_v54 = vld [vmem:[#allocation70_spill] sm:$0xff]  ;;  %v14325_v44 = vld [vmem:[#allocation127_spill] sm:$0xff] }
 0xa2c   :  { %v6537_v9 = vpop.f32.mrb[112].mxu0 }
 0xa2d   :  { %v4346_v14 = vpop.f32.mrb[128].mxu1  ;;  %v6538_v10 = vpop.f32.mrb[113].mxu0  ;;  %v11427_v20 = vpack.c.bf16 %v11423_v48, %v11423_v48 }
 0xa2e   :  { %v6539_v27 = vadd.f32 %v6538_v10, %v6537_v9  ;;  %v6810_v31 = vpop.f32.mrb[129].mxu1  ;;  %v6540_v62 = vpop.f32.mrb[114].mxu0  ;;  %v14326_v9 = vld [vmem:[#allocation128_spill] sm:$0xff]  ;;  %v14328_v10 = vld [vmem:[#allocation130_spill] sm:$0xff] }
 0xa2f   :  { %v4349_v43 = vpop.f32.mrb[130].mxu1  ;;  %v6541_v2 = vpop.f32.mrb[115].mxu0  ;;  %4462 = vmatprep.mubr.bf16.mxu0 %v11427_v20  ;;  %4544 = vmatprep.mubr.bf16.mxu1 %v11427_v20  ;;  %v14330_v31 = vld [vmem:[#allocation132_spill] sm:$0xff]  ;;  %v14331_v62 = vld [vmem:[#allocation133_spill] sm:$0xff] }
 0xa30   :  { %v4347_v22 = vadd.f32 %v6539_v27, %v4346_v14  ;;  %v6811_v34 = vpop.f32.mrb[131].mxu1  ;;  %4463 = vmatmul.mubr.bf16.vlgmr.msra.gmra.mrb[116].mxu0 %v11431_v21  ;;  %4545 = vmatmul.mubr.bf16.vlgmr.msra.gmra.mrb[132].mxu1 %v11431_v21  ;;  %v7312_v15 = vpop.eup %7311  ;;  %v14327_v14 = vld [vmem:[#allocation129_spill] sm:$0xff]  ;;  %v14329_v27 = vld [vmem:[#allocation131_spill] sm:$0xff]  ;;  %v14332_v43 = vld [vmem:[#allocation134_spill] sm:$0xff] }
 0xa31   :  { %4472 = vmatpush1.bf16.msra.mxu0 %v10859_v5  ;;  %4554 = vmatpush1.bf16.msra.mxu1 %v10862_v3  ;;  %v7314_v25 = vpop.eup %7313  ;;  %v14333_v2 = vld [vmem:[#allocation135_spill] sm:$0xff]  ;;  %v14335_v34 = vld [vmem:[#allocation137_spill] sm:$0xff] }
 0xa32   :  { %v4396_v37 = vadd.f32 %v4347_v22, %v13603_v11  ;;  %4473 = vmatprep.subr.bf16.mxu0 %v10866_v53  ;;  %4555 = vmatprep.subr.bf16.mxu1 %v10869_v58  ;;  %v4387_v5 = vadd.f32 1.0, %v7314_v25  ;;  %v14301_v53 = vld [vmem:[#allocation63_spill] sm:$0xff]  ;;  %v14334_v22 = vld [vmem:[#allocation136_spill] sm:$0xff] }
 0xa33   :  { %4503 = vmatprep.mubr.bf16.mxu0 %v13424_v24  ;;  %4585 = vmatprep.mubr.bf16.mxu1 %v13424_v24  ;;  %v14302_v58 = vld [vmem:[#allocation115_spill] sm:$0xff]  ;;  %v14338_v25 = vld [vmem:[#allocation140_spill] sm:$0xff] }
 0xa34   :  { %v4399_v46 = vmul.f32 %v7312_v15, %v4396_v37  ;;  %v14336_v15 = vld [vmem:[#allocation138_spill] sm:$0xff]  ;;  %v14337_v37 = vld [vmem:[#allocation139_spill] sm:$0xff] }
 0xa35   :  { %4474 = vmatpush1.bf16.msra.mxu0 %v10874_v49  ;;  %4556 = vmatpush1.bf16.msra.mxu1 %v10877_v36  ;;  %v14303_v49 = vld [vmem:[#allocation116_spill] sm:$0xff]  ;;  %v14304_v36 = vld [vmem:[#allocation25_spill] sm:$0xff] }
 0xa36   :  { %v4402_v3 = vadd.f32 %v4399_v46, %v14300_v13  ;;  %4475 = vmatprep.subr.bf16.mxu0 %v10881_v52  ;;  %4557 = vmatprep.subr.bf16.mxu1 %v10884_v29  ;;  %v14305_v52 = vld [vmem:[#allocation117_spill] sm:$0xff]  ;;  %v14341_v13 = vld [vmem:[#allocation143_spill] sm:$0xff] }
 0xa37   :  { %v14339_v46 = vld [vmem:[#allocation141_spill] sm:$0xff] }
 0xa38   :  { %7315 = vtanh.f32 %v4402_v3  ;;  %v14342_v3 = vld [vmem:[#allocation144_spill] sm:$0xff] }
 0xa39   :  { %4476 = vmatpush1.bf16.msra.mxu0 %v10887_v35  ;;  %4558 = vmatpush1.bf16.msra.mxu1 %v10890_v18  ;;  %7317 = vrcp.f32 %v4387_v5  ;;  %v14306_v35 = vld [vmem:[#allocation118_spill] sm:$0xff]  ;;  %v14307_v18 = vld [vmem:[#allocation119_spill] sm:$0xff] }
 0xa3a   :  { %4477 = vmatprep.subr.bf16.mxu0 %v10893_v63  ;;  %4559 = vmatprep.subr.bf16.mxu1 %v10896_v32  ;;  %v14340_v5 = vld [vmem:[#allocation142_spill] sm:$0xff] }
 0xa3d   :  { %4478 = vmatpush1.bf16.msra.mxu0 %v10899_v47  ;;  %4560 = vmatpush1.bf16.msra.mxu1 %v14301_v53  ;;  %v14309_v47 = vld [vmem:[#allocation93_spill] sm:$0xff] }
 0xa3e   :  { %4479 = vmatprep.subr.bf16.mxu0 %v14302_v58  ;;  %4561 = vmatprep.subr.bf16.mxu1 %v14303_v49  ;;  %v14343_v53 = vld [vmem:[#allocation145_spill] sm:$0xff]  ;;  %v14344_v58 = vld [vmem:[#allocation146_spill] sm:$0xff]  ;;  %v14345_v49 = vld [vmem:[#allocation147_spill] sm:$0xff] }
 0xa41   :  { %4480 = vmatpush1.bf16.msra.mxu0 %v14304_v36  ;;  %4562 = vmatpush1.bf16.msra.mxu1 %v14305_v52  ;;  %v14346_v36 = vld [vmem:[#allocation148_spill] sm:$0xff]  ;;  %v14347_v52 = vld [vmem:[#allocation149_spill] sm:$0xff] }
 0xa42   :  { %v7316_v29 = vpop.eup %7315  ;;  %4481 = vmatprep.subr.bf16.mxu0 %v14306_v35  ;;  %4563 = vmatprep.subr.bf16.mxu1 %v14307_v18  ;;  %v14349_v35 = vld [vmem:[#allocation151_spill] sm:$0xff]  ;;  %v14350_v18 = vld [vmem:[#allocation152_spill] sm:$0xff] }
 0xa43   :  { %v4408_v63 = vsub.f32 %v10936_v33, %v7316_v29  ;;  %v7318_v32 = vpop.eup %7317  ;;  %v14314_v33 = vld [vmem:[#allocation37_spill] sm:$0xff] }
 0xa45   :  { %4482 = vmatpush1.bf16.msra.mxu0 %v14308_v57  ;;  %4564 = vmatpush1.bf16.msra.mxu1 %v14309_v47  ;;  %v4411_v1 = vmul.f32 %v7318_v32, %v4408_v63  ;;  %v14351_v63 = vld [vmem:[#allocation153_spill] sm:$0xff]  ;;  %v14352_v32 = vld [vmem:[#allocation154_spill] sm:$0xff]  ;;  %v14353_v57 = vld [vmem:[#allocation155_spill] sm:$0xff] }
 0xa46   :  { %4483 = vmatprep.subr.bf16.mxu0 %v10930_v56  ;;  %4565 = vmatprep.subr.bf16.mxu1 %v10933_v17  ;;  %v14316_v56 = vld [vmem:[#allocation38_spill] sm:$0xff]  ;;  %v14317_v17 = vld [vmem:[#allocation69_spill] sm:$0xff]  ;;  %v14354_v47 = vld [vmem:[#allocation156_spill] sm:$0xff] }
 0xa47   :  { %v11466_v45 = vadd.f32 %v7316_v29, %v4411_v1  ;;  %v14348_v29 = vld [vmem:[#allocation150_spill] sm:$0xff]  ;;  %v14355_v1 = vld [vmem:[#allocation157_spill] sm:$0xff] }
 0xa49   :  { %4484 = vmatpush1.bf16.msra.mxu0 %v14310_v23  ;;  %4566 = vmatpush1.bf16.msra.mxu1 %v14311_v50  ;;  %v11476_v55 = vpack.c.bf16 %v11466_v45, %v11466_v45  ;;  %v14356_v23 = vld [vmem:[#allocation158_spill] sm:$0xff]  ;;  %v14357_v50 = vld [vmem:[#allocation159_spill] sm:$0xff] }
 0xa4a   :  { %4485 = vmatprep.subr.bf16.mxu0 %v14312_v42  ;;  %4567 = vmatprep.subr.bf16.mxu1 %v14313_v51  ;;  %v14358_v42 = vld [vmem:[#allocation160_spill] sm:$0xff]  ;;  %v14359_v51 = vld [vmem:[#allocation161_spill] sm:$0xff] }
 0xa4d   :  { %4486 = vmatpush1.bf16.msra.mxu0 %v14314_v33  ;;  %4568 = vmatpush1.bf16.msra.mxu1 %v14315_v39  ;;  %v14360_v33 = vld [vmem:[#allocation162_spill] sm:$0xff]  ;;  %v14361_v39 = vld [vmem:[#allocation163_spill] sm:$0xff] }
 0xa4e   :  { %4594 = vmatprep.subr.bf16.mxu0 %v14316_v56  ;;  %4676 = vmatprep.subr.bf16.mxu1 %v14317_v17  ;;  %v14362_v56 = vld [vmem:[#allocation164_spill] sm:$0xff]  ;;  %v14363_v17 = vld [vmem:[#allocation165_spill] sm:$0xff] }
 0xa50   :  { %4504 = vmatmul.mubr.bf16.vlgmr.msra.gmra.mrb[116].mxu0 %v11476_v55  ;;  %4586 = vmatmul.mubr.bf16.vlgmr.msra.gmra.mrb[132].mxu1 %v11476_v55 }
 0xa51   :  { %4595 = vmatpush1.bf16.msra.mxu0 %v14318_v16  ;;  %4626 = vmatprep.mubr.bf16.mxu0 %v11427_v20  ;;  %v14364_v16 = vld [vmem:[#allocation166_spill] sm:$0xff] }
 0xa52   :  { %4677 = vmatpush1.bf16.msra.mxu1 %v14319_v6  ;;  %4708 = vmatprep.mubr.bf16.mxu1 %v11427_v20  ;;  %v14365_v6 = vld [vmem:[#allocation167_spill] sm:$0xff] }
 0xa53   :  { %4596 = vmatprep.subr.bf16.mxu0 %v14320_v54  ;;  %4678 = vmatprep.subr.bf16.mxu1 %v14321_v61  ;;  %v14366_v54 = vld [vmem:[#allocation168_spill] sm:$0xff]  ;;  %v14367_v61 = vld [vmem:[#allocation169_spill] sm:$0xff] }
 0xa55   :  { %4597 = vmatpush1.bf16.msra.mxu0 %v14322_v28  ;;  %v14368_v28 = vld [vmem:[#allocation170_spill] sm:$0xff] }
 0xa56   :  { %4679 = vmatpush1.bf16.msra.mxu1 %v14323_v19  ;;  %4598 = vmatprep.subr.bf16.mxu0 %v14324_v60  ;;  %v14369_v19 = vld [vmem:[#allocation171_spill] sm:$0xff]  ;;  %v14370_v60 = vld [vmem:[#allocation172_spill] sm:$0xff] }
 0xa57   :  { %4680 = vmatprep.subr.bf16.mxu1 %v14325_v44  ;;  %v14371_v44 = vld [vmem:[#allocation173_spill] sm:$0xff] }
 0xa59   :  { %4599 = vmatpush1.bf16.msra.mxu0 %v14326_v9  ;;  %v14372_v9 = vld [vmem:[#allocation174_spill] sm:$0xff] }
 0xa5a   :  { %4681 = vmatpush1.bf16.msra.mxu1 %v14327_v14  ;;  %4600 = vmatprep.subr.bf16.mxu0 %v14328_v10  ;;  %v14373_v14 = vld [vmem:[#allocation175_spill] sm:$0xff]  ;;  %v14374_v10 = vld [vmem:[#allocation176_spill] sm:$0xff] }
 0xa5b   :  { %4682 = vmatprep.subr.bf16.mxu1 %v14329_v27  ;;  %v14375_v27 = vld [vmem:[#allocation177_spill] sm:$0xff] }
 0xa5d   :  { %4601 = vmatpush1.bf16.msra.mxu0 %v14330_v31  ;;  %v14376_v31 = vld [vmem:[#allocation178_spill] sm:$0xff] }
 0xa5e   :  { %4683 = vmatpush1.bf16.msra.mxu1 %v14331_v62  ;;  %4602 = vmatprep.subr.bf16.mxu0 %v14332_v43  ;;  %v14377_v62 = vld [vmem:[#allocation179_spill] sm:$0xff]  ;;  %v14378_v43 = vld [vmem:[#allocation180_spill] sm:$0xff] }
 0xa5f   :  { %4684 = vmatprep.subr.bf16.mxu1 %v14333_v2  ;;  %v14379_v2 = vld [vmem:[#allocation181_spill] sm:$0xff] }
 0xa61   :  { %4603 = vmatpush1.bf16.msra.mxu0 %v14334_v22  ;;  %v14380_v22 = vld [vmem:[#allocation182_spill] sm:$0xff] }
 0xa62   :  { %4685 = vmatpush1.bf16.msra.mxu1 %v14335_v34  ;;  %4604 = vmatprep.subr.bf16.mxu0 %v14336_v15  ;;  %v14381_v34 = vld [vmem:[#allocation183_spill] sm:$0xff]  ;;  %v14382_v15 = vld [vmem:[#allocation184_spill] sm:$0xff] }
 0xa63   :  { %4686 = vmatprep.subr.bf16.mxu1 %v14337_v37  ;;  %v14383_v37 = vld [vmem:[#allocation185_spill] sm:$0xff] }
 0xa65   :  { %4605 = vmatpush1.bf16.msra.mxu0 %v14338_v25  ;;  %v14384_v25 = vld [vmem:[#allocation186_spill] sm:$0xff] }
 0xa66   :  { %4687 = vmatpush1.bf16.msra.mxu1 %v14339_v46  ;;  %4606 = vmatprep.subr.bf16.mxu0 %v14340_v5  ;;  %v14385_v46 = vld [vmem:[#allocation187_spill] sm:$0xff]  ;;  %v14386_v5 = vld [vmem:[#allocation188_spill] sm:$0xff] }
 0xa67   :  { %4688 = vmatprep.subr.bf16.mxu1 %v14341_v13  ;;  %v14387_v13 = vld [vmem:[#allocation189_spill] sm:$0xff] }
 0xa69   :  { %4607 = vmatpush1.bf16.msra.mxu0 %v14342_v3  ;;  %v14388_v3 = vld [vmem:[#allocation190_spill] sm:$0xff] }
 0xa6a   :  { %4689 = vmatpush1.bf16.msra.mxu1 %v14343_v53  ;;  %4608 = vmatprep.subr.bf16.mxu0 %v14344_v58  ;;  %v14389_v53 = vld [vmem:[#allocation191_spill] sm:$0xff]  ;;  %v14390_v58 = vld [vmem:[#allocation192_spill] sm:$0xff] }
 0xa6b   :  { %4690 = vmatprep.subr.bf16.mxu1 %v14345_v49  ;;  %v14391_v49 = vld [vmem:[#allocation193_spill] sm:$0xff] }
 0xa6d   :  { %4609 = vmatpush1.bf16.msra.mxu0 %v14346_v36  ;;  %v14392_v36 = vld [vmem:[#allocation194_spill] sm:$0xff] }
 0xa6e   :  { %4691 = vmatpush1.bf16.msra.mxu1 %v14347_v52  ;;  %4610 = vmatprep.subr.bf16.mxu0 %v14348_v29  ;;  %v14393_v52 = vld [vmem:[#allocation195_spill] sm:$0xff]  ;;  %v14394_v29 = vld [vmem:[#allocation196_spill] sm:$0xff] }
 0xa6f   :  { %4692 = vmatprep.subr.bf16.mxu1 %v14349_v35  ;;  %v14395_v35 = vld [vmem:[#allocation197_spill] sm:$0xff] }
 0xa71   :  { %4611 = vmatpush1.bf16.msra.mxu0 %v14350_v18  ;;  %v14396_v18 = vld [vmem:[#allocation198_spill] sm:$0xff] }
 0xa72   :  { %4693 = vmatpush1.bf16.msra.mxu1 %v14351_v63  ;;  %4612 = vmatprep.subr.bf16.mxu0 %v14352_v32  ;;  %v14397_v63 = vld [vmem:[#allocation199_spill] sm:$0xff]  ;;  %v14398_v32 = vld [vmem:[#allocation200_spill] sm:$0xff] }
 0xa73   :  { %4694 = vmatprep.subr.bf16.mxu1 %v14353_v57  ;;  %v14399_v57 = vld [vmem:[#allocation201_spill] sm:$0xff] }
 0xa75   :  { %4613 = vmatpush1.bf16.msra.mxu0 %v14354_v47  ;;  %v14400_v47 = vld [vmem:[#allocation202_spill] sm:$0xff] }
 0xa76   :  { %4695 = vmatpush1.bf16.msra.mxu1 %v14355_v1  ;;  %4614 = vmatprep.subr.bf16.mxu0 %v14356_v23  ;;  %v14401_v1 = vld [vmem:[#allocation203_spill] sm:$0xff]  ;;  %v14402_v23 = vld [vmem:[#allocation204_spill] sm:$0xff] }
 0xa77   :  { %4696 = vmatprep.subr.bf16.mxu1 %v14357_v50  ;;  %v14403_v50 = vld [vmem:[#allocation205_spill] sm:$0xff] }
 0xa79   :  { %4615 = vmatpush1.bf16.msra.mxu0 %v14358_v42  ;;  %v14404_v42 = vld [vmem:[#allocation206_spill] sm:$0xff] }
 0xa7a   :  { %4697 = vmatpush1.bf16.msra.mxu1 %v14359_v51  ;;  %4616 = vmatprep.subr.bf16.mxu0 %v14360_v33  ;;  %v14405_v51 = vld [vmem:[#allocation207_spill] sm:$0xff]  ;;  %v14406_v33 = vld [vmem:[#allocation208_spill] sm:$0xff] }
 0xa7b   :  { %4698 = vmatprep.subr.bf16.mxu1 %v14361_v39  ;;  %v14407_v39 = vld [vmem:[#allocation209_spill] sm:$0xff] }
 0xa7d   :  { %4617 = vmatpush1.bf16.msra.mxu0 %v14362_v56  ;;  %v14408_v56 = vld [vmem:[#allocation210_spill] sm:$0xff] }
 0xa7e   :  { %4699 = vmatpush1.bf16.msra.mxu1 %v14363_v17  ;;  %4618 = vmatprep.subr.bf16.mxu0 %v14364_v16  ;;  %v14409_v17 = vld [vmem:[#allocation211_spill] sm:$0xff]  ;;  %v14410_v16 = vld [vmem:[#allocation212_spill] sm:$0xff] }
 0xa7f   :  { %4700 = vmatprep.subr.bf16.mxu1 %v14365_v6  ;;  %v14411_v6 = vld [vmem:[#allocation213_spill] sm:$0xff] }
 0xa81   :  { %4619 = vmatpush1.bf16.msra.mxu0 %v14366_v54  ;;  %v14412_v54 = vld [vmem:[#allocation214_spill] sm:$0xff] }
 0xa82   :  { %4701 = vmatpush1.bf16.msra.mxu1 %v14367_v61  ;;  %4620 = vmatprep.subr.bf16.mxu0 %v14368_v28  ;;  %v14414_v61 = vld [vmem:[#allocation216_spill] sm:$0xff]  ;;  %v14415_v28 = vld [vmem:[#allocation217_spill] sm:$0xff] }
 0xa83   :  { %4702 = vmatprep.subr.bf16.mxu1 %v14369_v19  ;;  %v14416_v19 = vld [vmem:[#allocation218_spill] sm:$0xff] }
 0xa85   :  { %4621 = vmatpush1.bf16.msra.mxu0 %v14370_v60  ;;  %v14417_v60 = vld [vmem:[#allocation219_spill] sm:$0xff] }
 0xa86   :  { %4703 = vmatpush1.bf16.msra.mxu1 %v14371_v44  ;;  %4622 = vmatprep.subr.bf16.mxu0 %v14372_v9  ;;  %v14418_v44 = vld [vmem:[#allocation220_spill] sm:$0xff]  ;;  %v14420_v9 = vld [vmem:[#allocation222_spill] sm:$0xff] }
 0xa87   :  { %4704 = vmatprep.subr.bf16.mxu1 %v14373_v14  ;;  %v14421_v14 = vld [vmem:[#allocation223_spill] sm:$0xff] }
 0xa89   :  { %4623 = vmatpush1.bf16.msra.mxu0 %v14374_v10  ;;  %v14422_v10 = vld [vmem:[#allocation224_spill] sm:$0xff] }
 0xa8a   :  { %4705 = vmatpush1.bf16.msra.mxu1 %v14375_v27  ;;  %4624 = vmatprep.subr.bf16.mxu0 %v14376_v31  ;;  %v14423_v27 = vld [vmem:[#allocation225_spill] sm:$0xff]  ;;  %v14424_v31 = vld [vmem:[#allocation226_spill] sm:$0xff] }
 0xa8b   :  { %4706 = vmatprep.subr.bf16.mxu1 %v14377_v62  ;;  %v14425_v62 = vld [vmem:[#allocation227_spill] sm:$0xff] }
 0xa8d   :  { %4625 = vmatpush1.bf16.msra.mxu0 %v14378_v43  ;;  %v14426_v43 = vld [vmem:[#allocation228_spill] sm:$0xff] }
 0xa8e   :  { %4707 = vmatpush1.bf16.msra.mxu1 %v14379_v2  ;;  %4635 = vmatprep.subr.bf16.mxu0 %v14380_v22  ;;  %v14427_v2 = vld [vmem:[#allocation229_spill] sm:$0xff]  ;;  %v14428_v22 = vld [vmem:[#allocation230_spill] sm:$0xff] }
 0xa8f   :  { %4717 = vmatprep.subr.bf16.mxu1 %v14381_v34  ;;  %v11619_v34 = vld [vmem:[#allocation3 + $0x8] sm:$0xff] }
 0xa90   :  { %4627 = vmatmul.mubr.bf16.vlgmr.msra.gmra.mrb[120].mxu0 %v11431_v21 }
 0xa91   :  { %4709 = vmatmul.mubr.bf16.vlgmr.msra.gmra.mrb[136].mxu1 %v11431_v21  ;;  %4636 = vmatpush1.bf16.msra.mxu0 %v14382_v15  ;;  %v11648_v15 = vld [vmem:[#allocation3 + $0xa8] sm:$0xff] }
 0xa92   :  { %4718 = vmatpush1.bf16.msra.mxu1 %v14383_v37  ;;  %4637 = vmatprep.subr.bf16.mxu0 %v14384_v25  ;;  %v11651_v37 = vld [vmem:[#allocation3 + $0x90] sm:$0xff]  ;;  %v11654_v25 = vld [vmem:[#allocation3 + $0xa0] sm:$0xff] }
 0xa93   :  { %4719 = vmatprep.subr.bf16.mxu1 %v14385_v46  ;;  %4667 = vmatprep.mubr.bf16.mxu0 %v13424_v24  ;;  %v11657_v46 = vld [vmem:[#allocation3 + $0xe0] sm:$0xff] }
 0xa94   :  { %4749 = vmatprep.mubr.bf16.mxu1 %v13424_v24 }
 0xa95   :  { %4638 = vmatpush1.bf16.msra.mxu0 %v14386_v5  ;;  %v11660_v5 = vld [vmem:[#allocation3 + $0xf0] sm:$0xff] }
 0xa96   :  { %4720 = vmatpush1.bf16.msra.mxu1 %v14387_v13  ;;  %4639 = vmatprep.subr.bf16.mxu0 %v14388_v3  ;;  %v11663_v13 = vld [vmem:[#allocation3 + $0xd8] sm:$0xff]  ;;  %v11666_v3 = vld [vmem:[#allocation3 + $0xe8] sm:$0xff] }
 0xa97   :  { %4721 = vmatprep.subr.bf16.mxu1 %v14389_v53  ;;  %v11669_v53 = vld [vmem:[#allocation3 + $0x128] sm:$0xff] }
 0xa99   :  { %4640 = vmatpush1.bf16.msra.mxu0 %v14390_v58  ;;  %v11672_v58 = vld [vmem:[#allocation3 + $0x138] sm:$0xff] }
 0xa9a   :  { %4722 = vmatpush1.bf16.msra.mxu1 %v14391_v49  ;;  %4641 = vmatprep.subr.bf16.mxu0 %v14392_v36  ;;  %v11675_v49 = vld [vmem:[#allocation3 + $0x120] sm:$0xff]  ;;  %v11678_v36 = vld [vmem:[#allocation3 + $0x130] sm:$0xff] }
 0xa9b   :  { %4723 = vmatprep.subr.bf16.mxu1 %v14393_v52  ;;  %v11681_v52 = vld [vmem:[#allocation3 + $0x170] sm:$0xff] }
 0xa9d   :  { %4642 = vmatpush1.bf16.msra.mxu0 %v14394_v29  ;;  %v11684_v29 = vld [vmem:[#allocation3 + $0x180] sm:$0xff] }
 0xa9e   :  { %4724 = vmatpush1.bf16.msra.mxu1 %v14395_v35  ;;  %4643 = vmatprep.subr.bf16.mxu0 %v14396_v18  ;;  %v11687_v35 = vld [vmem:[#allocation3 + $0x168] sm:$0xff]  ;;  %v11690_v18 = vld [vmem:[#allocation3 + $0x178] sm:$0xff] }
 0xa9f   :  { %4725 = vmatprep.subr.bf16.mxu1 %v14397_v63  ;;  %v11693_v63 = vld [vmem:[#allocation3 + $0x1b8] sm:$0xff] }
 0xaa1   :  { %4644 = vmatpush1.bf16.msra.mxu0 %v14398_v32  ;;  %v11696_v32 = vld [vmem:[#allocation3 + $0x1c8] sm:$0xff] }
 0xaa2   :  { %4726 = vmatpush1.bf16.msra.mxu1 %v14399_v57  ;;  %4645 = vmatprep.subr.bf16.mxu0 %v14400_v47  ;;  %v11699_v57 = vld [vmem:[#allocation3 + $0x1b0] sm:$0xff]  ;;  %v11702_v47 = vld [vmem:[#allocation3 + $0x1c0] sm:$0xff] }
 0xaa3   :  { %4727 = vmatprep.subr.bf16.mxu1 %v14401_v1  ;;  %v11705_v1 = vld [vmem:[#allocation3 + $0x200] sm:$0xff] }
 0xaa5   :  { %4646 = vmatpush1.bf16.msra.mxu0 %v14402_v23  ;;  %v11708_v23 = vld [vmem:[#allocation3 + $0x210] sm:$0xff] }
 0xaa6   :  { %4728 = vmatpush1.bf16.msra.mxu1 %v14403_v50  ;;  %4647 = vmatprep.subr.bf16.mxu0 %v14404_v42  ;;  %v11711_v50 = vld [vmem:[#allocation3 + $0x1f8] sm:$0xff]  ;;  %v11714_v42 = vld [vmem:[#allocation3 + $0x208] sm:$0xff] }
 0xaa7   :  { %4729 = vmatprep.subr.bf16.mxu1 %v14405_v51  ;;  %v11717_v51 = vld [vmem:[#allocation3 + $0x248] sm:$0xff] }
 0xaa8   :  { %14429 = vst [vmem:[#allocation231_spill] sm:$0xff] %v11717_v51 }
 0xaa9   :  { %4648 = vmatpush1.bf16.msra.mxu0 %v14406_v33  ;;  %v11720_v33 = vld [vmem:[#allocation3 + $0x258] sm:$0xff] }
 0xaaa   :  { %4730 = vmatpush1.bf16.msra.mxu1 %v11241_v4  ;;  %4649 = vmatprep.subr.bf16.mxu0 %v14407_v39  ;;  %v14413_v4 = vld [vmem:[#allocation215_spill] sm:$0xff]  ;;  %14430 = vst [vmem:[#allocation232_spill] sm:$0xff] %v11720_v33  ;;  %v11723_v39 = vld [vmem:[#allocation3 + $0x240] sm:$0xff] }
 0xaab   :  { %4731 = vmatprep.subr.bf16.mxu1 %v14408_v56  ;;  %14431 = vst [vmem:[#allocation233_spill] sm:$0xff] %v11723_v39  ;;  %v11726_v56 = vld [vmem:[#allocation3 + $0x250] sm:$0xff] }
 0xaac   :  { %14432 = vst [vmem:[#allocation234_spill] sm:$0xff] %v11726_v56 }
 0xaad   :  { %4650 = vmatpush1.bf16.msra.mxu0 %v14409_v17  ;;  %v11729_v17 = vld [vmem:[#allocation3 + $0x290] sm:$0xff] }
 0xaae   :  { %4732 = vmatpush1.bf16.msra.mxu1 %v14410_v16  ;;  %6552 = vmatprep.subr.bf16.mxu0 %v14411_v6  ;;  %14433 = vst [vmem:[#allocation235_spill] sm:$0xff] %v11729_v17  ;;  %v11732_v16 = vld [vmem:[#allocation3 + $0x2a0] sm:$0xff]  ;;  %v11735_v6 = vld [vmem:[#allocation3 + $0x288] sm:$0xff] }
 0xaaf   :  { %6812 = vmatprep.subr.bf16.mxu1 %v13420_v8  ;;  %14434 = vst [vmem:[#allocation236_spill] sm:$0xff] %v11732_v16  ;;  %14435 = vst [vmem:[#allocation237_spill] sm:$0xff] %v11735_v6 }
 0xab0   :  { %4668 = vmatmul.mubr.bf16.vlgmr.msra.gmra.mrb[120].mxu0 %v11476_v55 }
 0xab1   :  { %4750 = vmatmul.mubr.bf16.vlgmr.msra.gmra.mrb[140].mxu1 %v11476_v55  ;;  %6553 = vmatpush3.bf16.msra.mxu0 %v14412_v54  ;;  %v11738_v54 = vld [vmem:[#allocation3 + $0x298] sm:$0xff] }
 0xab2   :  { %4790 = vmatprep.mubr.bf16.mxu0 %v11427_v20  ;;  %6813 = vmatpush3.bf16.msra.mxu1 %v14413_v4  ;;  %v14419_v20 = vld [vmem:[#allocation221_spill] sm:$0xff]  ;;  %14436 = vst [vmem:[#allocation238_spill] sm:$0xff] %v11738_v54  ;;  %v11741_v4 = vld [vmem:[#allocation3 + $0x2d8] sm:$0xff] }
 0xab3   :  { %6554 = vmatprep.subr.bf16.mxu0 %v14414_v61  ;;  %6814 = vmatprep.subr.bf16.mxu1 %v13420_v8  ;;  %14437 = vst [vmem:[#allocation239_spill] sm:$0xff] %v11741_v4  ;;  %v11744_v61 = vld [vmem:[#allocation3 + $0x2e8] sm:$0xff] }
 0xab4   :  { %6828 = vmatprep.mubr.msk.bf16.mxu1 %vm8178_vm1, %v13420_v8  ;;  %14438 = vst [vmem:[#allocation240_spill] sm:$0xff] %v11744_v61 }
 0xab5   :  { %6555 = vmatpush3.bf16.msra.mxu0 %v14415_v28  ;;  %v11747_v28 = vld [vmem:[#allocation3 + $0x2d0] sm:$0xff] }
 0xab6   :  { %6815 = vmatpush3.bf16.msra.mxu1 %v14416_v19  ;;  %6556 = vmatprep.subr.bf16.mxu0 %v14417_v60  ;;  %14439 = vst [vmem:[#allocation241_spill] sm:$0xff] %v11747_v28  ;;  %v11750_v19 = vld [vmem:[#allocation3 + $0x2e0] sm:$0xff] }
 0xab7   :  { %6816 = vmatprep.subr.bf16.mxu1 %v13420_v8  ;;  %14440 = vst [vmem:[#allocation242_spill] sm:$0xff] %v11750_v19  ;;  %v11753_v60 = vld [vmem:[#allocation3 + $0x320] sm:$0xff] }
 0xab8   :  { %14441 = vst [vmem:[#allocation243_spill] sm:$0xff] %v11753_v60 }
 0xab9   :  { %6557 = vmatpush3.bf16.msra.mxu0 %v14418_v44  ;;  %v11756_v44 = vld [vmem:[#allocation3 + $0x330] sm:$0xff] }
 0xaba   :  { %6817 = vmatpush3.bf16.msra.mxu1 %v14419_v20  ;;  %6558 = vmatprep.subr.bf16.mxu0 %v14420_v9  ;;  %14442 = vst [vmem:[#allocation244_spill] sm:$0xff] %v11756_v44  ;;  %v11759_v20 = vld [vmem:[#allocation3 + $0x318] sm:$0xff]  ;;  %v11762_v9 = vld [vmem:[#allocation3 + $0x328] sm:$0xff] }
 0xabb   :  { %6818 = vmatprep.subr.bf16.mxu1 %v13420_v8  ;;  %14443 = vst [vmem:[#allocation245_spill] sm:$0xff] %v11759_v20  ;;  %14444 = vst [vmem:[#allocation246_spill] sm:$0xff] %v11762_v9 }
 0xabd   :  { %6559 = vmatpush3.bf16.msra.mxu0 %v14421_v14  ;;  %v11765_v14 = vld [vmem:[#allocation3 + $0x368] sm:$0xff] }
 0xabe   :  { %6819 = vmatpush3.bf16.msra.mxu1 %v14422_v10  ;;  %6560 = vmatprep.subr.bf16.mxu0 %v14423_v27  ;;  %14445 = vst [vmem:[#allocation247_spill] sm:$0xff] %v11765_v14  ;;  %v11768_v10 = vld [vmem:[#allocation3 + $0x378] sm:$0xff]  ;;  %v11771_v27 = vld [vmem:[#allocation3 + $0x360] sm:$0xff] }
 0xabf   :  { %6820 = vmatprep.subr.bf16.mxu1 %v13420_v8  ;;  %14446 = vst [vmem:[#allocation248_spill] sm:$0xff] %v11768_v10  ;;  %14447 = vst [vmem:[#allocation249_spill] sm:$0xff] %v11771_v27 }
 0xac1   :  { %6561 = vmatpush3.bf16.msra.mxu0 %v14424_v31  ;;  %v11774_v31 = vld [vmem:[#allocation3 + $0x370] sm:$0xff] }
 0xac2   :  { %6821 = vmatpush3.bf16.msra.mxu1 %v14425_v62  ;;  %6562 = vmatprep.subr.bf16.mxu0 %v14426_v43  ;;  %14448 = vst [vmem:[#allocation250_spill] sm:$0xff] %v11774_v31  ;;  %v11777_v62 = vld [vmem:[#allocation3 + $0x3b0] sm:$0xff]  ;;  %v11780_v43 = vld [vmem:[#allocation3 + $0x3c0] sm:$0xff] }
 0xac3   :  { %6822 = vmatprep.subr.bf16.mxu1 %v13420_v8  ;;  %14449 = vst [vmem:[#allocation251_spill] sm:$0xff] %v11777_v62  ;;  %14450 = vst [vmem:[#allocation252_spill] sm:$0xff] %v11780_v43 }
 0xac5   :  { %6563 = vmatpush3.bf16.msra.mxu0 %v11315_v0  ;;  %v11622_v0 = vld [vmem:[#allocation3 + $0x18] sm:$0xff] }
 0xac6   :  { %6823 = vmatpush3.bf16.msra.mxu1 %v14427_v2  ;;  %6564 = vmatprep.subr.bf16.mxu0 %v14428_v22  ;;  %v11783_v2 = vld [vmem:[#allocation3 + $0x3a8] sm:$0xff]  ;;  %v11786_v22 = vld [vmem:[#allocation3 + $0x3b8] sm:$0xff] }
 0xac7   :  { %6824 = vmatprep.subr.bf16.mxu1 %v13420_v8  ;;  %14451 = vst [vmem:[#allocation41_spill] sm:$0xff] %v11783_v2  ;;  %14452 = vst [vmem:[#allocation43_spill] sm:$0xff] %v11786_v22 }
 0xac9   :  { %6565 = vmatpush3.bf16.msra.mxu0 %v11325_v7  ;;  %v11627_v7 = vld [vmem:[#allocation3] sm:$0xff] }
 0xaca   :  { %6825 = vmatpush3.bf16.msra.mxu1 %v11328_v40  ;;  %6566 = vmatprep.subr.bf16.mxu0 %v11331_v59  ;;  %v11630_v59 = vld [vmem:[#allocation3 + $0x10] sm:$0xff]  ;;  %v11639_v40 = vld [vmem:[#allocation3 + $0x48] sm:$0xff] }
 0xacb   :  { %6826 = vmatprep.subr.bf16.mxu1 %v13420_v8 }
 0xacd   :  { %6567 = vmatpush3.bf16.msra.mxu0 %v11335_v41  ;;  %v11636_v41 = vld [vmem:[#allocation3 + $0x60] sm:$0xff] }
 0xace   :  { %6827 = vmatpush3.bf16.msra.mxu1 %v11338_v38  ;;  %4916 = vmatprep.subr.bf16.mxu0 %v11619_v34  ;;  %v11633_v38 = vld [vmem:[#allocation3 + $0x50] sm:$0xff] }
 0xacf   :  { %4998 = vmatprep.subr.bf16.mxu1 %v11622_v0 }
 0xad0   :  { %4791 = vmatmul.mubr.bf16.vlgmr.msra.gmra.mrb[124].mxu0 %v11431_v21  ;;  %v11642_v21 = vld [vmem:[#allocation3 + $0x58] sm:$0xff] }
 0xad1   :  { %6829 = vmatmul.mubr.bf16.vlgmr.msra.gmra.mrb[144].mxu1 %v11476_v55  ;;  %4917 = vmatpush1.bf16.msra.mxu0 %v11627_v7  ;;  %v11645_v55 = vld [vmem:[#allocation3 + $0x98] sm:$0xff] }
 0xad2   :  { %4999 = vmatpush1.bf16.msra.mxu1 %v11630_v59  ;;  %4918 = vmatprep.subr.bf16.mxu0 %v11633_v38 }
 0xad3   :  { %5000 = vmatprep.subr.bf16.mxu1 %v11636_v41 }
 0xad5   :  { %4919 = vmatpush1.bf16.msra.mxu0 %v11639_v40 }
 0xad6   :  { %5001 = vmatpush1.bf16.msra.mxu1 %v11642_v21  ;;  %4920 = vmatprep.subr.bf16.mxu0 %v11645_v55 }
 0xad7   :  { %5002 = vmatprep.subr.bf16.mxu1 %v11648_v15 }
 0xad9   :  { %4921 = vmatpush1.bf16.msra.mxu0 %v11651_v37 }
 0xada   :  { %5003 = vmatpush1.bf16.msra.mxu1 %v11654_v25  ;;  %4922 = vmatprep.subr.bf16.mxu0 %v11657_v46 }
 0xadb   :  { %5004 = vmatprep.subr.bf16.mxu1 %v11660_v5 }
 0xadd   :  { %4923 = vmatpush1.bf16.msra.mxu0 %v11663_v13 }
 0xade   :  { %5005 = vmatpush1.bf16.msra.mxu1 %v11666_v3  ;;  %4924 = vmatprep.subr.bf16.mxu0 %v11669_v53 }
 0xadf   :  { %5006 = vmatprep.subr.bf16.mxu1 %v11672_v58 }
 0xae1   :  { %4925 = vmatpush1.bf16.msra.mxu0 %v11675_v49 }
 0xae2   :  { %5007 = vmatpush1.bf16.msra.mxu1 %v11678_v36  ;;  %4926 = vmatprep.subr.bf16.mxu0 %v11681_v52 }
 0xae3   :  { %5008 = vmatprep.subr.bf16.mxu1 %v11684_v29 }
 0xae5   :  { %4927 = vmatpush1.bf16.msra.mxu0 %v11687_v35 }
 0xae6   :  { %5009 = vmatpush1.bf16.msra.mxu1 %v11690_v18  ;;  %4928 = vmatprep.subr.bf16.mxu0 %v11693_v63 }
 0xae7   :  { %5010 = vmatprep.subr.bf16.mxu1 %v11696_v32 }
 0xae9   :  { %4929 = vmatpush1.bf16.msra.mxu0 %v11699_v57 }
 0xaea   :  { %5011 = vmatpush1.bf16.msra.mxu1 %v11702_v47  ;;  %4930 = vmatprep.subr.bf16.mxu0 %v11705_v1 }
 0xaeb   :  { %5012 = vmatprep.subr.bf16.mxu1 %v11708_v23 }
 0xaed   :  { %4931 = vmatpush1.bf16.msra.mxu0 %v11711_v50 }
 0xaee   :  { %5013 = vmatpush1.bf16.msra.mxu1 %v11714_v42  ;;  %4932 = vmatprep.subr.bf16.mxu0 %v11717_v51 }
 0xaef   :  { %5014 = vmatprep.subr.bf16.mxu1 %v11720_v33 }
 0xaf1   :  { %4933 = vmatpush1.bf16.msra.mxu0 %v11723_v39 }
 0xaf2   :  { %5015 = vmatpush1.bf16.msra.mxu1 %v11726_v56  ;;  %4934 = vmatprep.subr.bf16.mxu0 %v11729_v17 }
 0xaf3   :  { %5016 = vmatprep.subr.bf16.mxu1 %v11732_v16 }
 0xaf5   :  { %4935 = vmatpush1.bf16.msra.mxu0 %v11735_v6 }
 0xaf6   :  { %5017 = vmatpush1.bf16.msra.mxu1 %v11738_v54  ;;  %4936 = vmatprep.subr.bf16.mxu0 %v11741_v4 }
 0xaf7   :  { %5018 = vmatprep.subr.bf16.mxu1 %v11744_v61  ;;  %v14464_v61 = vld [vmem:[#allocation51_spill] sm:$0xff] }
 0xaf9   :  { %4937 = vmatpush1.bf16.msra.mxu0 %v11747_v28 }
 0xafa   :  { %5019 = vmatpush1.bf16.msra.mxu1 %v11750_v19  ;;  %4938 = vmatprep.subr.bf16.mxu0 %v11753_v60  ;;  %v14463_v19 = vld [vmem:[#allocation49_spill] sm:$0xff] }
 0xafb   :  { %5020 = vmatprep.subr.bf16.mxu1 %v11756_v44 }
 0xafd   :  { %4939 = vmatpush1.bf16.msra.mxu0 %v11759_v20 }
 0xafe   :  { %5021 = vmatpush1.bf16.msra.mxu1 %v11762_v9  ;;  %4940 = vmatprep.subr.bf16.mxu0 %v11765_v14 }
 0xaff   :  { %5022 = vmatprep.subr.bf16.mxu1 %v11768_v10 }
 0xb01   :  { %4941 = vmatpush1.bf16.msra.mxu0 %v11771_v27  ;;  %v11789_v27 = vld [vmem:[#allocation3 + $0x3f8] sm:$0xff] }
 0xb02   :  { %5023 = vmatpush1.bf16.msra.mxu1 %v11774_v31  ;;  %4942 = vmatprep.subr.bf16.mxu0 %v11777_v62  ;;  %14453 = vst [vmem:[#allocation42_spill] sm:$0xff] %v11789_v27  ;;  %v11792_v31 = vld [vmem:[#allocation3 + $0x408] sm:$0xff]  ;;  %v11795_v62 = vld [vmem:[#allocation3 + $0x3f0] sm:$0xff] }
 0xb03   :  { %5024 = vmatprep.subr.bf16.mxu1 %v11780_v43  ;;  %14454 = vst [vmem:[#allocation73_spill] sm:$0xff] %v11792_v31  ;;  %14455 = vst [vmem:[#allocation40_spill] sm:$0xff] %v11795_v62  ;;  %v11798_v43 = vld [vmem:[#allocation3 + $0x400] sm:$0xff] }
 0xb04   :  { %14456 = vst [vmem:[#allocation72_spill] sm:$0xff] %v11798_v43 }
 0xb05   :  { %4943 = vmatpush1.bf16.msra.mxu0 %v11783_v2  ;;  %v11801_v2 = vld [vmem:[#allocation3 + $0x440] sm:$0xff] }
 0xb06   :  { %5025 = vmatpush1.bf16.msra.mxu1 %v11786_v22  ;;  %4944 = vmatprep.subr.bf16.mxu0 %v11789_v27  ;;  %14457 = vst [vmem:[#allocation74_spill] sm:$0xff] %v11801_v2  ;;  %v11804_v22 = vld [vmem:[#allocation3 + $0x450] sm:$0xff]  ;;  %v11807_v27 = vld [vmem:[#allocation3 + $0x438] sm:$0xff] }
 0xb07   :  { %5026 = vmatprep.subr.bf16.mxu1 %v11792_v31  ;;  %14458 = vst [vmem:[#allocation75_spill] sm:$0xff] %v11804_v22  ;;  %14459 = vst [vmem:[#allocation94_spill] sm:$0xff] %v11807_v27  ;;  %v11810_v31 = vld [vmem:[#allocation3 + $0x448] sm:$0xff] }
 0xb08   :  { %14460 = vst [vmem:[#allocation253_spill] sm:$0xff] %v11810_v31 }
 0xb09   :  { %4945 = vmatpush1.bf16.msra.mxu0 %v11795_v62  ;;  %v11813_v62 = vld [vmem:[#allocation3 + $0x488] sm:$0xff] }
 0xb0a   :  { %5027 = vmatpush1.bf16.msra.mxu1 %v11798_v43  ;;  %4946 = vmatprep.subr.bf16.mxu0 %v11801_v2  ;;  %14461 = vst [vmem:[#allocation254_spill] sm:$0xff] %v11813_v62  ;;  %v11816_v43 = vld [vmem:[#allocation3 + $0x498] sm:$0xff] }
 0xb0b   :  { %5028 = vmatprep.subr.bf16.mxu1 %v11804_v22  ;;  %14462 = vst [vmem:[#allocation255_spill] sm:$0xff] %v11816_v43 }
 0xb0d   :  { %4947 = vmatpush1.bf16.msra.mxu0 %v11807_v27 }
 0xb0e   :  { %5029 = vmatpush1.bf16.msra.mxu1 %v11810_v31  ;;  %4957 = vmatprep.subr.bf16.mxu0 %v11813_v62 }
 0xb0f   :  { %5039 = vmatprep.subr.bf16.mxu1 %v11816_v43  ;;  %v14465_v43 = vld [vmem:[#allocation50_spill] sm:$0xff] }
 0xb23   :  { %v4505_v2 = vpop.f32.mrb[116].mxu0  ;;  %v4587_v10 = vpop.f32.mrb[132].mxu1 }
 0xb24   :  { %v4507_v14 = vpop.f32.mrb[117].mxu0  ;;  %v4589_v22 = vpop.f32.mrb[133].mxu1  ;;  %v4838_v28 = vadd.f32 %v4505_v2, %v14463_v19 }
 0xb25   :  { %v4509_v9 = vpop.f32.mrb[118].mxu0  ;;  %v4591_v20 = vpop.f32.mrb[134].mxu1  ;;  %v4839_v4 = vadd.f32 %v4507_v14, %v14464_v61  ;;  %v4859_v17 = vadd.f32 %v4589_v22, %v14465_v43 }
 0xb26   :  { %v4510_v44 = vpop.f32.mrb[119].mxu0  ;;  %v4592_v27 = vpop.f32.mrb[135].mxu1  ;;  %v6339_v6 = vmul.f32 -1.442695, %v4838_v28 }
 0xb27   :  { %v6340_v16 = vmul.f32 -1.442695, %v4839_v4  ;;  %v6342_v9 = vmul.f32 -1.442695, %v4859_v17  ;;  %v14466_v27 = vld [vmem:[#allocation81_spill] sm:$0xff] }
 0xb28   :  { %7319 = vpow2.f32 %v6339_v6  ;;  %v14467_v6 = vld [vmem:[#allocation48_spill] sm:$0xff] }
 0xb29   :  { %7321 = vpow2.f32 %v6340_v16  ;;  %v4840_v16 = vadd.f32 %v4587_v10, %v14467_v6  ;;  %v14469_v10 = vld [vmem:[#allocation82_spill] sm:$0xff] }
 0xb2a   :  { %7323 = vpow2.f32 %v6342_v9 }
 0xb32   :  { %v7320_v56 = vpop.eup %7319 }
 0xb33   :  { %v7322_v39 = vpop.eup %7321  ;;  %v4850_v20 = vadd.f32 1.0, %v7320_v56 }
 0xb34   :  { %v4851_v44 = vadd.f32 1.0, %v7322_v39  ;;  %v7324_v17 = vpop.eup %7323 }
 0xb35   :  { %7325 = vrcp.f32 %v4850_v20 }
 0xb36   :  { %7327 = vrcp.f32 %v4851_v44 }
 0xb3f   :  { %v7326_v9 = vpop.eup %7325 }
 0xb40   :  { %v7328_v44 = vpop.eup %7327 }
 0xb64   :  { %v4710_v60 = vpop.f32.mrb[136].mxu1 }
 0xb65   :  { %v4712_v31 = vpop.f32.mrb[137].mxu1 }
 0xb66   :  { %v4714_v54 = vpop.f32.mrb[138].mxu1 }
 0xb67   :  { %v4715_v62 = vpop.f32.mrb[139].mxu1 }
 0xb83   :  { %v4669_v19 = vpop.f32.mrb[120].mxu0 }
 0xb84   :  { %v4860_v2 = vadd.f32 %v4669_v19, %v14466_v27  ;;  %v4751_v61 = vpop.f32.mrb[140].mxu1  ;;  %v4671_v54 = vpop.f32.mrb[121].mxu0  ;;  %v6341_v27 = vmul.f32 -1.442695, %v4840_v16 }
 0xb85   :  { %v4752_v14 = vadd.f32 %v4751_v61, %v4710_v60  ;;  %v4753_v28 = vpop.f32.mrb[141].mxu1  ;;  %v4673_v4 = vpop.f32.mrb[122].mxu0  ;;  %v4871_v61 = vadd.f32 1.0, %v7324_v17 }
 0xb86   :  { %v6343_v62 = vmul.f32 -1.442695, %v4860_v2  ;;  %v4754_v43 = vadd.f32 %v4753_v28, %v4712_v31  ;;  %v4755_v22 = vpop.f32.mrb[142].mxu1  ;;  %v4674_v33 = vpop.f32.mrb[123].mxu0  ;;  %v14468_v4 = vld [vmem:[#allocation80_spill] sm:$0xff] }
 0xb87   :  { %v4880_v39 = vadd.f32 %v4752_v14, %v13596_v26  ;;  %v4756_v56 = vpop.f32.mrb[143].mxu1 }
 0xb88   :  { %7329 = vpow2.f32 %v6343_v62  ;;  %v4881_v20 = vadd.f32 %v4754_v43, %v13597_v30  ;;  %v14470_v62 = vld [vmem:[#allocation83_spill] sm:$0xff] }
 0xb89   :  { %v4883_v19 = vmul.f32 %v7326_v9, %v4880_v39  ;;  %v4861_v43 = vadd.f32 %v4671_v54, %v14470_v62 }
 0xb8a   :  { %v4884_v60 = vmul.f32 %v7328_v44, %v4881_v20 }
 0xb8b   :  { %v4886_v51 = vadd.f32 %v4883_v19, %v14468_v4  ;;  %v6344_v56 = vmul.f32 -1.442695, %v4861_v43 }
 0xb8c   :  { %v4887_v31 = vadd.f32 %v4884_v60, %v14469_v10 }
 0xb8d   :  { %7331 = vtanh.f32 %v4886_v51 }
 0xb8e   :  { %7333 = vpow2.f32 %v6341_v27 }
 0xb8f   :  { %7335 = vrcp.f32 %v4871_v61 }
 0xb90   :  { %7337 = vtanh.f32 %v4887_v31 }
 0xb92   :  { %v7330_v33 = vpop.eup %7329 }
 0xb93   :  { %v4872_v2 = vadd.f32 1.0, %v7330_v33 }
 0xb95   :  { %7339 = vrcp.f32 %v4872_v2 }
 0xb97   :  { %v7332_v14 = vpop.eup %7331 }
 0xb98   :  { %v7334_v28 = vpop.eup %7333  ;;  %v4892_v6 = vsub.f32 %v11420_v12, %v7332_v14 }
 0xb99   :  { %v7336_v16 = vpop.eup %7335  ;;  %v4852_v39 = vadd.f32 1.0, %v7334_v28  ;;  %v11847_v28 = vld [vmem:[#allocation3 + $0x480] sm:$0xff] }
 0xb9a   :  { %v4895_v22 = vmul.f32 %v7336_v16, %v4892_v6  ;;  %v7338_v17 = vpop.eup %7337  ;;  %v11850_v6 = vld [vmem:[#allocation3 + $0x490] sm:$0xff] }
 0xb9b   :  { %v4893_v9 = vsub.f32 %v11423_v48, %v7338_v17  ;;  %7341 = vrcp.f32 %v4852_v39  ;;  %v11854_v16 = vld [vmem:[#allocation3 + $0x4d0] sm:$0xff] }
 0xb9c   :  { %v11830_v51 = vadd.f32 %v7332_v14, %v4895_v22  ;;  %7343 = vpow2.f32 %v6344_v56  ;;  %v11857_v22 = vld [vmem:[#allocation3 + $0x4e0] sm:$0xff]  ;;  %v11862_v56 = vld [vmem:[#allocation3 + $0x4c8] sm:$0xff] }
 0xb9e   :  { %v11841_v31 = vpack.c.bf16 %v11830_v51, %v11830_v51 }
 0xb9f   :  { %v7340_v20 = vpop.eup %7339 }
 0xba0   :  { %v4896_v44 = vmul.f32 %v7340_v20, %v4893_v9  ;;  %v11865_v9 = vld [vmem:[#allocation3 + $0x4d8] sm:$0xff] }
 0xba2   :  { %v11833_v19 = vadd.f32 %v7338_v17, %v4896_v44  ;;  %v14471_v44 = vld [vmem:[#allocation99_spill] sm:$0xff] }
 0xba3   :  { %v6568_v27 = vpop.f32.mrb[124].mxu0 }
 0xba4   :  { %v4832_v60 = vpop.f32.mrb[144].mxu1  ;;  %v6569_v12 = vpop.f32.mrb[125].mxu0  ;;  %v11837_v54 = vpack.c.bf16 %v11833_v19, %v11833_v19 }
 0xba5   :  { %v6570_v61 = vadd.f32 %v6569_v12, %v6568_v27  ;;  %v6830_v4 = vpop.f32.mrb[145].mxu1  ;;  %v6571_v10 = vpop.f32.mrb[126].mxu0  ;;  %v11872_v12 = vld [vmem:[#allocation3 + $0x528] sm:$0xff] }
 0xba6   :  { %v4835_v48 = vpop.f32.mrb[146].mxu1  ;;  %v6572_v33 = vpop.f32.mrb[127].mxu0  ;;  %4948 = vmatprep.mubr.bf16.mxu0 %v11837_v54  ;;  %5030 = vmatprep.mubr.bf16.mxu1 %v11837_v54  ;;  %v11878_v4 = vld [vmem:[#allocation3 + $0x520] sm:$0xff] }
 0xba7   :  { %v4833_v2 = vadd.f32 %v6570_v61, %v4832_v60  ;;  %v6831_v14 = vpop.f32.mrb[147].mxu1  ;;  %4949 = vmatmul.mubr.bf16.vlgmr.msra.gmra.mrb[128].mxu0 %v11841_v31  ;;  %5031 = vmatmul.mubr.bf16.vlgmr.msra.gmra.mrb[148].mxu1 %v11841_v31  ;;  %v7342_v62 = vpop.eup %7341  ;;  %v11869_v60 = vld [vmem:[#allocation3 + $0x518] sm:$0xff]  ;;  %v11875_v61 = vld [vmem:[#allocation3 + $0x510] sm:$0xff]  ;;  %v11881_v10 = vld [vmem:[#allocation3 + $0x560] sm:$0xff] }
 0xba8   :  { %4958 = vmatpush1.bf16.msra.mxu0 %v11847_v28  ;;  %5040 = vmatpush1.bf16.msra.mxu1 %v11850_v6  ;;  %v7344_v17 = vpop.eup %7343  ;;  %v11884_v48 = vld [vmem:[#allocation3 + $0x570] sm:$0xff]  ;;  %v11887_v33 = vld [vmem:[#allocation3 + $0x558] sm:$0xff]  ;;  %v11893_v14 = vld [vmem:[#allocation3 + $0x5a8] sm:$0xff] }
 0xba9   :  { %v4882_v43 = vadd.f32 %v4833_v2, %v13603_v11  ;;  %4959 = vmatprep.subr.bf16.mxu0 %v11854_v16  ;;  %5041 = vmatprep.subr.bf16.mxu1 %v11857_v22  ;;  %v4873_v20 = vadd.f32 1.0, %v7344_v17  ;;  %v11890_v2 = vld [vmem:[#allocation3 + $0x568] sm:$0xff]  ;;  %14473 = vst [vmem:[#allocation33_spill] sm:$0xff] %v11893_v14  ;;  %v11902_v17 = vld [vmem:[#allocation3 + $0x5b0] sm:$0xff] }
 0xbaa   :  { %4989 = vmatprep.mubr.bf16.mxu0 %v13424_v24  ;;  %5071 = vmatprep.mubr.bf16.mxu1 %v13424_v24  ;;  %14472 = vst [vmem:[#allocation256_spill] sm:$0xff] %v11890_v2  ;;  %14476 = vst [vmem:[#allocation65_spill] sm:$0xff] %v11902_v17 }
 0xbab   :  { %v4885_v39 = vmul.f32 %v7342_v62, %v4882_v43  ;;  %v11896_v62 = vld [vmem:[#allocation3 + $0x5b8] sm:$0xff]  ;;  %v11899_v43 = vld [vmem:[#allocation3 + $0x5a0] sm:$0xff] }
 0xbac   :  { %4960 = vmatpush1.bf16.msra.mxu0 %v11862_v56  ;;  %5042 = vmatpush1.bf16.msra.mxu1 %v11865_v9  ;;  %14474 = vst [vmem:[#allocation35_spill] sm:$0xff] %v11896_v62  ;;  %14475 = vst [vmem:[#allocation34_spill] sm:$0xff] %v11899_v43 }
 0xbad   :  { %v4888_v27 = vadd.f32 %v4885_v39, %v14471_v44  ;;  %4961 = vmatprep.subr.bf16.mxu0 %v11869_v60  ;;  %5043 = vmatprep.subr.bf16.mxu1 %v11872_v12  ;;  %v11908_v44 = vld [vmem:[#allocation3 + $0x600] sm:$0xff] }
 0xbae   :  { %14478 = vst [vmem:[#allocation64_spill] sm:$0xff] %v11908_v44 }
 0xbaf   :  { %7345 = vtanh.f32 %v4888_v27 }
 0xbb0   :  { %4962 = vmatpush1.bf16.msra.mxu0 %v11875_v61  ;;  %5044 = vmatpush1.bf16.msra.mxu1 %v11878_v4  ;;  %7347 = vrcp.f32 %v4873_v20  ;;  %v11905_v20 = vld [vmem:[#allocation3 + $0x5f0] sm:$0xff] }
 0xbb1   :  { %4963 = vmatprep.subr.bf16.mxu0 %v11881_v10  ;;  %5045 = vmatprep.subr.bf16.mxu1 %v11884_v48  ;;  %14477 = vst [vmem:[#allocation32_spill] sm:$0xff] %v11905_v20 }
 0xbb4   :  { %4964 = vmatpush1.bf16.msra.mxu0 %v11887_v33  ;;  %5046 = vmatpush1.bf16.msra.mxu1 %v11890_v2  ;;  %v11918_v2 = vld [vmem:[#allocation3 + $0x638] sm:$0xff] }
 0xbb5   :  { %4965 = vmatprep.subr.bf16.mxu0 %v11893_v14  ;;  %5047 = vmatprep.subr.bf16.mxu1 %v11896_v62  ;;  %v11912_v14 = vld [vmem:[#allocation3 + $0x5e8] sm:$0xff] }
 0xbb6   :  { %14479 = vst [vmem:[#allocation66_spill] sm:$0xff] %v11912_v14 }
 0xbb8   :  { %4966 = vmatpush1.bf16.msra.mxu0 %v11899_v43  ;;  %5048 = vmatpush1.bf16.msra.mxu1 %v11902_v17  ;;  %v11915_v43 = vld [vmem:[#allocation3 + $0x5f8] sm:$0xff] }
 0xbb9   :  { %v7346_v39 = vpop.eup %7345  ;;  %4967 = vmatprep.subr.bf16.mxu0 %v11905_v20  ;;  %5049 = vmatprep.subr.bf16.mxu1 %v11908_v44  ;;  %14480 = vst [vmem:[#allocation67_spill] sm:$0xff] %v11915_v43  ;;  %v11921_v20 = vld [vmem:[#allocation3 + $0x648] sm:$0xff] }
 0xbba   :  { %v4894_v27 = vsub.f32 %v11466_v45, %v7346_v39  ;;  %v7348_v62 = vpop.eup %7347  ;;  %v11926_v45 = vld [vmem:[#allocation3 + $0x630] sm:$0xff] }
 0xbbb   :  { %14481 = vst [vmem:[#allocation95_spill] sm:$0xff] %v11926_v45 }
 0xbbc   :  { %4968 = vmatpush1.bf16.msra.mxu0 %v11912_v14  ;;  %5050 = vmatpush1.bf16.msra.mxu1 %v11915_v43  ;;  %v4897_v17 = vmul.f32 %v7348_v62, %v4894_v27  ;;  %v11929_v14 = vld [vmem:[#allocation3 + $0x640] sm:$0xff]  ;;  %v11935_v62 = vld [vmem:[#allocation3 + $0x690] sm:$0xff]  ;;  %v11938_v27 = vld [vmem:[#allocation3 + $0x678] sm:$0xff] }
 0xbbd   :  { %4969 = vmatprep.subr.bf16.mxu0 %v11918_v2  ;;  %5051 = vmatprep.subr.bf16.mxu1 %v11921_v20  ;;  %14482 = vst [vmem:[#allocation103_spill] sm:$0xff] %v11929_v14  ;;  %v11932_v43 = vld [vmem:[#allocation3 + $0x680] sm:$0xff]  ;;  %14484 = vst [vmem:[#allocation105_spill] sm:$0xff] %v11935_v62 }
 0xbbe   :  { %v11924_v44 = vadd.f32 %v7346_v39, %v4897_v17  ;;  %14483 = vst [vmem:[#allocation104_spill] sm:$0xff] %v11932_v43  ;;  %14485 = vst [vmem:[#allocation106_spill] sm:$0xff] %v11938_v27  ;;  %v11941_v17 = vld [vmem:[#allocation3 + $0x688] sm:$0xff] }
 0xbbf   :  { %14486 = vst [vmem:[#allocation107_spill] sm:$0xff] %v11941_v17 }
 0xbc0   :  { %4970 = vmatpush1.bf16.msra.mxu0 %v11926_v45  ;;  %5052 = vmatpush1.bf16.msra.mxu1 %v11929_v14  ;;  %v11946_v39 = vpack.c.bf16 %v11924_v44, %v11924_v44  ;;  %v11948_v14 = vld [vmem:[#allocation3 + $0x28] sm:$0xff]  ;;  %v11976_v45 = vld [vmem:[#allocation3 + $0xb8] sm:$0xff] }
 0xbc1   :  { %4971 = vmatprep.subr.bf16.mxu0 %v11932_v43  ;;  %5053 = vmatprep.subr.bf16.mxu1 %v11935_v62  ;;  %14487 = vst [vmem:[#allocation108_spill] sm:$0xff] %v11948_v14  ;;  %v11951_v43 = vld [vmem:[#allocation3 + $0x38] sm:$0xff]  ;;  %v11970_v62 = vld [vmem:[#allocation3 + $0x68] sm:$0xff]  ;;  %14495 = vst [vmem:[#allocation31_spill] sm:$0xff] %v11976_v45 }
 0xbc2   :  { %14488 = vst [vmem:[#allocation109_spill] sm:$0xff] %v11951_v43  ;;  %14493 = vst [vmem:[#allocation114_spill] sm:$0xff] %v11970_v62 }
 0xbc4   :  { %4972 = vmatpush1.bf16.msra.mxu0 %v11938_v27  ;;  %5054 = vmatpush1.bf16.msra.mxu1 %v11941_v17  ;;  %v11956_v27 = vld [vmem:[#allocation3 + $0x20] sm:$0xff]  ;;  %v11960_v17 = vld [vmem:[#allocation3 + $0x30] sm:$0xff] }
 0xbc5   :  { %5080 = vmatprep.subr.bf16.mxu0 %v11948_v14  ;;  %5162 = vmatprep.subr.bf16.mxu1 %v11951_v43  ;;  %14489 = vst [vmem:[#allocation110_spill] sm:$0xff] %v11956_v27  ;;  %14490 = vst [vmem:[#allocation111_spill] sm:$0xff] %v11960_v17  ;;  %v11964_v14 = vld [vmem:[#allocation3 + $0x70] sm:$0xff]  ;;  %v11967_v43 = vld [vmem:[#allocation3 + $0x80] sm:$0xff] }
 0xbc6   :  { %14491 = vst [vmem:[#allocation112_spill] sm:$0xff] %v11964_v14  ;;  %14492 = vst [vmem:[#allocation113_spill] sm:$0xff] %v11967_v43 }
 0xbc7   :  { %4990 = vmatmul.mubr.bf16.vlgmr.msra.gmra.mrb[128].mxu0 %v11946_v39  ;;  %5072 = vmatmul.mubr.bf16.vlgmr.msra.gmra.mrb[148].mxu1 %v11946_v39 }
 0xbc8   :  { %5081 = vmatpush1.bf16.msra.mxu0 %v11956_v27  ;;  %5112 = vmatprep.mubr.bf16.mxu0 %v11837_v54  ;;  %v11973_v27 = vld [vmem:[#allocation3 + $0x78] sm:$0xff] }
 0xbc9   :  { %5163 = vmatpush1.bf16.msra.mxu1 %v11960_v17  ;;  %5194 = vmatprep.mubr.bf16.mxu1 %v11837_v54  ;;  %14494 = vst [vmem:[#allocation29_spill] sm:$0xff] %v11973_v27  ;;  %v11979_v17 = vld [vmem:[#allocation3 + $0xc8] sm:$0xff] }
 0xbca   :  { %5082 = vmatprep.subr.bf16.mxu0 %v11964_v14  ;;  %5164 = vmatprep.subr.bf16.mxu1 %v11967_v43  ;;  %14496 = vst [vmem:[#allocation30_spill] sm:$0xff] %v11979_v17  ;;  %v11982_v14 = vld [vmem:[#allocation3 + $0xb0] sm:$0xff]  ;;  %v11985_v43 = vld [vmem:[#allocation3 + $0xc0] sm:$0xff] }
 0xbcb   :  { %14497 = vst [vmem:[#allocation61_spill] sm:$0xff] %v11982_v14  ;;  %14498 = vst [vmem:[#allocation28_spill] sm:$0xff] %v11985_v43 }
 0xbcc   :  { %5083 = vmatpush1.bf16.msra.mxu0 %v11970_v62  ;;  %v11988_v62 = vld [vmem:[#allocation3 + $0x100] sm:$0xff] }
 0xbcd   :  { %5165 = vmatpush1.bf16.msra.mxu1 %v11973_v27  ;;  %5084 = vmatprep.subr.bf16.mxu0 %v11976_v45  ;;  %14499 = vst [vmem:[#allocation26_spill] sm:$0xff] %v11988_v62  ;;  %v11991_v27 = vld [vmem:[#allocation3 + $0x110] sm:$0xff]  ;;  %v11994_v45 = vld [vmem:[#allocation3 + $0xf8] sm:$0xff] }
 0xbce   :  { %5166 = vmatprep.subr.bf16.mxu1 %v11979_v17  ;;  %14500 = vst [vmem:[#allocation27_spill] sm:$0xff] %v11991_v27  ;;  %14501 = vst [vmem:[#allocation60_spill] sm:$0xff] %v11994_v45  ;;  %v11997_v17 = vld [vmem:[#allocation3 + $0x108] sm:$0xff] }
 0xbcf   :  { %14502 = vst [vmem:[#allocation62_spill] sm:$0xff] %v11997_v17 }
 0xbd0   :  { %5085 = vmatpush1.bf16.msra.mxu0 %v11982_v14  ;;  %v12000_v14 = vld [vmem:[#allocation3 + $0x148] sm:$0xff] }
 0xbd1   :  { %5167 = vmatpush1.bf16.msra.mxu1 %v11985_v43  ;;  %5086 = vmatprep.subr.bf16.mxu0 %v11988_v62  ;;  %14503 = vst [vmem:[#allocation45_spill] sm:$0xff] %v12000_v14  ;;  %v12003_v43 = vld [vmem:[#allocation3 + $0x158] sm:$0xff]  ;;  %v12006_v62 = vld [vmem:[#allocation3 + $0x140] sm:$0xff] }
 0xbd2   :  { %5168 = vmatprep.subr.bf16.mxu1 %v11991_v27  ;;  %14504 = vst [vmem:[#allocation47_spill] sm:$0xff] %v12003_v43  ;;  %14505 = vst [vmem:[#allocation46_spill] sm:$0xff] %v12006_v62  ;;  %v12009_v27 = vld [vmem:[#allocation3 + $0x150] sm:$0xff] }
 0xbd3   :  { %14506 = vst [vmem:[#allocation77_spill] sm:$0xff] %v12009_v27 }
 0xbd4   :  { %5087 = vmatpush1.bf16.msra.mxu0 %v11994_v45  ;;  %v12012_v45 = vld [vmem:[#allocation3 + $0x190] sm:$0xff] }
 0xbd5   :  { %5169 = vmatpush1.bf16.msra.mxu1 %v11997_v17  ;;  %5088 = vmatprep.subr.bf16.mxu0 %v12000_v14  ;;  %14507 = vst [vmem:[#allocation44_spill] sm:$0xff] %v12012_v45  ;;  %v12015_v17 = vld [vmem:[#allocation3 + $0x1a0] sm:$0xff]  ;;  %v12018_v14 = vld [vmem:[#allocation3 + $0x188] sm:$0xff] }
 0xbd6   :  { %5170 = vmatprep.subr.bf16.mxu1 %v12003_v43  ;;  %14508 = vst [vmem:[#allocation76_spill] sm:$0xff] %v12015_v17  ;;  %14509 = vst [vmem:[#allocation78_spill] sm:$0xff] %v12018_v14  ;;  %v12021_v43 = vld [vmem:[#allocation3 + $0x198] sm:$0xff] }
 0xbd7   :  { %14510 = vst [vmem:[#allocation79_spill] sm:$0xff] %v12021_v43 }
 0xbd8   :  { %5089 = vmatpush1.bf16.msra.mxu0 %v12006_v62  ;;  %v12024_v62 = vld [vmem:[#allocation3 + $0x1d8] sm:$0xff] }
 0xbd9   :  { %5171 = vmatpush1.bf16.msra.mxu1 %v12009_v27  ;;  %5090 = vmatprep.subr.bf16.mxu0 %v12012_v45  ;;  %14511 = vst [vmem:[#allocation97_spill] sm:$0xff] %v12024_v62  ;;  %v12027_v27 = vld [vmem:[#allocation3 + $0x1e8] sm:$0xff]  ;;  %v12030_v45 = vld [vmem:[#allocation3 + $0x1d0] sm:$0xff] }
 0xbda   :  { %5172 = vmatprep.subr.bf16.mxu1 %v12015_v17  ;;  %14512 = vst [vmem:[#allocation63_spill] sm:$0xff] %v12027_v27  ;;  %14513 = vst [vmem:[#allocation115_spill] sm:$0xff] %v12030_v45  ;;  %v12033_v17 = vld [vmem:[#allocation3 + $0x1e0] sm:$0xff] }
 0xbdb   :  { %14514 = vst [vmem:[#allocation116_spill] sm:$0xff] %v12033_v17 }
 0xbdc   :  { %5091 = vmatpush1.bf16.msra.mxu0 %v12018_v14  ;;  %v12036_v14 = vld [vmem:[#allocation3 + $0x220] sm:$0xff] }
 0xbdd   :  { %5173 = vmatpush1.bf16.msra.mxu1 %v12021_v43  ;;  %5092 = vmatprep.subr.bf16.mxu0 %v12024_v62  ;;  %14515 = vst [vmem:[#allocation25_spill] sm:$0xff] %v12036_v14  ;;  %v12039_v43 = vld [vmem:[#allocation3 + $0x230] sm:$0xff]  ;;  %v12042_v62 = vld [vmem:[#allocation3 + $0x218] sm:$0xff] }
 0xbde   :  { %5174 = vmatprep.subr.bf16.mxu1 %v12027_v27  ;;  %14516 = vst [vmem:[#allocation117_spill] sm:$0xff] %v12039_v43  ;;  %14517 = vst [vmem:[#allocation118_spill] sm:$0xff] %v12042_v62  ;;  %v12045_v27 = vld [vmem:[#allocation3 + $0x228] sm:$0xff] }
 0xbdf   :  { %14518 = vst [vmem:[#allocation119_spill] sm:$0xff] %v12045_v27 }
 0xbe0   :  { %5093 = vmatpush1.bf16.msra.mxu0 %v12030_v45  ;;  %v12048_v45 = vld [vmem:[#allocation3 + $0x268] sm:$0xff] }
 0xbe1   :  { %5175 = vmatpush1.bf16.msra.mxu1 %v12033_v17  ;;  %5094 = vmatprep.subr.bf16.mxu0 %v12036_v14  ;;  %14519 = vst [vmem:[#allocation120_spill] sm:$0xff] %v12048_v45  ;;  %v12051_v17 = vld [vmem:[#allocation3 + $0x278] sm:$0xff]  ;;  %v12054_v14 = vld [vmem:[#allocation3 + $0x260] sm:$0xff] }
 0xbe2   :  { %5176 = vmatprep.subr.bf16.mxu1 %v12039_v43  ;;  %14520 = vst [vmem:[#allocation93_spill] sm:$0xff] %v12051_v17  ;;  %14521 = vst [vmem:[#allocation121_spill] sm:$0xff] %v12054_v14  ;;  %v12057_v43 = vld [vmem:[#allocation3 + $0x270] sm:$0xff] }
 0xbe3   :  { %14522 = vst [vmem:[#allocation122_spill] sm:$0xff] %v12057_v43 }
 0xbe4   :  { %5095 = vmatpush1.bf16.msra.mxu0 %v12042_v62  ;;  %v12060_v62 = vld [vmem:[#allocation3 + $0x2b0] sm:$0xff] }
 0xbe5   :  { %5177 = vmatpush1.bf16.msra.mxu1 %v12045_v27  ;;  %5096 = vmatprep.subr.bf16.mxu0 %v12048_v45  ;;  %14523 = vst [vmem:[#allocation123_spill] sm:$0xff] %v12060_v62  ;;  %v12063_v27 = vld [vmem:[#allocation3 + $0x2c0] sm:$0xff]  ;;  %v12066_v45 = vld [vmem:[#allocation3 + $0x2a8] sm:$0xff] }
 0xbe6   :  { %5178 = vmatprep.subr.bf16.mxu1 %v12051_v17  ;;  %14524 = vst [vmem:[#allocation124_spill] sm:$0xff] %v12063_v27  ;;  %14525 = vst [vmem:[#allocation37_spill] sm:$0xff] %v12066_v45  ;;  %v12069_v17 = vld [vmem:[#allocation3 + $0x2b8] sm:$0xff] }
 0xbe7   :  { %14526 = vst [vmem:[#allocation39_spill] sm:$0xff] %v12069_v17 }
 0xbe8   :  { %5097 = vmatpush1.bf16.msra.mxu0 %v12054_v14  ;;  %v12072_v14 = vld [vmem:[#allocation3 + $0x2f8] sm:$0xff] }
 0xbe9   :  { %5179 = vmatpush1.bf16.msra.mxu1 %v12057_v43  ;;  %5098 = vmatprep.subr.bf16.mxu0 %v12060_v62  ;;  %14527 = vst [vmem:[#allocation38_spill] sm:$0xff] %v12072_v14  ;;  %v12075_v43 = vld [vmem:[#allocation3 + $0x308] sm:$0xff]  ;;  %v12078_v62 = vld [vmem:[#allocation3 + $0x2f0] sm:$0xff] }
 0xbea   :  { %5180 = vmatprep.subr.bf16.mxu1 %v12063_v27  ;;  %14528 = vst [vmem:[#allocation69_spill] sm:$0xff] %v12075_v43  ;;  %14529 = vst [vmem:[#allocation36_spill] sm:$0xff] %v12078_v62  ;;  %v12081_v27 = vld [vmem:[#allocation3 + $0x300] sm:$0xff] }
 0xbeb   :  { %14530 = vst [vmem:[#allocation68_spill] sm:$0xff] %v12081_v27 }
 0xbec   :  { %5099 = vmatpush1.bf16.msra.mxu0 %v12066_v45  ;;  %v12084_v45 = vld [vmem:[#allocation3 + $0x340] sm:$0xff] }
 0xbed   :  { %5181 = vmatpush1.bf16.msra.mxu1 %v12069_v17  ;;  %5100 = vmatprep.subr.bf16.mxu0 %v12072_v14  ;;  %14531 = vst [vmem:[#allocation70_spill] sm:$0xff] %v12084_v45  ;;  %v12087_v17 = vld [vmem:[#allocation3 + $0x350] sm:$0xff]  ;;  %v12090_v14 = vld [vmem:[#allocation3 + $0x338] sm:$0xff] }
 0xbee   :  { %5182 = vmatprep.subr.bf16.mxu1 %v12075_v43  ;;  %14532 = vst [vmem:[#allocation71_spill] sm:$0xff] %v12087_v17  ;;  %14533 = vst [vmem:[#allocation92_spill] sm:$0xff] %v12090_v14  ;;  %v12093_v43 = vld [vmem:[#allocation3 + $0x348] sm:$0xff] }
 0xbef   :  { %14534 = vst [vmem:[#allocation125_spill] sm:$0xff] %v12093_v43 }
 0xbf0   :  { %5101 = vmatpush1.bf16.msra.mxu0 %v12078_v62  ;;  %v12096_v62 = vld [vmem:[#allocation3 + $0x388] sm:$0xff] }
 0xbf1   :  { %5183 = vmatpush1.bf16.msra.mxu1 %v12081_v27  ;;  %5102 = vmatprep.subr.bf16.mxu0 %v12084_v45  ;;  %14535 = vst [vmem:[#allocation126_spill] sm:$0xff] %v12096_v62  ;;  %v12099_v27 = vld [vmem:[#allocation3 + $0x398] sm:$0xff]  ;;  %v12102_v45 = vld [vmem:[#allocation3 + $0x380] sm:$0xff] }
 0xbf2   :  { %5184 = vmatprep.subr.bf16.mxu1 %v12087_v17  ;;  %14536 = vst [vmem:[#allocation127_spill] sm:$0xff] %v12099_v27  ;;  %14537 = vst [vmem:[#allocation128_spill] sm:$0xff] %v12102_v45  ;;  %v12105_v17 = vld [vmem:[#allocation3 + $0x390] sm:$0xff] }
 0xbf3   :  { %14538 = vst [vmem:[#allocation129_spill] sm:$0xff] %v12105_v17 }
 0xbf4   :  { %5103 = vmatpush1.bf16.msra.mxu0 %v12090_v14  ;;  %v12108_v14 = vld [vmem:[#allocation3 + $0x3d0] sm:$0xff] }
 0xbf5   :  { %5185 = vmatpush1.bf16.msra.mxu1 %v12093_v43  ;;  %5104 = vmatprep.subr.bf16.mxu0 %v12096_v62  ;;  %14539 = vst [vmem:[#allocation130_spill] sm:$0xff] %v12108_v14  ;;  %v12111_v43 = vld [vmem:[#allocation3 + $0x3e0] sm:$0xff]  ;;  %v12114_v62 = vld [vmem:[#allocation3 + $0x3c8] sm:$0xff] }
 0xbf6   :  { %5186 = vmatprep.subr.bf16.mxu1 %v12099_v27  ;;  %14540 = vst [vmem:[#allocation131_spill] sm:$0xff] %v12111_v43  ;;  %14541 = vst [vmem:[#allocation132_spill] sm:$0xff] %v12114_v62  ;;  %v12117_v27 = vld [vmem:[#allocation3 + $0x3d8] sm:$0xff] }
 0xbf7   :  { %14542 = vst [vmem:[#allocation133_spill] sm:$0xff] %v12117_v27 }
 0xbf8   :  { %5105 = vmatpush1.bf16.msra.mxu0 %v12102_v45  ;;  %v12120_v45 = vld [vmem:[#allocation3 + $0x418] sm:$0xff] }
 0xbf9   :  { %5187 = vmatpush1.bf16.msra.mxu1 %v12105_v17  ;;  %5106 = vmatprep.subr.bf16.mxu0 %v12108_v14  ;;  %14543 = vst [vmem:[#allocation134_spill] sm:$0xff] %v12120_v45  ;;  %v12123_v17 = vld [vmem:[#allocation3 + $0x428] sm:$0xff]  ;;  %v12126_v14 = vld [vmem:[#allocation3 + $0x410] sm:$0xff] }
 0xbfa   :  { %5188 = vmatprep.subr.bf16.mxu1 %v12111_v43  ;;  %14544 = vst [vmem:[#allocation135_spill] sm:$0xff] %v12123_v17  ;;  %14545 = vst [vmem:[#allocation136_spill] sm:$0xff] %v12126_v14  ;;  %v12129_v43 = vld [vmem:[#allocation3 + $0x420] sm:$0xff] }
 0xbfb   :  { %14546 = vst [vmem:[#allocation137_spill] sm:$0xff] %v12129_v43 }
 0xbfc   :  { %5107 = vmatpush1.bf16.msra.mxu0 %v12114_v62  ;;  %v12132_v62 = vld [vmem:[#allocation3 + $0x460] sm:$0xff] }
 0xbfd   :  { %5189 = vmatpush1.bf16.msra.mxu1 %v12117_v27  ;;  %5108 = vmatprep.subr.bf16.mxu0 %v12120_v45  ;;  %14547 = vst [vmem:[#allocation138_spill] sm:$0xff] %v12132_v62  ;;  %v12135_v27 = vld [vmem:[#allocation3 + $0x470] sm:$0xff]  ;;  %v12138_v45 = vld [vmem:[#allocation3 + $0x458] sm:$0xff] }
 0xbfe   :  { %5190 = vmatprep.subr.bf16.mxu1 %v12123_v17  ;;  %14548 = vst [vmem:[#allocation139_spill] sm:$0xff] %v12135_v27  ;;  %14549 = vst [vmem:[#allocation140_spill] sm:$0xff] %v12138_v45  ;;  %v12141_v17 = vld [vmem:[#allocation3 + $0x468] sm:$0xff] }
 0xbff   :  { %14550 = vst [vmem:[#allocation141_spill] sm:$0xff] %v12141_v17 }
 0xc00   :  { %5109 = vmatpush1.bf16.msra.mxu0 %v12126_v14  ;;  %v12144_v14 = vld [vmem:[#allocation3 + $0x4a8] sm:$0xff] }
 0xc01   :  { %5191 = vmatpush1.bf16.msra.mxu1 %v12129_v43  ;;  %5110 = vmatprep.subr.bf16.mxu0 %v12132_v62  ;;  %14551 = vst [vmem:[#allocation142_spill] sm:$0xff] %v12144_v14  ;;  %v12147_v43 = vld [vmem:[#allocation3 + $0x4b8] sm:$0xff]  ;;  %v12181_v62 = vld [vmem:[#allocation3 + $0x540] sm:$0xff] }
 0xc02   :  { %5192 = vmatprep.subr.bf16.mxu1 %v12135_v27  ;;  %14552 = vst [vmem:[#allocation143_spill] sm:$0xff] %v12147_v43  ;;  %v12152_v27 = vld [vmem:[#allocation3 + $0x4a0] sm:$0xff]  ;;  %14562 = vst [vmem:[#allocation153_spill] sm:$0xff] %v12181_v62 }
 0xc03   :  { %14553 = vst [vmem:[#allocation144_spill] sm:$0xff] %v12152_v27 }
 0xc04   :  { %5111 = vmatpush1.bf16.msra.mxu0 %v12138_v45  ;;  %v12155_v45 = vld [vmem:[#allocation3 + $0x4b0] sm:$0xff] }
 0xc05   :  { %5193 = vmatpush1.bf16.msra.mxu1 %v12141_v17  ;;  %5121 = vmatprep.subr.bf16.mxu0 %v12144_v14  ;;  %14554 = vst [vmem:[#allocation145_spill] sm:$0xff] %v12155_v45  ;;  %v12158_v17 = vld [vmem:[#allocation3 + $0x4f0] sm:$0xff]  ;;  %v12161_v14 = vld [vmem:[#allocation3 + $0x500] sm:$0xff] }
 0xc06   :  { %5203 = vmatprep.subr.bf16.mxu1 %v12147_v43  ;;  %14555 = vst [vmem:[#allocation146_spill] sm:$0xff] %v12158_v17  ;;  %14556 = vst [vmem:[#allocation147_spill] sm:$0xff] %v12161_v14  ;;  %v12166_v43 = vld [vmem:[#allocation3 + $0x4e8] sm:$0xff] }
 0xc07   :  { %5113 = vmatmul.mubr.bf16.vlgmr.msra.gmra.mrb[132].mxu0 %v11841_v31  ;;  %14557 = vst [vmem:[#allocation148_spill] sm:$0xff] %v12166_v43 }
 0xc08   :  { %5195 = vmatmul.mubr.bf16.vlgmr.msra.gmra.mrb[152].mxu1 %v11841_v31  ;;  %5122 = vmatpush1.bf16.msra.mxu0 %v12152_v27  ;;  %v12169_v27 = vld [vmem:[#allocation3 + $0x4f8] sm:$0xff] }
 0xc09   :  { %5204 = vmatpush1.bf16.msra.mxu1 %v12155_v45  ;;  %5123 = vmatprep.subr.bf16.mxu0 %v12158_v17  ;;  %14558 = vst [vmem:[#allocation149_spill] sm:$0xff] %v12169_v27  ;;  %v12172_v45 = vld [vmem:[#allocation3 + $0x538] sm:$0xff]  ;;  %v12175_v17 = vld [vmem:[#allocation3 + $0x548] sm:$0xff] }
 0xc0a   :  { %5205 = vmatprep.subr.bf16.mxu1 %v12161_v14  ;;  %5153 = vmatprep.mubr.bf16.mxu0 %v13424_v24  ;;  %14559 = vst [vmem:[#allocation150_spill] sm:$0xff] %v12172_v45  ;;  %14560 = vst [vmem:[#allocation151_spill] sm:$0xff] %v12175_v17  ;;  %v12178_v14 = vld [vmem:[#allocation3 + $0x530] sm:$0xff] }
 0xc0b   :  { %5235 = vmatprep.mubr.bf16.mxu1 %v13424_v24  ;;  %14561 = vst [vmem:[#allocation152_spill] sm:$0xff] %v12178_v14 }
 0xc0c   :  { %5124 = vmatpush1.bf16.msra.mxu0 %v12166_v43  ;;  %v12184_v43 = vld [vmem:[#allocation3 + $0x580] sm:$0xff] }
 0xc0d   :  { %5206 = vmatpush1.bf16.msra.mxu1 %v12169_v27  ;;  %5125 = vmatprep.subr.bf16.mxu0 %v12172_v45  ;;  %14563 = vst [vmem:[#allocation154_spill] sm:$0xff] %v12184_v43  ;;  %v12187_v27 = vld [vmem:[#allocation3 + $0x590] sm:$0xff]  ;;  %v12190_v45 = vld [vmem:[#allocation3 + $0x578] sm:$0xff] }
 0xc0e   :  { %5207 = vmatprep.subr.bf16.mxu1 %v12175_v17  ;;  %14564 = vst [vmem:[#allocation155_spill] sm:$0xff] %v12187_v27  ;;  %14565 = vst [vmem:[#allocation156_spill] sm:$0xff] %v12190_v45  ;;  %v12193_v17 = vld [vmem:[#allocation3 + $0x588] sm:$0xff] }
 0xc0f   :  { %14566 = vst [vmem:[#allocation157_spill] sm:$0xff] %v12193_v17 }
 0xc10   :  { %5126 = vmatpush1.bf16.msra.mxu0 %v12178_v14  ;;  %v12196_v14 = vld [vmem:[#allocation3 + $0x5c8] sm:$0xff] }
 0xc11   :  { %5208 = vmatpush1.bf16.msra.mxu1 %v12181_v62  ;;  %5127 = vmatprep.subr.bf16.mxu0 %v12184_v43  ;;  %14567 = vst [vmem:[#allocation158_spill] sm:$0xff] %v12196_v14  ;;  %v12199_v62 = vld [vmem:[#allocation3 + $0x5d8] sm:$0xff]  ;;  %v12202_v43 = vld [vmem:[#allocation3 + $0x5c0] sm:$0xff] }
 0xc12   :  { %5209 = vmatprep.subr.bf16.mxu1 %v12187_v27  ;;  %14568 = vst [vmem:[#allocation159_spill] sm:$0xff] %v12199_v62  ;;  %14569 = vst [vmem:[#allocation160_spill] sm:$0xff] %v12202_v43  ;;  %v12205_v27 = vld [vmem:[#allocation3 + $0x5d0] sm:$0xff] }
 0xc13   :  { %14570 = vst [vmem:[#allocation161_spill] sm:$0xff] %v12205_v27 }
 0xc14   :  { %5128 = vmatpush1.bf16.msra.mxu0 %v12190_v45  ;;  %v12208_v45 = vld [vmem:[#allocation3 + $0x610] sm:$0xff] }
 0xc15   :  { %5210 = vmatpush1.bf16.msra.mxu1 %v12193_v17  ;;  %5129 = vmatprep.subr.bf16.mxu0 %v12196_v14  ;;  %14571 = vst [vmem:[#allocation162_spill] sm:$0xff] %v12208_v45  ;;  %v12211_v17 = vld [vmem:[#allocation3 + $0x620] sm:$0xff]  ;;  %v12214_v14 = vld [vmem:[#allocation3 + $0x608] sm:$0xff] }
 0xc16   :  { %5211 = vmatprep.subr.bf16.mxu1 %v12199_v62  ;;  %14572 = vst [vmem:[#allocation163_spill] sm:$0xff] %v12211_v17  ;;  %14573 = vst [vmem:[#allocation164_spill] sm:$0xff] %v12214_v14  ;;  %v12217_v62 = vld [vmem:[#allocation3 + $0x618] sm:$0xff] }
 0xc17   :  { %14574 = vst [vmem:[#allocation165_spill] sm:$0xff] %v12217_v62 }
 0xc18   :  { %5130 = vmatpush1.bf16.msra.mxu0 %v12202_v43  ;;  %v12220_v43 = vld [vmem:[#allocation3 + $0x658] sm:$0xff] }
 0xc19   :  { %5212 = vmatpush1.bf16.msra.mxu1 %v12205_v27  ;;  %5131 = vmatprep.subr.bf16.mxu0 %v12208_v45  ;;  %14575 = vst [vmem:[#allocation166_spill] sm:$0xff] %v12220_v43  ;;  %v12223_v27 = vld [vmem:[#allocation3 + $0x668] sm:$0xff]  ;;  %v12226_v45 = vld [vmem:[#allocation3 + $0x650] sm:$0xff] }
 0xc1a   :  { %5213 = vmatprep.subr.bf16.mxu1 %v12211_v17  ;;  %14576 = vst [vmem:[#allocation167_spill] sm:$0xff] %v12223_v27  ;;  %14577 = vst [vmem:[#allocation168_spill] sm:$0xff] %v12226_v45  ;;  %v12229_v17 = vld [vmem:[#allocation3 + $0x660] sm:$0xff] }
 0xc1c   :  { %5132 = vmatpush1.bf16.msra.mxu0 %v12214_v14  ;;  %v12232_v14 = vld [vmem:[#allocation3 + $0x6a0] sm:$0xff] }
 0xc1d   :  { %5214 = vmatpush1.bf16.msra.mxu1 %v12217_v62  ;;  %5133 = vmatprep.subr.bf16.mxu0 %v12220_v43  ;;  %14578 = vst [vmem:[#allocation169_spill] sm:$0xff] %v12232_v14  ;;  %v12235_v62 = vld [vmem:[#allocation3 + $0x6b0] sm:$0xff]  ;;  %v12238_v43 = vld [vmem:[#allocation3 + $0x698] sm:$0xff] }
 0xc1e   :  { %5215 = vmatprep.subr.bf16.mxu1 %v12223_v27  ;;  %14579 = vst [vmem:[#allocation170_spill] sm:$0xff] %v12235_v62  ;;  %14580 = vst [vmem:[#allocation171_spill] sm:$0xff] %v12238_v43  ;;  %v12241_v27 = vld [vmem:[#allocation3 + $0x6a8] sm:$0xff] }
 0xc1f   :  { %14581 = vst [vmem:[#allocation172_spill] sm:$0xff] %v12241_v27 }
 0xc20   :  { %5134 = vmatpush1.bf16.msra.mxu0 %v12226_v45  ;;  %v12244_v45 = vld [vmem:[#allocation3 + $0x280] sm:$0xff] }
 0xc21   :  { %5216 = vmatpush1.bf16.msra.mxu1 %v12229_v17  ;;  %5135 = vmatprep.subr.bf16.mxu0 %v12232_v14  ;;  %14582 = vst [vmem:[#allocation173_spill] sm:$0xff] %v12244_v45  ;;  %v12250_v14 = vld [vmem:[#allocation3 + $0x40] sm:$0xff] }
 0xc22   :  { %5217 = vmatprep.subr.bf16.mxu1 %v12235_v62  ;;  %14583 = vst [vmem:[#allocation174_spill] sm:$0xff] %v12250_v14  ;;  %v12279_v62 = vld [vmem:[#allocation3 + $0x358] sm:$0xff] }
 0xc23   :  { %14591 = vst [vmem:[#allocation182_spill] sm:$0xff] %v12279_v62 }
 0xc24   :  { %5136 = vmatpush1.bf16.msra.mxu0 %v12238_v43  ;;  %v12254_v43 = vld [vmem:[#allocation3 + $0x4c0] sm:$0xff] }
 0xc25   :  { %5218 = vmatpush1.bf16.msra.mxu1 %v12241_v27  ;;  %6583 = vmatprep.subr.bf16.mxu0 %v12244_v45  ;;  %14584 = vst [vmem:[#allocation175_spill] sm:$0xff] %v12254_v43  ;;  %v12257_v27 = vld [vmem:[#allocation3 + $0x2c8] sm:$0xff] }
 0xc26   :  { %6832 = vmatprep.subr.bf16.mxu1 %v13420_v8  ;;  %14585 = vst [vmem:[#allocation176_spill] sm:$0xff] %v12257_v27  ;;  %v12263_v45 = vld [vmem:[#allocation3 + $0x88] sm:$0xff] }
 0xc27   :  { %5154 = vmatmul.mubr.bf16.vlgmr.msra.gmra.mrb[132].mxu0 %v11946_v39  ;;  %14586 = vst [vmem:[#allocation177_spill] sm:$0xff] %v12263_v45 }
 0xc28   :  { %5236 = vmatmul.mubr.bf16.vlgmr.msra.gmra.mrb[156].mxu1 %v11946_v39  ;;  %6584 = vmatpush3.bf16.msra.mxu0 %v12250_v14  ;;  %v12266_v14 = vld [vmem:[#allocation3 + $0x508] sm:$0xff] }
 0xc29   :  { %5276 = vmatprep.mubr.bf16.mxu0 %v11837_v54  ;;  %6833 = vmatpush3.bf16.msra.mxu1 %v12254_v43  ;;  %14587 = vst [vmem:[#allocation178_spill] sm:$0xff] %v12266_v14  ;;  %v12269_v54 = vld [vmem:[#allocation3 + $0x310] sm:$0xff] }
 0xc2a   :  { %6585 = vmatprep.subr.bf16.mxu0 %v12257_v27  ;;  %6834 = vmatprep.subr.bf16.mxu1 %v13420_v8  ;;  %14588 = vst [vmem:[#allocation179_spill] sm:$0xff] %v12269_v54  ;;  %v12273_v27 = vld [vmem:[#allocation3 + $0xd0] sm:$0xff] }
 0xc2b   :  { %6848 = vmatprep.mubr.msk.bf16.mxu1 %vm8178_vm1, %v13420_v8  ;;  %14589 = vst [vmem:[#allocation180_spill] sm:$0xff] %v12273_v27  ;;  %v12276_v43 = vld [vmem:[#allocation3 + $0x550] sm:$0xff] }
 0xc2c   :  { %6586 = vmatpush3.bf16.msra.mxu0 %v12263_v45  ;;  %14590 = vst [vmem:[#allocation181_spill] sm:$0xff] %v12276_v43  ;;  %v12289_v45 = vld [vmem:[#allocation3 + $0x3a0] sm:$0xff] }
 0xc2d   :  { %6835 = vmatpush3.bf16.msra.mxu1 %v12266_v14  ;;  %6587 = vmatprep.subr.bf16.mxu0 %v12269_v54  ;;  %v12283_v14 = vld [vmem:[#allocation3 + $0x118] sm:$0xff]  ;;  %14594 = vst [vmem:[#allocation185_spill] sm:$0xff] %v12289_v45 }
 0xc2e   :  { %6836 = vmatprep.subr.bf16.mxu1 %v13420_v8  ;;  %14592 = vst [vmem:[#allocation183_spill] sm:$0xff] %v12283_v14  ;;  %v12286_v54 = vld [vmem:[#allocation3 + $0x598] sm:$0xff] }
 0xc2f   :  { %14593 = vst [vmem:[#allocation184_spill] sm:$0xff] %v12286_v54 }
 0xc30   :  { %6588 = vmatpush3.bf16.msra.mxu0 %v12273_v27  ;;  %v12299_v27 = vld [vmem:[#allocation3 + $0x3e8] sm:$0xff] }
 0xc31   :  { %6837 = vmatpush3.bf16.msra.mxu1 %v12276_v43  ;;  %6589 = vmatprep.subr.bf16.mxu0 %v12279_v62  ;;  %v12293_v43 = vld [vmem:[#allocation3 + $0x160] sm:$0xff]  ;;  %14597 = vst [vmem:[#allocation188_spill] sm:$0xff] %v12299_v27 }
 0xc32   :  { %6838 = vmatprep.subr.bf16.mxu1 %v13420_v8  ;;  %14595 = vst [vmem:[#allocation186_spill] sm:$0xff] %v12293_v43  ;;  %v12296_v62 = vld [vmem:[#allocation3 + $0x5e0] sm:$0xff] }
 0xc33   :  { %14596 = vst [vmem:[#allocation187_spill] sm:$0xff] %v12296_v62 }
 0xc34   :  { %6590 = vmatpush3.bf16.msra.mxu0 %v12283_v14  ;;  %v12309_v14 = vld [vmem:[#allocation3 + $0x430] sm:$0xff] }
 0xc35   :  { %6839 = vmatpush3.bf16.msra.mxu1 %v12286_v54  ;;  %6591 = vmatprep.subr.bf16.mxu0 %v12289_v45  ;;  %v12303_v54 = vld [vmem:[#allocation3 + $0x1a8] sm:$0xff]  ;;  %14599 = vst [vmem:[#allocation190_spill] sm:$0xff] %v12309_v14 }
 0xc36   :  { %6840 = vmatprep.subr.bf16.mxu1 %v13420_v8  ;;  %v12306_v45 = vld [vmem:[#allocation3 + $0x628] sm:$0xff] }
 0xc37   :  { %14598 = vst [vmem:[#allocation189_spill] sm:$0xff] %v12306_v45 }
 0xc38   :  { %6592 = vmatpush3.bf16.msra.mxu0 %v12293_v43  ;;  %v12319_v43 = vld [vmem:[#allocation3 + $0x478] sm:$0xff] }
 0xc39   :  { %6841 = vmatpush3.bf16.msra.mxu1 %v12296_v62  ;;  %6593 = vmatprep.subr.bf16.mxu0 %v12299_v27  ;;  %v12313_v62 = vld [vmem:[#allocation3 + $0x1f0] sm:$0xff] }
 0xc3a   :  { %6842 = vmatprep.subr.bf16.mxu1 %v13420_v8  ;;  %v12316_v27 = vld [vmem:[#allocation3 + $0x670] sm:$0xff] }
 0xc3c   :  { %6594 = vmatpush3.bf16.msra.mxu0 %v12303_v54 }
 0xc3d   :  { %6843 = vmatpush3.bf16.msra.mxu1 %v12306_v45  ;;  %6595 = vmatprep.subr.bf16.mxu0 %v12309_v14  ;;  %v12323_v45 = vld [vmem:[#allocation3 + $0x238] sm:$0xff] }
 0xc3e   :  { %6844 = vmatprep.subr.bf16.mxu1 %v13420_v8  ;;  %v12326_v14 = vld [vmem:[#allocation3 + $0x6b8] sm:$0xff] }
 0xc40   :  { %6596 = vmatpush3.bf16.msra.mxu0 %v12313_v62 }
 0xc41   :  { %6845 = vmatpush3.bf16.msra.mxu1 %v12316_v27  ;;  %6597 = vmatprep.subr.bf16.mxu0 %v12319_v43 }
 0xc42   :  { %6846 = vmatprep.subr.bf16.mxu1 %v13420_v8 }
 0xc44   :  { %6598 = vmatpush3.bf16.msra.mxu0 %v12323_v45 }
 0xc45   :  { %6847 = vmatpush3.bf16.msra.mxu1 %v12326_v14  ;;  %5402 = vmatprep.subr.bf16.mxu0 %v11619_v34  ;;  %v14600_v34 = vld [vmem:[#allocation231_spill] sm:$0xff] }
 0xc46   :  { %5484 = vmatprep.subr.bf16.mxu1 %v11622_v0  ;;  %v14601_v0 = vld [vmem:[#allocation232_spill] sm:$0xff] }
 0xc47   :  { %5277 = vmatmul.mubr.bf16.vlgmr.msra.gmra.mrb[136].mxu0 %v11841_v31  ;;  %v14632_v31 = vld [vmem:[#allocation254_spill] sm:$0xff] }
 0xc48   :  { %6849 = vmatmul.mubr.bf16.vlgmr.msra.gmra.mrb[160].mxu1 %v11946_v39  ;;  %5403 = vmatpush1.bf16.msra.mxu0 %v11627_v7  ;;  %v14602_v7 = vld [vmem:[#allocation233_spill] sm:$0xff]  ;;  %v14633_v39 = vld [vmem:[#allocation255_spill] sm:$0xff] }
 0xc49   :  { %5485 = vmatpush1.bf16.msra.mxu1 %v11630_v59  ;;  %5404 = vmatprep.subr.bf16.mxu0 %v11633_v38  ;;  %v14603_v59 = vld [vmem:[#allocation234_spill] sm:$0xff]  ;;  %v14604_v38 = vld [vmem:[#allocation235_spill] sm:$0xff] }
 0xc4a   :  { %5486 = vmatprep.subr.bf16.mxu1 %v11636_v41  ;;  %v14605_v41 = vld [vmem:[#allocation236_spill] sm:$0xff] }
 0xc4c   :  { %5405 = vmatpush1.bf16.msra.mxu0 %v11639_v40  ;;  %v14606_v40 = vld [vmem:[#allocation237_spill] sm:$0xff] }
 0xc4d   :  { %5487 = vmatpush1.bf16.msra.mxu1 %v11642_v21  ;;  %5406 = vmatprep.subr.bf16.mxu0 %v11645_v55  ;;  %v14607_v21 = vld [vmem:[#allocation238_spill] sm:$0xff]  ;;  %v14608_v55 = vld [vmem:[#allocation239_spill] sm:$0xff] }
 0xc4e   :  { %5488 = vmatprep.subr.bf16.mxu1 %v11648_v15  ;;  %v14609_v15 = vld [vmem:[#allocation240_spill] sm:$0xff] }
 0xc50   :  { %5407 = vmatpush1.bf16.msra.mxu0 %v11651_v37  ;;  %v14610_v37 = vld [vmem:[#allocation241_spill] sm:$0xff] }
 0xc51   :  { %5489 = vmatpush1.bf16.msra.mxu1 %v11654_v25  ;;  %5408 = vmatprep.subr.bf16.mxu0 %v11657_v46  ;;  %v14611_v25 = vld [vmem:[#allocation242_spill] sm:$0xff]  ;;  %v14612_v46 = vld [vmem:[#allocation243_spill] sm:$0xff] }
 0xc52   :  { %5490 = vmatprep.subr.bf16.mxu1 %v11660_v5  ;;  %v14613_v5 = vld [vmem:[#allocation244_spill] sm:$0xff] }
 0xc54   :  { %5409 = vmatpush1.bf16.msra.mxu0 %v11663_v13  ;;  %v14614_v13 = vld [vmem:[#allocation245_spill] sm:$0xff] }
 0xc55   :  { %5491 = vmatpush1.bf16.msra.mxu1 %v11666_v3  ;;  %5410 = vmatprep.subr.bf16.mxu0 %v11669_v53  ;;  %v14615_v3 = vld [vmem:[#allocation246_spill] sm:$0xff]  ;;  %v14616_v53 = vld [vmem:[#allocation247_spill] sm:$0xff] }
 0xc56   :  { %5492 = vmatprep.subr.bf16.mxu1 %v11672_v58  ;;  %v14617_v58 = vld [vmem:[#allocation248_spill] sm:$0xff] }
 0xc58   :  { %5411 = vmatpush1.bf16.msra.mxu0 %v11675_v49  ;;  %v14618_v49 = vld [vmem:[#allocation249_spill] sm:$0xff] }
 0xc59   :  { %5493 = vmatpush1.bf16.msra.mxu1 %v11678_v36  ;;  %5412 = vmatprep.subr.bf16.mxu0 %v11681_v52  ;;  %v14619_v36 = vld [vmem:[#allocation250_spill] sm:$0xff]  ;;  %v14620_v52 = vld [vmem:[#allocation251_spill] sm:$0xff] }
 0xc5a   :  { %5494 = vmatprep.subr.bf16.mxu1 %v11684_v29  ;;  %v14621_v29 = vld [vmem:[#allocation252_spill] sm:$0xff] }
 0xc5c   :  { %5413 = vmatpush1.bf16.msra.mxu0 %v11687_v35  ;;  %v14622_v35 = vld [vmem:[#allocation41_spill] sm:$0xff] }
 0xc5d   :  { %5495 = vmatpush1.bf16.msra.mxu1 %v11690_v18  ;;  %5414 = vmatprep.subr.bf16.mxu0 %v11693_v63  ;;  %v14623_v18 = vld [vmem:[#allocation43_spill] sm:$0xff]  ;;  %v14624_v63 = vld [vmem:[#allocation42_spill] sm:$0xff] }
 0xc5e   :  { %5496 = vmatprep.subr.bf16.mxu1 %v11696_v32  ;;  %v14625_v32 = vld [vmem:[#allocation73_spill] sm:$0xff] }
 0xc60   :  { %5415 = vmatpush1.bf16.msra.mxu0 %v11699_v57  ;;  %v14626_v57 = vld [vmem:[#allocation40_spill] sm:$0xff] }
 0xc61   :  { %5497 = vmatpush1.bf16.msra.mxu1 %v11702_v47  ;;  %5416 = vmatprep.subr.bf16.mxu0 %v11705_v1  ;;  %v14627_v47 = vld [vmem:[#allocation72_spill] sm:$0xff]  ;;  %v14628_v1 = vld [vmem:[#allocation74_spill] sm:$0xff] }
 0xc62   :  { %5498 = vmatprep.subr.bf16.mxu1 %v11708_v23  ;;  %v14629_v23 = vld [vmem:[#allocation75_spill] sm:$0xff] }
 0xc64   :  { %5417 = vmatpush1.bf16.msra.mxu0 %v11711_v50  ;;  %v14630_v50 = vld [vmem:[#allocation94_spill] sm:$0xff] }
 0xc65   :  { %5499 = vmatpush1.bf16.msra.mxu1 %v11714_v42  ;;  %5418 = vmatprep.subr.bf16.mxu0 %v14600_v34  ;;  %v14631_v42 = vld [vmem:[#allocation253_spill] sm:$0xff] }
 0xc66   :  { %5500 = vmatprep.subr.bf16.mxu1 %v14601_v0 }
 0xc68   :  { %5419 = vmatpush1.bf16.msra.mxu0 %v14602_v7 }
 0xc69   :  { %5501 = vmatpush1.bf16.msra.mxu1 %v14603_v59  ;;  %5420 = vmatprep.subr.bf16.mxu0 %v14604_v38 }
 0xc6a   :  { %5502 = vmatprep.subr.bf16.mxu1 %v14605_v41 }
 0xc6c   :  { %5421 = vmatpush1.bf16.msra.mxu0 %v14606_v40 }
 0xc6d   :  { %5503 = vmatpush1.bf16.msra.mxu1 %v14607_v21  ;;  %5422 = vmatprep.subr.bf16.mxu0 %v14608_v55 }
 0xc6e   :  { %5504 = vmatprep.subr.bf16.mxu1 %v14609_v15  ;;  %v14634_v15 = vld [vmem:[#allocation53_spill] sm:$0xff] }
 0xc70   :  { %5423 = vmatpush1.bf16.msra.mxu0 %v14610_v37 }
 0xc71   :  { %5505 = vmatpush1.bf16.msra.mxu1 %v14611_v25  ;;  %5424 = vmatprep.subr.bf16.mxu0 %v14612_v46  ;;  %v14635_v46 = vld [vmem:[#allocation55_spill] sm:$0xff] }
 0xc72   :  { %5506 = vmatprep.subr.bf16.mxu1 %v14613_v5 }
 0xc74   :  { %5425 = vmatpush1.bf16.msra.mxu0 %v14614_v13 }
 0xc75   :  { %5507 = vmatpush1.bf16.msra.mxu1 %v14615_v3  ;;  %5426 = vmatprep.subr.bf16.mxu0 %v14616_v53 }
 0xc76   :  { %5508 = vmatprep.subr.bf16.mxu1 %v14617_v58 }
 0xc78   :  { %5427 = vmatpush1.bf16.msra.mxu0 %v14618_v49  ;;  %v14636_v49 = vld [vmem:[#allocation54_spill] sm:$0xff] }
 0xc79   :  { %5509 = vmatpush1.bf16.msra.mxu1 %v14619_v36  ;;  %5428 = vmatprep.subr.bf16.mxu0 %v14620_v52 }
 0xc7a   :  { %5510 = vmatprep.subr.bf16.mxu1 %v14621_v29 }
 0xc7c   :  { %5429 = vmatpush1.bf16.msra.mxu0 %v14622_v35 }
 0xc7d   :  { %5511 = vmatpush1.bf16.msra.mxu1 %v14623_v18  ;;  %5430 = vmatprep.subr.bf16.mxu0 %v14624_v63 }
 0xc7e   :  { %5512 = vmatprep.subr.bf16.mxu1 %v14625_v32 }
 0xc80   :  { %5431 = vmatpush1.bf16.msra.mxu0 %v14626_v57  ;;  %v14637_v57 = vld [vmem:[#allocation85_spill] sm:$0xff] }
 0xc81   :  { %5513 = vmatpush1.bf16.msra.mxu1 %v14627_v47  ;;  %5432 = vmatprep.subr.bf16.mxu0 %v14628_v1 }
 0xc82   :  { %5514 = vmatprep.subr.bf16.mxu1 %v14629_v23 }
 0xc84   :  { %5433 = vmatpush1.bf16.msra.mxu0 %v14630_v50 }
 0xc85   :  { %5515 = vmatpush1.bf16.msra.mxu1 %v14631_v42  ;;  %5443 = vmatprep.subr.bf16.mxu0 %v14632_v31 }
 0xc86   :  { %5525 = vmatprep.subr.bf16.mxu1 %v14633_v39  ;;  %v14638_v39 = vld [vmem:[#allocation52_spill] sm:$0xff] }
 0xc9a   :  { %v4991_v34 = vpop.f32.mrb[128].mxu0  ;;  %v5073_v0 = vpop.f32.mrb[148].mxu1 }
 0xc9b   :  { %v4993_v7 = vpop.f32.mrb[129].mxu0  ;;  %v5075_v59 = vpop.f32.mrb[149].mxu1  ;;  %v5324_v37 = vadd.f32 %v4991_v34, %v14634_v15  ;;  %v5326_v34 = vadd.f32 %v5073_v0, %v14638_v39  ;;  %v14640_v0 = vld [vmem:[#allocation86_spill] sm:$0xff] }
 0xc9c   :  { %v4995_v38 = vpop.f32.mrb[130].mxu0  ;;  %v5077_v41 = vpop.f32.mrb[150].mxu1  ;;  %v5325_v5 = vadd.f32 %v4993_v7, %v14635_v46  ;;  %v5345_v36 = vadd.f32 %v5075_v59, %v14636_v49 }
 0xc9d   :  { %v4996_v40 = vpop.f32.mrb[131].mxu0  ;;  %v5078_v21 = vpop.f32.mrb[151].mxu1  ;;  %v6345_v53 = vmul.f32 -1.442695, %v5324_v37 }
 0xc9e   :  { %v6346_v58 = vmul.f32 -1.442695, %v5325_v5  ;;  %v6348_v35 = vmul.f32 -1.442695, %v5345_v36 }
 0xc9f   :  { %7349 = vpow2.f32 %v6345_v53 }
 0xca0   :  { %7351 = vpow2.f32 %v6346_v58  ;;  %v14639_v58 = vld [vmem:[#allocation84_spill] sm:$0xff] }
 0xca1   :  { %7353 = vpow2.f32 %v6348_v35 }
 0xca9   :  { %v7350_v52 = vpop.eup %7349 }
 0xcaa   :  { %v7352_v29 = vpop.eup %7351  ;;  %v5336_v18 = vadd.f32 1.0, %v7350_v52 }
 0xcab   :  { %v5337_v63 = vadd.f32 1.0, %v7352_v29  ;;  %v7354_v40 = vpop.eup %7353 }
 0xcac   :  { %7355 = vrcp.f32 %v5336_v18  ;;  %v5357_v53 = vadd.f32 1.0, %v7354_v40 }
 0xcad   :  { %7357 = vrcp.f32 %v5337_v63  ;;  %v14641_v63 = vld [vmem:[#allocation87_spill] sm:$0xff] }
 0xcb6   :  { %v7356_v37 = vpop.eup %7355 }
 0xcb7   :  { %v7358_v5 = vpop.eup %7357 }
 0xcdb   :  { %v5196_v55 = vpop.f32.mrb[152].mxu1 }
 0xcdc   :  { %v5198_v25 = vpop.f32.mrb[153].mxu1 }
 0xcdd   :  { %v5200_v13 = vpop.f32.mrb[154].mxu1 }
 0xcde   :  { %v5201_v3 = vpop.f32.mrb[155].mxu1 }
 0xcdf   :  { %v6347_v3 = vmul.f32 -1.442695, %v5326_v34 }
 0xcfa   :  { %v5155_v32 = vpop.f32.mrb[132].mxu0 }
 0xcfb   :  { %v5346_v47 = vadd.f32 %v5155_v32, %v14637_v57  ;;  %v5237_v1 = vpop.f32.mrb[156].mxu1  ;;  %v5157_v23 = vpop.f32.mrb[133].mxu0 }
 0xcfc   :  { %v5238_v50 = vadd.f32 %v5237_v1, %v5196_v55  ;;  %v5239_v42 = vpop.f32.mrb[157].mxu1  ;;  %v5159_v31 = vpop.f32.mrb[134].mxu0  ;;  %v5347_v32 = vadd.f32 %v5157_v23, %v14641_v63  ;;  %v14657_v63 = vld [vmem:[#allocation107_spill] sm:$0xff] }
 0xcfd   :  { %v6349_v7 = vmul.f32 -1.442695, %v5346_v47  ;;  %v5240_v59 = vadd.f32 %v5239_v42, %v5198_v25  ;;  %v5241_v38 = vpop.f32.mrb[158].mxu1  ;;  %v5160_v41 = vpop.f32.mrb[135].mxu0 }
 0xcfe   :  { %v5366_v21 = vadd.f32 %v5238_v50, %v13596_v26  ;;  %v5242_v15 = vpop.f32.mrb[159].mxu1  ;;  %v6350_v42 = vmul.f32 -1.442695, %v5347_v32 }
 0xcff   :  { %7359 = vpow2.f32 %v6349_v7  ;;  %v5367_v46 = vadd.f32 %v5240_v59, %v13597_v30 }
 0xd00   :  { %v5369_v13 = vmul.f32 %v7356_v37, %v5366_v21 }
 0xd01   :  { %v5370_v55 = vmul.f32 %v7358_v5, %v5367_v46 }
 0xd02   :  { %v5372_v49 = vadd.f32 %v5369_v13, %v14639_v58 }
 0xd03   :  { %v5373_v25 = vadd.f32 %v5370_v55, %v14640_v0  ;;  %v14650_v0 = vld [vmem:[#allocation66_spill] sm:$0xff] }
 0xd04   :  { %7361 = vtanh.f32 %v5372_v49  ;;  %v14642_v49 = vld [vmem:[#allocation96_spill] sm:$0xff] }
 0xd05   :  { %7363 = vpow2.f32 %v6347_v3 }
 0xd06   :  { %7365 = vrcp.f32 %v5357_v53 }
 0xd07   :  { %7367 = vtanh.f32 %v5373_v25 }
 0xd09   :  { %v7360_v36 = vpop.eup %7359 }
 0xd0a   :  { %v5358_v52 = vadd.f32 1.0, %v7360_v36 }
 0xd0c   :  { %7369 = vrcp.f32 %v5358_v52  ;;  %v14652_v52 = vld [vmem:[#allocation95_spill] sm:$0xff] }
 0xd0e   :  { %v7362_v29 = vpop.eup %7361 }
 0xd0f   :  { %v7364_v35 = vpop.eup %7363  ;;  %v5378_v18 = vsub.f32 %v11830_v51, %v7362_v29 }
 0xd10   :  { %v7366_v57 = vpop.eup %7365  ;;  %v5338_v50 = vadd.f32 1.0, %v7364_v35  ;;  %v14654_v35 = vld [vmem:[#allocation104_spill] sm:$0xff] }
 0xd11   :  { %v5381_v47 = vmul.f32 %v7366_v57, %v5378_v18  ;;  %v7368_v1 = vpop.eup %7367  ;;  %v14655_v18 = vld [vmem:[#allocation105_spill] sm:$0xff]  ;;  %v14660_v57 = vld [vmem:[#allocation110_spill] sm:$0xff] }
 0xd12   :  { %v5379_v39 = vsub.f32 %v11833_v19, %v7368_v1  ;;  %7371 = vrcp.f32 %v5338_v50  ;;  %v14663_v50 = vld [vmem:[#allocation113_spill] sm:$0xff] }
 0xd13   :  { %v12408_v31 = vadd.f32 %v7362_v29, %v5381_v47  ;;  %7373 = vpow2.f32 %v6350_v42  ;;  %v14653_v29 = vld [vmem:[#allocation103_spill] sm:$0xff]  ;;  %v14664_v42 = vld [vmem:[#allocation114_spill] sm:$0xff] }
 0xd14   :  { %v14661_v47 = vld [vmem:[#allocation111_spill] sm:$0xff] }
 0xd15   :  { %v12419_v37 = vpack.c.bf16 %v12408_v31, %v12408_v31 }
 0xd16   :  { %v7370_v34 = vpop.eup %7369 }
 0xd17   :  { %v5382_v7 = vmul.f32 %v7370_v34, %v5379_v39  ;;  %v14665_v39 = vld [vmem:[#allocation29_spill] sm:$0xff]  ;;  %v14666_v34 = vld [vmem:[#allocation31_spill] sm:$0xff] }
 0xd19   :  { %v12411_v59 = vadd.f32 %v7368_v1, %v5382_v7  ;;  %v14662_v1 = vld [vmem:[#allocation112_spill] sm:$0xff]  ;;  %v14667_v7 = vld [vmem:[#allocation30_spill] sm:$0xff] }
 0xd1a   :  { %v6599_v38 = vpop.f32.mrb[136].mxu0 }
 0xd1b   :  { %v5318_v41 = vpop.f32.mrb[160].mxu1  ;;  %v6600_v51 = vpop.f32.mrb[137].mxu0  ;;  %v12415_v23 = vpack.c.bf16 %v12411_v59, %v12411_v59 }
 0xd1c   :  { %v6601_v40 = vadd.f32 %v6600_v51, %v6599_v38  ;;  %v6850_v21 = vpop.f32.mrb[161].mxu1  ;;  %v6602_v15 = vpop.f32.mrb[138].mxu0  ;;  %v14668_v38 = vld [vmem:[#allocation61_spill] sm:$0xff]  ;;  %v14670_v51 = vld [vmem:[#allocation26_spill] sm:$0xff] }
 0xd1d   :  { %v5321_v19 = vpop.f32.mrb[162].mxu1  ;;  %v6603_v46 = vpop.f32.mrb[139].mxu0  ;;  %5434 = vmatprep.mubr.bf16.mxu0 %v12415_v23  ;;  %5516 = vmatprep.mubr.bf16.mxu1 %v12415_v23  ;;  %v14672_v21 = vld [vmem:[#allocation60_spill] sm:$0xff]  ;;  %v14673_v15 = vld [vmem:[#allocation62_spill] sm:$0xff] }
 0xd1e   :  { %v5319_v5 = vadd.f32 %v6601_v40, %v5318_v41  ;;  %v6851_v13 = vpop.f32.mrb[163].mxu1  ;;  %5435 = vmatmul.mubr.bf16.vlgmr.msra.gmra.mrb[140].mxu0 %v12419_v37  ;;  %5517 = vmatmul.mubr.bf16.vlgmr.msra.gmra.mrb[164].mxu1 %v12419_v37  ;;  %v7372_v3 = vpop.eup %7371  ;;  %v14669_v41 = vld [vmem:[#allocation28_spill] sm:$0xff]  ;;  %v14671_v40 = vld [vmem:[#allocation27_spill] sm:$0xff]  ;;  %v14674_v19 = vld [vmem:[#allocation45_spill] sm:$0xff] }
 0xd1f   :  { %5444 = vmatpush1.bf16.msra.mxu0 %v11847_v28  ;;  %5526 = vmatpush1.bf16.msra.mxu1 %v11850_v6  ;;  %v7374_v53 = vpop.eup %7373  ;;  %v14675_v46 = vld [vmem:[#allocation47_spill] sm:$0xff]  ;;  %v14677_v13 = vld [vmem:[#allocation77_spill] sm:$0xff] }
 0xd20   :  { %v5368_v55 = vadd.f32 %v5319_v5, %v13603_v11  ;;  %5445 = vmatprep.subr.bf16.mxu0 %v11854_v16  ;;  %5527 = vmatprep.subr.bf16.mxu1 %v11857_v22  ;;  %v5359_v28 = vadd.f32 1.0, %v7374_v53  ;;  %v14643_v16 = vld [vmem:[#allocation256_spill] sm:$0xff]  ;;  %v14644_v22 = vld [vmem:[#allocation33_spill] sm:$0xff]  ;;  %v14676_v5 = vld [vmem:[#allocation46_spill] sm:$0xff] }
 0xd21   :  { %5475 = vmatprep.mubr.bf16.mxu0 %v13424_v24  ;;  %5557 = vmatprep.mubr.bf16.mxu1 %v13424_v24  ;;  %v14680_v53 = vld [vmem:[#allocation78_spill] sm:$0xff] }
 0xd22   :  { %v5371_v58 = vmul.f32 %v7372_v3, %v5368_v55  ;;  %v14678_v3 = vld [vmem:[#allocation44_spill] sm:$0xff] }
 0xd23   :  { %5446 = vmatpush1.bf16.msra.mxu0 %v11862_v56  ;;  %5528 = vmatpush1.bf16.msra.mxu1 %v11865_v9  ;;  %v14645_v56 = vld [vmem:[#allocation35_spill] sm:$0xff]  ;;  %v14646_v9 = vld [vmem:[#allocation34_spill] sm:$0xff]  ;;  %v14679_v55 = vld [vmem:[#allocation76_spill] sm:$0xff] }
 0xd24   :  { %v5374_v6 = vadd.f32 %v5371_v58, %v14642_v49  ;;  %5447 = vmatprep.subr.bf16.mxu0 %v11869_v60  ;;  %5529 = vmatprep.subr.bf16.mxu1 %v11872_v12  ;;  %v14647_v60 = vld [vmem:[#allocation65_spill] sm:$0xff]  ;;  %v14681_v58 = vld [vmem:[#allocation79_spill] sm:$0xff] }
 0xd25   :  { %v14683_v49 = vld [vmem:[#allocation63_spill] sm:$0xff] }
 0xd26   :  { %7375 = vtanh.f32 %v5374_v6  ;;  %v14684_v6 = vld [vmem:[#allocation115_spill] sm:$0xff] }
 0xd27   :  { %5448 = vmatpush1.bf16.msra.mxu0 %v11875_v61  ;;  %5530 = vmatpush1.bf16.msra.mxu1 %v11878_v4  ;;  %7377 = vrcp.f32 %v5359_v28  ;;  %v14648_v61 = vld [vmem:[#allocation32_spill] sm:$0xff]  ;;  %v14682_v28 = vld [vmem:[#allocation97_spill] sm:$0xff] }
 0xd28   :  { %5449 = vmatprep.subr.bf16.mxu0 %v11881_v10  ;;  %5531 = vmatprep.subr.bf16.mxu1 %v11884_v48  ;;  %v14649_v4 = vld [vmem:[#allocation64_spill] sm:$0xff] }
 0xd2b   :  { %5450 = vmatpush1.bf16.msra.mxu0 %v11887_v33  ;;  %5532 = vmatpush1.bf16.msra.mxu1 %v14643_v16  ;;  %v14651_v33 = vld [vmem:[#allocation67_spill] sm:$0xff]  ;;  %v14685_v16 = vld [vmem:[#allocation116_spill] sm:$0xff] }
 0xd2c   :  { %5451 = vmatprep.subr.bf16.mxu0 %v14644_v22  ;;  %5533 = vmatprep.subr.bf16.mxu1 %v14645_v56  ;;  %v14686_v22 = vld [vmem:[#allocation25_spill] sm:$0xff] }
 0xd2d   :  { %v14687_v56 = vld [vmem:[#allocation117_spill] sm:$0xff] }
 0xd2f   :  { %5452 = vmatpush1.bf16.msra.mxu0 %v14646_v9  ;;  %5534 = vmatpush1.bf16.msra.mxu1 %v14647_v60  ;;  %v14688_v9 = vld [vmem:[#allocation118_spill] sm:$0xff]  ;;  %v14689_v60 = vld [vmem:[#allocation119_spill] sm:$0xff] }
 0xd30   :  { %v7376_v12 = vpop.eup %7375  ;;  %5453 = vmatprep.subr.bf16.mxu0 %v14648_v61  ;;  %5535 = vmatprep.subr.bf16.mxu1 %v14649_v4  ;;  %v14691_v61 = vld [vmem:[#allocation93_spill] sm:$0xff] }
 0xd31   :  { %v5380_v10 = vsub.f32 %v11924_v44, %v7376_v12  ;;  %v7378_v48 = vpop.eup %7377  ;;  %v14656_v44 = vld [vmem:[#allocation106_spill] sm:$0xff]  ;;  %v14692_v4 = vld [vmem:[#allocation121_spill] sm:$0xff] }
 0xd33   :  { %5454 = vmatpush1.bf16.msra.mxu0 %v14650_v0  ;;  %5536 = vmatpush1.bf16.msra.mxu1 %v14651_v33  ;;  %v5383_v25 = vmul.f32 %v7378_v48, %v5380_v10  ;;  %v14693_v10 = vld [vmem:[#allocation122_spill] sm:$0xff]  ;;  %v14694_v48 = vld [vmem:[#allocation123_spill] sm:$0xff]  ;;  %v14695_v0 = vld [vmem:[#allocation124_spill] sm:$0xff] }
 0xd34   :  { %5455 = vmatprep.subr.bf16.mxu0 %v11918_v2  ;;  %5537 = vmatprep.subr.bf16.mxu1 %v11921_v20  ;;  %v14658_v2 = vld [vmem:[#allocation108_spill] sm:$0xff]  ;;  %v14659_v20 = vld [vmem:[#allocation109_spill] sm:$0xff] }
 0xd35   :  { %v12454_v36 = vadd.f32 %v7376_v12, %v5383_v25  ;;  %v14690_v12 = vld [vmem:[#allocation120_spill] sm:$0xff]  ;;  %v14696_v33 = vld [vmem:[#allocation37_spill] sm:$0xff]  ;;  %v14697_v25 = vld [vmem:[#allocation39_spill] sm:$0xff] }
 0xd37   :  { %5456 = vmatpush1.bf16.msra.mxu0 %v14652_v52  ;;  %5538 = vmatpush1.bf16.msra.mxu1 %v14653_v29  ;;  %v12464_v32 = vpack.c.bf16 %v12454_v36, %v12454_v36  ;;  %v14698_v52 = vld [vmem:[#allocation38_spill] sm:$0xff]  ;;  %v14699_v29 = vld [vmem:[#allocation69_spill] sm:$0xff] }
 0xd38   :  { %5457 = vmatprep.subr.bf16.mxu0 %v14654_v35  ;;  %5539 = vmatprep.subr.bf16.mxu1 %v14655_v18  ;;  %v14700_v35 = vld [vmem:[#allocation36_spill] sm:$0xff] }
 0xd39   :  { %v14701_v18 = vld [vmem:[#allocation68_spill] sm:$0xff] }
 0xd3b   :  { %5458 = vmatpush1.bf16.msra.mxu0 %v14656_v44  ;;  %5540 = vmatpush1.bf16.msra.mxu1 %v14657_v63  ;;  %v14702_v44 = vld [vmem:[#allocation70_spill] sm:$0xff]  ;;  %v14703_v63 = vld [vmem:[#allocation71_spill] sm:$0xff] }
 0xd3c   :  { %5566 = vmatprep.subr.bf16.mxu0 %v14658_v2  ;;  %5648 = vmatprep.subr.bf16.mxu1 %v14659_v20  ;;  %v14704_v2 = vld [vmem:[#allocation92_spill] sm:$0xff]  ;;  %v14705_v20 = vld [vmem:[#allocation125_spill] sm:$0xff] }
 0xd3e   :  { %5476 = vmatmul.mubr.bf16.vlgmr.msra.gmra.mrb[140].mxu0 %v12464_v32  ;;  %5558 = vmatmul.mubr.bf16.vlgmr.msra.gmra.mrb[164].mxu1 %v12464_v32 }
 0xd3f   :  { %5567 = vmatpush1.bf16.msra.mxu0 %v14660_v57  ;;  %5598 = vmatprep.mubr.bf16.mxu0 %v12415_v23  ;;  %v14706_v57 = vld [vmem:[#allocation126_spill] sm:$0xff] }
 0xd40   :  { %5649 = vmatpush1.bf16.msra.mxu1 %v14661_v47  ;;  %5680 = vmatprep.mubr.bf16.mxu1 %v12415_v23  ;;  %v14707_v47 = vld [vmem:[#allocation127_spill] sm:$0xff] }
 0xd41   :  { %5568 = vmatprep.subr.bf16.mxu0 %v14662_v1  ;;  %5650 = vmatprep.subr.bf16.mxu1 %v14663_v50  ;;  %v14708_v1 = vld [vmem:[#allocation128_spill] sm:$0xff]  ;;  %v14709_v50 = vld [vmem:[#allocation129_spill] sm:$0xff] }
 0xd43   :  { %5569 = vmatpush1.bf16.msra.mxu0 %v14664_v42  ;;  %v14710_v42 = vld [vmem:[#allocation130_spill] sm:$0xff] }
 0xd44   :  { %5651 = vmatpush1.bf16.msra.mxu1 %v14665_v39  ;;  %5570 = vmatprep.subr.bf16.mxu0 %v14666_v34  ;;  %v14711_v39 = vld [vmem:[#allocation131_spill] sm:$0xff]  ;;  %v14712_v34 = vld [vmem:[#allocation132_spill] sm:$0xff] }
 0xd45   :  { %5652 = vmatprep.subr.bf16.mxu1 %v14667_v7  ;;  %v14713_v7 = vld [vmem:[#allocation133_spill] sm:$0xff] }
 0xd47   :  { %5571 = vmatpush1.bf16.msra.mxu0 %v14668_v38  ;;  %v14714_v38 = vld [vmem:[#allocation134_spill] sm:$0xff] }
 0xd48   :  { %5653 = vmatpush1.bf16.msra.mxu1 %v14669_v41  ;;  %5572 = vmatprep.subr.bf16.mxu0 %v14670_v51  ;;  %v14715_v41 = vld [vmem:[#allocation135_spill] sm:$0xff]  ;;  %v14716_v51 = vld [vmem:[#allocation136_spill] sm:$0xff] }
 0xd49   :  { %5654 = vmatprep.subr.bf16.mxu1 %v14671_v40  ;;  %v14717_v40 = vld [vmem:[#allocation137_spill] sm:$0xff] }
 0xd4b   :  { %5573 = vmatpush1.bf16.msra.mxu0 %v14672_v21  ;;  %v14718_v21 = vld [vmem:[#allocation138_spill] sm:$0xff] }
 0xd4c   :  { %5655 = vmatpush1.bf16.msra.mxu1 %v14673_v15  ;;  %5574 = vmatprep.subr.bf16.mxu0 %v14674_v19  ;;  %v14719_v15 = vld [vmem:[#allocation139_spill] sm:$0xff]  ;;  %v14720_v19 = vld [vmem:[#allocation140_spill] sm:$0xff] }
 0xd4d   :  { %5656 = vmatprep.subr.bf16.mxu1 %v14675_v46  ;;  %v14721_v46 = vld [vmem:[#allocation141_spill] sm:$0xff] }
 0xd4f   :  { %5575 = vmatpush1.bf16.msra.mxu0 %v14676_v5  ;;  %v14722_v5 = vld [vmem:[#allocation142_spill] sm:$0xff] }
 0xd50   :  { %5657 = vmatpush1.bf16.msra.mxu1 %v14677_v13  ;;  %5576 = vmatprep.subr.bf16.mxu0 %v14678_v3  ;;  %v14723_v13 = vld [vmem:[#allocation143_spill] sm:$0xff]  ;;  %v14724_v3 = vld [vmem:[#allocation144_spill] sm:$0xff] }
 0xd51   :  { %5658 = vmatprep.subr.bf16.mxu1 %v14679_v55  ;;  %v14725_v55 = vld [vmem:[#allocation145_spill] sm:$0xff] }
 0xd53   :  { %5577 = vmatpush1.bf16.msra.mxu0 %v14680_v53  ;;  %v14726_v53 = vld [vmem:[#allocation146_spill] sm:$0xff] }
 0xd54   :  { %5659 = vmatpush1.bf16.msra.mxu1 %v14681_v58  ;;  %5578 = vmatprep.subr.bf16.mxu0 %v14682_v28  ;;  %v14727_v58 = vld [vmem:[#allocation147_spill] sm:$0xff]  ;;  %v14728_v28 = vld [vmem:[#allocation148_spill] sm:$0xff] }
 0xd55   :  { %5660 = vmatprep.subr.bf16.mxu1 %v14683_v49  ;;  %v14729_v49 = vld [vmem:[#allocation149_spill] sm:$0xff] }
 0xd57   :  { %5579 = vmatpush1.bf16.msra.mxu0 %v14684_v6  ;;  %v14730_v6 = vld [vmem:[#allocation150_spill] sm:$0xff] }
 0xd58   :  { %5661 = vmatpush1.bf16.msra.mxu1 %v14685_v16  ;;  %5580 = vmatprep.subr.bf16.mxu0 %v14686_v22  ;;  %v14731_v16 = vld [vmem:[#allocation151_spill] sm:$0xff]  ;;  %v14732_v22 = vld [vmem:[#allocation152_spill] sm:$0xff] }
 0xd59   :  { %5662 = vmatprep.subr.bf16.mxu1 %v14687_v56  ;;  %v14733_v56 = vld [vmem:[#allocation153_spill] sm:$0xff] }
 0xd5b   :  { %5581 = vmatpush1.bf16.msra.mxu0 %v14688_v9  ;;  %v14734_v9 = vld [vmem:[#allocation154_spill] sm:$0xff] }
 0xd5c   :  { %5663 = vmatpush1.bf16.msra.mxu1 %v14689_v60  ;;  %5582 = vmatprep.subr.bf16.mxu0 %v14690_v12  ;;  %v14735_v60 = vld [vmem:[#allocation155_spill] sm:$0xff]  ;;  %v14736_v12 = vld [vmem:[#allocation156_spill] sm:$0xff] }
 0xd5d   :  { %5664 = vmatprep.subr.bf16.mxu1 %v14691_v61  ;;  %v14737_v61 = vld [vmem:[#allocation157_spill] sm:$0xff] }
 0xd5f   :  { %5583 = vmatpush1.bf16.msra.mxu0 %v14692_v4  ;;  %v14738_v4 = vld [vmem:[#allocation158_spill] sm:$0xff] }
 0xd60   :  { %5665 = vmatpush1.bf16.msra.mxu1 %v14693_v10  ;;  %5584 = vmatprep.subr.bf16.mxu0 %v14694_v48  ;;  %v14739_v10 = vld [vmem:[#allocation159_spill] sm:$0xff]  ;;  %v14740_v48 = vld [vmem:[#allocation160_spill] sm:$0xff] }
 0xd61   :  { %5666 = vmatprep.subr.bf16.mxu1 %v14695_v0  ;;  %v14741_v0 = vld [vmem:[#allocation161_spill] sm:$0xff] }
 0xd63   :  { %5585 = vmatpush1.bf16.msra.mxu0 %v14696_v33  ;;  %v14742_v33 = vld [vmem:[#allocation162_spill] sm:$0xff] }
 0xd64   :  { %5667 = vmatpush1.bf16.msra.mxu1 %v14697_v25  ;;  %5586 = vmatprep.subr.bf16.mxu0 %v14698_v52  ;;  %v14743_v25 = vld [vmem:[#allocation163_spill] sm:$0xff]  ;;  %v14744_v52 = vld [vmem:[#allocation164_spill] sm:$0xff] }
 0xd65   :  { %5668 = vmatprep.subr.bf16.mxu1 %v14699_v29  ;;  %v14745_v29 = vld [vmem:[#allocation165_spill] sm:$0xff] }
 0xd67   :  { %5587 = vmatpush1.bf16.msra.mxu0 %v14700_v35  ;;  %v14746_v35 = vld [vmem:[#allocation166_spill] sm:$0xff] }
 0xd68   :  { %5669 = vmatpush1.bf16.msra.mxu1 %v14701_v18  ;;  %5588 = vmatprep.subr.bf16.mxu0 %v14702_v44  ;;  %v14747_v18 = vld [vmem:[#allocation167_spill] sm:$0xff]  ;;  %v14748_v44 = vld [vmem:[#allocation168_spill] sm:$0xff] }
 0xd69   :  { %5670 = vmatprep.subr.bf16.mxu1 %v14703_v63  ;;  %v14749_v63 = vld [vmem:[#allocation169_spill] sm:$0xff] }
 0xd6b   :  { %5589 = vmatpush1.bf16.msra.mxu0 %v14704_v2  ;;  %v14750_v2 = vld [vmem:[#allocation170_spill] sm:$0xff] }
 0xd6c   :  { %5671 = vmatpush1.bf16.msra.mxu1 %v14705_v20  ;;  %5590 = vmatprep.subr.bf16.mxu0 %v14706_v57  ;;  %v14751_v20 = vld [vmem:[#allocation171_spill] sm:$0xff]  ;;  %v14752_v57 = vld [vmem:[#allocation172_spill] sm:$0xff] }
 0xd6d   :  { %5672 = vmatprep.subr.bf16.mxu1 %v14707_v47  ;;  %v14753_v47 = vld [vmem:[#allocation173_spill] sm:$0xff] }
 0xd6f   :  { %5591 = vmatpush1.bf16.msra.mxu0 %v14708_v1  ;;  %v14754_v1 = vld [vmem:[#allocation174_spill] sm:$0xff] }
 0xd70   :  { %5673 = vmatpush1.bf16.msra.mxu1 %v14709_v50  ;;  %5592 = vmatprep.subr.bf16.mxu0 %v14710_v42  ;;  %v14756_v50 = vld [vmem:[#allocation176_spill] sm:$0xff]  ;;  %v14757_v42 = vld [vmem:[#allocation177_spill] sm:$0xff] }
 0xd71   :  { %5674 = vmatprep.subr.bf16.mxu1 %v14711_v39  ;;  %v14758_v39 = vld [vmem:[#allocation178_spill] sm:$0xff] }
 0xd73   :  { %5593 = vmatpush1.bf16.msra.mxu0 %v14712_v34  ;;  %v14759_v34 = vld [vmem:[#allocation179_spill] sm:$0xff] }
 0xd74   :  { %5675 = vmatpush1.bf16.msra.mxu1 %v14713_v7  ;;  %5594 = vmatprep.subr.bf16.mxu0 %v14714_v38  ;;  %v14760_v7 = vld [vmem:[#allocation180_spill] sm:$0xff]  ;;  %v14762_v38 = vld [vmem:[#allocation182_spill] sm:$0xff] }
 0xd75   :  { %5676 = vmatprep.subr.bf16.mxu1 %v14715_v41  ;;  %v14763_v41 = vld [vmem:[#allocation183_spill] sm:$0xff] }
 0xd77   :  { %5595 = vmatpush1.bf16.msra.mxu0 %v14716_v51  ;;  %v14764_v51 = vld [vmem:[#allocation184_spill] sm:$0xff] }
 0xd78   :  { %5677 = vmatpush1.bf16.msra.mxu1 %v14717_v40  ;;  %5596 = vmatprep.subr.bf16.mxu0 %v14718_v21  ;;  %v14765_v40 = vld [vmem:[#allocation185_spill] sm:$0xff]  ;;  %v14766_v21 = vld [vmem:[#allocation186_spill] sm:$0xff] }
 0xd79   :  { %5678 = vmatprep.subr.bf16.mxu1 %v14719_v15  ;;  %v14767_v15 = vld [vmem:[#allocation187_spill] sm:$0xff] }
 0xd7b   :  { %5597 = vmatpush1.bf16.msra.mxu0 %v14720_v19  ;;  %v14768_v19 = vld [vmem:[#allocation188_spill] sm:$0xff] }
 0xd7c   :  { %5679 = vmatpush1.bf16.msra.mxu1 %v14721_v46  ;;  %5607 = vmatprep.subr.bf16.mxu0 %v14722_v5  ;;  %v14769_v46 = vld [vmem:[#allocation189_spill] sm:$0xff]  ;;  %v14770_v5 = vld [vmem:[#allocation190_spill] sm:$0xff] }
 0xd7d   :  { %5689 = vmatprep.subr.bf16.mxu1 %v14723_v13 }
 0xd7e   :  { %5599 = vmatmul.mubr.bf16.vlgmr.msra.gmra.mrb[144].mxu0 %v12419_v37 }
 0xd7f   :  { %5681 = vmatmul.mubr.bf16.vlgmr.msra.gmra.mrb[168].mxu1 %v12419_v37  ;;  %5608 = vmatpush1.bf16.msra.mxu0 %v14724_v3 }
 0xd80   :  { %5690 = vmatpush1.bf16.msra.mxu1 %v14725_v55  ;;  %5609 = vmatprep.subr.bf16.mxu0 %v14726_v53 }
 0xd81   :  { %5691 = vmatprep.subr.bf16.mxu1 %v14727_v58  ;;  %5639 = vmatprep.mubr.bf16.mxu0 %v13424_v24 }
 0xd82   :  { %5721 = vmatprep.mubr.bf16.mxu1 %v13424_v24 }
 0xd83   :  { %5610 = vmatpush1.bf16.msra.mxu0 %v14728_v28 }
 0xd84   :  { %5692 = vmatpush1.bf16.msra.mxu1 %v14729_v49  ;;  %5611 = vmatprep.subr.bf16.mxu0 %v14730_v6 }
 0xd85   :  { %5693 = vmatprep.subr.bf16.mxu1 %v14731_v16  ;;  %v14772_v16 = vld [vmem:[#allocation59_spill] sm:$0xff] }
 0xd87   :  { %5612 = vmatpush1.bf16.msra.mxu0 %v14732_v22 }
 0xd88   :  { %5694 = vmatpush1.bf16.msra.mxu1 %v14733_v56  ;;  %5613 = vmatprep.subr.bf16.mxu0 %v14734_v9 }
 0xd89   :  { %5695 = vmatprep.subr.bf16.mxu1 %v14735_v60 }
 0xd8b   :  { %5614 = vmatpush1.bf16.msra.mxu0 %v14736_v12 }
 0xd8c   :  { %5696 = vmatpush1.bf16.msra.mxu1 %v14737_v61  ;;  %5615 = vmatprep.subr.bf16.mxu0 %v14738_v4 }
 0xd8d   :  { %5697 = vmatprep.subr.bf16.mxu1 %v14739_v10 }
 0xd8f   :  { %5616 = vmatpush1.bf16.msra.mxu0 %v14740_v48 }
 0xd90   :  { %5698 = vmatpush1.bf16.msra.mxu1 %v14741_v0  ;;  %5617 = vmatprep.subr.bf16.mxu0 %v14742_v33  ;;  %v14774_v0 = vld [vmem:[#allocation89_spill] sm:$0xff] }
 0xd91   :  { %5699 = vmatprep.subr.bf16.mxu1 %v14743_v25 }
 0xd93   :  { %5618 = vmatpush1.bf16.msra.mxu0 %v14744_v52 }
 0xd94   :  { %5700 = vmatpush1.bf16.msra.mxu1 %v14745_v29  ;;  %5619 = vmatprep.subr.bf16.mxu0 %v14746_v35 }
 0xd95   :  { %5701 = vmatprep.subr.bf16.mxu1 %v14747_v18 }
 0xd97   :  { %5620 = vmatpush1.bf16.msra.mxu0 %v14748_v44  ;;  %v14775_v44 = vld [vmem:[#allocation56_spill] sm:$0xff] }
 0xd98   :  { %5702 = vmatpush1.bf16.msra.mxu1 %v12229_v17  ;;  %5621 = vmatprep.subr.bf16.mxu0 %v14749_v63  ;;  %v14755_v17 = vld [vmem:[#allocation175_spill] sm:$0xff] }
 0xd99   :  { %5703 = vmatprep.subr.bf16.mxu1 %v14750_v2 }
 0xd9b   :  { %5622 = vmatpush1.bf16.msra.mxu0 %v14751_v20 }
 0xd9c   :  { %5704 = vmatpush1.bf16.msra.mxu1 %v14752_v57  ;;  %6614 = vmatprep.subr.bf16.mxu0 %v14753_v47 }
 0xd9d   :  { %6852 = vmatprep.subr.bf16.mxu1 %v13420_v8 }
 0xd9e   :  { %5640 = vmatmul.mubr.bf16.vlgmr.msra.gmra.mrb[144].mxu0 %v12464_v32 }
 0xd9f   :  { %5722 = vmatmul.mubr.bf16.vlgmr.msra.gmra.mrb[172].mxu1 %v12464_v32  ;;  %6615 = vmatpush3.bf16.msra.mxu0 %v14754_v1 }
 0xda0   :  { %5762 = vmatprep.mubr.bf16.mxu0 %v12415_v23  ;;  %6853 = vmatpush3.bf16.msra.mxu1 %v14755_v17  ;;  %v14761_v23 = vld [vmem:[#allocation181_spill] sm:$0xff] }
 0xda1   :  { %6616 = vmatprep.subr.bf16.mxu0 %v14756_v50  ;;  %6854 = vmatprep.subr.bf16.mxu1 %v13420_v8 }
 0xda2   :  { %6868 = vmatprep.mubr.msk.bf16.mxu1 %vm8178_vm1, %v13420_v8 }
 0xda3   :  { %6617 = vmatpush3.bf16.msra.mxu0 %v14757_v42 }
 0xda4   :  { %6855 = vmatpush3.bf16.msra.mxu1 %v14758_v39  ;;  %6618 = vmatprep.subr.bf16.mxu0 %v14759_v34 }
 0xda5   :  { %6856 = vmatprep.subr.bf16.mxu1 %v13420_v8 }
 0xda7   :  { %6619 = vmatpush3.bf16.msra.mxu0 %v14760_v7 }
 0xda8   :  { %6857 = vmatpush3.bf16.msra.mxu1 %v14761_v23  ;;  %6620 = vmatprep.subr.bf16.mxu0 %v14762_v38 }
 0xda9   :  { %6858 = vmatprep.subr.bf16.mxu1 %v13420_v8 }
 0xdab   :  { %6621 = vmatpush3.bf16.msra.mxu0 %v14763_v41 }
 0xdac   :  { %6859 = vmatpush3.bf16.msra.mxu1 %v14764_v51  ;;  %6622 = vmatprep.subr.bf16.mxu0 %v14765_v40  ;;  %v14776_v51 = vld [vmem:[#allocation88_spill] sm:$0xff] }
 0xdad   :  { %6860 = vmatprep.subr.bf16.mxu1 %v13420_v8 }
 0xdaf   :  { %6623 = vmatpush3.bf16.msra.mxu0 %v14766_v21  ;;  %v14777_v21 = vld [vmem:[#allocation90_spill] sm:$0xff] }
 0xdb0   :  { %6861 = vmatpush3.bf16.msra.mxu1 %v14767_v15  ;;  %6624 = vmatprep.subr.bf16.mxu0 %v14768_v19 }
 0xdb1   :  { %6862 = vmatprep.subr.bf16.mxu1 %v13420_v8 }
 0xdb3   :  { %6625 = vmatpush3.bf16.msra.mxu0 %v12303_v54 }
 0xdb4   :  { %6863 = vmatpush3.bf16.msra.mxu1 %v14769_v46  ;;  %6626 = vmatprep.subr.bf16.mxu0 %v14770_v5 }
 0xdb5   :  { %6864 = vmatprep.subr.bf16.mxu1 %v13420_v8 }
 0xdb7   :  { %6627 = vmatpush3.bf16.msra.mxu0 %v12313_v62 }
 0xdb8   :  { %6865 = vmatpush3.bf16.msra.mxu1 %v12316_v27  ;;  %6628 = vmatprep.subr.bf16.mxu0 %v12319_v43  ;;  %v14771_v43 = vld [vmem:[#allocation57_spill] sm:$0xff] }
 0xdb9   :  { %6866 = vmatprep.subr.bf16.mxu1 %v13420_v8 }
 0xdbb   :  { %6629 = vmatpush3.bf16.msra.mxu0 %v12323_v45 }
 0xdbc   :  { %6867 = vmatpush3.bf16.msra.mxu1 %v12326_v14 }
 0xdbe   :  { %5763 = vmatmul.mubr.bf16.vlgmr.msra.gmra.mrb[148].mxu0 %v12419_v37 }
 0xdbf   :  { %6869 = vmatmul.mubr.bf16.vlgmr.msra.gmra.mrb[176].mxu1 %v12464_v32  ;;  %v14773_v32 = vld [vmem:[#allocation58_spill] sm:$0xff] }
 0xe11   :  { %v5477_v54 = vpop.f32.mrb[140].mxu0  ;;  %v5559_v13 = vpop.f32.mrb[164].mxu1 }
 0xe12   :  { %v5479_v3 = vpop.f32.mrb[141].mxu0  ;;  %v5561_v55 = vpop.f32.mrb[165].mxu1  ;;  %v5810_v49 = vadd.f32 %v5477_v54, %v14771_v43  ;;  %v5812_v63 = vadd.f32 %v5559_v13, %v14775_v44  ;;  %v14778_v54 = vld [vmem:[#allocation91_spill] sm:$0xff] }
 0xe13   :  { %v5481_v53 = vpop.f32.mrb[142].mxu0  ;;  %v5563_v62 = vpop.f32.mrb[166].mxu1  ;;  %v5811_v45 = vadd.f32 %v5479_v3, %v14772_v16  ;;  %v5831_v9 = vadd.f32 %v5561_v55, %v14773_v32 }
 0xe14   :  { %v5482_v58 = vpop.f32.mrb[143].mxu0  ;;  %v5564_v27 = vpop.f32.mrb[167].mxu1  ;;  %v6351_v56 = vmul.f32 -1.442695, %v5810_v49  ;;  %v6353_v23 = vmul.f32 -1.442695, %v5812_v63 }
 0xe15   :  { %v6352_v37 = vmul.f32 -1.442695, %v5811_v45  ;;  %v6354_v61 = vmul.f32 -1.442695, %v5831_v9 }
 0xe16   :  { %7379 = vpow2.f32 %v6351_v56 }
 0xe17   :  { %7381 = vpow2.f32 %v6352_v37 }
 0xe18   :  { %7383 = vpow2.f32 %v6354_v61 }
 0xe20   :  { %v7380_v60 = vpop.eup %7379 }
 0xe21   :  { %v7382_v12 = vpop.eup %7381  ;;  %v5822_v4 = vadd.f32 1.0, %v7380_v60 }
 0xe22   :  { %v5823_v10 = vadd.f32 1.0, %v7382_v12  ;;  %v7384_v1 = vpop.eup %7383 }
 0xe23   :  { %7385 = vrcp.f32 %v5822_v4  ;;  %v5843_v41 = vadd.f32 1.0, %v7384_v1 }
 0xe24   :  { %7387 = vrcp.f32 %v5823_v10 }
 0xe2d   :  { %v7386_v42 = vpop.eup %7385 }
 0xe2e   :  { %v7388_v34 = vpop.eup %7387 }
 0xe52   :  { %v5682_v28 = vpop.f32.mrb[168].mxu1 }
 0xe53   :  { %v5684_v6 = vpop.f32.mrb[169].mxu1 }
 0xe54   :  { %v5686_v22 = vpop.f32.mrb[170].mxu1 }
 0xe55   :  { %v5687_v14 = vpop.f32.mrb[171].mxu1 }
 0xe71   :  { %v5641_v48 = vpop.f32.mrb[144].mxu0 }
 0xe72   :  { %v5832_v33 = vadd.f32 %v5641_v48, %v14774_v0  ;;  %v5723_v25 = vpop.f32.mrb[172].mxu1  ;;  %v5643_v52 = vpop.f32.mrb[145].mxu0  ;;  %v14779_v48 = vld [vmem:[#allocation98_spill] sm:$0xff] }
 0xe73   :  { %v5724_v29 = vadd.f32 %v5723_v25, %v5682_v28  ;;  %v5725_v35 = vpop.f32.mrb[173].mxu1  ;;  %v5645_v18 = vpop.f32.mrb[146].mxu0  ;;  %v5833_v13 = vadd.f32 %v5643_v52, %v14778_v54 }
 0xe74   :  { %v6355_v2 = vmul.f32 -1.442695, %v5832_v33  ;;  %v5726_v20 = vadd.f32 %v5725_v35, %v5684_v6  ;;  %v5727_v57 = vpop.f32.mrb[174].mxu1  ;;  %v5646_v47 = vpop.f32.mrb[147].mxu0 }
 0xe75   :  { %v5852_v17 = vadd.f32 %v5724_v29, %v13596_v26  ;;  %v5728_v50 = vpop.f32.mrb[175].mxu1  ;;  %v6356_v27 = vmul.f32 -1.442695, %v5833_v13 }
 0xe76   :  { %7389 = vpow2.f32 %v6355_v2  ;;  %v5853_v39 = vadd.f32 %v5726_v20, %v13597_v30 }
 0xe77   :  { %v5855_v7 = vmul.f32 %v7386_v42, %v5852_v17 }
 0xe78   :  { %v5856_v38 = vmul.f32 %v7388_v34, %v5853_v39 }
 0xe79   :  { %v5858_v40 = vadd.f32 %v5855_v7, %v14776_v51 }
 0xe7a   :  { %v5859_v15 = vadd.f32 %v5856_v38, %v14777_v21 }
 0xe7b   :  { %7391 = vtanh.f32 %v5858_v40 }
 0xe7c   :  { %7393 = vpow2.f32 %v6353_v23 }
 0xe7d   :  { %7395 = vrcp.f32 %v5843_v41 }
 0xe7e   :  { %7397 = vtanh.f32 %v5859_v15 }
 0xe80   :  { %v7390_v19 = vpop.eup %7389 }
 0xe81   :  { %v5844_v26 = vadd.f32 1.0, %v7390_v19 }
 0xe83   :  { %7399 = vrcp.f32 %v5844_v26 }
 0xe85   :  { %v7392_v46 = vpop.eup %7391 }
 0xe86   :  { %v7394_v5 = vpop.eup %7393  ;;  %v5864_v30 = vsub.f32 %v12408_v31, %v7392_v46 }
 0xe87   :  { %v7396_v3 = vpop.eup %7395  ;;  %v5824_v62 = vadd.f32 1.0, %v7394_v5 }
 0xe88   :  { %v5867_v55 = vmul.f32 %v7396_v3, %v5864_v30  ;;  %v7398_v53 = vpop.eup %7397 }
 0xe89   :  { %v5865_v28 = vsub.f32 %v12411_v59, %v7398_v53  ;;  %7401 = vrcp.f32 %v5824_v62 }
 0xe8a   :  { %v12620_v58 = vadd.f32 %v7392_v46, %v5867_v55  ;;  %7403 = vpow2.f32 %v6356_v27 }
 0xe8d   :  { %v7400_v43 = vpop.eup %7399 }
 0xe8e   :  { %v5868_v49 = vmul.f32 %v7400_v43, %v5865_v28 }
 0xe90   :  { %v5871_v6 = vadd.f32 %v7398_v53, %v5868_v49 }
 0xe91   :  { %v6630_v16 = vpop.f32.mrb[148].mxu0 }
 0xe92   :  { %v5804_v45 = vpop.f32.mrb[176].mxu1  ;;  %v6631_v22 = vpop.f32.mrb[149].mxu0 }
 0xe93   :  { %v6632_v31 = vadd.f32 %v6631_v22, %v6630_v16  ;;  %v6870_v14 = vpop.f32.mrb[177].mxu1  ;;  %v6633_v56 = vpop.f32.mrb[150].mxu0 }
 0xe94   :  { %v5807_v37 = vpop.f32.mrb[178].mxu1  ;;  %v6634_v32 = vpop.f32.mrb[151].mxu0 }
 0xe95   :  { %v5805_v9 = vadd.f32 %v6632_v31, %v5804_v45  ;;  %v6871_v60 = vpop.f32.mrb[179].mxu1  ;;  %v7402_v12 = vpop.eup %7401 }
 0xe96   :  { %v7404_v4 = vpop.eup %7403 }
 0xe97   :  { %v5854_v61 = vadd.f32 %v5805_v9, %v13603_v11  ;;  %v5845_v10 = vadd.f32 1.0, %v7404_v4 }
 0xe99   :  { %v5857_v59 = vmul.f32 %v7402_v12, %v5854_v61 }
 0xe9b   :  { %v5860_v0 = vadd.f32 %v5857_v59, %v14779_v48 }
 0xe9d   :  { %7405 = vtanh.f32 %v5860_v0 }
 0xe9e   :  { %7407 = vrcp.f32 %v5845_v10 }
 0xea7   :  { %v7406_v33 = vpop.eup %7405 }
 0xea8   :  { %v5866_v25 = vsub.f32 %v12454_v36, %v7406_v33  ;;  %v7408_v52 = vpop.eup %7407 }
 0xeaa   :  { %v5869_v29 = vmul.f32 %v7408_v52, %v5866_v25 }
 0xeac   :  { %v12626_v35 = vadd.f32 %v7406_v33, %v5869_v29 }
 0xead   :  { %8151 = dma.done.wait [#allocation5 + $0x1], 9216 }
 0xeae   :  { %8152 = vsyncadd [#allocation5 + $0x1], 4294958080  ;;  %6027 = vmatprep.mubr.bf16.mxu1 %v13424_v24  ;;  %v5877_v18 = vmax.f32 %v5871_v6, 0.0  ;;  %v5883_v44 = vld [vmem:[#allocation4 + $0x8] sm:$0xff]  ;;  %v5882_v63 = vld [vmem:[#allocation4] sm:$0xff]  ;;  %v5878_v62 = vmax.f32 %v12626_v35, 0.0 }
 0xeaf   :  { %v5886_v2 = vld [vmem:[#allocation4 + $0x20] sm:$0xff]  ;;  %5954 = vmatprep.subr.bf16.mxu0 %v5883_v44  ;;  %v5885_v36 = vld [vmem:[#allocation4 + $0x18] sm:$0xff]  ;;  %v5931_v57 = vld [vmem:[#allocation4 + $0x188] sm:$0xff]  ;;  %v5876_v44 = vmax.f32 %v12620_v58, 0.0 }
 0xeb0   :  { %v12629_v11 = vpack.c.bf16 %v5877_v18, %v5877_v18  ;;  %5955 = vmatpush1.bf16.msra.mxu0 %v5882_v63  ;;  %v5889_v20 = vld [vmem:[#allocation4 + $0x38] sm:$0xff]  ;;  %5995 = vmatprep.subr.bf16.mxu1 %v5931_v57  ;;  %v5930_v47 = vld [vmem:[#allocation4 + $0x180] sm:$0xff]  ;;  %v5888_v24 = vld [vmem:[#allocation4 + $0x30] sm:$0xff]  ;;  %v12633_v6 = vpack.c.bf16 %v5878_v62, %v5878_v62 }
 0xeb1   :  { %5956 = vmatprep.subr.bf16.mxu0 %v5886_v2  ;;  %v5934_v1 = vld [vmem:[#allocation4 + $0x1a0] sm:$0xff]  ;;  %5996 = vmatpush1.bf16.msra.mxu1 %v5930_v47  ;;  %v5933_v17 = vld [vmem:[#allocation4 + $0x198] sm:$0xff]  ;;  %v5892_v50 = vld [vmem:[#allocation4 + $0x50] sm:$0xff] }
 0xeb2   :  { %5986 = vmatprep.mubr.bf16.mxu0 %v12629_v11  ;;  %5997 = vmatprep.subr.bf16.mxu1 %v5934_v1  ;;  %v5937_v42 = vld [vmem:[#allocation4 + $0x1b8] sm:$0xff]  ;;  %v5891_v39 = vld [vmem:[#allocation4 + $0x48] sm:$0xff]  ;;  %v5936_v34 = vld [vmem:[#allocation4 + $0x1b0] sm:$0xff] }
 0xeb3   :  { %v5895_v7 = vld [vmem:[#allocation4 + $0x68] sm:$0xff]  ;;  %v5940_v23 = vld [vmem:[#allocation4 + $0x1d0] sm:$0xff]  ;;  %v5894_v38 = vld [vmem:[#allocation4 + $0x60] sm:$0xff] }
 0xeb4   :  { %5957 = vmatpush1.bf16.msra.mxu0 %v5885_v36  ;;  %v5939_v41 = vld [vmem:[#allocation4 + $0x1c8] sm:$0xff]  ;;  %v5898_v51 = vld [vmem:[#allocation4 + $0x80] sm:$0xff]  ;;  %v5897_v21 = vld [vmem:[#allocation4 + $0x78] sm:$0xff] }
 0xeb5   :  { %5958 = vmatprep.subr.bf16.mxu0 %v5889_v20  ;;  %5998 = vmatpush1.bf16.msra.mxu1 %v5933_v17  ;;  %v5943_v40 = vld [vmem:[#allocation4 + $0x1e8] sm:$0xff]  ;;  %v5942_v15 = vld [vmem:[#allocation4 + $0x1e0] sm:$0xff]  ;;  %v5901_v19 = vld [vmem:[#allocation4 + $0x98] sm:$0xff]  ;;  %v5879_v20 = vpack.c.bf16 %v5876_v44, %v5876_v44 }
 0xeb6   :  { %5999 = vmatprep.subr.bf16.mxu1 %v5937_v42  ;;  %v5946_v26 = vld [vmem:[#allocation4 + $0x200] sm:$0xff]  ;;  %v5900_v46 = vld [vmem:[#allocation4 + $0x90] sm:$0xff]  ;;  %v5945_v5 = vld [vmem:[#allocation4 + $0x1f8] sm:$0xff] }
 0xeb7   :  { %v5904_v30 = vld [vmem:[#allocation4 + $0xb0] sm:$0xff]  ;;  %v5949_v54 = vld [vmem:[#allocation4 + $0x218] sm:$0xff]  ;;  %v5903_v13 = vld [vmem:[#allocation4 + $0xa8] sm:$0xff] }
 0xeb8   :  { %5959 = vmatpush1.bf16.msra.mxu0 %v5888_v24  ;;  %v5948_v3 = vld [vmem:[#allocation4 + $0x210] sm:$0xff]  ;;  %v5907_v55 = vld [vmem:[#allocation4 + $0xc8] sm:$0xff]  ;;  %v5906_v27 = vld [vmem:[#allocation4 + $0xc0] sm:$0xff] }
 0xeb9   :  { %5960 = vmatprep.subr.bf16.mxu0 %v5892_v50  ;;  %6000 = vmatpush1.bf16.msra.mxu1 %v5936_v34  ;;  %v5952_v53 = vld [vmem:[#allocation4 + $0x230] sm:$0xff]  ;;  %v5951_v28 = vld [vmem:[#allocation4 + $0x228] sm:$0xff]  ;;  %v5910_v43 = vld [vmem:[#allocation4 + $0xe0] sm:$0xff] }
 0xeba   :  { %6001 = vmatprep.subr.bf16.mxu1 %v5940_v23  ;;  %v5908_v49 = vld [vmem:[#allocation4 + $0xd0] sm:$0xff]  ;;  %v5909_v16 = vld [vmem:[#allocation4 + $0xd8] sm:$0xff]  ;;  %v5911_v31 = vld [vmem:[#allocation4 + $0xe8] sm:$0xff] }
 0xebb   :  { %v5884_v45 = vld [vmem:[#allocation4 + $0x10] sm:$0xff]  ;;  %v5913_v22 = vld [vmem:[#allocation4 + $0xf8] sm:$0xff]  ;;  %v5887_v56 = vld [vmem:[#allocation4 + $0x28] sm:$0xff] }
 0xebc   :  { %5961 = vmatpush1.bf16.msra.mxu0 %v5891_v39  ;;  %v5912_v14 = vld [vmem:[#allocation4 + $0xf0] sm:$0xff]  ;;  %v5914_v32 = vld [vmem:[#allocation4 + $0x100] sm:$0xff]  ;;  %v5915_v9 = vld [vmem:[#allocation4 + $0x108] sm:$0xff] }
 0xebd   :  { %5962 = vmatprep.subr.bf16.mxu0 %v5895_v7  ;;  %6002 = vmatpush1.bf16.msra.mxu1 %v5939_v41  ;;  %v5916_v37 = vld [vmem:[#allocation4 + $0x110] sm:$0xff]  ;;  %v5890_v60 = vld [vmem:[#allocation4 + $0x40] sm:$0xff]  ;;  %v5919_v12 = vld [vmem:[#allocation4 + $0x128] sm:$0xff] }
 0xebe   :  { %6003 = vmatprep.subr.bf16.mxu1 %v5943_v40  ;;  %v5917_v61 = vld [vmem:[#allocation4 + $0x118] sm:$0xff]  ;;  %v5918_v4 = vld [vmem:[#allocation4 + $0x120] sm:$0xff]  ;;  %v5920_v48 = vld [vmem:[#allocation4 + $0x130] sm:$0xff] }
 0xebf   :  { %v5893_v59 = vld [vmem:[#allocation4 + $0x58] sm:$0xff]  ;;  %v5922_v10 = vld [vmem:[#allocation4 + $0x140] sm:$0xff]  ;;  %v5896_v33 = vld [vmem:[#allocation4 + $0x70] sm:$0xff] }
 0xec0   :  { %5963 = vmatpush1.bf16.msra.mxu0 %v5894_v38  ;;  %v5921_v0 = vld [vmem:[#allocation4 + $0x138] sm:$0xff]  ;;  %v5923_v52 = vld [vmem:[#allocation4 + $0x148] sm:$0xff]  ;;  %v5924_v29 = vld [vmem:[#allocation4 + $0x150] sm:$0xff] }
 0xec1   :  { %5964 = vmatprep.subr.bf16.mxu0 %v5898_v51  ;;  %6004 = vmatpush1.bf16.msra.mxu1 %v5942_v15  ;;  %v5925_v25 = vld [vmem:[#allocation4 + $0x158] sm:$0xff]  ;;  %v5899_v35 = vld [vmem:[#allocation4 + $0x88] sm:$0xff]  ;;  %v5928_v18 = vld [vmem:[#allocation4 + $0x170] sm:$0xff] }
 0xec2   :  { %6005 = vmatprep.subr.bf16.mxu1 %v5946_v26  ;;  %v5927_v63 = vld [vmem:[#allocation4 + $0x168] sm:$0xff]  ;;  %v5902_v2 = vld [vmem:[#allocation4 + $0xa0] sm:$0xff]  ;;  %v5929_v36 = vld [vmem:[#allocation4 + $0x178] sm:$0xff] }
 0xec3   :  { %v5932_v57 = vld [vmem:[#allocation4 + $0x190] sm:$0xff]  ;;  %v5905_v47 = vld [vmem:[#allocation4 + $0xb8] sm:$0xff]  ;;  %v5935_v58 = vld [vmem:[#allocation4 + $0x1a8] sm:$0xff] }
 0xec4   :  { %5965 = vmatpush1.bf16.msra.mxu0 %v5897_v21  ;;  %v5938_v1 = vld [vmem:[#allocation4 + $0x1c0] sm:$0xff]  ;;  %v5941_v24 = vld [vmem:[#allocation4 + $0x1d8] sm:$0xff]  ;;  %v5944_v17 = vld [vmem:[#allocation4 + $0x1f0] sm:$0xff] }
 0xec5   :  { %5966 = vmatprep.subr.bf16.mxu0 %v5901_v19  ;;  %6006 = vmatpush1.bf16.msra.mxu1 %v5945_v5  ;;  %v5947_v50 = vld [vmem:[#allocation4 + $0x208] sm:$0xff]  ;;  %v5950_v42 = vld [vmem:[#allocation4 + $0x220] sm:$0xff]  ;;  %v5953_v39 = vld [vmem:[#allocation4 + $0x238] sm:$0xff] }
 0xec6   :  { %6007 = vmatprep.subr.bf16.mxu1 %v5949_v54  ;;  %v6116_v41 = vld [vmem:[%s12678_s8] sm:$0x7]  ;;  %v14780_v40 = vld [vmem:[#allocation100_spill] sm:$0xff]  ;;  %v14781_v15 = vld [vmem:[#allocation23_spill] sm:$0xff]  ;;  %s8179_s8 = smov [#allocation12]  }
 0xec7   :  { %v6121_v19 = vrot.slane %v6116_v41, %v14781_v15  ;;  %v14783_v5 = vld [vmem:[#allocation24_spill] sm:$0xff]  ;;  %s6148_s20 = sshll.u32 %s8179_s8, 4  ;;  %s6149_s20 = int_to_ptr.vmem [resolvable:$true] %s6148_s20 }
 0xec8   :  { %5967 = vmatpush1.bf16.msra.mxu0 %v5900_v46  ;;  %v14782_v46 = vld [vmem:[#allocation101_spill] sm:$0xff]  ;;  %s8123_s30 = scalar_lea.vmem %s6149_s20, 384  ;;  %p8128_p11 = scmp.lt.s32.totalorder %s6149_s20, %s6149_s20 }
 0xec9   :  { %5968 = vmatprep.subr.bf16.mxu0 %v5904_v30  ;;  %6008 = vmatpush1.bf16.msra.mxu1 %v5948_v3  ;;  %v6125_v30 = vrot.slane %v6116_v41, %v14783_v5  ;;  %p8124_p10 = scmp.ne.s32.totalorder %s6149_s20, %s8123_s30  ;;  %p8129_p12 = scmp.lt.s32.totalorder %s8123_s30, %s8123_s30 }
 0xeca   :  { %6009 = vmatprep.subr.bf16.mxu1 %v5952_v53 }
 0xecb   :  { %p8130_p13 = por %p8129_p12, %p8128_p11 }
 0xecc   :  { %5969 = vmatpush1.bf16.msra.mxu0 %v5903_v13 }
 0xecd   :  { %5970 = vmatprep.subr.bf16.mxu0 %v5907_v55  ;;  %6010 = vmatpush1.bf16.msra.mxu1 %v5951_v28  ;;  %p8131_p0 = pnand %p8130_p13, %p8124_p10 }
 0xece   :  { %6645 = vmatprep.subr.bf16.mxu1 %v5908_v49 }
 0xed0   :  { %5971 = vmatpush1.bf16.msra.mxu0 %v5906_v27  ;;  %6028 = vmatmul.mubr.bf16.vlgmr.msra.gmra.mrb[180].mxu1 %v12633_v6 }
 0xed1   :  { %5972 = vmatprep.subr.bf16.mxu0 %v5910_v43  ;;  %6646 = vmatpush3.bf16.msra.mxu1 %v5884_v45 }
 0xed2   :  { %6647 = vmatprep.subr.bf16.mxu1 %v5911_v31  ;;  %6068 = vmatprep.mubr.bf16.mxu1 %v12629_v11  ;;  %v5926_v11 = vld [vmem:[#allocation4 + $0x160] sm:$0xff] }
 0xed4   :  { %5973 = vmatpush1.bf16.msra.mxu0 %v5909_v16 }
 0xed5   :  { %5974 = vmatprep.subr.bf16.mxu0 %v5913_v22  ;;  %6648 = vmatpush3.bf16.msra.mxu1 %v5887_v56  ;;  %v14784_v22 = vld [vmem:[#allocation102_spill] sm:$0xff] }
 0xed6   :  { %6649 = vmatprep.subr.bf16.mxu1 %v5914_v32 }
 0xed8   :  { %5975 = vmatpush1.bf16.msra.mxu0 %v5912_v14  ;;  %v14785_v14 = vld [vmem:[#allocation22_spill] sm:$0xff] }
 0xed9   :  { %5976 = vmatprep.subr.bf16.mxu0 %v5916_v37  ;;  %6650 = vmatpush3.bf16.msra.mxu1 %v5890_v60  ;;  %v6129_v56 = vrot.slane %v6116_v41, %v14785_v14 }
 0xeda   :  { %6651 = vmatprep.subr.bf16.mxu1 %v5917_v61 }
 0xedc   :  { %5977 = vmatpush1.bf16.msra.mxu0 %v5915_v9 }
 0xedd   :  { %5978 = vmatprep.subr.bf16.mxu0 %v5919_v12  ;;  %6652 = vmatpush3.bf16.msra.mxu1 %v5893_v59 }
 0xede   :  { %6653 = vmatprep.subr.bf16.mxu1 %v5920_v48 }
 0xee0   :  { %5979 = vmatpush1.bf16.msra.mxu0 %v5918_v4 }
 0xee1   :  { %5980 = vmatprep.subr.bf16.mxu0 %v5922_v10  ;;  %6654 = vmatpush3.bf16.msra.mxu1 %v5896_v33 }
 0xee2   :  { %6655 = vmatprep.subr.bf16.mxu1 %v5923_v52 }
 0xee4   :  { %5981 = vmatpush1.bf16.msra.mxu0 %v5921_v0 }
 0xee5   :  { %5982 = vmatprep.subr.bf16.mxu0 %v5925_v25  ;;  %6656 = vmatpush3.bf16.msra.mxu1 %v5899_v35 }
 0xee6   :  { %6657 = vmatprep.subr.bf16.mxu1 %v5926_v11 }
 0xee8   :  { %5983 = vmatpush1.bf16.msra.mxu0 %v5924_v29 }
 0xee9   :  { %5984 = vmatprep.subr.bf16.mxu0 %v5928_v18  ;;  %6658 = vmatpush3.bf16.msra.mxu1 %v5902_v2 }
 0xeea   :  { %6659 = vmatprep.subr.bf16.mxu1 %v5929_v36 }
 0xeec   :  { %5985 = vmatpush1.bf16.msra.mxu0 %v5927_v63 }
 0xeed   :  { %6872 = vmatprep.subr.bf16.mxu0 %v13420_v8  ;;  %6660 = vmatpush3.bf16.msra.mxu1 %v5905_v47 }
 0xeef   :  { %5987 = vmatmul.mubr.bf16.vlgmr.msra.gmra.mrb[152].mxu0 %v5879_v20 }
 0xef0   :  { %6873 = vmatpush3.bf16.msra.mxu0 %v5932_v57  ;;  %6888 = vmatprep.mubr.msk.bf16.mxu0 %vm8178_vm1, %v13420_v8 }
 0xef1   :  { %6874 = vmatprep.subr.bf16.mxu0 %v13420_v8  ;;  %6069 = vmatmul.mubr.bf16.vlgmr.msra.gmra.mrb[184].mxu1 %v5879_v20 }
 0xef4   :  { %6875 = vmatpush3.bf16.msra.mxu0 %v5935_v58 }
 0xef5   :  { %6876 = vmatprep.subr.bf16.mxu0 %v13420_v8 }
 0xef8   :  { %6877 = vmatpush3.bf16.msra.mxu0 %v5938_v1 }
 0xef9   :  { %6878 = vmatprep.subr.bf16.mxu0 %v13420_v8 }
 0xefc   :  { %6879 = vmatpush3.bf16.msra.mxu0 %v5941_v24 }
 0xefd   :  { %6880 = vmatprep.subr.bf16.mxu0 %v13420_v8 }
 0xf00   :  { %6881 = vmatpush3.bf16.msra.mxu0 %v5944_v17 }
 0xf01   :  { %6882 = vmatprep.subr.bf16.mxu0 %v13420_v8 }
 0xf04   :  { %6883 = vmatpush3.bf16.msra.mxu0 %v5947_v50 }
 0xf05   :  { %6884 = vmatprep.subr.bf16.mxu0 %v13420_v8 }
 0xf08   :  { %6885 = vmatpush3.bf16.msra.mxu0 %v5950_v42 }
 0xf09   :  { %6886 = vmatprep.subr.bf16.mxu0 %v13420_v8 }
 0xf0c   :  { %6887 = vmatpush3.bf16.msra.mxu0 %v5953_v39 }
 0xf0f   :  { %6889 = vmatmul.mubr.bf16.vlgmr.msra.gmra.mrb[156].mxu0 %v12633_v6 }
 0xfa3   :  { %v6029_v34 = vpop.f32.mrb[180].mxu1 }
 0xfa4   :  { %v6031_v7 = vpop.f32.mrb[181].mxu1 }
 0xfa5   :  { %v6033_v23 = vpop.f32.mrb[182].mxu1 }
 0xfa6   :  { %v6034_v38 = vpop.f32.mrb[183].mxu1 }
 0xfc2   :  { %v5988_v51 = vpop.f32.mrb[152].mxu0 }
 0xfc3   :  { %v5989_v21 = vadd.f32 %v5988_v51, %v14780_v40  ;;  %v5990_v26 = vpop.f32.mrb[153].mxu0 }
 0xfc4   :  { %v5991_v8 = vadd.f32 %v5990_v26, %v14782_v46  ;;  %v5992_v54 = vpop.f32.mrb[154].mxu0  ;;  %v6661_v53 = vpop.f32.mrb[184].mxu1 }
 0xfc5   :  { %v6030_v13 = vadd.f32 %v6029_v34, %v5989_v21  ;;  %v5993_v3 = vpop.f32.mrb[155].mxu0  ;;  %v6662_v27 = vpop.f32.mrb[185].mxu1 }
 0xfc6   :  { %v6032_v55 = vadd.f32 %v6031_v7, %v5991_v8  ;;  %v6663_v43 = vadd.f32 %v6662_v27, %v6661_v53  ;;  %v6664_v49 = vpop.f32.mrb[186].mxu1 }
 0xfc7   :  { %v6133_v62 = vadd.f32 %v6121_v19, %v6030_v13  ;;  %v6665_v16 = vpop.f32.mrb[187].mxu1 }
 0xfc8   :  { %v6134_v28 = vadd.f32 %v6125_v30, %v6032_v55  ;;  %v6071_v31 = vadd.f32 %v6663_v43, %v14784_v22 }
 0xfc9   :  { %v6136_v6 = vmax.f32 %v6133_v62, 0.0 }
 0xfca   :  { %v6137_v45 = vmax.f32 %v6134_v28, 0.0 }
 0xfcb   :  { %6139 = vst [vmem:[#allocation12] sm:$0xff] %v6136_v6 }
 0xfcc   :  { %6140 = vst [vmem:[#allocation12 + $0x8] sm:$0xff] %v6137_v45 }
 0xfe2   :  { %v6110_v37 = vpop.f32.mrb[156].mxu0 }
 0xfe3   :  { %v6111_v32 = vadd.f32 %v6110_v37, %v6071_v31  ;;  %v6890_v9 = vpop.f32.mrb[157].mxu0 }
 0xfe4   :  { %v6113_v60 = vpop.f32.mrb[158].mxu0 }
 0xfe5   :  { %v6135_v12 = vadd.f32 %v6129_v56, %v6111_v32  ;;  %v6891_v61 = vpop.f32.mrb[159].mxu0 }
 0xfe7   :  { %v6138_v4 = vmax.f32 %v6135_v12, 0.0 }
 0xfe9   :  { %6141 = vst [vmem:[#allocation12 + $0x10] sm:$0xff] %v6138_v4 }
 0xfea   :  { %8134 = shalt.err (!%p8131_p0)
}
 0xfeb   :  { %s8135_s21 = scalar_lea.hbm %s12681_s11, 384 }
 0xfec   :  { %p8136_p1 = scmp.ne.s32.totalorder %s12681_s11, %s8135_s21  ;;  %p8139_p2 = scmp.lt.u32.totalorder %s8135_s21, %s12681_s11 }
 0xfee   :  { %p8141_p3 = pnand %p8139_p2, %p8136_p1 }
 0xff0   :  { %8144 = shalt.err (!%p8141_p3)
}
 0xff1   :  { %6151 = dma.vmem_to_hbm [thread:$0]  %s6149_s20, 384, %s12681_s11, [#allocation8]  }
 0xff2   :  { %8153 = dma.done.wait [#allocation8], 384  }
 0xff3   :  { %8154 = vsyncadd [#allocation8], 4294966912 }
 0xff4   :  { %6155 = vsyncpa [#allocation7], 1 }
 0xff5   :  { %6156 = vsyncpa [#allocation10], 1 }
 0xff6   :  { %6157 = vsyncpa [#allocation8], 1 }
 0xff7   :  { %6158 = vsyncmov [#allocation5] }
 0xffa   :  { %s6159_s7 = vpop.sfrf %6158 }
 0xffb   :  { %p6357_p4 = scmp.ne.s32.totalorder %s6159_s7, 0 }
 0xffd   :  { %6163 = shalt.err (%p6357_p4)  }
 0xffe   :  { %6165 = vsyncmov [#allocation5 + $0x1] }
0x1001   :  { %s6166_s18 = vpop.sfrf %6165 }
0x1002   :  { %p6358_p5 = scmp.ne.s32.totalorder %s6166_s18, 0 }
0x1004   :  { %6170 = shalt.err (%p6358_p5)  }

</bundles_post_ra>
